<compile_context>
chip_gen: v7x
topology: tpu7x:2x2x1
jax: 0.10.0
libtpu: 0.0.40
codegen_flags: <defaults>
</compile_context>

<pallas_src>
import functools

import jax
import jax.numpy as jnp
from jax.experimental import pallas as pl
from jax.experimental.pallas import tpu as pltpu


DILATIONS = (3, 5, 7)
PAD = max(DILATIONS)          # pad once with the max dilation; slice per branch


# ----------------------------------------------------------------------------
# Fused kernel: grid=(3,) over {dilated conv k -> nonlocal block k -> its slice
# of the final 1x1 output conv}.  k==0 additionally folds in the image-pool and
# atrous_block1 branches plus the output-conv bias.  Each step writes its own
# partial (parallel-friendly); wrapper sums the three partials.
# ----------------------------------------------------------------------------
def _aspp_nonlocal_kernel(
        x_ref, col_ref,
        w_img_ref, b_img_ref, w_ab1_ref, b_ab1_ref,
        wd_ref, bd_ref,
        wg_ref, bg_ref, wtp_ref, btp_ref, wW_ref, bW_ref, gamma_ref, beta_ref,
        wo_img_ref, wo_ab1_ref, wo_nl_ref, bo_ref,
        o_ref):
    k = pl.program_id(0)
    N, HW, C = x_ref.shape
    Ci = C // 2
    NHW = N * HW

    # ---- dilated 3x3 conv (branch k): ONE (NHW, 9C) @ (9C, C) bf16 matmul ----
    conv = (jnp.dot(col_ref[0], wd_ref[0],
                    preferred_element_type=jnp.float32) + bd_ref[0])   # (NHW, C) f32
    conv_bf = conv.astype(jnp.bfloat16)

    # ---- nonlocal block k: g (separate) + fused theta|phi 1x1 projections ----
    g = (jnp.dot(conv_bf, wg_ref[0], preferred_element_type=jnp.float32)
         + bg_ref[0]).reshape(N, HW, Ci)
    tp = (jnp.dot(conv_bf, wtp_ref[0], preferred_element_type=jnp.float32)
          + btp_ref[0])                                                 # (NHW, 2Ci)
    th = tp[:, :Ci].astype(jnp.bfloat16).reshape(N, HW, Ci)
    ph = tp[:, Ci:].astype(jnp.bfloat16).reshape(N, HW, Ci)

    # attention: contract on the channel axis directly (no transpose of phi)
    f = jnp.einsum('bqc,bkc->bqk', th, ph,
                   preferred_element_type=jnp.float32)                  # (N, HW, HW)
    f = f - jnp.max(f, axis=-1, keepdims=True)                          # stable softmax
    p = jnp.exp(f)
    p = p * pl.reciprocal(jnp.sum(p, axis=-1, keepdims=True), approx=False)
    y = jnp.einsum('bqk,bkc->bqc', p.astype(jnp.bfloat16),
                   g.astype(jnp.bfloat16),
                   preferred_element_type=jnp.float32)                  # (N, HW, Ci)

    # W projection + BatchNorm2d (training-mode batch stats, biased var, eps=1e-5)
    wy = (jnp.dot(y.reshape(NHW, Ci).astype(jnp.bfloat16), wW_ref[0],
                  preferred_element_type=jnp.float32) + bW_ref[0])      # (NHW, C)
    mean = jnp.mean(wy, axis=0, keepdims=True)
    var = jnp.mean(jnp.square(wy - mean), axis=0, keepdims=True)
    wy = (wy - mean) * jax.lax.rsqrt(var + 1e-5) * gamma_ref[0] + beta_ref[0]
    z = wy + conv                                                       # residual

    # ---- this block's slice of the final 1x1 output conv -> own partial ----
    part = jnp.dot(z.astype(jnp.bfloat16), wo_nl_ref[0],
                   preferred_element_type=jnp.float32)                  # (NHW, C)
    o_ref[0] = part.reshape(N, HW, C)

    # ---- image-pool + atrous_block1 branches + output bias folded in at k==0
    @pl.when(k == 0)
    def _():
        x3 = x_ref[...]                                                 # (N, HW, C) f32
        x2 = x3.reshape(NHW, C).astype(jnp.bfloat16)
        # AdaptiveAvgPool2d((1,1)) per image; bilinear upsample from 1x1 == broadcast
        pooled = jnp.concatenate(
            [jnp.mean(x3[b], axis=0, keepdims=True) for b in range(N)], axis=0)  # (N, C)
        img = (jnp.dot(pooled.astype(jnp.bfloat16), w_img_ref[...],
                       preferred_element_type=jnp.float32) + b_img_ref[...])     # (N, C)
        ab1 = (jnp.dot(x2, w_ab1_ref[...],
                       preferred_element_type=jnp.float32) + b_ab1_ref[...])     # (NHW, C)
        # [img | ab1] @ Wa  split into two matmuls (no lane concat needed)
        base_img = jnp.dot(img.astype(jnp.bfloat16), wo_img_ref[...],
                           preferred_element_type=jnp.float32)                   # (N, C)
        base = (jnp.dot(ab1.astype(jnp.bfloat16), wo_ab1_ref[...],
                        preferred_element_type=jnp.float32)
                + bo_ref[...]).reshape(N, HW, C)
        o_ref[0] = (o_ref[0] + base
                    + jnp.broadcast_to(base_img.reshape(N, 1, C), (N, HW, C)))


# ----------------------------------------------------------------------------
# Forward pass wrapper: layout plumbing (NCHW<->NHWC, im2col, weight packing)
# + one pallas_call + a trivial XLA sum of the 3 partials.
# ----------------------------------------------------------------------------
def aspp_nonlocal(x_nchw, params):
    N, C, H, W = x_nchw.shape
    HW = H * W
    NHW = N * HW
    Ci = C // 2

    x = jnp.transpose(x_nchw, (0, 2, 3, 1)).astype(jnp.float32)         # NHWC
    xp = jnp.pad(x, ((0, 0), (PAD, PAD), (PAD, PAD), (0, 0)))
    x_flat = x.reshape(N, HW, C)

    # ---- im2col slabs per dilation (wrapper-side layout plumbing, bf16) -----
    def im2col(d):
        patches = []
        for ky in range(3):
            for kx in range(3):
                y0 = PAD + (ky - 1) * d
                x0 = PAD + (kx - 1) * d
                patches.append(xp[:, y0:y0 + H, x0:x0 + W, :])
        return jnp.stack(patches, axis=3).reshape(NHW, 9 * C)           # (NHW, 9C)

    col = jnp.stack([im2col(d) for d in DILATIONS]).astype(jnp.bfloat16)  # (3, NHW, 9C)

    bf = lambda a: a.astype(jnp.bfloat16)
    f32 = lambda a: a.astype(jnp.float32)

    # ---- pack weights into matmul layout (tiny, one-time) -------------------
    w_img = bf(params["conv_w"].T)                                      # (C, C)
    b_img = f32(params["conv_b"]).reshape(1, C)
    w_ab1 = bf(params["ab1_w"].T)                                       # (C, C)
    b_ab1 = f32(params["ab1_b"]).reshape(1, C)

    wd = jnp.stack([bf(jnp.transpose(params[f"ab{d}_w"], (2, 3, 1, 0)).reshape(9 * C, C))
                    for d in DILATIONS])                                # (3, 9C, C)
    bd = jnp.stack([f32(params[f"ab{d}_b"]).reshape(1, C) for d in DILATIONS])

    nls = [params[f"nl{d}"] for d in DILATIONS]
    wg = jnp.stack([bf(p["g_w"].T) for p in nls])                       # (3, C, Ci)
    bg = jnp.stack([f32(p["g_b"]).reshape(1, Ci) for p in nls])
    wtp = jnp.stack([bf(jnp.concatenate([p["theta_w"].T, p["phi_w"].T], axis=1))
                     for p in nls])                                     # (3, C, 2Ci)
    btp = jnp.stack([f32(jnp.concatenate([p["theta_b"], p["phi_b"]])).reshape(1, 2 * Ci)
                     for p in nls])
    wW = jnp.stack([bf(p["W_w"].T) for p in nls])                       # (3, Ci, C)
    bW = jnp.stack([f32(p["W_b"]).reshape(1, C) for p in nls])
    gamma = jnp.stack([f32(p["bn_gamma"]).reshape(1, C) for p in nls])
    beta = jnp.stack([f32(p["bn_beta"]).reshape(1, C) for p in nls])

    wout_t = params["out_w"].T                                          # (5C, C)
    wo_img = bf(wout_t[:C])                                             # image-pool part
    wo_ab1 = bf(wout_t[C:2 * C])                                        # atrous_block1 part
    wo_nl = jnp.stack([bf(wout_t[2 * C + i * C: 2 * C + (i + 1) * C])
                       for i in range(3)])                              # (3, C, C)
    bo = f32(params["out_b"]).reshape(1, C)

    # ---- advisory cost estimate (latency-bound workload) --------------------
    per_block_flops = (2 * NHW * (9 * C) * C          # dilated conv
                       + 2 * NHW * C * (3 * Ci)       # g + theta|phi projections
                       + 4 * N * HW * HW * Ci         # theta.phi^T and p.g
                       + 2 * NHW * Ci * C             # W projection
                       + 2 * NHW * C * C)             # output-conv slice
    base_flops = 4 * NHW * C * C + 4 * N * C * C
    weight_bytes = ((wd.size + wg.size + wtp.size + wW.size + wo_nl.size
                     + w_img.size + w_ab1.size + wo_img.size + wo_ab1.size) * 2
                    + (bd.size + bg.size + btp.size + bW.size + gamma.size
                       + beta.size + b_img.size + b_ab1.size + bo.size) * 4)
    cost = pl.CostEstimate(
        flops=3 * per_block_flops + base_flops,
        transcendentals=3 * N * HW * HW,
        bytes_accessed=col.size * 2 + 3 * x_flat.size * 4 + 3 * weight_bytes
                       + 3 * NHW * C * 4)

    # ---- single fused launch, grid over the 3 branches ("parallel") ---------
    partials = pl.pallas_call(
        _aspp_nonlocal_kernel,
        out_shape=jax.ShapeDtypeStruct((3, N, HW, C), jnp.float32),
        grid_spec=pltpu.PrefetchScalarGridSpec(
            num_scalar_prefetch=0,
            grid=(3,),
            in_specs=[
                pl.BlockSpec((N, HW, C), lambda k: (0, 0, 0)),           # x
                pl.BlockSpec((1, NHW, 9 * C), lambda k: (k, 0, 0)),      # im2col slab
                pl.BlockSpec((C, C), lambda k: (0, 0)),                  # w_img
                pl.BlockSpec((1, C), lambda k: (0, 0)),                  # b_img
                pl.BlockSpec((C, C), lambda k: (0, 0)),                  # w_ab1
                pl.BlockSpec((1, C), lambda k: (0, 0)),                  # b_ab1
                pl.BlockSpec((1, 9 * C, C), lambda k: (k, 0, 0)),        # wd
                pl.BlockSpec((1, 1, C), lambda k: (k, 0, 0)),            # bd
                pl.BlockSpec((1, C, Ci), lambda k: (k, 0, 0)),           # wg
                pl.BlockSpec((1, 1, Ci), lambda k: (k, 0, 0)),           # bg
                pl.BlockSpec((1, C, 2 * Ci), lambda k: (k, 0, 0)),       # wtp
                pl.BlockSpec((1, 1, 2 * Ci), lambda k: (k, 0, 0)),       # btp
                pl.BlockSpec((1, Ci, C), lambda k: (k, 0, 0)),           # wW
                pl.BlockSpec((1, 1, C), lambda k: (k, 0, 0)),            # bW
                pl.BlockSpec((1, 1, C), lambda k: (k, 0, 0)),            # gamma
                pl.BlockSpec((1, 1, C), lambda k: (k, 0, 0)),            # beta
                pl.BlockSpec((C, C), lambda k: (0, 0)),                  # wo_img
                pl.BlockSpec((C, C), lambda k: (0, 0)),                  # wo_ab1
                pl.BlockSpec((1, C, C), lambda k: (k, 0, 0)),            # wo_nl
                pl.BlockSpec((1, C), lambda k: (0, 0)),                  # bo
            ],
            # each k writes its own partial block -> parallel-safe on v7x megacore
            out_specs=pl.BlockSpec((1, N, HW, C), lambda k: (k, 0, 0, 0))),
        compiler_params=pltpu.CompilerParams(
            dimension_semantics=("parallel",)),
        cost_estimate=cost,
    )(x_flat, col, w_img, b_img, w_ab1, b_ab1, wd, bd,
      wg, bg, wtp, btp, wW, bW, gamma, beta, wo_img, wo_ab1, wo_nl, bo)

    out = jnp.sum(partials, axis=0).reshape(N, H, W, C)
    return jnp.transpose(out, (0, 3, 1, 2))                             # back to NCHW


# ----------------------------------------------------------------------------
# Deterministic synthetic parameters (shapes/inits from the module's __init__)
# ----------------------------------------------------------------------------
def _normal(key, shape, std):
    return std * jax.random.normal(key, shape, dtype=jnp.float32)


def init_nonlocal_params(key, in_channels=64):
    inter = in_channels // 2
    k = jax.random.split(key, 5)
    return dict(
        g_w=_normal(k[0], (inter, in_channels), 0.01),
        g_b=jnp.zeros((inter,), jnp.float32),
        theta_w=_normal(k[1], (inter, in_channels), 0.01),
        theta_b=jnp.zeros((inter,), jnp.float32),
        phi_w=_normal(k[2], (inter, in_channels), 0.01),
        phi_b=jnp.zeros((inter,), jnp.float32),
        W_w=_normal(k[3], (in_channels, inter), 0.01),
        W_b=jnp.zeros((in_channels,), jnp.float32),
        bn_gamma=_normal(k[4], (in_channels,), 1.0),   # nn.init.normal_(W[1].weight, 0)
        bn_beta=jnp.zeros((in_channels,), jnp.float32),
    )


def init_params(key, in_channel=64, depth=64):
    k = jax.random.split(key, 9)
    return dict(
        conv_w=_normal(k[0], (depth, in_channel), 0.02),
        conv_b=jnp.zeros((depth,), jnp.float32),
        ab1_w=_normal(k[1], (depth, in_channel), 0.02),
        ab1_b=jnp.zeros((depth,), jnp.float32),
        ab3_w=_normal(k[2], (depth, in_channel, 3, 3), 0.02),
        ab3_b=jnp.zeros((depth,), jnp.float32),
        ab5_w=_normal(k[3], (depth, in_channel, 3, 3), 0.02),
        ab5_b=jnp.zeros((depth,), jnp.float32),
        ab7_w=_normal(k[4], (depth, in_channel, 3, 3), 0.02),
        ab7_b=jnp.zeros((depth,), jnp.float32),
        out_w=_normal(k[5], (depth, depth * 5), 0.02),
        out_b=jnp.zeros((depth,), jnp.float32),
        nl3=init_nonlocal_params(k[6], in_channel),
        nl5=init_nonlocal_params(k[7], in_channel),
        nl7=init_nonlocal_params(k[8], in_channel),
    )


if __name__ == "__main__":
    key = jax.random.PRNGKey(0)
    kx, kp = jax.random.split(key)

    # PyTorch-style NCHW input (batch=2; channels=64 required by NonlocalBlock(64)).
    x = jax.random.normal(kx, (2, 64, 16, 16), dtype=jnp.float32)
    params = init_params(kp, in_channel=64, depth=64)

    fwd = jax.jit(functools.partial(aspp_nonlocal, params=params))
    out = fwd(x)
    jax.block_until_ready(out)

    assert out.shape == (2, 64, 16, 16), out.shape
    assert jnp.all(jnp.isfinite(out))
    print("KERNEL_OK")
</pallas_src>

<mosaic_0001>
module attributes {stable_mosaic.version = 11 : i64} {
  func.func @_aspp_nonlocal_kernel(%arg0: i32, %arg1: memref<2x256x64xf32, #tpu.memory_space<vmem>>, %arg2: memref<1x512x576xbf16, #tpu.memory_space<vmem>>, %arg3: memref<64x64xbf16, #tpu.memory_space<vmem>>, %arg4: memref<1x64xf32, #tpu.memory_space<vmem>>, %arg5: memref<64x64xbf16, #tpu.memory_space<vmem>>, %arg6: memref<1x64xf32, #tpu.memory_space<vmem>>, %arg7: memref<1x576x64xbf16, #tpu.memory_space<vmem>>, %arg8: memref<1x1x64xf32, #tpu.memory_space<vmem>>, %arg9: memref<1x64x32xbf16, #tpu.memory_space<vmem>>, %arg10: memref<1x1x32xf32, #tpu.memory_space<vmem>>, %arg11: memref<1x64x64xbf16, #tpu.memory_space<vmem>>, %arg12: memref<1x1x64xf32, #tpu.memory_space<vmem>>, %arg13: memref<1x32x64xbf16, #tpu.memory_space<vmem>>, %arg14: memref<1x1x64xf32, #tpu.memory_space<vmem>>, %arg15: memref<1x1x64xf32, #tpu.memory_space<vmem>>, %arg16: memref<1x1x64xf32, #tpu.memory_space<vmem>>, %arg17: memref<64x64xbf16, #tpu.memory_space<vmem>>, %arg18: memref<64x64xbf16, #tpu.memory_space<vmem>>, %arg19: memref<1x64x64xbf16, #tpu.memory_space<vmem>>, %arg20: memref<1x64xf32, #tpu.memory_space<vmem>>, %arg21: memref<1x2x256x64xf32, #tpu.memory_space<vmem>>) attributes {dimension_semantics = [#tpu.dimension_semantics<parallel>], iteration_bounds = array<i64: 3>, scalar_prefetch = 0 : i64, scratch_operands = 0 : i64, tpu.core_type = #tpu.core_type<tc>, window_params = [{pipeline_mode = #tpu.pipeline_mode<synchronous>, transform_indices = @transform_0, window_bounds = array<i64: 2, 256, 64>}, {transform_indices = @transform_1, window_bounds = array<i64: 1, 512, 576>}, {pipeline_mode = #tpu.pipeline_mode<synchronous>, transform_indices = @transform_2, window_bounds = array<i64: 64, 64>}, {pipeline_mode = #tpu.pipeline_mode<synchronous>, transform_indices = @transform_3, window_bounds = array<i64: 1, 64>}, {pipeline_mode = #tpu.pipeline_mode<synchronous>, transform_indices = @transform_4, window_bounds = array<i64: 64, 64>}, {pipeline_mode = #tpu.pipeline_mode<synchronous>, transform_indices = @transform_5, window_bounds = array<i64: 1, 64>}, {transform_indices = @transform_6, window_bounds = array<i64: 1, 576, 64>}, {transform_indices = @transform_7, window_bounds = array<i64: 1, 1, 64>}, {transform_indices = @transform_8, window_bounds = array<i64: 1, 64, 32>}, {transform_indices = @transform_9, window_bounds = array<i64: 1, 1, 32>}, {transform_indices = @transform_10, window_bounds = array<i64: 1, 64, 64>}, {transform_indices = @transform_11, window_bounds = array<i64: 1, 1, 64>}, {transform_indices = @transform_12, window_bounds = array<i64: 1, 32, 64>}, {transform_indices = @transform_13, window_bounds = array<i64: 1, 1, 64>}, {transform_indices = @transform_14, window_bounds = array<i64: 1, 1, 64>}, {transform_indices = @transform_15, window_bounds = array<i64: 1, 1, 64>}, {pipeline_mode = #tpu.pipeline_mode<synchronous>, transform_indices = @transform_16, window_bounds = array<i64: 64, 64>}, {pipeline_mode = #tpu.pipeline_mode<synchronous>, transform_indices = @transform_17, window_bounds = array<i64: 64, 64>}, {transform_indices = @transform_18, window_bounds = array<i64: 1, 64, 64>}, {pipeline_mode = #tpu.pipeline_mode<synchronous>, transform_indices = @transform_19, window_bounds = array<i64: 1, 64>}, {transform_indices = @transform_20, window_bounds = array<i64: 1, 2, 256, 64>}]} {
    %c0 = arith.constant 0 : index
    %c0_0 = arith.constant 0 : index
    %c0_1 = arith.constant 0 : index
    %0 = vector.load %arg2[%c0, %c0_0, %c0_1] : memref<1x512x576xbf16, #tpu.memory_space<vmem>>, vector<1x512x576xbf16>
    %1 = vector.shape_cast %0 : vector<1x512x576xbf16> to vector<512x576xbf16>
    %c0_2 = arith.constant 0 : index
    %c0_3 = arith.constant 0 : index
    %c0_4 = arith.constant 0 : index
    %2 = vector.load %arg7[%c0_2, %c0_3, %c0_4] : memref<1x576x64xbf16, #tpu.memory_space<vmem>>, vector<1x576x64xbf16>
    %3 = vector.shape_cast %2 : vector<1x576x64xbf16> to vector<576x64xbf16>
    %cst = arith.constant dense<0.000000e+00> : vector<512x64xf32>
    %4 = tpu.matmul %1, %3, %cst {dimension_numbers = #tpu.dot_dimension_numbers<[1], [0], [0], [1], [0, 0, 1, 1], [], []>} : vector<512x576xbf16>, vector<576x64xbf16>, vector<512x64xf32> -> vector<512x64xf32>
    %c0_5 = arith.constant 0 : index
    %c0_6 = arith.constant 0 : index
    %c0_7 = arith.constant 0 : index
    %5 = vector.load %arg8[%c0_5, %c0_6, %c0_7] : memref<1x1x64xf32, #tpu.memory_space<vmem>>, vector<1x1x64xf32>
    %6 = vector.shape_cast %5 : vector<1x1x64xf32> to vector<1x64xf32>
    %7 = vector.broadcast %6 : vector<1x64xf32> to vector<512x64xf32>
    %8 = arith.addf %4, %7 : vector<512x64xf32>
    %9 = arith.truncf %8 : vector<512x64xf32> to vector<512x64xbf16>
    %c0_8 = arith.constant 0 : index
    %c0_9 = arith.constant 0 : index
    %c0_10 = arith.constant 0 : index
    %10 = vector.load %arg9[%c0_8, %c0_9, %c0_10] : memref<1x64x32xbf16, #tpu.memory_space<vmem>>, vector<1x64x32xbf16>
    %11 = vector.shape_cast %10 : vector<1x64x32xbf16> to vector<64x32xbf16>
    %cst_11 = arith.constant dense<0.000000e+00> : vector<512x32xf32>
    %12 = tpu.matmul %9, %11, %cst_11 {dimension_numbers = #tpu.dot_dimension_numbers<[1], [0], [0], [1], [0, 0, 1, 1], [], []>} : vector<512x64xbf16>, vector<64x32xbf16>, vector<512x32xf32> -> vector<512x32xf32>
    %c0_12 = arith.constant 0 : index
    %c0_13 = arith.constant 0 : index
    %c0_14 = arith.constant 0 : index
    %13 = vector.load %arg10[%c0_12, %c0_13, %c0_14] : memref<1x1x32xf32, #tpu.memory_space<vmem>>, vector<1x1x32xf32>
    %14 = vector.shape_cast %13 : vector<1x1x32xf32> to vector<1x32xf32>
    %15 = vector.broadcast %14 : vector<1x32xf32> to vector<512x32xf32>
    %16 = arith.addf %12, %15 : vector<512x32xf32>
    %17 = vector.shape_cast %16 : vector<512x32xf32> to vector<2x256x32xf32>
    %c0_15 = arith.constant 0 : index
    %c0_16 = arith.constant 0 : index
    %c0_17 = arith.constant 0 : index
    %18 = vector.load %arg11[%c0_15, %c0_16, %c0_17] : memref<1x64x64xbf16, #tpu.memory_space<vmem>>, vector<1x64x64xbf16>
    %19 = vector.shape_cast %18 : vector<1x64x64xbf16> to vector<64x64xbf16>
    %cst_18 = arith.constant dense<0.000000e+00> : vector<512x64xf32>
    %20 = tpu.matmul %9, %19, %cst_18 {dimension_numbers = #tpu.dot_dimension_numbers<[1], [0], [0], [1], [0, 0, 1, 1], [], []>} : vector<512x64xbf16>, vector<64x64xbf16>, vector<512x64xf32> -> vector<512x64xf32>
    %c0_19 = arith.constant 0 : index
    %c0_20 = arith.constant 0 : index
    %c0_21 = arith.constant 0 : index
    %21 = vector.load %arg12[%c0_19, %c0_20, %c0_21] : memref<1x1x64xf32, #tpu.memory_space<vmem>>, vector<1x1x64xf32>
    %22 = vector.shape_cast %21 : vector<1x1x64xf32> to vector<1x64xf32>
    %23 = vector.broadcast %22 : vector<1x64xf32> to vector<512x64xf32>
    %24 = arith.addf %20, %23 : vector<512x64xf32>
    %25 = vector.extract_strided_slice %24 {offsets = [0, 0], sizes = [512, 32], strides = [1, 1]} : vector<512x64xf32> to vector<512x32xf32>
    %26 = arith.truncf %25 : vector<512x32xf32> to vector<512x32xbf16>
    %27 = vector.shape_cast %26 : vector<512x32xbf16> to vector<2x256x32xbf16>
    %28 = vector.extract_strided_slice %24 {offsets = [0, 32], sizes = [512, 32], strides = [1, 1]} : vector<512x64xf32> to vector<512x32xf32>
    %29 = arith.truncf %28 : vector<512x32xf32> to vector<512x32xbf16>
    %30 = vector.shape_cast %29 : vector<512x32xbf16> to vector<2x256x32xbf16>
    "tpu.trace_start"() <{level = 10 : i32, message = "bqc,bkc->bqk"}> : () -> ()
    %cst_22 = arith.constant dense<0.000000e+00> : vector<2x256x256xf32>
    %31 = tpu.matmul %27, %30, %cst_22 {dimension_numbers = #tpu.dot_dimension_numbers<[2], [2], [1], [1], [0, 0, 0, 1, 1, 1], [0], [0]>} : vector<2x256x32xbf16>, vector<2x256x32xbf16>, vector<2x256x256xf32> -> vector<2x256x256xf32>
    "tpu.trace_stop"() : () -> ()
    %cst_23 = arith.constant dense<0xFF800000> : vector<2x256xf32>
    %32 = vector.multi_reduction <maximumf>, %31, %cst_23 [2] : vector<2x256x256xf32> to vector<2x256xf32>
    %33 = vector.shape_cast %32 : vector<2x256xf32> to vector<2x256x1xf32>
    %34 = vector.broadcast %33 : vector<2x256x1xf32> to vector<2x256x256xf32>
    %35 = arith.subf %31, %34 : vector<2x256x256xf32>
    %36 = math.exp %35 : vector<2x256x256xf32>
    %cst_24 = arith.constant dense<0.000000e+00> : vector<2x256xf32>
    %37 = vector.multi_reduction <add>, %36, %cst_24 [2] : vector<2x256x256xf32> to vector<2x256xf32>
    %38 = vector.shape_cast %37 : vector<2x256xf32> to vector<2x256x1xf32>
    %39 = tpu.reciprocal %38 : vector<2x256x1xf32> -> vector<2x256x1xf32>
    %40 = vector.broadcast %39 : vector<2x256x1xf32> to vector<2x256x256xf32>
    %41 = arith.mulf %36, %40 : vector<2x256x256xf32>
    %42 = arith.truncf %41 : vector<2x256x256xf32> to vector<2x256x256xbf16>
    %43 = arith.truncf %17 : vector<2x256x32xf32> to vector<2x256x32xbf16>
    "tpu.trace_start"() <{level = 10 : i32, message = "bqk,bkc->bqc"}> : () -> ()
    %cst_25 = arith.constant dense<0.000000e+00> : vector<2x256x32xf32>
    %44 = tpu.matmul %42, %43, %cst_25 {dimension_numbers = #tpu.dot_dimension_numbers<[2], [1], [1], [2], [0, 0, 0, 1, 1, 2], [0], [0]>} : vector<2x256x256xbf16>, vector<2x256x32xbf16>, vector<2x256x32xf32> -> vector<2x256x32xf32>
    "tpu.trace_stop"() : () -> ()
    %45 = vector.shape_cast %44 : vector<2x256x32xf32> to vector<512x32xf32>
    %46 = arith.truncf %45 : vector<512x32xf32> to vector<512x32xbf16>
    %c0_26 = arith.constant 0 : index
    %c0_27 = arith.constant 0 : index
    %c0_28 = arith.constant 0 : index
    %47 = vector.load %arg13[%c0_26, %c0_27, %c0_28] : memref<1x32x64xbf16, #tpu.memory_space<vmem>>, vector<1x32x64xbf16>
    %48 = vector.shape_cast %47 : vector<1x32x64xbf16> to vector<32x64xbf16>
    %cst_29 = arith.constant dense<0.000000e+00> : vector<512x64xf32>
    %49 = tpu.matmul %46, %48, %cst_29 {dimension_numbers = #tpu.dot_dimension_numbers<[1], [0], [0], [1], [0, 0, 1, 1], [], []>} : vector<512x32xbf16>, vector<32x64xbf16>, vector<512x64xf32> -> vector<512x64xf32>
    %c0_30 = arith.constant 0 : index
    %c0_31 = arith.constant 0 : index
    %c0_32 = arith.constant 0 : index
    %50 = vector.load %arg14[%c0_30, %c0_31, %c0_32] : memref<1x1x64xf32, #tpu.memory_space<vmem>>, vector<1x1x64xf32>
    %51 = vector.shape_cast %50 : vector<1x1x64xf32> to vector<1x64xf32>
    %52 = vector.broadcast %51 : vector<1x64xf32> to vector<512x64xf32>
    %53 = arith.addf %49, %52 : vector<512x64xf32>
    %cst_33 = arith.constant dense<0.000000e+00> : vector<64xf32>
    %54 = vector.multi_reduction <add>, %53, %cst_33 [0] : vector<512x64xf32> to vector<64xf32>
    %55 = vector.shape_cast %54 : vector<64xf32> to vector<1x64xf32>
    %cst_34 = arith.constant 5.120000e+02 : f32
    %56 = vector.broadcast %cst_34 : f32 to vector<1x64xf32>
    %57 = arith.divf %55, %56 : vector<1x64xf32>
    %58 = vector.broadcast %57 : vector<1x64xf32> to vector<512x64xf32>
    %59 = arith.subf %53, %58 : vector<512x64xf32>
    %60 = arith.mulf %59, %59 : vector<512x64xf32>
    %cst_35 = arith.constant dense<0.000000e+00> : vector<64xf32>
    %61 = vector.multi_reduction <add>, %60, %cst_35 [0] : vector<512x64xf32> to vector<64xf32>
    %62 = vector.shape_cast %61 : vector<64xf32> to vector<1x64xf32>
    %cst_36 = arith.constant 5.120000e+02 : f32
    %63 = vector.broadcast %cst_36 : f32 to vector<1x64xf32>
    %64 = arith.divf %62, %63 : vector<1x64xf32>
    %65 = vector.broadcast %57 : vector<1x64xf32> to vector<512x64xf32>
    %66 = arith.subf %53, %65 : vector<512x64xf32>
    %cst_37 = arith.constant 9.99999974E-6 : f32
    %67 = vector.broadcast %cst_37 : f32 to vector<1x64xf32>
    %68 = arith.addf %64, %67 : vector<1x64xf32>
    %69 = math.rsqrt %68 : vector<1x64xf32>
    %70 = vector.broadcast %69 : vector<1x64xf32> to vector<512x64xf32>
    %71 = arith.mulf %66, %70 : vector<512x64xf32>
    %c0_38 = arith.constant 0 : index
    %c0_39 = arith.constant 0 : index
    %c0_40 = arith.constant 0 : index
    %72 = vector.load %arg15[%c0_38, %c0_39, %c0_40] : memref<1x1x64xf32, #tpu.memory_space<vmem>>, vector<1x1x64xf32>
    %73 = vector.shape_cast %72 : vector<1x1x64xf32> to vector<1x64xf32>
    %74 = vector.broadcast %73 : vector<1x64xf32> to vector<512x64xf32>
    %75 = arith.mulf %71, %74 : vector<512x64xf32>
    %c0_41 = arith.constant 0 : index
    %c0_42 = arith.constant 0 : index
    %c0_43 = arith.constant 0 : index
    %76 = vector.load %arg16[%c0_41, %c0_42, %c0_43] : memref<1x1x64xf32, #tpu.memory_space<vmem>>, vector<1x1x64xf32>
    %77 = vector.shape_cast %76 : vector<1x1x64xf32> to vector<1x64xf32>
    %78 = vector.broadcast %77 : vector<1x64xf32> to vector<512x64xf32>
    %79 = arith.addf %75, %78 : vector<512x64xf32>
    %80 = arith.addf %79, %8 : vector<512x64xf32>
    %81 = arith.truncf %80 : vector<512x64xf32> to vector<512x64xbf16>
    %c0_44 = arith.constant 0 : index
    %c0_45 = arith.constant 0 : index
    %c0_46 = arith.constant 0 : index
    %82 = vector.load %arg19[%c0_44, %c0_45, %c0_46] : memref<1x64x64xbf16, #tpu.memory_space<vmem>>, vector<1x64x64xbf16>
    %83 = vector.shape_cast %82 : vector<1x64x64xbf16> to vector<64x64xbf16>
    %cst_47 = arith.constant dense<0.000000e+00> : vector<512x64xf32>
    %84 = tpu.matmul %81, %83, %cst_47 {dimension_numbers = #tpu.dot_dimension_numbers<[1], [0], [0], [1], [0, 0, 1, 1], [], []>} : vector<512x64xbf16>, vector<64x64xbf16>, vector<512x64xf32> -> vector<512x64xf32>
    %85 = vector.shape_cast %84 : vector<512x64xf32> to vector<2x256x64xf32>
    %c0_48 = arith.constant 0 : index
    %c0_49 = arith.constant 0 : index
    %c0_50 = arith.constant 0 : index
    %c0_51 = arith.constant 0 : index
    %86 = vector.load %arg21[%c0_48, %c0_49, %c0_50, %c0_51] : memref<1x2x256x64xf32, #tpu.memory_space<vmem>>, vector<1x2x256x64xf32>
    %87 = vector.shape_cast %86 : vector<1x2x256x64xf32> to vector<2x256x64xf32>
    %88 = vector.shape_cast %85 : vector<2x256x64xf32> to vector<1x2x256x64xf32>
    tpu.vector_store %arg21[%c0_48, %c0_49, %c0_50, %c0_51], %88 {strides = array<i32>} : memref<1x2x256x64xf32, #tpu.memory_space<vmem>>, vector<1x2x256x64xf32>,
    %c0_i32 = arith.constant 0 : i32
    %89 = arith.cmpi eq, %arg0, %c0_i32 : i32
    %90 = arith.extui %89 : i1 to i32
    %c0_i32_52 = arith.constant 0 : i32
    %91 = arith.cmpi ne, %90, %c0_i32_52 : i32
    scf.if %91 {
      %c0_53 = arith.constant 0 : index
      %c0_54 = arith.constant 0 : index
      %c0_55 = arith.constant 0 : index
      %92 = vector.load %arg1[%c0_53, %c0_54, %c0_55] : memref<2x256x64xf32, #tpu.memory_space<vmem>>, vector<2x256x64xf32>
      %93 = vector.shape_cast %92 : vector<2x256x64xf32> to vector<512x64xf32>
      %94 = arith.truncf %93 : vector<512x64xf32> to vector<512x64xbf16>
      %95 = vector.extract_strided_slice %92 {offsets = [0, 0, 0], sizes = [1, 256, 64], strides = [1, 1, 1]} : vector<2x256x64xf32> to vector<1x256x64xf32>
      %96 = vector.shape_cast %95 : vector<1x256x64xf32> to vector<256x64xf32>
      %cst_56 = arith.constant dense<0.000000e+00> : vector<64xf32>
      %97 = vector.multi_reduction <add>, %96, %cst_56 [0] : vector<256x64xf32> to vector<64xf32>
      %98 = vector.shape_cast %97 : vector<64xf32> to vector<1x64xf32>
      %cst_57 = arith.constant 2.560000e+02 : f32
      %99 = vector.broadcast %cst_57 : f32 to vector<1x64xf32>
      %100 = arith.divf %98, %99 : vector<1x64xf32>
      %101 = vector.extract_strided_slice %92 {offsets = [1, 0, 0], sizes = [1, 256, 64], strides = [1, 1, 1]} : vector<2x256x64xf32> to vector<1x256x64xf32>
      %102 = vector.shape_cast %101 : vector<1x256x64xf32> to vector<256x64xf32>
      %cst_58 = arith.constant dense<0.000000e+00> : vector<64xf32>
      %103 = vector.multi_reduction <add>, %102, %cst_58 [0] : vector<256x64xf32> to vector<64xf32>
      %104 = vector.shape_cast %103 : vector<64xf32> to vector<1x64xf32>
      %cst_59 = arith.constant 2.560000e+02 : f32
      %105 = vector.broadcast %cst_59 : f32 to vector<1x64xf32>
      %106 = arith.divf %104, %105 : vector<1x64xf32>
      %107 = tpu.concatenate %100, %106 in 0 : vector<1x64xf32>, vector<1x64xf32> -> vector<2x64xf32>
      %108 = arith.truncf %107 : vector<2x64xf32> to vector<2x64xbf16>
      %c0_60 = arith.constant 0 : index
      %c0_61 = arith.constant 0 : index
      %109 = vector.load %arg3[%c0_60, %c0_61] : memref<64x64xbf16, #tpu.memory_space<vmem>>, vector<64x64xbf16>
      %cst_62 = arith.constant dense<0.000000e+00> : vector<2x64xf32>
      %110 = tpu.matmul %108, %109, %cst_62 {dimension_numbers = #tpu.dot_dimension_numbers<[1], [0], [0], [1], [0, 0, 1, 1], [], []>} : vector<2x64xbf16>, vector<64x64xbf16>, vector<2x64xf32> -> vector<2x64xf32>
      %c0_63 = arith.constant 0 : index
      %c0_64 = arith.constant 0 : index
      %111 = vector.load %arg4[%c0_63, %c0_64] : memref<1x64xf32, #tpu.memory_space<vmem>>, vector<1x64xf32>
      %112 = vector.broadcast %111 : vector<1x64xf32> to vector<2x64xf32>
      %113 = arith.addf %110, %112 : vector<2x64xf32>
      %c0_65 = arith.constant 0 : index
      %c0_66 = arith.constant 0 : index
      %114 = vector.load %arg5[%c0_65, %c0_66] : memref<64x64xbf16, #tpu.memory_space<vmem>>, vector<64x64xbf16>
      %cst_67 = arith.constant dense<0.000000e+00> : vector<512x64xf32>
      %115 = tpu.matmul %94, %114, %cst_67 {dimension_numbers = #tpu.dot_dimension_numbers<[1], [0], [0], [1], [0, 0, 1, 1], [], []>} : vector<512x64xbf16>, vector<64x64xbf16>, vector<512x64xf32> -> vector<512x64xf32>
      %c0_68 = arith.constant 0 : index
      %c0_69 = arith.constant 0 : index
      %116 = vector.load %arg6[%c0_68, %c0_69] : memref<1x64xf32, #tpu.memory_space<vmem>>, vector<1x64xf32>
      %117 = vector.broadcast %116 : vector<1x64xf32> to vector<512x64xf32>
      %118 = arith.addf %115, %117 : vector<512x64xf32>
      %119 = arith.truncf %113 : vector<2x64xf32> to vector<2x64xbf16>
      %c0_70 = arith.constant 0 : index
      %c0_71 = arith.constant 0 : index
      %120 = vector.load %arg17[%c0_70, %c0_71] : memref<64x64xbf16, #tpu.memory_space<vmem>>, vector<64x64xbf16>
      %cst_72 = arith.constant dense<0.000000e+00> : vector<2x64xf32>
      %121 = tpu.matmul %119, %120, %cst_72 {dimension_numbers = #tpu.dot_dimension_numbers<[1], [0], [0], [1], [0, 0, 1, 1], [], []>} : vector<2x64xbf16>, vector<64x64xbf16>, vector<2x64xf32> -> vector<2x64xf32>
      %122 = arith.truncf %118 : vector<512x64xf32> to vector<512x64xbf16>
      %c0_73 = arith.constant 0 : index
      %c0_74 = arith.constant 0 : index
      %123 = vector.load %arg18[%c0_73, %c0_74] : memref<64x64xbf16, #tpu.memory_space<vmem>>, vector<64x64xbf16>
      %cst_75 = arith.constant dense<0.000000e+00> : vector<512x64xf32>
      %124 = tpu.matmul %122, %123, %cst_75 {dimension_numbers = #tpu.dot_dimension_numbers<[1], [0], [0], [1], [0, 0, 1, 1], [], []>} : vector<512x64xbf16>, vector<64x64xbf16>, vector<512x64xf32> -> vector<512x64xf32>
      %c0_76 = arith.constant 0 : index
      %c0_77 = arith.constant 0 : index
      %125 = vector.load %arg20[%c0_76, %c0_77] : memref<1x64xf32, #tpu.memory_space<vmem>>, vector<1x64xf32>
      %126 = vector.broadcast %125 : vector<1x64xf32> to vector<512x64xf32>
      %127 = arith.addf %124, %126 : vector<512x64xf32>
      %128 = vector.shape_cast %127 : vector<512x64xf32> to vector<2x256x64xf32>
      %c0_78 = arith.constant 0 : index
      %c0_79 = arith.constant 0 : index
      %c0_80 = arith.constant 0 : index
      %c0_81 = arith.constant 0 : index
      %129 = vector.load %arg21[%c0_78, %c0_79, %c0_80, %c0_81] : memref<1x2x256x64xf32, #tpu.memory_space<vmem>>, vector<1x2x256x64xf32>
      %130 = vector.shape_cast %129 : vector<1x2x256x64xf32> to vector<2x256x64xf32>
      %131 = arith.addf %130, %128 : vector<2x256x64xf32>
      %132 = vector.shape_cast %121 : vector<2x64xf32> to vector<2x1x64xf32>
      %133 = vector.shape_cast %132 : vector<2x1x64xf32> to vector<2x1x64xf32>
      %134 = vector.broadcast %133 : vector<2x1x64xf32> to vector<2x256x64xf32>
      %135 = arith.addf %131, %134 : vector<2x256x64xf32>
      %c0_82 = arith.constant 0 : index
      %c0_83 = arith.constant 0 : index
      %c0_84 = arith.constant 0 : index
      %c0_85 = arith.constant 0 : index
      %136 = vector.load %arg21[%c0_82, %c0_83, %c0_84, %c0_85] : memref<1x2x256x64xf32, #tpu.memory_space<vmem>>, vector<1x2x256x64xf32>
      %137 = vector.shape_cast %136 : vector<1x2x256x64xf32> to vector<2x256x64xf32>
      %138 = vector.shape_cast %135 : vector<2x256x64xf32> to vector<1x2x256x64xf32>
      tpu.vector_store %arg21[%c0_82, %c0_83, %c0_84, %c0_85], %138 {strides = array<i32>} : memref<1x2x256x64xf32, #tpu.memory_space<vmem>>, vector<1x2x256x64xf32>,
    } else {
    }
    return
  }
  func.func @transform_0(%arg0: i32) -> (i32, i32, i32) {
    %c0_i32 = arith.constant 0 : i32
    %c0_i32_0 = arith.constant 0 : i32
    %c0_i32_1 = arith.constant 0 : i32
    %c0_i32_2 = arith.constant 0 : i32
    return %c0_i32, %c0_i32_0, %c0_i32_1 : i32, i32, i32
  }
  func.func @transform_1(%arg0: i32) -> (i32, i32, i32) {
    %c0_i32 = arith.constant 0 : i32
    %c0_i32_0 = arith.constant 0 : i32
    %c0_i32_1 = arith.constant 0 : i32
    return %arg0, %c0_i32, %c0_i32_0 : i32, i32, i32
  }
  func.func @transform_2(%arg0: i32) -> (i32, i32) {
    %c0_i32 = arith.constant 0 : i32
    %c0_i32_0 = arith.constant 0 : i32
    %c0_i32_1 = arith.constant 0 : i32
    return %c0_i32, %c0_i32_0 : i32, i32
  }
  func.func @transform_3(%arg0: i32) -> (i32, i32) {
    %c0_i32 = arith.constant 0 : i32
    %c0_i32_0 = arith.constant 0 : i32
    %c0_i32_1 = arith.constant 0 : i32
    return %c0_i32, %c0_i32_0 : i32, i32
  }
  func.func @transform_4(%arg0: i32) -> (i32, i32) {
    %c0_i32 = arith.constant 0 : i32
    %c0_i32_0 = arith.constant 0 : i32
    %c0_i32_1 = arith.constant 0 : i32
    return %c0_i32, %c0_i32_0 : i32, i32
  }
  func.func @transform_5(%arg0: i32) -> (i32, i32) {
    %c0_i32 = arith.constant 0 : i32
    %c0_i32_0 = arith.constant 0 : i32
    %c0_i32_1 = arith.constant 0 : i32
    return %c0_i32, %c0_i32_0 : i32, i32
  }
  func.func @transform_6(%arg0: i32) -> (i32, i32, i32) {
    %c0_i32 = arith.constant 0 : i32
    %c0_i32_0 = arith.constant 0 : i32
    %c0_i32_1 = arith.constant 0 : i32
    return %arg0, %c0_i32, %c0_i32_0 : i32, i32, i32
  }
  func.func @transform_7(%arg0: i32) -> (i32, i32, i32) {
    %c0_i32 = arith.constant 0 : i32
    %c0_i32_0 = arith.constant 0 : i32
    %c0_i32_1 = arith.constant 0 : i32
    return %arg0, %c0_i32, %c0_i32_0 : i32, i32, i32
  }
  func.func @transform_8(%arg0: i32) -> (i32, i32, i32) {
    %c0_i32 = arith.constant 0 : i32
    %c0_i32_0 = arith.constant 0 : i32
    %c0_i32_1 = arith.constant 0 : i32
    return %arg0, %c0_i32, %c0_i32_0 : i32, i32, i32
  }
  func.func @transform_9(%arg0: i32) -> (i32, i32, i32) {
    %c0_i32 = arith.constant 0 : i32
    %c0_i32_0 = arith.constant 0 : i32
    %c0_i32_1 = arith.constant 0 : i32
    return %arg0, %c0_i32, %c0_i32_0 : i32, i32, i32
  }
  func.func @transform_10(%arg0: i32) -> (i32, i32, i32) {
    %c0_i32 = arith.constant 0 : i32
    %c0_i32_0 = arith.constant 0 : i32
    %c0_i32_1 = arith.constant 0 : i32
    return %arg0, %c0_i32, %c0_i32_0 : i32, i32, i32
  }
  func.func @transform_11(%arg0: i32) -> (i32, i32, i32) {
    %c0_i32 = arith.constant 0 : i32
    %c0_i32_0 = arith.constant 0 : i32
    %c0_i32_1 = arith.constant 0 : i32
    return %arg0, %c0_i32, %c0_i32_0 : i32, i32, i32
  }
  func.func @transform_12(%arg0: i32) -> (i32, i32, i32) {
    %c0_i32 = arith.constant 0 : i32
    %c0_i32_0 = arith.constant 0 : i32
    %c0_i32_1 = arith.constant 0 : i32
    return %arg0, %c0_i32, %c0_i32_0 : i32, i32, i32
  }
  func.func @transform_13(%arg0: i32) -> (i32, i32, i32) {
    %c0_i32 = arith.constant 0 : i32
    %c0_i32_0 = arith.constant 0 : i32
    %c0_i32_1 = arith.constant 0 : i32
    return %arg0, %c0_i32, %c0_i32_0 : i32, i32, i32
  }
  func.func @transform_14(%arg0: i32) -> (i32, i32, i32) {
    %c0_i32 = arith.constant 0 : i32
    %c0_i32_0 = arith.constant 0 : i32
    %c0_i32_1 = arith.constant 0 : i32
    return %arg0, %c0_i32, %c0_i32_0 : i32, i32, i32
  }
  func.func @transform_15(%arg0: i32) -> (i32, i32, i32) {
    %c0_i32 = arith.constant 0 : i32
    %c0_i32_0 = arith.constant 0 : i32
    %c0_i32_1 = arith.constant 0 : i32
    return %arg0, %c0_i32, %c0_i32_0 : i32, i32, i32
  }
  func.func @transform_16(%arg0: i32) -> (i32, i32) {
    %c0_i32 = arith.constant 0 : i32
    %c0_i32_0 = arith.constant 0 : i32
    %c0_i32_1 = arith.constant 0 : i32
    return %c0_i32, %c0_i32_0 : i32, i32
  }
  func.func @transform_17(%arg0: i32) -> (i32, i32) {
    %c0_i32 = arith.constant 0 : i32
    %c0_i32_0 = arith.constant 0 : i32
    %c0_i32_1 = arith.constant 0 : i32
    return %c0_i32, %c0_i32_0 : i32, i32
  }
  func.func @transform_18(%arg0: i32) -> (i32, i32, i32) {
    %c0_i32 = arith.constant 0 : i32
    %c0_i32_0 = arith.constant 0 : i32
    %c0_i32_1 = arith.constant 0 : i32
    return %arg0, %c0_i32, %c0_i32_0 : i32, i32, i32
  }
  func.func @transform_19(%arg0: i32) -> (i32, i32) {
    %c0_i32 = arith.constant 0 : i32
    %c0_i32_0 = arith.constant 0 : i32
    %c0_i32_1 = arith.constant 0 : i32
    return %c0_i32, %c0_i32_0 : i32, i32
  }
  func.func @transform_20(%arg0: i32) -> (i32, i32, i32, i32) {
    %c0_i32 = arith.constant 0 : i32
    %c0_i32_0 = arith.constant 0 : i32
    %c0_i32_1 = arith.constant 0 : i32
    %c0_i32_2 = arith.constant 0 : i32
    return %arg0, %c0_i32, %c0_i32_0, %c0_i32_1 : i32, i32, i32, i32
  }
}

</mosaic_0001>

<bundles_post_ra>
// kernel: aspp_nonlocal.1
= control target key start
LH: loop header
LB: loop body
LE: loop exit
PB: predicated region body
PF: predicated region fallthrough
CT: control target
= control target key end

     0   :  { %s17171_s0 = inlined_call_operand.vmem [shape: f32[2,256,64], index: 0, kind: input, shape index: {}]   ;;  %s17172_s1 = inlined_call_operand.vmem [shape: bf16[3,512,576], index: 1, kind: input, shape index: {}]   ;;  %s17173_s2 = inlined_call_operand.vmem [shape: bf16[64,64], index: 2, kind: input, shape index: {}]   ;;  %s17174_s3 = inlined_call_operand.vmem [shape: f32[1,64], index: 3, kind: input, shape index: {}, may-alias: {3,5,19}]   ;;  %s17175_s4 = inlined_call_operand.vmem [shape: bf16[64,64], index: 4, kind: input, shape index: {}]   ;;  %s17176_s5 = inlined_call_operand.vmem [shape: f32[1,64], index: 5, kind: input, shape index: {}, may-alias: {3,5,19}]   ;;  %s17177_s6 = inlined_call_operand.vmem [shape: bf16[3,576,64], index: 6, kind: input, shape index: {}]   ;;  %s17178_s7 = inlined_call_operand.vmem [shape: f32[3,1,64], index: 7, kind: input, shape index: {}, may-alias: {7,11,13,15}]   ;;  %s17179_s8 = inlined_call_operand.vmem [shape: bf16[3,64,32], index: 8, kind: input, shape index: {}]   ;;  %s17180_s9 = inlined_call_operand.vmem [shape: f32[3,1,32], index: 9, kind: input, shape index: {}]   ;;  %s17181_s10 = inlined_call_operand.vmem [shape: bf16[3,64,64], index: 10, kind: input, shape index: {}]   ;;  %s17182_s11 = inlined_call_operand.vmem [shape: f32[3,1,64], index: 11, kind: input, shape index: {}, may-alias: {7,11,13,15}]   ;;  %s17183_s12 = inlined_call_operand.vmem [shape: bf16[3,32,64], index: 12, kind: input, shape index: {}]   ;;  %s17184_s13 = inlined_call_operand.vmem [shape: f32[3,1,64], index: 13, kind: input, shape index: {}, may-alias: {7,11,13,15}]   ;;  %s17185_s14 = inlined_call_operand.vmem [shape: f32[3,1,64], index: 14, kind: input, shape index: {}]   ;;  %s17186_s15 = inlined_call_operand.vmem [shape: f32[3,1,64], index: 15, kind: input, shape index: {}, may-alias: {7,11,13,15}]   ;;  %s17187_s16 = inlined_call_operand.vmem [shape: bf16[64,64], index: 16, kind: input, shape index: {}]   ;;  %s17188_s17 = inlined_call_operand.vmem [shape: bf16[64,64], index: 17, kind: input, shape index: {}]   ;;  %s17189_s18 = inlined_call_operand.vmem [shape: bf16[3,64,64], index: 18, kind: input, shape index: {}]   ;;  %s17190_s19 = inlined_call_operand.vmem [shape: f32[1,64], index: 19, kind: input, shape index: {}, may-alias: {3,5,19}]   ;;  %s17191_s20 = inlined_call_operand.vmem [shape: f32[3,2,256,64], index: 20, kind: output, shape index: {}]  }
   0x1   :  { %17461 = sst [smem:[#allocation175_spill]] %s17171_s0 }
   0x2   :  { %17462 = sst [smem:[#allocation176_spill]] %s17172_s1  ;;  %s11944_s1 = smov 0  }
   0x3   :  { %17463 = sst [smem:[#allocation177_spill]] %s17173_s2 }
   0x4   :  { %17464 = sst [smem:[#allocation178_spill]] %s17174_s3 }
   0x5   :  { %17465 = sst [smem:[#allocation179_spill]] %s17175_s4 }
   0x6 LB: > { %s11950_s22 = sadd.s32 4294967295, %s11832_s1   ;;  %p9301_p0 = scmp.ge.s32.totalorder %s11832_s1, 1  ;;  %s11832_s1 = sphi %s11944_s1, %s30_s1  }
   0x7   : > { %p660_p1 = scmp.lt.s32.totalorder %s11832_s1, 4 }
   0x9   : > { %p661_p2 = pnand %p9301_p0, %p660_p1 }
   0xb   : > { %664 = sbr.rel (%p661_p2) target bundleno = 3892 (0xf34), region = 100 }
  0x12   : > { %p761_p3 = scmp.lt.s32.totalorder %s11950_s22, 2  ;;  %v11834_v0 = vmov 0   ;;  %s17466_s26 = sld [smem:[#allocation176_spill]]  ;;  %vm2102_vm0 = vcmask 523264   ;;  %vm3930_vm1 = vcmask 261120  }
  0x13   : > { %2199 = vmatprep.subr.bf16.mxu0 %v11834_v0  ;;  %s11835_s25 = smov 96   ;;  %p9722_p4 = scmp.ne.s32.totalorder %s11950_s22, 0 }
  0x14   : > { %s11957_s23 = scalar_select %p761_p3, %s11950_s22, 2 }
  0x16   : > { %s11135_s24 = smul.u32 1280, %s11957_s23  ;;  %s773_s21 = scalar_lea.vmem %s17178_s7, %s11957_s23 }
  0x17   : > { %s11136_s2 = smul.u32 288, %s11957_s23  ;;  %s781_s30 = scalar_lea.vmem %s17180_s9, %s11957_s23 }
  0x18   : > { %s11964_s27 = scalar_lea.vmem %s17466_s26, %s11135_s24  ;;  %s12398_s24 = sshll.u32 %s11957_s23, 5 }
  0x19   : > { %s11969_s29 = scalar_lea.vmem %s17177_s6, %s11136_s2  ;;  %v11168_v6 = vld [vmem:[%s11964_s27 + $0x4] ss:$20 sps:$4 sm:$0xff]   ;;  %v11166_v18 = vld [vmem:[%s11964_s27] ss:$20 sps:$4 sm:$0xff]   ;;  %v11171_v22 = vld [vmem:[%s11964_s27 + $0x28] ss:$20 sps:$4 sm:$0xff]   ;;  %s12404_s3 = scalar_lea.vmem %s17179_s8, %s12398_s24 }
  0x1a   : > { %v11150_v1 = vld [vmem:[%s11969_s29] sm:$0xff]   ;;  %v11151_v2 = vld [vmem:[%s11969_s29 + $0x8] sm:$0xff]   ;;  %v11152_v3 = vld [vmem:[%s11969_s29 + $0x10] sm:$0xff]   ;;  %2231 = vmatprep.mubr.bf16.mxu0 %v11168_v6  ;;  %s12508_s28 = scalar_lea.vmem %s17181_s10, %s12398_s24  ;;  %s789_s2 = scalar_lea.vmem %s17182_s11, %s11957_s23 }
  0x1b   : > { %2200 = vmatpush1.bf16.msra.mxu0 %v11150_v1  ;;  %v11153_v4 = vld [vmem:[%s11969_s29 + $0x18] sm:$0xff]   ;;  %v11154_v5 = vld [vmem:[%s11969_s29 + $0x20] sm:$0xff]   ;;  %v11155_v7 = vld [vmem:[%s11969_s29 + $0x28] sm:$0xff]   ;;  %s9814_s4 = sshll.u32 %s11957_s23, 9 }
  0x1c   : > { %2201 = vmatprep.subr.bf16.mxu0 %v11834_v0  ;;  %v11156_v8 = vld [vmem:[%s11969_s29 + $0x30] sm:$0xff]   ;;  %v11157_v9 = vld [vmem:[%s11969_s29 + $0x38] sm:$0xff]   ;;  %v11158_v10 = vld [vmem:[%s11969_s29 + $0x40] sm:$0xff]   ;;  %s15912_s0 = scalar_lea.vmem %s17191_s20, %s9814_s4 }
  0x1d   : > { %v11159_v11 = vld [vmem:[%s11969_s29 + $0x48] sm:$0xff]   ;;  %v11160_v12 = vld [vmem:[%s11969_s29 + $0x50] sm:$0xff]   ;;  %v11161_v13 = vld [vmem:[%s11969_s29 + $0x58] sm:$0xff]  }
  0x1e   : > { %v11162_v14 = vld [vmem:[%s11969_s29 + $0x60] sm:$0xff]   ;;  %v11163_v15 = vld [vmem:[%s11969_s29 + $0x68] sm:$0xff]   ;;  %v11164_v16 = vld [vmem:[%s11969_s29 + $0x70] sm:$0xff]  }
  0x1f   : > { %2202 = vmatpush1.bf16.msra.mxu0 %v11151_v2  ;;  %v11165_v17 = vld [vmem:[%s11969_s29 + $0x78] sm:$0xff]   ;;  %v11169_v19 = vld [vmem:[%s11964_s27 + $0x2c] ss:$20 sps:$4 sm:$0xff]   ;;  %v11172_v23 = vld [vmem:[%s11964_s27 + $0x54] ss:$20 sps:$4 sm:$0xff]  }
  0x20   : > { %2203 = vmatprep.subr.bf16.mxu0 %v11834_v0  ;;  %v11193_v20 = vld [vmem:[%s11969_s29 + $0x80] sm:$0xff]   ;;  %v11200_v21 = vld [vmem:[%s11969_s29 + $0x88] sm:$0xff]   ;;  %v11207_v24 = vld [vmem:[%s11969_s29 + $0x90] sm:$0xff]  }
  0x21   : > { %v11214_v25 = vld [vmem:[%s11969_s29 + $0x98] sm:$0xff]   ;;  %v11174_v26 = vld [vmem:[%s11964_s27 + $0x50] ss:$20 sps:$4 sm:$0xff]   ;;  %v11228_v29 = vld [vmem:[%s11969_s29 + $0xa8] sm:$0xff]  }
  0x22   : > { %v11175_v27 = vld [vmem:[%s11964_s27 + $0x7c] ss:$20 sps:$4 sm:$0xff]   ;;  %v11221_v28 = vld [vmem:[%s11969_s29 + $0xa0] sm:$0xff]   ;;  %v11177_v30 = vld [vmem:[%s11964_s27 + $0x78] ss:$20 sps:$4 sm:$0xff]  }
  0x23   : > { %2204 = vmatpush1.bf16.msra.mxu0 %v11152_v3  ;;  %v11178_v31 = vld [vmem:[%s11964_s27 + $0xa4] ss:$20 sps:$4 sm:$0xff]   ;;  %v11180_v32 = vld [vmem:[%s11964_s27 + $0xa0] ss:$20 sps:$4 sm:$0xff]   ;;  %v11183_v35 = vld [vmem:[%s11964_s27 + $0xc8] ss:$20 sps:$4 sm:$0xff]  }
  0x24   : > { %2205 = vmatprep.subr.bf16.mxu0 %v11834_v0  ;;  %v11181_v33 = vld [vmem:[%s11964_s27 + $0xcc] ss:$20 sps:$4 sm:$0xff]   ;;  %v11235_v34 = vld [vmem:[%s11969_s29 + $0xb0] sm:$0xff]   ;;  %v11242_v39 = vld [vmem:[%s11969_s29 + $0xb8] sm:$0xff]  }
  0x25   : > { %v11184_v36 = vld [vmem:[%s11964_s27 + $0xf4] ss:$20 sps:$4 sm:$0xff]   ;;  %v11186_v37 = vld [vmem:[%s11964_s27 + $0xf0] ss:$20 sps:$4 sm:$0xff]   ;;  %v11189_v40 = vld [vmem:[%s11964_s27 + $0x118] ss:$20 sps:$4 sm:$0xff]  }
  0x26   : > { %v11187_v38 = vld [vmem:[%s11964_s27 + $0x11c] ss:$20 sps:$4 sm:$0xff]   ;;  %v11190_v41 = vld [vmem:[%s11964_s27 + $0x144] ss:$20 sps:$4 sm:$0xff]   ;;  %v11192_v42 = vld [vmem:[%s11964_s27 + $0x140] ss:$20 sps:$4 sm:$0xff]  }
  0x27   : > { %2206 = vmatpush1.bf16.msra.mxu0 %v11153_v4  ;;  %v11194_v43 = vld [vmem:[%s11964_s27 + $0x16c] ss:$20 sps:$4 sm:$0xff]   ;;  %v11196_v45 = vld [vmem:[%s11964_s27 + $0x168] ss:$20 sps:$4 sm:$0xff]   ;;  %v11199_v47 = vld [vmem:[%s11964_s27 + $0x190] ss:$20 sps:$4 sm:$0xff]  }
  0x28   : > { %2207 = vmatprep.subr.bf16.mxu0 %v11834_v0  ;;  %v11249_v44 = vld [vmem:[%s11969_s29 + $0xc0] sm:$0xff]   ;;  %v11197_v46 = vld [vmem:[%s11964_s27 + $0x194] ss:$20 sps:$4 sm:$0xff]   ;;  %v11201_v48 = vld [vmem:[%s11964_s27 + $0x1bc] ss:$20 sps:$4 sm:$0xff]  }
  0x29   : > { %v11256_v49 = vld [vmem:[%s11969_s29 + $0xc8] sm:$0xff]   ;;  %v11204_v51 = vld [vmem:[%s11964_s27 + $0x1e4] ss:$20 sps:$4 sm:$0xff]   ;;  %v11206_v52 = vld [vmem:[%s11964_s27 + $0x1e0] ss:$20 sps:$4 sm:$0xff]  }
  0x2a   : > { %v11203_v50 = vld [vmem:[%s11964_s27 + $0x1b8] ss:$20 sps:$4 sm:$0xff]   ;;  %v11263_v54 = vld [vmem:[%s11969_s29 + $0xd0] sm:$0xff]   ;;  %v11210_v55 = vld [vmem:[%s11964_s27 + $0x208] ss:$20 sps:$4 sm:$0xff]  }
  0x2b   : > { %2208 = vmatpush1.bf16.msra.mxu0 %v11154_v5  ;;  %v11208_v53 = vld [vmem:[%s11964_s27 + $0x20c] ss:$20 sps:$4 sm:$0xff]   ;;  %v11211_v56 = vld [vmem:[%s11964_s27 + $0x234] ss:$20 sps:$4 sm:$0xff]   ;;  %v11267_v57 = vld [vmem:[%s11969_s29 + $0xd8] sm:$0xff]  }
  0x2c   : > { %2209 = vmatprep.subr.bf16.mxu0 %v11834_v0  ;;  %v11213_v58 = vld [vmem:[%s11964_s27 + $0x230] ss:$20 sps:$4 sm:$0xff]   ;;  %v11272_v61 = vld [vmem:[%s11969_s29 + $0xe8] sm:$0xff]   ;;  %v11277_v2 = vld [vmem:[%s11969_s29 + $0xf8] sm:$0xff]  }
  0x2d   : > { %v11215_v59 = vld [vmem:[%s11964_s27 + $0x25c] ss:$20 sps:$4 sm:$0xff]   ;;  %v11271_v60 = vld [vmem:[%s11969_s29 + $0xe0] sm:$0xff]   ;;  %v11217_v62 = vld [vmem:[%s11964_s27 + $0x258] ss:$20 sps:$4 sm:$0xff]  }
  0x2e   : > { %v11218_v63 = vld [vmem:[%s11964_s27 + $0x284] ss:$20 sps:$4 sm:$0xff]   ;;  %v11276_v1 = vld [vmem:[%s11969_s29 + $0xf0] sm:$0xff]   ;;  %v11222_v4 = vld [vmem:[%s11964_s27 + $0x2ac] ss:$20 sps:$4 sm:$0xff]  }
  0x2f   : > { %2210 = vmatpush1.bf16.msra.mxu0 %v11155_v7  ;;  %v11220_v3 = vld [vmem:[%s11964_s27 + $0x280] ss:$20 sps:$4 sm:$0xff]   ;;  %v11224_v5 = vld [vmem:[%s11964_s27 + $0x2a8] ss:$20 sps:$4 sm:$0xff]   ;;  %v11227_v7 = vld [vmem:[%s11964_s27 + $0x2d0] ss:$20 sps:$4 sm:$0xff]  }
  0x30   : > { %2211 = vmatprep.subr.bf16.mxu0 %v11834_v0  ;;  %v11225_v6 = vld [vmem:[%s11964_s27 + $0x2d4] ss:$20 sps:$4 sm:$0xff]  }
  0x33   : > { %2212 = vmatpush1.bf16.msra.mxu0 %v11156_v8  ;;  %v11229_v8 = vld [vmem:[%s11964_s27 + $0x2fc] ss:$20 sps:$4 sm:$0xff]  }
  0x34   : > { %2213 = vmatprep.subr.bf16.mxu0 %v11834_v0 }
  0x37   : > { %2214 = vmatpush1.bf16.msra.mxu0 %v11157_v9  ;;  %v11232_v9 = vld [vmem:[%s11964_s27 + $0x324] ss:$20 sps:$4 sm:$0xff]  }
  0x38   : > { %2215 = vmatprep.subr.bf16.mxu0 %v11834_v0 }
  0x3b   : > { %2216 = vmatpush1.bf16.msra.mxu0 %v11158_v10  ;;  %v11234_v10 = vld [vmem:[%s11964_s27 + $0x320] ss:$20 sps:$4 sm:$0xff]  }
  0x3c   : > { %2217 = vmatprep.subr.bf16.mxu0 %v11834_v0 }
  0x3f   : > { %2218 = vmatpush1.bf16.msra.mxu0 %v11159_v11  ;;  %v11236_v11 = vld [vmem:[%s11964_s27 + $0x34c] ss:$20 sps:$4 sm:$0xff]  }
  0x40   : > { %2219 = vmatprep.subr.bf16.mxu0 %v11834_v0 }
  0x43   : > { %2220 = vmatpush1.bf16.msra.mxu0 %v11160_v12  ;;  %v11238_v12 = vld [vmem:[%s11964_s27 + $0x348] ss:$20 sps:$4 sm:$0xff]  }
  0x44   : > { %2221 = vmatprep.subr.bf16.mxu0 %v11834_v0 }
  0x47   : > { %2222 = vmatpush1.bf16.msra.mxu0 %v11161_v13  ;;  %v11239_v13 = vld [vmem:[%s11964_s27 + $0x374] ss:$20 sps:$4 sm:$0xff]  }
  0x48   : > { %2223 = vmatprep.subr.bf16.mxu0 %v11834_v0 }
  0x4b   : > { %2224 = vmatpush1.bf16.msra.mxu0 %v11162_v14  ;;  %v11241_v14 = vld [vmem:[%s11964_s27 + $0x370] ss:$20 sps:$4 sm:$0xff]  }
  0x4c   : > { %2225 = vmatprep.subr.bf16.mxu0 %v11834_v0 }
  0x4f   : > { %2226 = vmatpush1.bf16.msra.mxu0 %v11163_v15  ;;  %v11243_v15 = vld [vmem:[%s11964_s27 + $0x39c] ss:$20 sps:$4 sm:$0xff]  }
  0x50   : > { %2227 = vmatprep.subr.bf16.mxu0 %v11834_v0 }
  0x53   : > { %2228 = vmatpush1.bf16.msra.mxu0 %v11164_v16  ;;  %v11245_v16 = vld [vmem:[%s11964_s27 + $0x398] ss:$20 sps:$4 sm:$0xff]  }
  0x54   : > { %2229 = vmatprep.subr.bf16.mxu0 %v11834_v0 }
  0x57   : > { %2230 = vmatpush1.bf16.msra.mxu0 %v11165_v17  ;;  %v11246_v17 = vld [vmem:[%s11964_s27 + $0x3c4] ss:$20 sps:$4 sm:$0xff]  }
  0x58   : > { %2488 = vmatprep.subr.bf16.mxu0 %v11834_v0 }
  0x5a   : > { %2232 = vmatmul.mubr.bf16.vlgmr.msra.gmra.mrb[0].mxu0 %v11166_v18  ;;  %v11248_v18 = vld [vmem:[%s11964_s27 + $0x3c0] ss:$20 sps:$4 sm:$0xff]  }
  0x5b   : > { %2239 = vmatprep.mubr.bf16.mxu0 %v11169_v19  ;;  %2489 = vmatpush1.bf16.msra.mxu0 %v11193_v20  ;;  %v11250_v19 = vld [vmem:[%s11964_s27 + $0x3ec] ss:$20 sps:$4 sm:$0xff]  }
  0x5c   : > { %2490 = vmatprep.subr.bf16.mxu0 %v11834_v0  ;;  %v11305_v20 = vld [vmem:[%s11969_s29 + $0x100] sm:$0xff]  }
  0x5d   : > { %10919 = vmatprep.subr.bf16.mxu1 %v11305_v20 }
  0x5e   : > { %10923 = vmatpush3.bf16.msra.mxu1 %v11305_v20 }
  0x5f   : > { %2491 = vmatpush1.bf16.msra.mxu0 %v11200_v21  ;;  %v12087_v21 = vld [vmem:[%s11969_s29 + $0x108] sm:$0xff]  }
  0x60   : > { %2492 = vmatprep.subr.bf16.mxu0 %v11834_v0  ;;  %10920 = vmatprep.subr.bf16.mxu1 %v12087_v21 }
  0x62   : > { %2240 = vmatmul.mubr.bf16.gmra.mrb[4].mxu0 %v11171_v22  ;;  %v11252_v22 = vld [vmem:[%s11964_s27 + $0x3e8] ss:$20 sps:$4 sm:$0xff]   ;;  %10924 = vmatpush3.bf16.msra.mxu1 %v12087_v21 }
  0x63   : > { %2247 = vmatprep.mubr.bf16.mxu0 %v11172_v23  ;;  %2493 = vmatpush1.bf16.msra.mxu0 %v11207_v24  ;;  %v11253_v23 = vld [vmem:[%s11964_s27 + $0x414] ss:$20 sps:$4 sm:$0xff]  }
  0x64   : > { %2494 = vmatprep.subr.bf16.mxu0 %v11834_v0  ;;  %v11310_v24 = vld [vmem:[%s11969_s29 + $0x110] sm:$0xff]  }
  0x65   : > { %10921 = vmatprep.subr.bf16.mxu1 %v11310_v24 }
  0x66   : > { %10925 = vmatpush3.bf16.msra.mxu1 %v11310_v24 }
  0x67   : > { %2495 = vmatpush1.bf16.msra.mxu0 %v11214_v25  ;;  %v11311_v25 = vld [vmem:[%s11969_s29 + $0x118] sm:$0xff]  }
  0x68   : > { %2496 = vmatprep.subr.bf16.mxu0 %v11834_v0  ;;  %10922 = vmatprep.subr.bf16.mxu1 %v11311_v25 }
  0x6a   : > { %2248 = vmatmul.mubr.bf16.gmra.mrb[8].mxu0 %v11174_v26  ;;  %v11255_v26 = vld [vmem:[%s11964_s27 + $0x410] ss:$20 sps:$4 sm:$0xff]   ;;  %10926 = vmatpush3.bf16.msra.mxu1 %v11311_v25 }
  0x6b   : > { %2255 = vmatprep.mubr.bf16.mxu0 %v11175_v27  ;;  %2497 = vmatpush1.bf16.msra.mxu0 %v11221_v28  ;;  %v11257_v27 = vld [vmem:[%s11964_s27 + $0x43c] ss:$20 sps:$4 sm:$0xff]   ;;  %v11315_v28 = vld [vmem:[%s11964_s27 + $0x1a0] ss:$20 sps:$4 sm:$0xff]  }
  0x6c   : > { %2498 = vmatprep.subr.bf16.mxu0 %v11834_v0  ;;  %10423 = vmatprep.mubr.msk.bf16.mxu1 %vm2102_vm0, %v11315_v28  ;;  %v11338_v28 = vld [vmem:[%s11964_s27 + $0x288] ss:$20 sps:$4 sm:$0xff]  }
  0x6f   : > { %2499 = vmatpush1.bf16.msra.mxu0 %v11228_v29  ;;  %v11316_v29 = vld [vmem:[%s11964_s27 + $0x1c8] ss:$20 sps:$4 sm:$0xff]  }
  0x70   : > { %2500 = vmatprep.subr.bf16.mxu0 %v11834_v0  ;;  %10424 = vmatmul.mubr.msk.bf16.vlgmr.msra.gmra.mrb[0].mxu1 %vm2102_vm0, %v11316_v29  ;;  %v11341_v29 = vld [vmem:[%s11964_s27 + $0x2b4] ss:$20 sps:$4 sm:$0xff]  }
  0x72   : > { %2256 = vmatmul.mubr.bf16.gmra.mrb[12].mxu0 %v11177_v30  ;;  %v11259_v30 = vld [vmem:[%s11964_s27 + $0x438] ss:$20 sps:$4 sm:$0xff]  }
  0x73   : > { %2263 = vmatprep.mubr.bf16.mxu0 %v11178_v31  ;;  %2501 = vmatpush1.bf16.msra.mxu0 %v11235_v34  ;;  %v11260_v31 = vld [vmem:[%s11964_s27 + $0x464] ss:$20 sps:$4 sm:$0xff]  }
  0x74   : > { %2502 = vmatprep.subr.bf16.mxu0 %v11834_v0  ;;  %v11323_v34 = vld [vmem:[%s11964_s27 + $0x1f0] ss:$20 sps:$4 sm:$0xff]  }
  0x75   : > { %10427 = vmatprep.mubr.msk.bf16.mxu1 %vm2102_vm0, %v11323_v34  ;;  %v11351_v34 = vld [vmem:[%s11964_s27 + $0x300] ss:$20 sps:$4 sm:$0xff]  }
  0x77   : > { %2503 = vmatpush1.bf16.msra.mxu0 %v11242_v39  ;;  %v11273_v39 = vld [vmem:[%s11964_s27 + $0x4dc] ss:$20 sps:$4 sm:$0xff]  }
  0x78   : > { %2504 = vmatprep.subr.bf16.mxu0 %v11834_v0 }
  0x7a   : > { %2264 = vmatmul.mubr.bf16.gmra.mrb[16].mxu0 %v11180_v32  ;;  %v11262_v32 = vld [vmem:[%s11964_s27 + $0x460] ss:$20 sps:$4 sm:$0xff]  }
  0x7b   : > { %2271 = vmatprep.mubr.bf16.mxu0 %v11181_v33  ;;  %2505 = vmatpush1.bf16.msra.mxu0 %v11249_v44  ;;  %v11264_v33 = vld [vmem:[%s11964_s27 + $0x48c] ss:$20 sps:$4 sm:$0xff]   ;;  %v11278_v44 = vld [vmem:[%s11964_s27 + $0x8] ss:$20 sps:$4 sm:$0xff]  }
  0x7c   : > { %2506 = vmatprep.subr.bf16.mxu0 %v11834_v0 }
  0x7f   : > { %2507 = vmatpush1.bf16.msra.mxu0 %v11256_v49  ;;  %v11284_v49 = vld [vmem:[%s11964_s27 + $0x5c] ss:$20 sps:$4 sm:$0xff]  }
  0x80   : > { %2508 = vmatprep.subr.bf16.mxu0 %v11834_v0 }
  0x82   : > { %2272 = vmatmul.mubr.bf16.gmra.mrb[20].mxu0 %v11183_v35  ;;  %v11324_v35 = vld [vmem:[%s11964_s27 + $0x218] ss:$20 sps:$4 sm:$0xff]  }
  0x83   : > { %2279 = vmatprep.mubr.bf16.mxu0 %v11184_v36  ;;  %2509 = vmatpush1.bf16.msra.mxu0 %v11263_v54  ;;  %v11266_v36 = vld [vmem:[%s11964_s27 + $0x488] ss:$20 sps:$4 sm:$0xff]   ;;  %v11289_v54 = vld [vmem:[%s11964_s27 + $0x80] ss:$20 sps:$4 sm:$0xff]  }
  0x84   : > { %2510 = vmatprep.subr.bf16.mxu0 %v11834_v0  ;;  %10428 = vmatmul.mubr.msk.bf16.gmra.mrb[4].mxu1 %vm2102_vm0, %v11324_v35  ;;  %v11352_v35 = vld [vmem:[%s11964_s27 + $0x32c] ss:$20 sps:$4 sm:$0xff]  }
  0x87   : > { %2511 = vmatpush1.bf16.msra.mxu0 %v11267_v57  ;;  %v11293_v57 = vld [vmem:[%s11964_s27 + $0xd4] ss:$20 sps:$4 sm:$0xff]  }
  0x88   : > { %2512 = vmatprep.subr.bf16.mxu0 %v11834_v0 }
  0x8a   : > { %2280 = vmatmul.mubr.bf16.gmra.mrb[24].mxu0 %v11186_v37  ;;  %v11268_v37 = vld [vmem:[%s11964_s27 + $0x4b4] ss:$20 sps:$4 sm:$0xff]  }
  0x8b   : > { %2287 = vmatprep.mubr.bf16.mxu0 %v11187_v38  ;;  %2513 = vmatpush1.bf16.msra.mxu0 %v11271_v60  ;;  %v11270_v38 = vld [vmem:[%s11964_s27 + $0x4b0] ss:$20 sps:$4 sm:$0xff]  }
  0x8c   : > { %2514 = vmatprep.subr.bf16.mxu0 %v11834_v0  ;;  %v11295_v60 = vld [vmem:[%s11964_s27 + $0xd0] ss:$20 sps:$4 sm:$0xff]  }
  0x8f   : > { %2515 = vmatpush1.bf16.msra.mxu0 %v11272_v61  ;;  %v11296_v61 = vld [vmem:[%s11964_s27 + $0xfc] ss:$20 sps:$4 sm:$0xff]  }
  0x90   : > { %2516 = vmatprep.subr.bf16.mxu0 %v11834_v0 }
  0x92   : > { %2288 = vmatmul.mubr.bf16.gmra.mrb[28].mxu0 %v11189_v40  ;;  %v11331_v40 = vld [vmem:[%s11964_s27 + $0x240] ss:$20 sps:$4 sm:$0xff]  }
  0x93   : > { %2295 = vmatprep.mubr.bf16.mxu0 %v11190_v41  ;;  %2517 = vmatpush1.bf16.msra.mxu0 %v11276_v1  ;;  %v11332_v41 = vld [vmem:[%s11964_s27 + $0x268] ss:$20 sps:$4 sm:$0xff]   ;;  %v11363_v1 = vld [vmem:[%s11964_s27 + $0x380] ss:$20 sps:$4 sm:$0xff]  }
  0x94   : > { %2518 = vmatprep.subr.bf16.mxu0 %v11834_v0  ;;  %v11231_v0 = vld [vmem:[%s11964_s27 + $0x2f8] ss:$20 sps:$4 sm:$0xff]   ;;  %10431 = vmatprep.mubr.msk.bf16.mxu1 %vm2102_vm0, %v11331_v40 }
  0x95   : > { %10432 = vmatmul.mubr.msk.bf16.gmra.mrb[8].mxu1 %vm2102_vm0, %v11332_v41 }
  0x97   : > { %2519 = vmatpush1.bf16.msra.mxu0 %v11277_v2  ;;  %v11364_v2 = vld [vmem:[%s11964_s27 + $0x3a8] ss:$20 sps:$4 sm:$0xff]  }
  0x98   : > { %10395 = vmatprep.subr.bf16.mxu0 %v11305_v20 }
  0x9a   : > { %2296 = vmatmul.mubr.bf16.gmra.mrb[32].mxu0 %v11192_v42  ;;  %v11275_v42 = vld [vmem:[%s11964_s27 + $0x4d8] ss:$20 sps:$4 sm:$0xff]  }
  0x9b   : > { %2303 = vmatprep.mubr.bf16.mxu0 %v11194_v43  ;;  %v11280_v43 = vld [vmem:[%s11964_s27 + $0xc] ss:$20 sps:$4 sm:$0xff]  }
  0xa2   : > { %2304 = vmatmul.mubr.bf16.gmra.mrb[36].mxu0 %v11196_v45  ;;  %v11281_v45 = vld [vmem:[%s11964_s27 + $0x34] ss:$20 sps:$4 sm:$0xff]  }
  0xa3   : > { %2311 = vmatprep.mubr.bf16.mxu0 %v11197_v46  ;;  %v11339_v46 = vld [vmem:[%s11964_s27 + $0x290] ss:$20 sps:$4 sm:$0xff]  }
  0xa4   : > { %10435 = vmatprep.mubr.msk.bf16.mxu1 %vm2102_vm0, %v11339_v46  ;;  %v11367_v46 = vld [vmem:[%s11964_s27 + $0x3a0] ss:$20 sps:$4 sm:$0xff]  }
  0xaa   : > { %2312 = vmatmul.mubr.bf16.gmra.mrb[40].mxu0 %v11199_v47  ;;  %v11340_v47 = vld [vmem:[%s11964_s27 + $0x2b8] ss:$20 sps:$4 sm:$0xff]  }
  0xab   : > { %2319 = vmatprep.mubr.bf16.mxu0 %v11201_v48  ;;  %10436 = vmatmul.mubr.msk.bf16.gmra.mrb[12].mxu1 %vm2102_vm0, %v11340_v47  ;;  %v11283_v48 = vld [vmem:[%s11964_s27 + $0x30] ss:$20 sps:$4 sm:$0xff]  }
  0xb2   : > { %2320 = vmatmul.mubr.bf16.gmra.mrb[44].mxu0 %v11203_v50  ;;  %v11286_v50 = vld [vmem:[%s11964_s27 + $0x58] ss:$20 sps:$4 sm:$0xff]  }
  0xb3   : > { %2327 = vmatprep.mubr.bf16.mxu0 %v11204_v51  ;;  %v11287_v51 = vld [vmem:[%s11964_s27 + $0x84] ss:$20 sps:$4 sm:$0xff]  }
  0xba   : > { %2328 = vmatmul.mubr.bf16.gmra.mrb[48].mxu0 %v11206_v52  ;;  %v11347_v52 = vld [vmem:[%s11964_s27 + $0x2e0] ss:$20 sps:$4 sm:$0xff]  }
  0xbb   : > { %2335 = vmatprep.mubr.bf16.mxu0 %v11208_v53  ;;  %v11348_v53 = vld [vmem:[%s11964_s27 + $0x308] ss:$20 sps:$4 sm:$0xff]   ;;  %10439 = vmatprep.mubr.msk.bf16.mxu1 %vm2102_vm0, %v11347_v52 }
  0xbc   : > { %10440 = vmatmul.mubr.msk.bf16.gmra.mrb[16].mxu1 %vm2102_vm0, %v11348_v53  ;;  %v11370_v52 = vld [vmem:[%s11964_s27 + $0x3c8] ss:$20 sps:$4 sm:$0xff]  }
  0xbd   : > { %v11373_v53 = vld [vmem:[%s11964_s27 + $0x3f4] ss:$20 sps:$4 sm:$0xff]  }
  0xc2   : > { %2336 = vmatmul.mubr.bf16.gmra.mrb[52].mxu0 %v11210_v55  ;;  %v11290_v55 = vld [vmem:[%s11964_s27 + $0xac] ss:$20 sps:$4 sm:$0xff]  }
  0xc3   : > { %2343 = vmatprep.mubr.bf16.mxu0 %v11211_v56  ;;  %v11292_v56 = vld [vmem:[%s11964_s27 + $0xa8] ss:$20 sps:$4 sm:$0xff]  }
  0xca   : > { %2344 = vmatmul.mubr.bf16.gmra.mrb[56].mxu0 %v11213_v58  ;;  %v11355_v58 = vld [vmem:[%s11964_s27 + $0x330] ss:$20 sps:$4 sm:$0xff]  }
  0xcb   : > { %2351 = vmatprep.mubr.bf16.mxu0 %v11215_v59  ;;  %v11356_v59 = vld [vmem:[%s11964_s27 + $0x358] ss:$20 sps:$4 sm:$0xff]   ;;  %10443 = vmatprep.mubr.msk.bf16.mxu1 %vm2102_vm0, %v11355_v58 }
  0xcc   : > { %10444 = vmatmul.mubr.msk.bf16.gmra.mrb[20].mxu1 %vm2102_vm0, %v11356_v59 }
  0xcd   : > { %10447 = vmatprep.mubr.msk.bf16.mxu1 %vm2102_vm0, %v11363_v1  ;;  %v11383_v1 = vld [vmem:[%s11964_s27 + $0x440] ss:$20 sps:$4 sm:$0xff]  }
  0xd2   : > { %2352 = vmatmul.mubr.bf16.gmra.mrb[60].mxu0 %v11217_v62  ;;  %v11298_v62 = vld [vmem:[%s11964_s27 + $0xf8] ss:$20 sps:$4 sm:$0xff]  }
  0xd3   : > { %2359 = vmatprep.mubr.bf16.mxu0 %v11218_v63  ;;  %v11299_v63 = vld [vmem:[%s11964_s27 + $0x124] ss:$20 sps:$4 sm:$0xff]  }
  0xd4   : > { %10448 = vmatmul.mubr.msk.bf16.gmra.mrb[24].mxu1 %vm2102_vm0, %v11364_v2 }
  0xda   : > { %2360 = vmatmul.mubr.bf16.gmra.mrb[64].mxu0 %v11220_v3  ;;  %v11301_v3 = vld [vmem:[%s11964_s27 + $0x120] ss:$20 sps:$4 sm:$0xff]  }
  0xdb   : > { %2367 = vmatprep.mubr.bf16.mxu0 %v11222_v4  ;;  %v11302_v4 = vld [vmem:[%s11964_s27 + $0x14c] ss:$20 sps:$4 sm:$0xff]  }
  0xe2   : > { %2368 = vmatmul.mubr.bf16.gmra.mrb[68].mxu0 %v11224_v5  ;;  %v11304_v5 = vld [vmem:[%s11964_s27 + $0x148] ss:$20 sps:$4 sm:$0xff]  }
  0xe3   : > { %2375 = vmatprep.mubr.bf16.mxu0 %v11225_v6  ;;  %v11307_v6 = vld [vmem:[%s11964_s27 + $0x174] ss:$20 sps:$4 sm:$0xff]  }
  0xea   : > { %2376 = vmatmul.mubr.bf16.gmra.mrb[72].mxu0 %v11227_v7  ;;  %v11371_v7 = vld [vmem:[%s11964_s27 + $0x3d0] ss:$20 sps:$4 sm:$0xff]  }
  0xeb   : > { %2383 = vmatprep.mubr.bf16.mxu0 %v11229_v8  ;;  %v11372_v8 = vld [vmem:[%s11964_s27 + $0x3f8] ss:$20 sps:$4 sm:$0xff]   ;;  %10451 = vmatprep.mubr.msk.bf16.mxu1 %vm2102_vm0, %v11371_v7 }
  0xec   : > { %10452 = vmatmul.mubr.msk.bf16.gmra.mrb[28].mxu1 %vm2102_vm0, %v11372_v8 }
  0xf2   : > { %2384 = vmatmul.mubr.bf16.gmra.mrb[76].mxu0 %v11231_v0  ;;  %v11309_v0 = vld [vmem:[%s11964_s27 + $0x170] ss:$20 sps:$4 sm:$0xff]  }
  0xf3   : > { %2391 = vmatprep.mubr.bf16.mxu0 %v11232_v9  ;;  %v11312_v9 = vld [vmem:[%s11964_s27 + $0x19c] ss:$20 sps:$4 sm:$0xff]  }
  0xfa   : > { %2392 = vmatmul.mubr.bf16.gmra.mrb[80].mxu0 %v11234_v10  ;;  %v11314_v10 = vld [vmem:[%s11964_s27 + $0x198] ss:$20 sps:$4 sm:$0xff]  }
  0xfb   : > { %2399 = vmatprep.mubr.bf16.mxu0 %v11236_v11  ;;  %v11317_v11 = vld [vmem:[%s11964_s27 + $0x1c4] ss:$20 sps:$4 sm:$0xff]  }
 0x102   : > { %2400 = vmatmul.mubr.bf16.gmra.mrb[84].mxu0 %v11238_v12  ;;  %v11379_v12 = vld [vmem:[%s11964_s27 + $0x420] ss:$20 sps:$4 sm:$0xff]  }
 0x103   : > { %2407 = vmatprep.mubr.bf16.mxu0 %v11239_v13  ;;  %v11380_v13 = vld [vmem:[%s11964_s27 + $0x448] ss:$20 sps:$4 sm:$0xff]   ;;  %10455 = vmatprep.mubr.msk.bf16.mxu1 %vm2102_vm0, %v11379_v12 }
 0x104   : > { %10456 = vmatmul.mubr.msk.bf16.gmra.mrb[32].mxu1 %vm2102_vm0, %v11380_v13  ;;  %v11389_v12 = vld [vmem:[%s11964_s27 + $0x494] ss:$20 sps:$4 sm:$0xff]  }
 0x10a   : > { %2408 = vmatmul.mubr.bf16.gmra.mrb[88].mxu0 %v11241_v14  ;;  %v11319_v14 = vld [vmem:[%s11964_s27 + $0x1c0] ss:$20 sps:$4 sm:$0xff]  }
 0x10b   : > { %2415 = vmatprep.mubr.bf16.mxu0 %v11243_v15  ;;  %v11320_v15 = vld [vmem:[%s11964_s27 + $0x1ec] ss:$20 sps:$4 sm:$0xff]  }
 0x112   : > { %2416 = vmatmul.mubr.bf16.gmra.mrb[92].mxu0 %v11245_v16  ;;  %v11322_v16 = vld [vmem:[%s11964_s27 + $0x1e8] ss:$20 sps:$4 sm:$0xff]  }
 0x113   : > { %2423 = vmatprep.mubr.bf16.mxu0 %v11246_v17  ;;  %v11325_v17 = vld [vmem:[%s11964_s27 + $0x214] ss:$20 sps:$4 sm:$0xff]  }
 0x11a   : > { %2424 = vmatmul.mubr.bf16.gmra.mrb[96].mxu0 %v11248_v18  ;;  %v11387_v18 = vld [vmem:[%s11964_s27 + $0x470] ss:$20 sps:$4 sm:$0xff]  }
 0x11b   : > { %2431 = vmatprep.mubr.bf16.mxu0 %v11250_v19  ;;  %v11388_v19 = vld [vmem:[%s11964_s27 + $0x498] ss:$20 sps:$4 sm:$0xff]   ;;  %10459 = vmatprep.mubr.msk.bf16.mxu1 %vm2102_vm0, %v11387_v18 }
 0x11c   : > { %10460 = vmatmul.mubr.msk.bf16.gmra.mrb[36].mxu1 %vm2102_vm0, %v11388_v19  ;;  %v11392_v19 = vld [vmem:[%s11964_s27 + $0x4bc] ss:$20 sps:$4 sm:$0xff]  }
 0x122   : > { %2432 = vmatmul.mubr.bf16.gmra.mrb[100].mxu0 %v11252_v22  ;;  %v11330_v22 = vld [vmem:[%s11964_s27 + $0x238] ss:$20 sps:$4 sm:$0xff]  }
 0x123   : > { %2439 = vmatprep.mubr.bf16.mxu0 %v11253_v23  ;;  %v11333_v23 = vld [vmem:[%s11964_s27 + $0x264] ss:$20 sps:$4 sm:$0xff]  }
 0x12a   : > { %2440 = vmatmul.mubr.bf16.gmra.mrb[104].mxu0 %v11255_v26  ;;  %v11335_v26 = vld [vmem:[%s11964_s27 + $0x260] ss:$20 sps:$4 sm:$0xff]  }
 0x12b   : > { %2447 = vmatprep.mubr.bf16.mxu0 %v11257_v27  ;;  %v11336_v27 = vld [vmem:[%s11964_s27 + $0x28c] ss:$20 sps:$4 sm:$0xff]  }
 0x132   : > { %2448 = vmatmul.mubr.bf16.gmra.mrb[108].mxu0 %v11259_v30  ;;  %v11343_v30 = vld [vmem:[%s11964_s27 + $0x2b0] ss:$20 sps:$4 sm:$0xff]  }
 0x133   : > { %2455 = vmatprep.mubr.bf16.mxu0 %v11260_v31  ;;  %v11344_v31 = vld [vmem:[%s11964_s27 + $0x2dc] ss:$20 sps:$4 sm:$0xff]  }
 0x13a   : > { %2456 = vmatmul.mubr.bf16.gmra.mrb[112].mxu0 %v11262_v32  ;;  %v11346_v32 = vld [vmem:[%s11964_s27 + $0x2d8] ss:$20 sps:$4 sm:$0xff]  }
 0x13b   : > { %2463 = vmatprep.mubr.bf16.mxu0 %v11264_v33  ;;  %v11349_v33 = vld [vmem:[%s11964_s27 + $0x304] ss:$20 sps:$4 sm:$0xff]  }
 0x142   : > { %2464 = vmatmul.mubr.bf16.gmra.mrb[116].mxu0 %v11266_v36  ;;  %v11354_v36 = vld [vmem:[%s11964_s27 + $0x328] ss:$20 sps:$4 sm:$0xff]  }
 0x143   : > { %2471 = vmatprep.mubr.bf16.mxu0 %v11268_v37  ;;  %v11357_v37 = vld [vmem:[%s11964_s27 + $0x354] ss:$20 sps:$4 sm:$0xff]   ;;  %v12197_v40 = vpop.f32.mrb[0].mxu1 }
 0x144   : > { %v12199_v41 = vpop.f32.mrb[1].mxu1 }
 0x14a   : > { %2472 = vmatmul.mubr.bf16.gmra.mrb[120].mxu0 %v11270_v38  ;;  %v11359_v38 = vld [vmem:[%s11964_s27 + $0x350] ss:$20 sps:$4 sm:$0xff]  }
 0x14b   : > { %2479 = vmatprep.mubr.bf16.mxu0 %v11273_v39  ;;  %v11360_v39 = vld [vmem:[%s11964_s27 + $0x37c] ss:$20 sps:$4 sm:$0xff]  }
 0x152   : > { %2480 = vmatmul.mubr.bf16.gmra.mrb[124].mxu0 %v11275_v42  ;;  %v12201_v42 = vpop.f32.mrb[2].mxu1 }
 0x153   : > { %2520 = vmatprep.mubr.bf16.mxu0 %v11280_v43  ;;  %v12203_v43 = vpop.f32.mrb[3].mxu1 }
 0x157   : > { %v12208_v47 = vpop.f32.mrb[4].mxu1 }
 0x15a   : > { %2521 = vmatmul.mubr.bf16.vlgmr.msra.gmra.mrb[0].mxu0 %v11278_v44  ;;  %v11362_v44 = vld [vmem:[%s11964_s27 + $0x378] ss:$20 sps:$4 sm:$0xff]  }
 0x15b   : > { %2528 = vmatprep.mubr.bf16.mxu0 %v11281_v45  ;;  %10396 = vmatpush3.bf16.msra.mxu0 %v11305_v20  ;;  %v11327_v20 = vld [vmem:[%s11964_s27 + $0x210] ss:$20 sps:$4 sm:$0xff]  }
 0x15c   : > { %10397 = vmatprep.subr.bf16.mxu0 %v12087_v21  ;;  %v11365_v45 = vld [vmem:[%s11964_s27 + $0x3a4] ss:$20 sps:$4 sm:$0xff]  }
 0x15f   : > { %10398 = vmatpush3.bf16.msra.mxu0 %v12087_v21  ;;  %v11328_v21 = vld [vmem:[%s11964_s27 + $0x23c] ss:$20 sps:$4 sm:$0xff]  }
 0x160   : > { %10399 = vmatprep.subr.bf16.mxu0 %v11310_v24 }
 0x162   : > { %2529 = vmatmul.mubr.bf16.gmra.mrb[4].mxu0 %v11283_v48  ;;  %v11368_v48 = vld [vmem:[%s11964_s27 + $0x3cc] ss:$20 sps:$4 sm:$0xff]  }
 0x163   : > { %2536 = vmatprep.mubr.bf16.mxu0 %v11284_v49  ;;  %10400 = vmatpush3.bf16.msra.mxu0 %v11310_v24  ;;  %v11395_v24 = vld [vmem:[%s11964_s27 + $0x4c0] ss:$20 sps:$4 sm:$0xff]   ;;  %v12211_v49 = vpop.f32.mrb[5].mxu1 }
 0x164   : > { %10401 = vmatprep.subr.bf16.mxu0 %v11311_v25  ;;  %10463 = vmatprep.mubr.msk.bf16.mxu1 %vm2102_vm0, %v11395_v24 }
 0x167   : > { %10402 = vmatpush3.bf16.msra.mxu0 %v11311_v25  ;;  %v11396_v25 = vld [vmem:[%s11964_s27 + $0x4e8] ss:$20 sps:$4 sm:$0xff]  }
 0x168   : > { %10464 = vmatmul.mubr.msk.bf16.gmra.mrb[40].mxu1 %vm2102_vm0, %v11396_v25 }
 0x16a   : > { %2537 = vmatmul.mubr.bf16.gmra.mrb[8].mxu0 %v11286_v50  ;;  %v12213_v50 = vpop.f32.mrb[6].mxu1 }
 0x16b   : > { %2544 = vmatprep.mubr.bf16.mxu0 %v11287_v51  ;;  %v12215_v51 = vpop.f32.mrb[7].mxu1 }
 0x172   : > { %2545 = vmatmul.mubr.bf16.gmra.mrb[12].mxu0 %v11289_v54  ;;  %v11375_v54 = vld [vmem:[%s11964_s27 + $0x3f0] ss:$20 sps:$4 sm:$0xff]  }
 0x173   : > { %2552 = vmatprep.mubr.bf16.mxu0 %v11290_v55  ;;  %v12220_v55 = vpop.f32.mrb[8].mxu1 }
 0x17a   : > { %2553 = vmatmul.mubr.bf16.gmra.mrb[16].mxu0 %v11292_v56  ;;  %v11376_v56 = vld [vmem:[%s11964_s27 + $0x41c] ss:$20 sps:$4 sm:$0xff]  }
 0x17b   : > { %2560 = vmatprep.mubr.bf16.mxu0 %v11293_v57  ;;  %v12223_v57 = vpop.f32.mrb[9].mxu1 }
 0x17c   : > { %v12225_v58 = vpop.f32.mrb[10].mxu1 }
 0x17d   : > { %v12227_v59 = vpop.f32.mrb[11].mxu1 }
 0x182   : > { %2561 = vmatmul.mubr.bf16.gmra.mrb[20].mxu0 %v11295_v60  ;;  %v11378_v60 = vld [vmem:[%s11964_s27 + $0x418] ss:$20 sps:$4 sm:$0xff]  }
 0x183   : > { %2568 = vmatprep.mubr.bf16.mxu0 %v11296_v61  ;;  %v11381_v61 = vld [vmem:[%s11964_s27 + $0x444] ss:$20 sps:$4 sm:$0xff]  }
 0x18a   : > { %2569 = vmatmul.mubr.bf16.gmra.mrb[24].mxu0 %v11298_v62 }
 0x18b   : > { %2576 = vmatprep.mubr.bf16.mxu0 %v11299_v63 }
 0x192   : > { %2577 = vmatmul.mubr.bf16.gmra.mrb[28].mxu0 %v11301_v3  ;;  %v11384_v3 = vld [vmem:[%s11964_s27 + $0x46c] ss:$20 sps:$4 sm:$0xff]  }
 0x193   : > { %2584 = vmatprep.mubr.bf16.mxu0 %v11302_v4  ;;  %v12237_v4 = vpop.f32.mrb[12].mxu1 }
 0x19a   : > { %2585 = vmatmul.mubr.bf16.gmra.mrb[32].mxu0 %v11304_v5 }
 0x19b   : > { %2592 = vmatprep.mubr.bf16.mxu0 %v11307_v6  ;;  %v12239_v6 = vpop.f32.mrb[13].mxu1 }
 0x19c   : > { %v12241_v7 = vpop.f32.mrb[14].mxu1 }
 0x19d   : > { %v12243_v8 = vpop.f32.mrb[15].mxu1 }
 0x1a2   : > { %2593 = vmatmul.mubr.bf16.gmra.mrb[36].mxu0 %v11309_v0 }
 0x1a3   : > { %2600 = vmatprep.mubr.bf16.mxu0 %v11312_v9 }
 0x1aa   : > { %2601 = vmatmul.mubr.bf16.gmra.mrb[40].mxu0 %v11314_v10  ;;  %v11386_v10 = vld [vmem:[%s11964_s27 + $0x468] ss:$20 sps:$4 sm:$0xff]  }
 0x1ab   : > { %2608 = vmatprep.mubr.bf16.mxu0 %v11317_v11 }
 0x1b2   : > { %2609 = vmatmul.mubr.bf16.gmra.mrb[44].mxu0 %v11319_v14 }
 0x1b3   : > { %2616 = vmatprep.mubr.bf16.mxu0 %v11320_v15 }
 0x1ba   : > { %2617 = vmatmul.mubr.bf16.gmra.mrb[48].mxu0 %v11322_v16  ;;  %v11391_v16 = vld [vmem:[%s11964_s27 + $0x490] ss:$20 sps:$4 sm:$0xff]  }
 0x1bb   : > { %2624 = vmatprep.mubr.bf16.mxu0 %v11325_v17  ;;  %v12254_v17 = vpop.f32.mrb[16].mxu1 }
 0x1c2   : > { %2625 = vmatmul.mubr.bf16.gmra.mrb[52].mxu0 %v11327_v20  ;;  %v12259_v20 = vpop.f32.mrb[17].mxu1 }
 0x1c3   : > { %2632 = vmatprep.mubr.bf16.mxu0 %v11328_v21 }
 0x1ca   : > { %2633 = vmatmul.mubr.bf16.gmra.mrb[56].mxu0 %v11330_v22  ;;  %v12261_v22 = vpop.f32.mrb[18].mxu1 }
 0x1cb   : > { %2640 = vmatprep.mubr.bf16.mxu0 %v11333_v23  ;;  %v12263_v23 = vpop.f32.mrb[19].mxu1 }
 0x1d2   : > { %2641 = vmatmul.mubr.bf16.gmra.mrb[60].mxu0 %v11335_v26  ;;  %v11394_v26 = vld [vmem:[%s11964_s27 + $0x4b8] ss:$20 sps:$4 sm:$0xff]  }
 0x1d3   : > { %2648 = vmatprep.mubr.bf16.mxu0 %v11336_v27 }
 0x1da   : > { %2649 = vmatmul.mubr.bf16.gmra.mrb[64].mxu0 %v11338_v28  ;;  %v11397_v28 = vld [vmem:[%s11964_s27 + $0x4e4] ss:$20 sps:$4 sm:$0xff]  }
 0x1db   : > { %2656 = vmatprep.mubr.bf16.mxu0 %v11341_v29 }
 0x1e2   : > { %2657 = vmatmul.mubr.bf16.gmra.mrb[68].mxu0 %v11343_v30 }
 0x1e3   : > { %2664 = vmatprep.mubr.bf16.mxu0 %v11344_v31 }
 0x1ea   : > { %2665 = vmatmul.mubr.bf16.gmra.mrb[72].mxu0 %v11346_v32  ;;  %v11399_v32 = vld [vmem:[%s11964_s27 + $0x4e0] ss:$20 sps:$4 sm:$0xff]  }
 0x1eb   : > { %2672 = vmatprep.mubr.bf16.mxu0 %v11349_v33  ;;  %v12274_v33 = vpop.f32.mrb[20].mxu1 }
 0x1f2   : > { %2673 = vmatmul.mubr.bf16.gmra.mrb[76].mxu0 %v11351_v34 }
 0x1f3   : > { %2680 = vmatprep.mubr.bf16.mxu0 %v11352_v35  ;;  %v11400_v35 = vld [vmem:[%s11964_s27 + $0x10] ss:$20 sps:$4 sm:$0xff]  }
 0x1fa   : > { %2681 = vmatmul.mubr.bf16.gmra.mrb[80].mxu0 %v11354_v36  ;;  %v12279_v36 = vpop.f32.mrb[21].mxu1 }
 0x1fb   : > { %2688 = vmatprep.mubr.bf16.mxu0 %v11357_v37 }
 0x202   : > { %2689 = vmatmul.mubr.bf16.gmra.mrb[84].mxu0 %v11359_v38  ;;  %v12281_v38 = vpop.f32.mrb[22].mxu1 }
 0x203   : > { %2696 = vmatprep.mubr.bf16.mxu0 %v11360_v39  ;;  %v12283_v39 = vpop.f32.mrb[23].mxu1 }
 0x20a   : > { %2697 = vmatmul.mubr.bf16.gmra.mrb[88].mxu0 %v11362_v44 }
 0x20b   : > { %2704 = vmatprep.mubr.bf16.mxu0 %v11365_v45 }
 0x212   : > { %2705 = vmatmul.mubr.bf16.gmra.mrb[92].mxu0 %v11367_v46  ;;  %v11401_v46 = vld [vmem:[%s11964_s27 + $0x38] ss:$20 sps:$4 sm:$0xff]  }
 0x213   : > { %2712 = vmatprep.mubr.bf16.mxu0 %v11368_v48 }
 0x21a   : > { %2713 = vmatmul.mubr.bf16.gmra.mrb[96].mxu0 %v11370_v52  ;;  %v11402_v52 = vld [vmem:[%s11964_s27 + $0x60] ss:$20 sps:$4 sm:$0xff]  }
 0x21b   : > { %2720 = vmatprep.mubr.bf16.mxu0 %v11373_v53 }
 0x222   : > { %2721 = vmatmul.mubr.bf16.gmra.mrb[100].mxu0 %v11375_v54 }
 0x223   : > { %2728 = vmatprep.mubr.bf16.mxu0 %v11376_v56 }
 0x22a   : > { %2729 = vmatmul.mubr.bf16.gmra.mrb[104].mxu0 %v11378_v60  ;;  %v11403_v60 = vld [vmem:[%s11964_s27 + $0x88] ss:$20 sps:$4 sm:$0xff]  }
 0x22b   : > { %2736 = vmatprep.mubr.bf16.mxu0 %v11381_v61  ;;  %v12297_v61 = vpop.f32.mrb[24].mxu1 }
 0x22d   : > { %v12231_v62 = vpop.f32.mrb[0].mxu0 }
 0x22e   : > { %v2524_v63 = vpop.f32.mrb[1].mxu0 }
 0x22f   : > { %v12234_v2 = vpop.f32.mrb[2].mxu0 }
 0x230   : > { %v2527_v5 = vpop.f32.mrb[3].mxu0 }
 0x232   : > { %2737 = vmatmul.mubr.bf16.gmra.mrb[108].mxu0 %v11383_v1  ;;  %v11404_v1 = vld [vmem:[%s11964_s27 + $0xb0] ss:$20 sps:$4 sm:$0xff]  }
 0x233   : > { %2744 = vmatprep.mubr.bf16.mxu0 %v11384_v3  ;;  %v12302_v3 = vpop.f32.mrb[25].mxu1 }
 0x235   : > { %v12245_v0 = vpop.f32.mrb[4].mxu0 }
 0x236   : > { %v2532_v9 = vpop.f32.mrb[5].mxu0 }
 0x237   : > { %v12248_v11 = vpop.f32.mrb[6].mxu0  ;;  %v12304_v9 = vpop.f32.mrb[26].mxu1 }
 0x238   : > { %v2535_v13 = vpop.f32.mrb[7].mxu0 }
 0x23a   : > { %2745 = vmatmul.mubr.bf16.gmra.mrb[112].mxu0 %v11386_v10  ;;  %v12306_v10 = vpop.f32.mrb[27].mxu1 }
 0x23b   : > { %2752 = vmatprep.mubr.bf16.mxu0 %v11389_v12 }
 0x23d   : > { %v12251_v14 = vpop.f32.mrb[8].mxu0 }
 0x23e   : > { %v2540_v15 = vpop.f32.mrb[9].mxu0 }
 0x23f   : > { %v12256_v18 = vpop.f32.mrb[10].mxu0  ;;  %v11405_v15 = vld [vmem:[%s11964_s27 + $0xd8] ss:$20 sps:$4 sm:$0xff]  }
 0x240   : > { %v2543_v21 = vpop.f32.mrb[11].mxu0 }
 0x242   : > { %2753 = vmatmul.mubr.bf16.gmra.mrb[116].mxu0 %v11391_v16 }
 0x243   : > { %2760 = vmatprep.mubr.bf16.mxu0 %v11392_v19  ;;  %v11406_v19 = vld [vmem:[%s11964_s27 + $0x100] ss:$20 sps:$4 sm:$0xff]  }
 0x245   : > { %v12265_v24 = vpop.f32.mrb[12].mxu0 }
 0x246   : > { %v2548_v25 = vpop.f32.mrb[13].mxu0 }
 0x247   : > { %v12268_v27 = vpop.f32.mrb[14].mxu0 }
 0x248   : > { %v2551_v29 = vpop.f32.mrb[15].mxu0 }
 0x249   : > { %v12321_v29 = vpop.f32.mrb[28].mxu1 }
 0x24a   : > { %2761 = vmatmul.mubr.bf16.gmra.mrb[120].mxu0 %v11394_v26 }
 0x24b   : > { %2768 = vmatprep.mubr.bf16.mxu0 %v11397_v28  ;;  %v11407_v28 = vld [vmem:[%s11964_s27 + $0x128] ss:$20 sps:$4 sm:$0xff]  }
 0x24d   : > { %v12271_v30 = vpop.f32.mrb[16].mxu0 }
 0x24e   : > { %v2556_v31 = vpop.f32.mrb[17].mxu0 }
 0x24f   : > { %v12276_v34 = vpop.f32.mrb[18].mxu0 }
 0x250   : > { %v2559_v37 = vpop.f32.mrb[19].mxu0 }
 0x252   : > { %2769 = vmatmul.mubr.bf16.gmra.mrb[124].mxu0 %v11399_v32  ;;  %v11408_v32 = vld [vmem:[%s11964_s27 + $0x150] ss:$20 sps:$4 sm:$0xff]  }
 0x253   : > { %10403 = vmatprep.mubr.msk.bf16.mxu0 %vm2102_vm0, %v11400_v35  ;;  %v12326_v35 = vpop.f32.mrb[29].mxu1 }
 0x255   : > { %v12286_v44 = vpop.f32.mrb[20].mxu0 }
 0x256   : > { %v2564_v45 = vpop.f32.mrb[21].mxu0 }
 0x257   : > { %v12289_v48 = vpop.f32.mrb[22].mxu0  ;;  %v12328_v45 = vpop.f32.mrb[30].mxu1 }
 0x258   : > { %v2567_v53 = vpop.f32.mrb[23].mxu0 }
 0x25a   : > { %10404 = vmatmul.mubr.msk.bf16.vlgmr.msra.gmra.mrb[128].mxu0 %vm2102_vm0, %v11401_v46  ;;  %v12330_v46 = vpop.f32.mrb[31].mxu1 }
 0x25b   : > { %10407 = vmatprep.mubr.msk.bf16.mxu0 %vm2102_vm0, %v11402_v52 }
 0x25d   : > { %v12294_v54 = vpop.f32.mrb[24].mxu0 }
 0x25e   : > { %v2572_v56 = vpop.f32.mrb[25].mxu0 }
 0x25f   : > { %v12299_v63 = vpop.f32.mrb[26].mxu0  ;;  %v11409_v56 = vld [vmem:[%s11964_s27 + $0x178] ss:$20 sps:$4 sm:$0xff]  }
 0x260   : > { %17467 = vst [vmem:[#allocation2_spill] sm:$0xff] %v12299_v63  ;;  %v2575_v5 = vpop.f32.mrb[27].mxu0 }
 0x261   : > { %v12344_v5 = vld [vmem:[%s773_s21] ss:$0 sm:$0xff] }
 0x262   : > { %10408 = vmatmul.mubr.msk.bf16.gmra.mrb[132].mxu0 %vm2102_vm0, %v11403_v60 }
 0x263   : > { %10411 = vmatprep.mubr.msk.bf16.mxu0 %vm2102_vm0, %v11404_v1 }
 0x265   : > { %v12310_v12 = vpop.f32.mrb[28].mxu0 }
 0x266   : > { %v2580_v13 = vpop.f32.mrb[29].mxu0 }
 0x267   : > { %v12313_v16 = vpop.f32.mrb[30].mxu0 }
 0x268   : > { %v2583_v21 = vpop.f32.mrb[31].mxu0 }
 0x269   : > { %v12347_v21 = vpop.f32.mrb[32].mxu1 }
 0x26a   : > { %10412 = vmatmul.mubr.msk.bf16.gmra.mrb[136].mxu0 %vm2102_vm0, %v11405_v15 }
 0x26b   : > { %10415 = vmatprep.mubr.msk.bf16.mxu0 %vm2102_vm0, %v11406_v19 }
 0x26d   : > { %v12318_v25 = vpop.f32.mrb[32].mxu0 }
 0x26e   : > { %17468 = vst [vmem:[#allocation3_spill] sm:$0xff] %v12318_v25  ;;  %v2588_v26 = vpop.f32.mrb[33].mxu0 }
 0x26f   : > { %v12323_v31 = vpop.f32.mrb[34].mxu0 }
 0x270   : > { %17469 = vst [vmem:[#allocation4_spill] sm:$0xff] %v12323_v31  ;;  %v2591_v37 = vpop.f32.mrb[35].mxu0 }
 0x272   : > { %10416 = vmatmul.mubr.msk.bf16.gmra.mrb[140].mxu0 %vm2102_vm0, %v11407_v28  ;;  %v12349_v28 = vpop.f32.mrb[33].mxu1 }
 0x273   : > { %10419 = vmatprep.mubr.msk.bf16.mxu0 %vm2102_vm0, %v11408_v32 }
 0x275   : > { %v12334_v52 = vpop.f32.mrb[36].mxu0 }
 0x276   : > { %17470 = vst [vmem:[#allocation5_spill] sm:$0xff] %v12334_v52  ;;  %v2596_v53 = vpop.f32.mrb[37].mxu0 }
 0x277   : > { %v12337_v60 = vpop.f32.mrb[38].mxu0 }
 0x278   : > { %17471 = vst [vmem:[#allocation6_spill] sm:$0xff] %v12337_v60  ;;  %v2599_v1 = vpop.f32.mrb[39].mxu0 }
 0x279   : > { %v12355_v1 = vpop.f32.mrb[34].mxu1 }
 0x27a   : > { %10420 = vmatmul.mubr.msk.bf16.gmra.mrb[144].mxu0 %vm2102_vm0, %v11409_v56  ;;  %v12357_v56 = vpop.f32.mrb[35].mxu1 }
 0x27d   : > { %v2602_v13 = vpop.f32.mrb[40].mxu0 }
 0x27e   : > { %v10947_v15 = vadd.f32 %v12344_v5, %v2602_v13  ;;  %v2604_v19 = vpop.f32.mrb[41].mxu0 }
 0x27f   : > { %v2605_v26 = vpop.f32.mrb[42].mxu0 }
 0x280   : > { %v10948_v32 = vadd.f32 %v12344_v5, %v2605_v26  ;;  %v12353_v37 = vadd.f32 %v10947_v15, %v12199_v41  ;;  %v2607_v53 = vpop.f32.mrb[43].mxu0 }
 0x282   : > { %17472 = vst [vmem:[#allocation7_spill] sm:$0xff] %v12353_v37  ;;  %v12360_v31 = vadd.f32 %v10948_v32, %v12203_v43  ;;  %v12371_v43 = vpop.f32.mrb[36].mxu1 }
 0x284   : > { %17473 = vst [vmem:[#allocation8_spill] sm:$0xff] %v12360_v31  ;;  %v12373_v31 = vpop.f32.mrb[37].mxu1 }
 0x285   : > { %v2610_v13 = vpop.f32.mrb[44].mxu0 }
 0x286   : > { %v10949_v19 = vadd.f32 %v12344_v5, %v2610_v13  ;;  %v2612_v60 = vpop.f32.mrb[45].mxu0 }
 0x287   : > { %v2613_v25 = vpop.f32.mrb[46].mxu0 }
 0x288   : > { %v12364_v52 = vadd.f32 %v10949_v19, %v12197_v40  ;;  %v10950_v26 = vadd.f32 %v12344_v5, %v2613_v25  ;;  %v2615_v41 = vpop.f32.mrb[47].mxu0  ;;  %v12379_v25 = vpop.f32.mrb[38].mxu1 }
 0x28a   : > { %17474 = vst [vmem:[#allocation9_spill] sm:$0xff] %v12364_v52  ;;  %v12368_v15 = vadd.f32 %v10950_v26, %v12201_v42  ;;  %v12381_v42 = vpop.f32.mrb[39].mxu1 }
 0x28c   : > { %17475 = vst [vmem:[#allocation10_spill] sm:$0xff] %v12368_v15 }
 0x28d   : > { %v2618_v53 = vpop.f32.mrb[48].mxu0 }
 0x28e   : > { %v10951_v37 = vadd.f32 %v12344_v5, %v2618_v53  ;;  %v2620_v63 = vpop.f32.mrb[49].mxu0 }
 0x28f   : > { %v2621_v32 = vpop.f32.mrb[50].mxu0 }
 0x290   : > { %v10952_v60 = vadd.f32 %v12344_v5, %v2621_v32  ;;  %v12377_v40 = vadd.f32 %v10951_v37, %v12211_v49  ;;  %v2623_v13 = vpop.f32.mrb[51].mxu0 }
 0x292   : > { %17476 = vst [vmem:[#allocation11_spill] sm:$0xff] %v12377_v40  ;;  %v12384_v19 = vadd.f32 %v10952_v60, %v12215_v51  ;;  %v12395_v51 = vpop.f32.mrb[40].mxu1 }
 0x294   : > { %17477 = vst [vmem:[#allocation12_spill] sm:$0xff] %v12384_v19 }
 0x295   : > { %v2626_v63 = vpop.f32.mrb[52].mxu0 }
 0x296   : > { %v10953_v26 = vadd.f32 %v12344_v5, %v2626_v63  ;;  %v2628_v41 = vpop.f32.mrb[53].mxu0 }
 0x297   : > { %v2629_v53 = vpop.f32.mrb[54].mxu0 }
 0x298   : > { %v12388_v15 = vadd.f32 %v10953_v26, %v12208_v47  ;;  %v10954_v49 = vadd.f32 %v12344_v5, %v2629_v53  ;;  %v2631_v37 = vpop.f32.mrb[55].mxu0  ;;  %v12406_v47 = vpop.f32.mrb[41].mxu1  ;;  %v11410_v26 = vld [vmem:[%s12404_s3] sm:$0xff]  }
 0x299   : > { %v12413_v41 = vpop.f32.mrb[42].mxu1  ;;  %10467 = vmatprep.subr.bf16.mxu1 %v11410_v26 }
 0x29a   : > { %17478 = vst [vmem:[#allocation13_spill] sm:$0xff] %v12388_v15  ;;  %v12392_v32 = vadd.f32 %v10954_v49, %v12213_v50  ;;  %v12418_v49 = vpop.f32.mrb[43].mxu1  ;;  %10468 = vmatpush3.bf16.msra.mxu1 %v11410_v26 }
 0x29c   : > { %17479 = vst [vmem:[#allocation14_spill] sm:$0xff] %v12392_v32 }
 0x29d   : > { %v2634_v13 = vpop.f32.mrb[56].mxu0 }
 0x29e   : > { %v10955_v40 = vadd.f32 %v12344_v5, %v2634_v13  ;;  %v2636_v52 = vpop.f32.mrb[57].mxu0 }
 0x29f   : > { %v2637_v60 = vpop.f32.mrb[58].mxu0 }
 0x2a0   : > { %v10956_v50 = vadd.f32 %v12344_v5, %v2637_v60  ;;  %v12410_v63 = vadd.f32 %v10955_v40, %v12223_v57  ;;  %v2639_v52 = vpop.f32.mrb[59].mxu0 }
 0x2a2   : > { %17480 = vst [vmem:[#allocation15_spill] sm:$0xff] %v12410_v63  ;;  %v12416_v53 = vadd.f32 %v10956_v50, %v12227_v59  ;;  %v11411_v63 = vld [vmem:[%s12404_s3 + $0x8] sm:$0xff]   ;;  %v11412_v50 = vld [vmem:[%s12404_s3 + $0x10] sm:$0xff]  }
 0x2a3   : > { %10469 = vmatprep.subr.bf16.mxu1 %v11411_v63 }
 0x2a4   : > { %17481 = vst [vmem:[#allocation16_spill] sm:$0xff] %v12416_v53  ;;  %10470 = vmatpush3.bf16.msra.mxu1 %v11411_v63 }
 0x2a5   : > { %v2642_v37 = vpop.f32.mrb[60].mxu0  ;;  %10471 = vmatprep.subr.bf16.mxu1 %v11412_v50 }
 0x2a6   : > { %v10957_v13 = vadd.f32 %v12344_v5, %v2642_v37  ;;  %v2644_v60 = vpop.f32.mrb[61].mxu0 }
 0x2a7   : > { %v2645_v32 = vpop.f32.mrb[62].mxu0 }
 0x2a8   : > { %v12422_v57 = vadd.f32 %v10957_v13, %v12220_v55  ;;  %v10958_v40 = vadd.f32 %v12344_v5, %v2645_v32  ;;  %v2647_v52 = vpop.f32.mrb[63].mxu0  ;;  %10472 = vmatpush3.bf16.msra.mxu1 %v11412_v50 }
 0x2a9   : > { %v11413_v52 = vld [vmem:[%s12404_s3 + $0x18] sm:$0xff]   ;;  %s9812_s3 = sshll.u32 %s11957_s23, 4 }
 0x2aa   : > { %17482 = vst [vmem:[#allocation17_spill] sm:$0xff] %v12422_v57  ;;  %v12427_v59 = vadd.f32 %v10958_v40, %v12225_v58  ;;  %10473 = vmatprep.subr.bf16.mxu1 %v11413_v52 }
 0x2ac   : > { %17483 = vst [vmem:[#allocation18_spill] sm:$0xff] %v12427_v59  ;;  %10474 = vmatpush3.bf16.msra.mxu1 %v11413_v52 }
 0x2ad   : > { %v2650_v26 = vpop.f32.mrb[64].mxu0 }
 0x2ae   : > { %v10959_v53 = vadd.f32 %v12344_v5, %v2650_v26  ;;  %v2652_v37 = vpop.f32.mrb[65].mxu0 }
 0x2af   : > { %v2653_v60 = vpop.f32.mrb[66].mxu0 }
 0x2b0   : > { %v10960_v55 = vadd.f32 %v12344_v5, %v2653_v60  ;;  %v12433_v32 = vadd.f32 %v10959_v53, %v12239_v6  ;;  %v2655_v13 = vpop.f32.mrb[67].mxu0 }
 0x2b2   : > { %17484 = vst [vmem:[#allocation19_spill] sm:$0xff] %v12433_v32  ;;  %v12437_v58 = vadd.f32 %v10960_v55, %v12243_v8 }
 0x2b4   : > { %17485 = vst [vmem:[#allocation20_spill] sm:$0xff] %v12437_v58 }
 0x2b5   : > { %v2658_v63 = vpop.f32.mrb[68].mxu0 }
 0x2b6   : > { %v10961_v40 = vadd.f32 %v12344_v5, %v2658_v63  ;;  %v2660_v26 = vpop.f32.mrb[69].mxu0 }
 0x2b7   : > { %v2661_v37 = vpop.f32.mrb[70].mxu0 }
 0x2b8   : > { %v12441_v59 = vadd.f32 %v10961_v40, %v12237_v4  ;;  %v10962_v50 = vadd.f32 %v12344_v5, %v2661_v37  ;;  %v2663_v60 = vpop.f32.mrb[71].mxu0 }
 0x2ba   : > { %17486 = vst [vmem:[#allocation21_spill] sm:$0xff] %v12441_v59  ;;  %v12445_v6 = vadd.f32 %v10962_v50, %v12241_v7 }
 0x2bc   : > { %17487 = vst [vmem:[#allocation22_spill] sm:$0xff] %v12445_v6 }
 0x2bd   : > { %v2666_v53 = vpop.f32.mrb[72].mxu0 }
 0x2be   : > { %v10963_v8 = vadd.f32 %v12344_v5, %v2666_v53  ;;  %v2668_v55 = vpop.f32.mrb[73].mxu0 }
 0x2bf   : > { %v2669_v13 = vpop.f32.mrb[74].mxu0 }
 0x2c0   : > { %v10964_v52 = vadd.f32 %v12344_v5, %v2669_v13  ;;  %v12450_v63 = vadd.f32 %v10963_v8, %v12259_v20  ;;  %v2671_v26 = vpop.f32.mrb[75].mxu0 }
 0x2c2   : > { %17488 = vst [vmem:[#allocation23_spill] sm:$0xff] %v12450_v63  ;;  %v12453_v4 = vadd.f32 %v10964_v52, %v12263_v23 }
 0x2c4   : > { %17489 = vst [vmem:[#allocation24_spill] sm:$0xff] %v12453_v4 }
 0x2c5   : > { %v2674_v40 = vpop.f32.mrb[76].mxu0 }
 0x2c6   : > { %v10965_v37 = vadd.f32 %v12344_v5, %v2674_v40  ;;  %v2676_v60 = vpop.f32.mrb[77].mxu0 }
 0x2c7   : > { %v2677_v7 = vpop.f32.mrb[78].mxu0 }
 0x2c8   : > { %v12457_v50 = vadd.f32 %v10965_v37, %v12254_v17  ;;  %v10966_v53 = vadd.f32 %v12344_v5, %v2677_v7  ;;  %v2679_v55 = vpop.f32.mrb[79].mxu0 }
 0x2ca   : > { %17490 = vst [vmem:[#allocation25_spill] sm:$0xff] %v12457_v50  ;;  %v12461_v13 = vadd.f32 %v10966_v53, %v12261_v22 }
 0x2cc   : > { %17491 = vst [vmem:[#allocation26_spill] sm:$0xff] %v12461_v13 }
 0x2cd   : > { %v2682_v20 = vpop.f32.mrb[80].mxu0 }
 0x2ce   : > { %v10967_v8 = vadd.f32 %v12344_v5, %v2682_v20  ;;  %v2684_v26 = vpop.f32.mrb[81].mxu0 }
 0x2cf   : > { %v2685_v23 = vpop.f32.mrb[82].mxu0 }
 0x2d0   : > { %v10968_v52 = vadd.f32 %v12344_v5, %v2685_v23  ;;  %v12466_v40 = vadd.f32 %v10967_v8, %v12279_v36  ;;  %v2687_v60 = vpop.f32.mrb[83].mxu0 }
 0x2d2   : > { %17492 = vst [vmem:[#allocation27_spill] sm:$0xff] %v12466_v40  ;;  %v12469_v17 = vadd.f32 %v10968_v52, %v12283_v39 }
 0x2d4   : > { %17493 = vst [vmem:[#allocation28_spill] sm:$0xff] %v12469_v17 }
 0x2d5   : > { %v2690_v37 = vpop.f32.mrb[84].mxu0 }
 0x2d6   : > { %v10969_v7 = vadd.f32 %v12344_v5, %v2690_v37  ;;  %v2692_v55 = vpop.f32.mrb[85].mxu0 }
 0x2d7   : > { %v2693_v22 = vpop.f32.mrb[86].mxu0 }
 0x2d8   : > { %v12473_v53 = vadd.f32 %v10969_v7, %v12274_v33  ;;  %v10970_v20 = vadd.f32 %v12344_v5, %v2693_v22  ;;  %v2695_v26 = vpop.f32.mrb[87].mxu0 }
 0x2da   : > { %17494 = vst [vmem:[#allocation29_spill] sm:$0xff] %v12473_v53  ;;  %v12477_v23 = vadd.f32 %v10970_v20, %v12281_v38 }
 0x2dc   : > { %17495 = vst [vmem:[#allocation30_spill] sm:$0xff] %v12477_v23 }
 0x2dd   : > { %v2698_v36 = vpop.f32.mrb[88].mxu0 }
 0x2de   : > { %v10971_v8 = vadd.f32 %v12344_v5, %v2698_v36  ;;  %v2700_v60 = vpop.f32.mrb[89].mxu0 }
 0x2df   : > { %v2701_v39 = vpop.f32.mrb[90].mxu0 }
 0x2e0   : > { %v10972_v52 = vadd.f32 %v12344_v5, %v2701_v39  ;;  %v12482_v37 = vadd.f32 %v10971_v8, %v12302_v3  ;;  %v2703_v55 = vpop.f32.mrb[91].mxu0 }
 0x2e2   : > { %17496 = vst [vmem:[#allocation31_spill] sm:$0xff] %v12482_v37  ;;  %v12485_v33 = vadd.f32 %v10972_v52, %v12306_v10 }
 0x2e4   : > { %17497 = vst [vmem:[#allocation32_spill] sm:$0xff] %v12485_v33 }
 0x2e5   : > { %v2706_v7 = vpop.f32.mrb[92].mxu0 }
 0x2e6   : > { %v10973_v22 = vadd.f32 %v12344_v5, %v2706_v7  ;;  %v2708_v26 = vpop.f32.mrb[93].mxu0 }
 0x2e7   : > { %v2709_v38 = vpop.f32.mrb[94].mxu0 }
 0x2e8   : > { %v12489_v20 = vadd.f32 %v10973_v22, %v12297_v61  ;;  %v10974_v36 = vadd.f32 %v12344_v5, %v2709_v38  ;;  %v2711_v60 = vpop.f32.mrb[95].mxu0 }
 0x2ea   : > { %17498 = vst [vmem:[#allocation33_spill] sm:$0xff] %v12489_v20  ;;  %v12493_v39 = vadd.f32 %v10974_v36, %v12304_v9  ;;  %v12511_v36 = vld [vmem:[%s12508_s28] sm:$0xff]  }
 0x2eb   : > { %10539 = vmatprep.subr.bf16.mxu1 %v12511_v36 }
 0x2ec   : > { %17499 = vst [vmem:[#allocation34_spill] sm:$0xff] %v12493_v39 }
 0x2ed   : > { %v2714_v3 = vpop.f32.mrb[96].mxu0 }
 0x2ee   : > { %v10975_v8 = vadd.f32 %v12344_v5, %v2714_v3  ;;  %v2716_v10 = vpop.f32.mrb[97].mxu0 }
 0x2ef   : > { %v2717_v52 = vpop.f32.mrb[98].mxu0 }
 0x2f0   : > { %v10976_v55 = vadd.f32 %v12344_v5, %v2717_v52  ;;  %v12498_v7 = vadd.f32 %v10975_v8, %v12326_v35  ;;  %v2719_v26 = vpop.f32.mrb[99].mxu0 }
 0x2f2   : > { %17500 = vst [vmem:[#allocation35_spill] sm:$0xff] %v12498_v7  ;;  %v12501_v61 = vadd.f32 %v10976_v55, %v12330_v46 }
 0x2f4   : > { %17501 = vst [vmem:[#allocation36_spill] sm:$0xff] %v12501_v61 }
 0x2f5   : > { %v2722_v22 = vpop.f32.mrb[100].mxu0 }
 0x2f6   : > { %v10977_v38 = vadd.f32 %v12344_v5, %v2722_v22  ;;  %v2724_v60 = vpop.f32.mrb[101].mxu0 }
 0x2f7   : > { %v2725_v9 = vpop.f32.mrb[102].mxu0 }
 0x2f8   : > { %v12514_v35 = vadd.f32 %v10977_v38, %v12321_v29  ;;  %v10978_v3 = vadd.f32 %v12344_v5, %v2725_v9  ;;  %v2727_v46 = vpop.f32.mrb[103].mxu0 }
 0x2fa   : > { %17502 = vst [vmem:[#allocation37_spill] sm:$0xff] %v12514_v35  ;;  %v12519_v8 = vadd.f32 %v10978_v3, %v12328_v45 }
 0x2fc   : > { %17503 = vst [vmem:[#allocation38_spill] sm:$0xff] %v12519_v8 }
 0x2fd   : > { %v2730_v10 = vpop.f32.mrb[104].mxu0 }
 0x2fe   : > { %v10979_v52 = vadd.f32 %v12344_v5, %v2730_v10  ;;  %v2732_v55 = vpop.f32.mrb[105].mxu0 }
 0x2ff   : > { %v2733_v26 = vpop.f32.mrb[106].mxu0 }
 0x300   : > { %v10980_v22 = vadd.f32 %v12344_v5, %v2733_v26  ;;  %v12524_v60 = vadd.f32 %v10979_v52, %v12349_v28  ;;  %v2735_v29 = vpop.f32.mrb[107].mxu0 }
 0x302   : > { %17504 = vst [vmem:[#allocation39_spill] sm:$0xff] %v12524_v60  ;;  %v12527_v38 = vadd.f32 %v10980_v22, %v12357_v56 }
 0x304   : > { %17505 = vst [vmem:[#allocation40_spill] sm:$0xff] %v12527_v38 }
 0x305   : > { %v2738_v9 = vpop.f32.mrb[108].mxu0 }
 0x306   : > { %v10981_v46 = vadd.f32 %v12344_v5, %v2738_v9  ;;  %v2740_v35 = vpop.f32.mrb[109].mxu0 }
 0x307   : > { %v2741_v45 = vpop.f32.mrb[110].mxu0 }
 0x308   : > { %v12531_v3 = vadd.f32 %v10981_v46, %v12347_v21  ;;  %v10982_v10 = vadd.f32 %v12344_v5, %v2741_v45  ;;  %v2743_v55 = vpop.f32.mrb[111].mxu0 }
 0x30a   : > { %17506 = vst [vmem:[#allocation41_spill] sm:$0xff] %v12531_v3  ;;  %v12535_v26 = vadd.f32 %v10982_v10, %v12355_v1 }
 0x30c   : > { %17507 = vst [vmem:[#allocation42_spill] sm:$0xff] %v12535_v26 }
 0x30d   : > { %v2746_v28 = vpop.f32.mrb[112].mxu0 }
 0x30e   : > { %v10983_v52 = vadd.f32 %v12344_v5, %v2746_v28  ;;  %v2748_v29 = vpop.f32.mrb[113].mxu0 }
 0x30f   : > { %v2749_v56 = vpop.f32.mrb[114].mxu0 }
 0x310   : > { %v10984_v22 = vadd.f32 %v12344_v5, %v2749_v56  ;;  %v12540_v9 = vadd.f32 %v10983_v52, %v12373_v31  ;;  %v2751_v35 = vpop.f32.mrb[115].mxu0 }
 0x312   : > { %17508 = vst [vmem:[#allocation43_spill] sm:$0xff] %v12540_v9  ;;  %v12543_v21 = vadd.f32 %v10984_v22, %v12381_v42 }
 0x314   : > { %17509 = vst [vmem:[#allocation44_spill] sm:$0xff] %v12543_v21 }
 0x315   : > { %v2754_v46 = vpop.f32.mrb[116].mxu0 }
 0x316   : > { %v10985_v45 = vadd.f32 %v12344_v5, %v2754_v46  ;;  %v2756_v55 = vpop.f32.mrb[117].mxu0 }
 0x317   : > { %v2757_v1 = vpop.f32.mrb[118].mxu0 }
 0x318   : > { %v12547_v10 = vadd.f32 %v10985_v45, %v12371_v43  ;;  %v10986_v28 = vadd.f32 %v12344_v5, %v2757_v1  ;;  %v2759_v29 = vpop.f32.mrb[119].mxu0 }
 0x31a   : > { %17510 = vst [vmem:[#allocation45_spill] sm:$0xff] %v12547_v10  ;;  %v12551_v56 = vadd.f32 %v10986_v28, %v12379_v25 }
 0x31c   : > { %17511 = vst [vmem:[#allocation46_spill] sm:$0xff] %v12551_v56 }
 0x31d   : > { %v2762_v31 = vpop.f32.mrb[120].mxu0 }
 0x31e   : > { %v10987_v52 = vadd.f32 %v12344_v5, %v2762_v31  ;;  %v2764_v35 = vpop.f32.mrb[121].mxu0 }
 0x31f   : > { %v2765_v42 = vpop.f32.mrb[122].mxu0 }
 0x320   : > { %v10988_v22 = vadd.f32 %v12344_v5, %v2765_v42  ;;  %v12556_v46 = vadd.f32 %v10987_v52, %v12406_v47  ;;  %v2767_v55 = vpop.f32.mrb[123].mxu0  ;;  %v10929_v47 = vadd.f32 %v12344_v5, %v12245_v0  ;;  %v10927_v52 = vadd.f32 %v12344_v5, %v12231_v62 }
 0x322   : > { %17512 = vst [vmem:[#allocation47_spill] sm:$0xff] %v12556_v46  ;;  %v12559_v43 = vadd.f32 %v10988_v22, %v12418_v49 }
 0x324   : > { %17513 = vst [vmem:[#allocation48_spill] sm:$0xff] %v12559_v43 }
 0x325   : > { %v2770_v45 = vpop.f32.mrb[124].mxu0 }
 0x326   : > { %v10989_v1 = vadd.f32 %v12344_v5, %v2770_v45  ;;  %v2772_v29 = vpop.f32.mrb[125].mxu0 }
 0x327   : > { %v2773_v25 = vpop.f32.mrb[126].mxu0 }
 0x328   : > { %v12563_v28 = vadd.f32 %v10989_v1, %v12395_v51  ;;  %v10990_v31 = vadd.f32 %v12344_v5, %v2773_v25  ;;  %v2775_v35 = vpop.f32.mrb[127].mxu0  ;;  %v10930_v51 = vadd.f32 %v12344_v5, %v12248_v11  ;;  %v10933_v11 = vadd.f32 %v12344_v5, %v12265_v24 }
 0x329   : > { %v11415_v35 = vld [vmem:[%s12508_s28 + $0x8] sm:$0xff]  }
 0x32a   : > { %17514 = vst [vmem:[#allocation49_spill] sm:$0xff] %v12563_v28  ;;  %v12567_v42 = vadd.f32 %v10990_v31, %v12413_v41  ;;  %v10928_v41 = vadd.f32 %v12344_v5, %v12234_v2  ;;  %v10931_v2 = vadd.f32 %v12344_v5, %v12251_v14 }
 0x32c   : > { %17515 = vst [vmem:[#allocation50_spill] sm:$0xff] %v12567_v42 }
 0x32d   : > { %v10405_v49 = vpop.f32.mrb[128].mxu0 }
 0x32e   : > { %v12573_v22 = vadd.f32 %v10929_v47, %v10405_v49  ;;  %v2811_v55 = vpop.f32.mrb[129].mxu0 }
 0x32f   : > { %v12577_v45 = vadd.f32 %v10927_v52, %v2811_v55  ;;  %v10406_v1 = vpop.f32.mrb[130].mxu0  ;;  %v10934_v55 = vadd.f32 %v12344_v5, %v12268_v27  ;;  %v10937_v27 = vadd.f32 %v12344_v5, %v12286_v44 }
 0x330   : > { %17516 = vst [vmem:[#allocation51_spill] sm:$0xff] %v12573_v22  ;;  %v12581_v29 = vadd.f32 %v10930_v51, %v10406_v1  ;;  %v2814_v25 = vpop.f32.mrb[131].mxu0  ;;  %v10932_v1 = vadd.f32 %v12344_v5, %v12256_v18 }
 0x331   : > { %17517 = vst [vmem:[#allocation52_spill] sm:$0xff] %v12577_v45  ;;  %v12583_v0 = vadd.f32 %v10928_v41, %v2814_v25  ;;  %v11416_v25 = vld [vmem:[%s12508_s28 + $0x10] sm:$0xff]  }
 0x332   : > { %17518 = vst [vmem:[#allocation53_spill] sm:$0xff] %v12581_v29  ;;  %v12591_v31 = vpack.c.bf16 %v12581_v29, %v12573_v22 }
 0x333   : > { %17519 = vst [vmem:[#allocation54_spill] sm:$0xff] %v12583_v0  ;;  %v12587_v62 = vpack.c.bf16 %v12583_v0, %v12577_v45 }
 0x335   : > { %v10409_v47 = vpop.f32.mrb[132].mxu0  ;;  %10475 = vmatprep.mubr.msk.bf16.mxu1 %vm2102_vm0, %v12587_v62 }
 0x336   : > { %v12600_v49 = vadd.f32 %v10933_v11, %v10409_v47  ;;  %v2827_v52 = vpop.f32.mrb[133].mxu0  ;;  %10476 = vmatmul.mubr.msk.bf16.vlgmr.msra.gmra.mrb[44].mxu1 %vm2102_vm0, %v12591_v31 }
 0x337   : > { %v12606_v24 = vadd.f32 %v10931_v2, %v2827_v52  ;;  %v10410_v51 = vpop.f32.mrb[134].mxu0  ;;  %10540 = vmatpush3.bf16.msra.mxu1 %v12511_v36  ;;  %v11417_v36 = vld [vmem:[%s12508_s28 + $0x18] sm:$0xff]   ;;  %v10935_v52 = vadd.f32 %v12344_v5, %v12271_v30  ;;  %s794_s28 = scalar_lea.vmem %s17183_s12, %s9812_s3  ;;  %s800_s3 = scalar_lea.vmem %s17185_s14, %s11957_s23 }
 0x338   : > { %17520 = vst [vmem:[#allocation55_spill] sm:$0xff] %v12600_v49  ;;  %v12611_v41 = vadd.f32 %v10934_v55, %v10410_v51  ;;  %v2830_v14 = vpop.f32.mrb[135].mxu0  ;;  %10541 = vmatprep.subr.bf16.mxu1 %v11415_v35  ;;  %v10938_v55 = vadd.f32 %v12344_v5, %v12289_v48 }
 0x339   : > { %17521 = vst [vmem:[#allocation56_spill] sm:$0xff] %v12606_v24  ;;  %v12614_v11 = vadd.f32 %v10932_v1, %v2830_v14  ;;  %v10936_v14 = vadd.f32 %v12344_v5, %v12276_v34  ;;  %v10939_v34 = vadd.f32 %v12344_v5, %v12294_v54 }
 0x33a   : > { %17522 = vst [vmem:[#allocation57_spill] sm:$0xff] %v12611_v41  ;;  %v12624_v18 = vpack.c.bf16 %v12611_v41, %v12600_v49 }
 0x33b   : > { %17523 = vst [vmem:[#allocation58_spill] sm:$0xff] %v12614_v11  ;;  %v12618_v47 = vpack.c.bf16 %v12614_v11, %v12606_v24  ;;  %10542 = vmatpush3.bf16.msra.mxu1 %v11415_v35 }
 0x33c   : > { %10543 = vmatprep.subr.bf16.mxu1 %v11416_v25 }
 0x33d   : > { %v10413_v2 = vpop.f32.mrb[136].mxu0  ;;  %10479 = vmatprep.mubr.msk.bf16.mxu1 %vm2102_vm0, %v12618_v47 }
 0x33e   : > { %v12633_v35 = vadd.f32 %v10937_v27, %v10413_v2  ;;  %v2843_v51 = vpop.f32.mrb[137].mxu0  ;;  %10480 = vmatmul.mubr.msk.bf16.gmra.mrb[48].mxu1 %vm2102_vm0, %v12624_v18  ;;  %v10941_v27 = vadd.f32 %v12344_v5, %v12310_v12  ;;  %v17529_v12 = vld [vmem:[#allocation2_spill] sm:$0xff] }
 0x33f   : > { %v12637_v44 = vadd.f32 %v10935_v52, %v2843_v51  ;;  %v10414_v1 = vpop.f32.mrb[138].mxu0  ;;  %10544 = vmatpush3.bf16.msra.mxu1 %v11416_v25 }
 0x340   : > { %17524 = vst [vmem:[#allocation59_spill] sm:$0xff] %v12633_v35  ;;  %v12641_v41 = vadd.f32 %v10938_v55, %v10414_v1  ;;  %v2846_v49 = vpop.f32.mrb[139].mxu0  ;;  %10545 = vmatprep.subr.bf16.mxu1 %v11417_v36  ;;  %v10940_v55 = vadd.f32 %v12344_v5, %v17529_v12  ;;  %v17534_v12 = vld [vmem:[#allocation3_spill] sm:$0xff] }
 0x341   : > { %17525 = vst [vmem:[#allocation60_spill] sm:$0xff] %v12637_v44  ;;  %v12643_v30 = vadd.f32 %v10936_v14, %v2846_v49  ;;  %v10942_v49 = vadd.f32 %v12344_v5, %v12313_v16 }
 0x342   : > { %17526 = vst [vmem:[#allocation61_spill] sm:$0xff] %v12641_v41  ;;  %v12653_v2 = vpack.c.bf16 %v12641_v41, %v12633_v35 }
 0x343   : > { %17527 = vst [vmem:[#allocation62_spill] sm:$0xff] %v12643_v30  ;;  %v12647_v48 = vpack.c.bf16 %v12643_v30, %v12637_v44  ;;  %10546 = vmatpush3.bf16.msra.mxu1 %v11417_v36  ;;  %v17542_v44 = vld [vmem:[#allocation8_spill] sm:$0xff] }
 0x345   : > { %v10417_v25 = vpop.f32.mrb[140].mxu0  ;;  %10483 = vmatprep.mubr.msk.bf16.mxu1 %vm2102_vm0, %v12647_v48 }
 0x346   : > { %v12661_v52 = vadd.f32 %v10941_v27, %v10417_v25  ;;  %v2859_v36 = vpop.f32.mrb[141].mxu0  ;;  %10484 = vmatmul.mubr.msk.bf16.gmra.mrb[52].mxu1 %vm2102_vm0, %v12653_v2  ;;  %v17533_v27 = vld [vmem:[#allocation5_spill] sm:$0xff] }
 0x347   : > { %v12667_v51 = vadd.f32 %v10939_v34, %v2859_v36  ;;  %v10418_v1 = vpop.f32.mrb[142].mxu0  ;;  %v10945_v25 = vadd.f32 %v12344_v5, %v17533_v27  ;;  %v10943_v34 = vadd.f32 %v12344_v5, %v17534_v12  ;;  %v17537_v27 = vld [vmem:[#allocation4_spill] sm:$0xff] }
 0x348   : > { %17528 = vst [vmem:[#allocation63_spill] sm:$0xff] %v12661_v52  ;;  %v12669_v54 = vadd.f32 %v10942_v49, %v10418_v1  ;;  %v2862_v14 = vpop.f32.mrb[143].mxu0  ;;  %v17535_v49 = vld [vmem:[#allocation6_spill] sm:$0xff] }
 0x349   : > { %17530 = vst [vmem:[#allocation2_spill] sm:$0xff] %v12667_v51  ;;  %v12671_v41 = vadd.f32 %v10940_v55, %v2862_v14  ;;  %v10946_v55 = vadd.f32 %v12344_v5, %v17535_v49 }
 0x34a   : > { %17531 = vst [vmem:[#allocation64_spill] sm:$0xff] %v12669_v54  ;;  %v12681_v35 = vpack.c.bf16 %v12669_v54, %v12661_v52  ;;  %v10944_v54 = vadd.f32 %v12344_v5, %v17537_v27  ;;  %v17543_v5 = vld [vmem:[#allocation9_spill] sm:$0xff]  ;;  %v17547_v27 = vld [vmem:[#allocation15_spill] sm:$0xff] }
 0x34b   : > { %17532 = vst [vmem:[#allocation65_spill] sm:$0xff] %v12671_v41  ;;  %v12675_v16 = vpack.c.bf16 %v12671_v41, %v12667_v51 }
 0x34d   : > { %v10421_v36 = vpop.f32.mrb[144].mxu0  ;;  %10487 = vmatprep.mubr.msk.bf16.mxu1 %vm2102_vm0, %v12675_v16 }
 0x34e   : > { %v12689_v1 = vadd.f32 %v10945_v25, %v10421_v36  ;;  %v2875_v14 = vpop.f32.mrb[145].mxu0  ;;  %10488 = vmatmul.mubr.msk.bf16.gmra.mrb[56].mxu1 %vm2102_vm0, %v12681_v35  ;;  %v17541_v36 = vld [vmem:[#allocation7_spill] sm:$0xff] }
 0x34f   : > { %v12695_v52 = vadd.f32 %v10943_v34, %v2875_v14  ;;  %v10422_v41 = vpop.f32.mrb[146].mxu0  ;;  %v3076_v11 = vpack.c.bf16 %v17542_v44, %v17541_v36  ;;  %v17548_v44 = vld [vmem:[#allocation16_spill] sm:$0xff] }
 0x350   : > { %17536 = vst [vmem:[#allocation5_spill] sm:$0xff] %v12689_v1  ;;  %v12697_v12 = vadd.f32 %v10946_v55, %v10422_v41  ;;  %v2878_v51 = vpop.f32.mrb[147].mxu0  ;;  %v17544_v41 = vld [vmem:[#allocation10_spill] sm:$0xff]  ;;  %v3080_v36 = vpack.c.bf16 %v17548_v44, %v17547_v27  ;;  %v3084_v44 = vpack.c.bf16 %v12453_v4, %v12450_v63  ;;  %v3089_v27 = vpack.c.bf16 %v12493_v39, %v12489_v20 }
 0x351   : > { %17538 = vst [vmem:[#allocation3_spill] sm:$0xff] %v12695_v52  ;;  %v12699_v30 = vadd.f32 %v10944_v54, %v2878_v51  ;;  %v3077_v34 = vpack.c.bf16 %v17544_v41, %v17543_v5  ;;  %v17545_v51 = vld [vmem:[#allocation11_spill] sm:$0xff]  ;;  %v17546_v55 = vld [vmem:[#allocation14_spill] sm:$0xff] }
 0x352   : > { %17539 = vst [vmem:[#allocation6_spill] sm:$0xff] %v12697_v12  ;;  %v3075_v25 = vpack.c.bf16 %v12697_v12, %v12689_v1  ;;  %v3078_v54 = vpack.c.bf16 %v12384_v19, %v17545_v51  ;;  %v3079_v14 = vpack.c.bf16 %v17546_v55, %v12388_v15  ;;  %v17549_v12 = vld [vmem:[#allocation18_spill] sm:$0xff]  ;;  %v3082_v19 = vpack.c.bf16 %v12437_v58, %v12433_v32  ;;  %v17550_v51 = vld [vmem:[#allocation37_spill] sm:$0xff] }
 0x353   : > { %17540 = vst [vmem:[#allocation4_spill] sm:$0xff] %v12699_v30  ;;  %v3074_v49 = vpack.c.bf16 %v12699_v30, %v12695_v52  ;;  %v3081_v41 = vpack.c.bf16 %v17549_v12, %v12422_v57  ;;  %v3083_v55 = vpack.c.bf16 %v12445_v6, %v12441_v59  ;;  %v3085_v12 = vpack.c.bf16 %v12461_v13, %v12457_v50 }
 0x354   : > { %v3086_v58 = vpack.c.bf16 %v12469_v17, %v12466_v40  ;;  %v3087_v32 = vpack.c.bf16 %v12477_v23, %v12473_v53  ;;  %v3088_v57 = vpack.c.bf16 %v12485_v33, %v12482_v37  ;;  %v3090_v15 = vpack.c.bf16 %v12501_v61, %v12498_v7 }
 0x355   : > { %10491 = vmatprep.mubr.msk.bf16.mxu1 %vm2102_vm0, %v3074_v49  ;;  %v3091_v5 = vpack.c.bf16 %v12519_v8, %v17550_v51  ;;  %v3092_v1 = vpack.c.bf16 %v12527_v38, %v12524_v60  ;;  %v12760_v30 = vpack.c.bf16 %v12535_v26, %v12531_v3  ;;  %v12764_v52 = vpack.c.bf16 %v12543_v21, %v12540_v9 }
 0x356   : > { %10492 = vmatmul.mubr.msk.bf16.gmra.mrb[60].mxu1 %vm2102_vm0, %v3075_v25  ;;  %v12772_v38 = vpack.c.bf16 %v12551_v56, %v12547_v10  ;;  %v12776_v60 = vpack.c.bf16 %v12559_v43, %v12556_v46  ;;  %v12784_v21 = vpack.c.bf16 %v12567_v42, %v12563_v28 }
 0x357   : > { %10495 = vmatprep.mubr.msk.bf16.mxu1 %vm2102_vm0, %v3076_v11 }
 0x35e   : > { %10496 = vmatmul.mubr.msk.bf16.gmra.mrb[64].mxu1 %vm2102_vm0, %v3077_v34 }
 0x35f   : > { %10499 = vmatprep.mubr.msk.bf16.mxu1 %vm2102_vm0, %v3078_v54 }
 0x366   : > { %10500 = vmatmul.mubr.msk.bf16.gmra.mrb[68].mxu1 %vm2102_vm0, %v3079_v14 }
 0x367   : > { %10503 = vmatprep.mubr.msk.bf16.mxu1 %vm2102_vm0, %v3080_v36 }
 0x36e   : > { %10504 = vmatmul.mubr.msk.bf16.gmra.mrb[72].mxu1 %vm2102_vm0, %v3081_v41 }
 0x36f   : > { %10507 = vmatprep.mubr.msk.bf16.mxu1 %vm2102_vm0, %v3082_v19 }
 0x376   : > { %10508 = vmatmul.mubr.msk.bf16.gmra.mrb[76].mxu1 %vm2102_vm0, %v3083_v55 }
 0x377   : > { %10511 = vmatprep.mubr.msk.bf16.mxu1 %vm2102_vm0, %v3084_v44 }
 0x37e   : > { %10512 = vmatmul.mubr.msk.bf16.gmra.mrb[80].mxu1 %vm2102_vm0, %v3085_v12 }
 0x37f   : > { %10515 = vmatprep.mubr.msk.bf16.mxu1 %vm2102_vm0, %v3086_v58 }
 0x386   : > { %10516 = vmatmul.mubr.msk.bf16.gmra.mrb[84].mxu1 %vm2102_vm0, %v3087_v32 }
 0x387   : > { %10519 = vmatprep.mubr.msk.bf16.mxu1 %vm2102_vm0, %v3088_v57 }
 0x38e   : > { %10520 = vmatmul.mubr.msk.bf16.gmra.mrb[88].mxu1 %vm2102_vm0, %v3089_v27 }
 0x38f   : > { %10523 = vmatprep.mubr.msk.bf16.mxu1 %vm2102_vm0, %v3090_v15 }
 0x396   : > { %10524 = vmatmul.mubr.msk.bf16.gmra.mrb[92].mxu1 %vm2102_vm0, %v3091_v5 }
 0x397   : > { %10527 = vmatprep.mubr.msk.bf16.mxu1 %vm2102_vm0, %v3092_v1 }
 0x39e   : > { %10528 = vmatmul.mubr.msk.bf16.gmra.mrb[96].mxu1 %vm2102_vm0, %v12760_v30 }
 0x39f   : > { %10531 = vmatprep.mubr.msk.bf16.mxu1 %vm2102_vm0, %v12764_v52 }
 0x3a6   : > { %10532 = vmatmul.mubr.msk.bf16.gmra.mrb[100].mxu1 %vm2102_vm0, %v12772_v38 }
 0x3a7   : > { %10535 = vmatprep.mubr.msk.bf16.mxu1 %vm2102_vm0, %v12776_v60 }
 0x3ae   : > { %10536 = vmatmul.mubr.msk.bf16.gmra.mrb[104].mxu1 %vm2102_vm0, %v12784_v21 }
 0x3af   : > { %10547 = vmatprep.mubr.msk.bf16.mxu1 %vm2102_vm0, %v12587_v62 }
 0x3b6   : > { %10548 = vmatmul.mubr.msk.bf16.vlgmr.msra.gmra.mrb[108].mxu1 %vm2102_vm0, %v12591_v31  ;;  %v12823_v31 = vld [vmem:[%s781_s30] ss:$0 sm:$0xff]  ;;  %s797_s30 = scalar_lea.vmem %s17184_s13, %s11957_s23 }
 0x3b7   : > { %10551 = vmatprep.mubr.msk.bf16.mxu1 %vm2102_vm0, %v12618_v47 }
 0x3be   : > { %10552 = vmatmul.mubr.msk.bf16.gmra.mrb[112].mxu1 %vm2102_vm0, %v12624_v18 }
 0x3bf   : > { %10555 = vmatprep.mubr.msk.bf16.mxu1 %vm2102_vm0, %v12647_v48 }
 0x3c6   : > { %10556 = vmatmul.mubr.msk.bf16.gmra.mrb[116].mxu1 %vm2102_vm0, %v12653_v2 }
 0x3c7   : > { %10559 = vmatprep.mubr.msk.bf16.mxu1 %vm2102_vm0, %v12675_v16 }
 0x3ce   : > { %10560 = vmatmul.mubr.msk.bf16.gmra.mrb[120].mxu1 %vm2102_vm0, %v12681_v35 }
 0x3cf   : > { %10563 = vmatprep.mubr.msk.bf16.mxu1 %vm2102_vm0, %v3074_v49 }
 0x3d6   : > { %10564 = vmatmul.mubr.msk.bf16.gmra.mrb[124].mxu1 %vm2102_vm0, %v3075_v25 }
 0x3d7   : > { %10567 = vmatprep.mubr.msk.bf16.mxu1 %vm2102_vm0, %v3076_v11 }
 0x3de   : > { %10568 = vmatmul.mubr.msk.bf16.gmra.mrb[128].mxu1 %vm2102_vm0, %v3077_v34 }
 0x3df   : > { %10571 = vmatprep.mubr.msk.bf16.mxu1 %vm2102_vm0, %v3078_v54 }
 0x3e6   : > { %10572 = vmatmul.mubr.msk.bf16.gmra.mrb[132].mxu1 %vm2102_vm0, %v3079_v14 }
 0x3e7   : > { %10575 = vmatprep.mubr.msk.bf16.mxu1 %vm2102_vm0, %v3080_v36 }
 0x3ee   : > { %10576 = vmatmul.mubr.msk.bf16.gmra.mrb[136].mxu1 %vm2102_vm0, %v3081_v41 }
 0x3ef   : > { %10579 = vmatprep.mubr.msk.bf16.mxu1 %vm2102_vm0, %v3082_v19 }
 0x3f6   : > { %10580 = vmatmul.mubr.msk.bf16.gmra.mrb[140].mxu1 %vm2102_vm0, %v3083_v55 }
 0x3f7   : > { %10583 = vmatprep.mubr.msk.bf16.mxu1 %vm2102_vm0, %v3084_v44 }
 0x3fe   : > { %10584 = vmatmul.mubr.msk.bf16.gmra.mrb[144].mxu1 %vm2102_vm0, %v3085_v12 }
 0x3ff   : > { %10587 = vmatprep.mubr.msk.bf16.mxu1 %vm2102_vm0, %v3086_v58 }
 0x406   : > { %10588 = vmatmul.mubr.msk.bf16.gmra.mrb[148].mxu1 %vm2102_vm0, %v3087_v32 }
 0x407   : > { %10591 = vmatprep.mubr.msk.bf16.mxu1 %vm2102_vm0, %v3088_v57 }
 0x409   : > { %v10477_v62 = vpop.f32.mrb[44].mxu1 }
 0x40a   : > { %v3267_v19 = vpop.f32.mrb[45].mxu1  ;;  %v12826_v47 = vadd.f32 %v10477_v62, %v12823_v31 }
 0x40b   : > { %v10478_v11 = vpop.f32.mrb[46].mxu1  ;;  %v3268_v32 = vadd.f32 %v12823_v31, %v3267_v19 }
 0x40c   : > { %v12829_v18 = vadd.f32 %v10478_v11, %v12823_v31  ;;  %v3270_v58 = vpop.f32.mrb[47].mxu1 }
 0x40d   : > { %v3271_v35 = vadd.f32 %v12823_v31, %v3270_v58 }
 0x40e   : > { %v5582_v44 = vpack.c.bf16 %v12829_v18, %v12826_v47  ;;  %10592 = vmatmul.mubr.msk.bf16.gmra.mrb[152].mxu1 %vm2102_vm0, %v3089_v27 }
 0x40f   : > { %v5581_v57 = vpack.c.bf16 %v3271_v35, %v3268_v32  ;;  %10595 = vmatprep.mubr.msk.bf16.mxu1 %vm2102_vm0, %v3090_v15 }
 0x411   : > { %v10481_v48 = vpop.f32.mrb[48].mxu1 }
 0x412   : > { %v3283_v2 = vpop.f32.mrb[49].mxu1  ;;  %v12838_v12 = vadd.f32 %v10481_v48, %v12823_v31 }
 0x413   : > { %v10482_v16 = vpop.f32.mrb[50].mxu1  ;;  %v3284_v36 = vadd.f32 %v12823_v31, %v3283_v2 }
 0x414   : > { %v12841_v49 = vadd.f32 %v10482_v16, %v12823_v31  ;;  %v3286_v25 = vpop.f32.mrb[51].mxu1 }
 0x415   : > { %v3287_v41 = vadd.f32 %v12823_v31, %v3286_v25 }
 0x416   : > { %v5584_v34 = vpack.c.bf16 %v12841_v49, %v12838_v12  ;;  %10596 = vmatmul.mubr.msk.bf16.gmra.mrb[156].mxu1 %vm2102_vm0, %v3091_v5 }
 0x417   : > { %v5583_v15 = vpack.c.bf16 %v3287_v41, %v3284_v36  ;;  %10599 = vmatprep.mubr.msk.bf16.mxu1 %vm2102_vm0, %v3092_v1 }
 0x419   : > { %v10485_v54 = vpop.f32.mrb[52].mxu1 }
 0x41a   : > { %v3299_v55 = vpop.f32.mrb[53].mxu1  ;;  %v12850_v27 = vadd.f32 %v10485_v54, %v12823_v31 }
 0x41b   : > { %v10486_v14 = vpop.f32.mrb[54].mxu1  ;;  %v3300_v11 = vadd.f32 %v12823_v31, %v3299_v55 }
 0x41c   : > { %v12853_v62 = vadd.f32 %v10486_v14, %v12823_v31  ;;  %v3302_v19 = vpop.f32.mrb[55].mxu1 }
 0x41d   : > { %v3303_v47 = vadd.f32 %v12823_v31, %v3302_v19 }
 0x41e   : > { %v5586_v5 = vpack.c.bf16 %v12853_v62, %v12850_v27  ;;  %10600 = vmatmul.mubr.msk.bf16.gmra.mrb[160].mxu1 %vm2102_vm0, %v12760_v30 }
 0x41f   : > { %v5585_v1 = vpack.c.bf16 %v3303_v47, %v3300_v11  ;;  %10603 = vmatprep.mubr.msk.bf16.mxu1 %vm2102_vm0, %v12764_v52 }
 0x421   : > { %v10489_v18 = vpop.f32.mrb[56].mxu1 }
 0x422   : > { %v3315_v58 = vpop.f32.mrb[57].mxu1  ;;  %v12864_v35 = vadd.f32 %v10489_v18, %v12823_v31 }
 0x423   : > { %v10490_v32 = vpop.f32.mrb[58].mxu1  ;;  %v3316_v16 = vadd.f32 %v12823_v31, %v3315_v58 }
 0x424   : > { %v12867_v48 = vadd.f32 %v10490_v32, %v12823_v31  ;;  %v3318_v2 = vpop.f32.mrb[59].mxu1 }
 0x425   : > { %v3319_v25 = vadd.f32 %v12823_v31, %v3318_v2 }
 0x426   : > { %v5588_v30 = vpack.c.bf16 %v12867_v48, %v12864_v35  ;;  %10604 = vmatmul.mubr.msk.bf16.gmra.mrb[164].mxu1 %vm2102_vm0, %v12772_v38 }
 0x427   : > { %v5587_v52 = vpack.c.bf16 %v3319_v25, %v3316_v16  ;;  %10607 = vmatprep.mubr.msk.bf16.mxu1 %vm2102_vm0, %v12776_v60 }
 0x429   : > { %v10493_v36 = vpop.f32.mrb[60].mxu1 }
 0x42a   : > { %v3331_v41 = vpop.f32.mrb[61].mxu1  ;;  %v3340_v55 = vadd.f32 %v10493_v36, %v12823_v31 }
 0x42b   : > { %v10494_v54 = vpop.f32.mrb[62].mxu1  ;;  %v3332_v11 = vadd.f32 %v12823_v31, %v3331_v41 }
 0x42c   : > { %v3343_v14 = vadd.f32 %v10494_v54, %v12823_v31  ;;  %v3334_v19 = vpop.f32.mrb[63].mxu1 }
 0x42d   : > { %v3335_v47 = vadd.f32 %v12823_v31, %v3334_v19 }
 0x42e   : > { %10608 = vmatmul.mubr.msk.bf16.gmra.mrb[168].mxu1 %vm2102_vm0, %v12784_v21  ;;  %v5590_v38 = vpack.c.bf16 %v3343_v14, %v3340_v55 }
 0x42f   : > { %v5589_v18 = vpack.c.bf16 %v3335_v47, %v3332_v11 }
 0x431   : > { %v10497_v58 = vpop.f32.mrb[64].mxu1  ;;  %10019 = vmatprep.subr.bf16.mxu0 %v5589_v18 }
 0x432   : > { %v3347_v60 = vpop.f32.mrb[65].mxu1  ;;  %10020 = vmatpush3.bf16.msra.mxu0 %v5581_v57  ;;  %v3356_v2 = vadd.f32 %v10497_v58, %v12823_v31 }
 0x433   : > { %v10498_v32 = vpop.f32.mrb[66].mxu1  ;;  %10021 = vmatprep.subr.bf16.mxu0 %v5590_v38  ;;  %v3348_v36 = vadd.f32 %v12823_v31, %v3347_v60 }
 0x434   : > { %v3359_v16 = vadd.f32 %v10498_v32, %v12823_v31  ;;  %v3350_v25 = vpop.f32.mrb[67].mxu1 }
 0x435   : > { %v3351_v41 = vadd.f32 %v12823_v31, %v3350_v25 }
 0x436   : > { %10022 = vmatpush3.bf16.msra.mxu0 %v5582_v44  ;;  %v5592_v54 = vpack.c.bf16 %v3359_v16, %v3356_v2 }
 0x437   : > { %v5591_v21 = vpack.c.bf16 %v3351_v41, %v3348_v36 }
 0x439   : > { %v10501_v55 = vpop.f32.mrb[68].mxu1  ;;  %10023 = vmatprep.subr.bf16.mxu0 %v5591_v21 }
 0x43a   : > { %v3363_v14 = vpop.f32.mrb[69].mxu1  ;;  %10024 = vmatpush3.bf16.msra.mxu0 %v5583_v15  ;;  %v3372_v57 = vadd.f32 %v10501_v55, %v12823_v31 }
 0x43b   : > { %v10502_v19 = vpop.f32.mrb[70].mxu1  ;;  %10025 = vmatprep.subr.bf16.mxu0 %v5592_v54  ;;  %v3364_v38 = vadd.f32 %v12823_v31, %v3363_v14 }
 0x43c   : > { %v3375_v11 = vadd.f32 %v10502_v19, %v12823_v31  ;;  %v3366_v47 = vpop.f32.mrb[71].mxu1 }
 0x43d   : > { %v3367_v18 = vadd.f32 %v12823_v31, %v3366_v47 }
 0x43e   : > { %10026 = vmatpush3.bf16.msra.mxu0 %v5584_v34  ;;  %v5594_v44 = vpack.c.bf16 %v3375_v11, %v3372_v57 }
 0x43f   : > { %v5593_v58 = vpack.c.bf16 %v3367_v18, %v3364_v38 }
 0x441   : > { %v10505_v60 = vpop.f32.mrb[72].mxu1  ;;  %10027 = vmatprep.subr.bf16.mxu0 %v5593_v58 }
 0x442   : > { %v3379_v15 = vpop.f32.mrb[73].mxu1  ;;  %10028 = vmatpush3.bf16.msra.mxu0 %v5585_v1  ;;  %v3388_v2 = vadd.f32 %v10505_v60, %v12823_v31 }
 0x443   : > { %v10506_v32 = vpop.f32.mrb[74].mxu1  ;;  %10029 = vmatprep.subr.bf16.mxu0 %v5594_v44  ;;  %v3380_v36 = vadd.f32 %v12823_v31, %v3379_v15 }
 0x444   : > { %v3391_v16 = vadd.f32 %v10506_v32, %v12823_v31  ;;  %v3382_v25 = vpop.f32.mrb[75].mxu1 }
 0x445   : > { %v3383_v41 = vadd.f32 %v12823_v31, %v3382_v25 }
 0x446   : > { %10030 = vmatpush3.bf16.msra.mxu0 %v5586_v5  ;;  %v5596_v12 = vpack.c.bf16 %v3391_v16, %v3388_v2 }
 0x447   : > { %v5595_v49 = vpack.c.bf16 %v3383_v41, %v3380_v36 }
 0x449   : > { %v10509_v34 = vpop.f32.mrb[76].mxu1  ;;  %10031 = vmatprep.subr.bf16.mxu0 %v5595_v49 }
 0x44a   : > { %v3395_v1 = vpop.f32.mrb[77].mxu1  ;;  %10032 = vmatpush3.bf16.msra.mxu0 %v5587_v52  ;;  %v12902_v21 = vadd.f32 %v10509_v34, %v12823_v31 }
 0x44b   : > { %v10510_v54 = vpop.f32.mrb[78].mxu1  ;;  %10033 = vmatprep.subr.bf16.mxu0 %v5596_v12  ;;  %v12908_v19 = vadd.f32 %v12823_v31, %v3395_v1 }
 0x44c   : > { %v12905_v55 = vadd.f32 %v10510_v54, %v12823_v31  ;;  %v3398_v14 = vpop.f32.mrb[79].mxu1 }
 0x44d   : > { %v12911_v27 = vadd.f32 %v12823_v31, %v3398_v14 }
 0x44e   : > { %10034 = vmatpush3.bf16.msra.mxu0 %v5588_v30 }
 0x451   : > { %v10513_v52 = vpop.f32.mrb[80].mxu1 }
 0x452   : > { %v3411_v57 = vpop.f32.mrb[81].mxu1  ;;  %v12921_v47 = vadd.f32 %v10513_v52, %v12823_v31 }
 0x453   : > { %v10514_v11 = vpop.f32.mrb[82].mxu1  ;;  %v12927_v44 = vadd.f32 %v12823_v31, %v3411_v57 }
 0x454   : > { %v12924_v38 = vadd.f32 %v10514_v11, %v12823_v31  ;;  %v3414_v18 = vpop.f32.mrb[83].mxu1 }
 0x455   : > { %v12930_v58 = vadd.f32 %v12823_v31, %v3414_v18 }
 0x459   : > { %v10517_v30 = vpop.f32.mrb[84].mxu1 }
 0x45a   : > { %v3427_v60 = vpop.f32.mrb[85].mxu1  ;;  %v12937_v32 = vadd.f32 %v10517_v30, %v12823_v31 }
 0x45b   : > { %v10518_v15 = vpop.f32.mrb[86].mxu1  ;;  %v12943_v25 = vadd.f32 %v12823_v31, %v3427_v60 }
 0x45c   : > { %v12940_v2 = vadd.f32 %v10518_v15, %v12823_v31  ;;  %v3430_v16 = vpop.f32.mrb[87].mxu1 }
 0x45d   : > { %v12946_v36 = vadd.f32 %v12823_v31, %v3430_v16 }
 0x461   : > { %v10521_v49 = vpop.f32.mrb[88].mxu1 }
 0x462   : > { %v3443_v34 = vpop.f32.mrb[89].mxu1  ;;  %v12953_v54 = vadd.f32 %v10521_v49, %v12823_v31 }
 0x463   : > { %v10522_v1 = vpop.f32.mrb[90].mxu1  ;;  %v12959_v57 = vadd.f32 %v12823_v31, %v3443_v34 }
 0x464   : > { %17551 = vst [vmem:[#allocation66_spill] sm:$0xff] %v12953_v54  ;;  %v12956_v14 = vadd.f32 %v10522_v1, %v12823_v31  ;;  %v3446_v52 = vpop.f32.mrb[91].mxu1 }
 0x465   : > { %v12962_v11 = vadd.f32 %v12823_v31, %v3446_v52 }
 0x466   : > { %17552 = vst [vmem:[#allocation67_spill] sm:$0xff] %v12956_v14 }
 0x469   : > { %v10525_v60 = vpop.f32.mrb[92].mxu1 }
 0x46a   : > { %v3459_v15 = vpop.f32.mrb[93].mxu1  ;;  %v12969_v49 = vadd.f32 %v10525_v60, %v12823_v31 }
 0x46b   : > { %v10526_v16 = vpop.f32.mrb[94].mxu1  ;;  %v12975_v41 = vadd.f32 %v12823_v31, %v3459_v15 }
 0x46c   : > { %v12972_v1 = vadd.f32 %v10526_v16, %v12823_v31  ;;  %v3462_v34 = vpop.f32.mrb[95].mxu1 }
 0x46d   : > { %v12978_v52 = vadd.f32 %v12823_v31, %v3462_v34 }
 0x471   : > { %v10529_v12 = vpop.f32.mrb[96].mxu1 }
 0x472   : > { %v3475_v35 = vpop.f32.mrb[97].mxu1  ;;  %v12985_v48 = vadd.f32 %v10529_v12, %v12823_v31 }
 0x473   : > { %v10530_v60 = vpop.f32.mrb[98].mxu1  ;;  %v12991_v62 = vadd.f32 %v12823_v31, %v3475_v35 }
 0x474   : > { %v12988_v16 = vadd.f32 %v10530_v60, %v12823_v31  ;;  %v3478_v15 = vpop.f32.mrb[99].mxu1 }
 0x475   : > { %v12994_v34 = vadd.f32 %v12823_v31, %v3478_v15 }
 0x479   : > { %v10533_v30 = vpop.f32.mrb[100].mxu1 }
 0x47a   : > { %v3491_v43 = vpop.f32.mrb[101].mxu1  ;;  %v13001_v60 = vadd.f32 %v10533_v30, %v12823_v31 }
 0x47b   : > { %v10534_v12 = vpop.f32.mrb[102].mxu1  ;;  %v13007_v15 = vadd.f32 %v12823_v31, %v3491_v43 }
 0x47c   : > { %v13004_v46 = vadd.f32 %v10534_v12, %v12823_v31  ;;  %v3494_v35 = vpop.f32.mrb[103].mxu1 }
 0x47d   : > { %v13010_v9 = vadd.f32 %v12823_v31, %v3494_v35 }
 0x481   : > { %v10537_v61 = vpop.f32.mrb[104].mxu1 }
 0x482   : > { %v3507_v7 = vpop.f32.mrb[105].mxu1  ;;  %v13017_v33 = vadd.f32 %v10537_v61, %v12823_v31 }
 0x483   : > { %v10538_v30 = vpop.f32.mrb[106].mxu1  ;;  %v13023_v37 = vadd.f32 %v12823_v31, %v3507_v7 }
 0x484   : > { %17553 = vst [vmem:[#allocation68_spill] sm:$0xff] %v13017_v33  ;;  %v13020_v12 = vadd.f32 %v10538_v30, %v12823_v31  ;;  %v3510_v43 = vpop.f32.mrb[107].mxu1  ;;  %v13036_v30 = vld [vmem:[%s789_s2] ss:$0 sm:$0xff]  ;;  %s15088_s2 = scalar_lea.vmem %s17189_s18, %s12398_s24 }
 0x485   : > { %v13026_v35 = vadd.f32 %v12823_v31, %v3510_v43 }
 0x486   : > { %17554 = vst [vmem:[#allocation69_spill] sm:$0xff] %v13020_v12 }
 0x489   : > { %v10549_v5 = vpop.f32.mrb[108].mxu1 }
 0x48a   : > { %v3595_v17 = vpop.f32.mrb[109].mxu1  ;;  %v3604_v7 = vadd.f32 %v10549_v5, %v13036_v30 }
 0x48b   : > { %v10550_v40 = vpop.f32.mrb[110].mxu1  ;;  %v3596_v4 = vadd.f32 %v13036_v30, %v3595_v17 }
 0x48c   : > { %v3607_v31 = vadd.f32 %v10550_v40, %v13036_v30  ;;  %v3598_v43 = vpop.f32.mrb[111].mxu1 }
 0x48d   : > { %v3599_v63 = vadd.f32 %v13036_v30, %v3598_v43 }
 0x48e   : > { %v13042_v24 = vpack.c.bf16 %v3607_v31, %v3604_v7 }
 0x48f   : > { %v13044_v18 = vpack.c.bf16 %v3599_v63, %v3596_v4 }
 0x490   : > { %3900 = vrot.lane.b32.xlu1 %v13042_v24, %s11835_s25 }
 0x491   : > { %v10553_v61 = vpop.f32.mrb[112].mxu1  ;;  %3898 = vrot.lane.b32.xlu0 %v13044_v18, %s11835_s25  ;;  %9939 = vmatprep.mubr.msk.bf16.mxu1 %vm3930_vm1, %v13044_v18 }
 0x492   : > { %v3611_v40 = vpop.f32.mrb[113].mxu1  ;;  %v3620_v5 = vadd.f32 %v10553_v61, %v13036_v30 }
 0x493   : > { %v10554_v17 = vpop.f32.mrb[114].mxu1  ;;  %v3612_v63 = vadd.f32 %v13036_v30, %v3611_v40 }
 0x494   : > { %v3623_v7 = vadd.f32 %v10554_v17, %v13036_v30  ;;  %v3614_v31 = vpop.f32.mrb[115].mxu1 }
 0x495   : > { %v3615_v4 = vadd.f32 %v13036_v30, %v3614_v31 }
 0x496   : > { %v13056_v43 = vpack.c.bf16 %v3623_v7, %v3620_v5 }
 0x497   : > { %v13058_v0 = vpack.c.bf16 %v3615_v4, %v3612_v63 }
 0x499   : > { %v10557_v45 = vpop.f32.mrb[116].mxu1 }
 0x49a   : > { %v3627_v29 = vpop.f32.mrb[117].mxu1  ;;  %v3636_v42 = vadd.f32 %v10557_v45, %v13036_v30 }
 0x49b   : > { %v10558_v22 = vpop.f32.mrb[118].mxu1  ;;  %v3628_v61 = vadd.f32 %v13036_v30, %v3627_v29 }
 0x49c   : > { %v3639_v28 = vadd.f32 %v10558_v22, %v13036_v30  ;;  %v3630_v56 = vpop.f32.mrb[119].mxu1 }
 0x49d   : > { %v3631_v17 = vadd.f32 %v13036_v30, %v3630_v56 }
 0x49e   : > { %v13064_v10 = vpack.c.bf16 %v3639_v28, %v3636_v42 }
 0x49f   : > { %v13066_v40 = vpack.c.bf16 %v3631_v17, %v3628_v61 }
 0x4a1   : > { %v10561_v5 = vpop.f32.mrb[120].mxu1 }
 0x4a2   : > { %v3643_v7 = vpop.f32.mrb[121].mxu1  ;;  %v3652_v63 = vadd.f32 %v10561_v5, %v13036_v30 }
 0x4a3   : > { %v10562_v31 = vpop.f32.mrb[122].mxu1  ;;  %v3644_v45 = vadd.f32 %v13036_v30, %v3643_v7 }
 0x4a4   : > { %v3655_v4 = vadd.f32 %v10562_v31, %v13036_v30  ;;  %v3646_v26 = vpop.f32.mrb[123].mxu1 }
 0x4a5   : > { %v3647_v22 = vadd.f32 %v13036_v30, %v3646_v26 }
 0x4a6   : > { %v13072_v3 = vpack.c.bf16 %v3655_v4, %v3652_v63 }
 0x4a7   : > { %v13074_v29 = vpack.c.bf16 %v3647_v22, %v3644_v45 }
 0x4a9   : > { %v10565_v56 = vpop.f32.mrb[124].mxu1 }
 0x4aa   : > { %v3659_v28 = vpop.f32.mrb[125].mxu1  ;;  %v3668_v61 = vadd.f32 %v10565_v56, %v13036_v30 }
 0x4ab   : > { %v10566_v42 = vpop.f32.mrb[126].mxu1  ;;  %v3660_v5 = vadd.f32 %v13036_v30, %v3659_v28 }
 0x4ac   : > { %v3671_v17 = vadd.f32 %v10566_v42, %v13036_v30  ;;  %v3662_v8 = vpop.f32.mrb[127].mxu1 }
 0x4ad   : > { %v3663_v31 = vadd.f32 %v13036_v30, %v3662_v8 }
 0x4ae   : > { %v13080_v51 = vpack.c.bf16 %v3671_v17, %v3668_v61 }
 0x4af   : > { %v13082_v7 = vpack.c.bf16 %v3663_v31, %v3660_v5 }
 0x4b0   : > { %3916 = vrot.lane.b32.xlu1 %v13080_v51, %s11835_s25 }
 0x4b1   : > { %v10569_v26 = vpop.f32.mrb[128].mxu1  ;;  %3914 = vrot.lane.b32.xlu0 %v13082_v7, %s11835_s25 }
 0x4b2   : > { %v3675_v63 = vpop.f32.mrb[129].mxu1  ;;  %v3684_v45 = vadd.f32 %v10569_v26, %v13036_v30 }
 0x4b3   : > { %v10570_v4 = vpop.f32.mrb[130].mxu1  ;;  %v3676_v8 = vadd.f32 %v13036_v30, %v3675_v63 }
 0x4b4   : > { %v3687_v22 = vadd.f32 %v10570_v4, %v13036_v30  ;;  %v3678_v56 = vpop.f32.mrb[131].mxu1 }
 0x4b5   : > { %v3679_v28 = vadd.f32 %v13036_v30, %v3678_v56  ;;  %3902 = vrot.lane.b32.xlu0 %v13058_v0, %s11835_s25 }
 0x4b6   : > { %v13094_v42 = vpack.c.bf16 %v3687_v22, %v3684_v45 }
 0x4b7   : > { %v13096_v61 = vpack.c.bf16 %v3679_v28, %v3676_v8 }
 0x4b9   : > { %v10573_v17 = vpop.f32.mrb[132].mxu1  ;;  %3918 = vrot.lane.b32.xlu1 %v13096_v61, %s11835_s25  ;;  %3904 = vrot.lane.b32.xlu0 %v13056_v43, %s11835_s25 }
 0x4ba   : > { %v3691_v5 = vpop.f32.mrb[133].mxu1  ;;  %v3700_v26 = vadd.f32 %v10573_v17, %v13036_v30 }
 0x4bb   : > { %v10574_v31 = vpop.f32.mrb[134].mxu1  ;;  %v3692_v56 = vadd.f32 %v13036_v30, %v3691_v5 }
 0x4bc   : > { %v3703_v63 = vadd.f32 %v10574_v31, %v13036_v30  ;;  %v3694_v4 = vpop.f32.mrb[135].mxu1 }
 0x4bd   : > { %v3695_v45 = vadd.f32 %v13036_v30, %v3694_v4  ;;  %3920 = vrot.lane.b32.xlu1 %v13094_v42, %s11835_s25  ;;  %3906 = vrot.lane.b32.xlu0 %v13066_v40, %s11835_s25 }
 0x4be   : > { %v13110_v22 = vpack.c.bf16 %v3703_v63, %v3700_v26 }
 0x4bf   : > { %v13112_v8 = vpack.c.bf16 %v3695_v45, %v3692_v56 }
 0x4c1   : > { %v10577_v28 = vpop.f32.mrb[136].mxu1  ;;  %3922 = vrot.lane.b32.xlu1 %v13112_v8, %s11835_s25  ;;  %3908 = vrot.lane.b32.xlu0 %v13064_v10, %s11835_s25 }
 0x4c2   : > { %v3707_v17 = vpop.f32.mrb[137].mxu1  ;;  %v3716_v31 = vadd.f32 %v10577_v28, %v13036_v30 }
 0x4c3   : > { %v10578_v5 = vpop.f32.mrb[138].mxu1  ;;  %v3708_v20 = vadd.f32 %v13036_v30, %v3707_v17 }
 0x4c4   : > { %v3719_v4 = vadd.f32 %v10578_v5, %v13036_v30  ;;  %v3710_v39 = vpop.f32.mrb[139].mxu1 }
 0x4c5   : > { %v3711_v26 = vadd.f32 %v13036_v30, %v3710_v39  ;;  %3924 = vrot.lane.b32.xlu1 %v13110_v22, %s11835_s25  ;;  %3910 = vrot.lane.b32.xlu0 %v13074_v29, %s11835_s25 }
 0x4c6   : > { %v13126_v63 = vpack.c.bf16 %v3719_v4, %v3716_v31 }
 0x4c7   : > { %v13128_v56 = vpack.c.bf16 %v3711_v26, %v3708_v20 }
 0x4c9   : > { %v10581_v45 = vpop.f32.mrb[140].mxu1  ;;  %3926 = vrot.lane.b32.xlu1 %v13128_v56, %s11835_s25  ;;  %3912 = vrot.lane.b32.xlu0 %v13072_v3, %s11835_s25 }
 0x4ca   : > { %v3723_v28 = vpop.f32.mrb[141].mxu1  ;;  %v3732_v39 = vadd.f32 %v10581_v45, %v13036_v30 }
 0x4cb   : > { %v10582_v17 = vpop.f32.mrb[142].mxu1  ;;  %v3724_v53 = vadd.f32 %v13036_v30, %v3723_v28 }
 0x4cc   : > { %v3735_v5 = vadd.f32 %v10582_v17, %v13036_v30  ;;  %v3726_v23 = vpop.f32.mrb[143].mxu1 }
 0x4cd   : > { %v3727_v31 = vadd.f32 %v13036_v30, %v3726_v23  ;;  %3928 = vrot.lane.b32.xlu1 %v13126_v63, %s11835_s25 }
 0x4ce   : > { %v13140_v20 = vpack.c.bf16 %v3735_v5, %v3732_v39 }
 0x4cf   : > { %v13142_v4 = vpack.c.bf16 %v3727_v31, %v3724_v53 }
 0x4d1   : > { %v10585_v26 = vpop.f32.mrb[144].mxu1  ;;  %4236 = vrot.lane.b32.xlu0 %v13142_v4, %s11835_s25 }
 0x4d2   : > { %v3739_v13 = vpop.f32.mrb[145].mxu1  ;;  %v3748_v17 = vadd.f32 %v10585_v26, %v13036_v30 }
 0x4d3   : > { %v10586_v45 = vpop.f32.mrb[146].mxu1  ;;  %v3740_v23 = vadd.f32 %v13036_v30, %v3739_v13 }
 0x4d4   : > { %v3751_v50 = vadd.f32 %v10586_v45, %v13036_v30  ;;  %v3742_v28 = vpop.f32.mrb[147].mxu1 }
 0x4d5   : > { %v3743_v6 = vadd.f32 %v13036_v30, %v3742_v28  ;;  %4238 = vrot.lane.b32.xlu0 %v13140_v20, %s11835_s25 }
 0x4d6   : > { %v13152_v53 = vpack.c.bf16 %v3751_v50, %v3748_v17 }
 0x4d7   : > { %v13154_v39 = vpack.c.bf16 %v3743_v6, %v3740_v23 }
 0x4d9   : > { %v10589_v5 = vpop.f32.mrb[148].mxu1  ;;  %4240 = vrot.lane.b32.xlu0 %v13154_v39, %s11835_s25 }
 0x4da   : > { %v3755_v31 = vpop.f32.mrb[149].mxu1  ;;  %v3764_v45 = vadd.f32 %v10589_v5, %v13036_v30 }
 0x4db   : > { %v10590_v26 = vpop.f32.mrb[150].mxu1  ;;  %v3756_v28 = vadd.f32 %v13036_v30, %v3755_v31 }
 0x4dc   : > { %v3767_v59 = vadd.f32 %v10590_v26, %v13036_v30  ;;  %v3758_v13 = vpop.f32.mrb[151].mxu1 }
 0x4dd   : > { %v3759_v54 = vadd.f32 %v13036_v30, %v3758_v13  ;;  %4242 = vrot.lane.b32.xlu0 %v13152_v53, %s11835_s25 }
 0x4de   : > { %v13164_v6 = vpack.c.bf16 %v3767_v59, %v3764_v45 }
 0x4df   : > { %v13166_v50 = vpack.c.bf16 %v3759_v54, %v3756_v28 }
 0x4e0   : > { %17555 = vst [vmem:[#allocation70_spill] sm:$0xff] %v13164_v6 }
 0x4e1   : > { %17556 = vst [vmem:[#allocation71_spill] sm:$0xff] %v13166_v50  ;;  %v10593_v17 = vpop.f32.mrb[152].mxu1  ;;  %4244 = vrot.lane.b32.xlu0 %v13166_v50, %s11835_s25 }
 0x4e2   : > { %v3771_v23 = vpop.f32.mrb[153].mxu1  ;;  %v3780_v26 = vadd.f32 %v10593_v17, %v13036_v30 }
 0x4e3   : > { %v10594_v5 = vpop.f32.mrb[154].mxu1  ;;  %v3772_v13 = vadd.f32 %v13036_v30, %v3771_v23 }
 0x4e4   : > { %v3783_v14 = vadd.f32 %v10594_v5, %v13036_v30  ;;  %v3774_v31 = vpop.f32.mrb[155].mxu1 }
 0x4e5   : > { %v3775_v33 = vadd.f32 %v13036_v30, %v3774_v31  ;;  %4246 = vrot.lane.b32.xlu0 %v13164_v6, %s11835_s25 }
 0x4e6   : > { %v13176_v59 = vpack.c.bf16 %v3783_v14, %v3780_v26 }
 0x4e7   : > { %v13178_v54 = vpack.c.bf16 %v3775_v33, %v3772_v13 }
 0x4e8   : > { %17557 = vst [vmem:[#allocation72_spill] sm:$0xff] %v13176_v59 }
 0x4e9   : > { %17558 = vst [vmem:[#allocation73_spill] sm:$0xff] %v13178_v54  ;;  %v10597_v45 = vpop.f32.mrb[156].mxu1  ;;  %4248 = vrot.lane.b32.xlu0 %v13178_v54, %s11835_s25 }
 0x4ea   : > { %v3787_v28 = vpop.f32.mrb[157].mxu1  ;;  %v3796_v5 = vadd.f32 %v10597_v45, %v13036_v30 }
 0x4eb   : > { %v10598_v17 = vpop.f32.mrb[158].mxu1  ;;  %v3788_v31 = vadd.f32 %v13036_v30, %v3787_v28 }
 0x4ec   : > { %v3799_v12 = vadd.f32 %v10598_v17, %v13036_v30  ;;  %v3790_v23 = vpop.f32.mrb[159].mxu1 }
 0x4ed   : > { %v3791_v50 = vadd.f32 %v13036_v30, %v3790_v23  ;;  %4250 = vrot.lane.b32.xlu0 %v13176_v59, %s11835_s25 }
 0x4ee   : > { %v13188_v33 = vpack.c.bf16 %v3799_v12, %v3796_v5 }
 0x4ef   : > { %v13190_v14 = vpack.c.bf16 %v3791_v50, %v3788_v31 }
 0x4f0   : > { %17559 = vst [vmem:[#allocation74_spill] sm:$0xff] %v13188_v33 }
 0x4f1   : > { %17560 = vst [vmem:[#allocation75_spill] sm:$0xff] %v13190_v14  ;;  %v10601_v26 = vpop.f32.mrb[160].mxu1  ;;  %4252 = vrot.lane.b32.xlu1 %v13190_v14, %s11835_s25 }
 0x4f2   : > { %v3803_v13 = vpop.f32.mrb[161].mxu1  ;;  %v3812_v17 = vadd.f32 %v10601_v26, %v13036_v30 }
 0x4f3   : > { %v10602_v45 = vpop.f32.mrb[162].mxu1  ;;  %v3804_v23 = vadd.f32 %v13036_v30, %v3803_v13 }
 0x4f4   : > { %v3815_v54 = vadd.f32 %v10602_v45, %v13036_v30  ;;  %v3806_v28 = vpop.f32.mrb[163].mxu1 }
 0x4f5   : > { %v3807_v6 = vadd.f32 %v13036_v30, %v3806_v28  ;;  %4254 = vrot.lane.b32.xlu1 %v13188_v33, %s11835_s25 }
 0x4f6   : > { %v13200_v12 = vpack.c.bf16 %v3815_v54, %v3812_v17 }
 0x4f7   : > { %v13202_v50 = vpack.c.bf16 %v3807_v6, %v3804_v23 }
 0x4f9   : > { %17561 = vst [vmem:[#allocation76_spill] sm:$0xff] %v13202_v50  ;;  %v10605_v5 = vpop.f32.mrb[164].mxu1  ;;  %4256 = vrot.lane.b32.xlu1 %v13202_v50, %s11835_s25 }
 0x4fa   : > { %v3819_v31 = vpop.f32.mrb[165].mxu1  ;;  %v3828_v45 = vadd.f32 %v10605_v5, %v13036_v30 }
 0x4fb   : > { %v10606_v26 = vpop.f32.mrb[166].mxu1  ;;  %v3820_v28 = vadd.f32 %v13036_v30, %v3819_v31 }
 0x4fc   : > { %v3831_v14 = vadd.f32 %v10606_v26, %v13036_v30  ;;  %v3822_v13 = vpop.f32.mrb[167].mxu1 }
 0x4fd   : > { %v3823_v59 = vadd.f32 %v13036_v30, %v3822_v13  ;;  %4258 = vrot.lane.b32.xlu1 %v13200_v12, %s11835_s25 }
 0x4fe   : > { %v13212_v6 = vpack.c.bf16 %v3831_v14, %v3828_v45 }
 0x4ff   : > { %v13214_v54 = vpack.c.bf16 %v3823_v59, %v3820_v28 }
 0x501   : > { %v10609_v17 = vpop.f32.mrb[168].mxu1  ;;  %4260 = vrot.lane.b32.xlu1 %v13214_v54, %s11835_s25 }
 0x502   : > { %v3835_v23 = vpop.f32.mrb[169].mxu1  ;;  %v3844_v26 = vadd.f32 %v10609_v17, %v13036_v30  ;;  %v3901_v28 = vpop.permute.xlu1 %3900 }
 0x503   : > { %v10610_v5 = vpop.f32.mrb[170].mxu1  ;;  %v3836_v13 = vadd.f32 %v13036_v30, %v3835_v23  ;;  %v3899_v45 = vpop.permute.xlu0 %3898 }
 0x504   : > { %v3847_v50 = vadd.f32 %v10610_v5, %v13036_v30  ;;  %v3838_v31 = vpop.f32.mrb[171].mxu1  ;;  %v3980_v23 = vsel %vm3930_vm1, %v3899_v45, 0 }
 0x505   : > { %v3839_v33 = vadd.f32 %v13036_v30, %v3838_v31  ;;  %4262 = vrot.lane.b32.xlu1 %v13212_v6, %s11835_s25 }
 0x506   : > { %v13224_v59 = vpack.c.bf16 %v3847_v50, %v3844_v26 }
 0x507   : > { %v13226_v14 = vpack.c.bf16 %v3839_v33, %v3836_v13  ;;  %v3983_v33 = vsel %vm3930_vm1, %v3901_v28, 0 }
 0x509   : > { %4264 = vrot.lane.b32.xlu1 %v13226_v14, %s11835_s25 }
 0x50d   : > { %4266 = vrot.lane.b32.xlu1 %v13224_v59, %s11835_s25 }
 0x522   : > { %v3917_v30 = vpop.permute.xlu1 %3916 }
 0x523   : > { %v3915_v17 = vpop.permute.xlu0 %3914 }
 0x524   : > { %11119 = vmatprep.subr.msk.bf16.mxu1 %vm3930_vm1, %v3915_v17 }
 0x525   : > { %9924 = vmatpush3.bf16.xpose.msra.mxu1 %v3980_v23 }
 0x526   : > { %11120 = vmatprep.subr.msk.bf16.mxu1 %vm3930_vm1, %v3917_v30 }
 0x527   : > { %v3903_v5 = vpop.permute.xlu0 %3902 }
 0x528   : > { %v3986_v26 = vsel %vm3930_vm1, %v3903_v5, 0 }
 0x52b   : > { %v3919_v50 = vpop.permute.xlu1 %3918  ;;  %v3905_v13 = vpop.permute.xlu0 %3904 }
 0x52c   : > { %v3989_v45 = vsel %vm3930_vm1, %v3905_v13, 0 }
 0x52d   : > { %9926 = vmatpush3.bf16.xpose.msra.mxu1 %v3983_v33 }
 0x52e   : > { %11121 = vmatprep.subr.msk.bf16.mxu1 %vm3930_vm1, %v3919_v50 }
 0x52f   : > { %v3921_v31 = vpop.permute.xlu1 %3920  ;;  %v3907_v23 = vpop.permute.xlu0 %3906 }
 0x530   : > { %v3992_v28 = vsel %vm3930_vm1, %v3907_v23, 0 }
 0x533   : > { %v3923_v17 = vpop.permute.xlu1 %3922  ;;  %v3909_v33 = vpop.permute.xlu0 %3908 }
 0x534   : > { %v3995_v50 = vsel %vm3930_vm1, %v3909_v33, 0 }
 0x535   : > { %9928 = vmatpush3.bf16.xpose.msra.mxu1 %v3986_v26 }
 0x536   : > { %11122 = vmatprep.subr.msk.bf16.mxu1 %vm3930_vm1, %v3921_v31 }
 0x537   : > { %v3925_v30 = vpop.permute.xlu1 %3924  ;;  %v3911_v26 = vpop.permute.xlu0 %3910 }
 0x538   : > { %v3998_v31 = vsel %vm3930_vm1, %v3911_v26, 0 }
 0x53b   : > { %v3927_v5 = vpop.permute.xlu1 %3926 }
 0x53d   : > { %9930 = vmatpush3.bf16.xpose.msra.mxu1 %v3989_v45  ;;  %v3913_v45 = vpop.permute.xlu0 %3912 }
 0x53e   : > { %11123 = vmatprep.subr.msk.bf16.mxu1 %vm3930_vm1, %v3923_v17  ;;  %v4001_v17 = vsel %vm3930_vm1, %v3913_v45, 0 }
 0x53f   : > { %v3929_v13 = vpop.permute.xlu1 %3928 }
 0x543   : > { %v4237_v23 = vpop.permute.xlu0 %4236 }
 0x545   : > { %9932 = vmatpush3.bf16.xpose.msra.mxu1 %v3992_v28 }
 0x546   : > { %11124 = vmatprep.subr.msk.bf16.mxu1 %vm3930_vm1, %v3925_v30  ;;  %v4317_v30 = vsel %vm3930_vm1, %v4237_v23, 0 }
 0x54d   : > { %9934 = vmatpush3.bf16.xpose.msra.mxu1 %v3995_v50  ;;  %v4239_v50 = vpop.permute.xlu0 %4238 }
 0x54e   : > { %11125 = vmatprep.subr.msk.bf16.mxu1 %vm3930_vm1, %v3927_v5  ;;  %v4320_v5 = vsel %vm3930_vm1, %v4239_v50, 0 }
 0x555   : > { %9936 = vmatpush3.bf16.xpose.msra.mxu1 %v3998_v31 }
 0x556   : > { %11126 = vmatprep.subr.msk.bf16.mxu1 %vm3930_vm1, %v3929_v13 }
 0x55d   : > { %9938 = vmatpush3.bf16.xpose.msra.mxu1 %v4001_v17 }
 0x563   : > { %v4253_v28 = vpop.permute.xlu1 %4252 }
 0x564   : > { %9940 = vmatmul.mubr.msk.bf16.vlgmr.msra.gmra.mrb[172].mxu1 %vm3930_vm1, %v13044_v18  ;;  %11127 = vmatprep.subr.msk.bf16.mxu1 %vm3930_vm1, %v4253_v28  ;;  %v4241_v18 = vpop.permute.xlu0 %4240 }
 0x565   : > { %9941 = vmatprep.mubr.msk.bf16.mxu1 %vm3930_vm1, %v13042_v24  ;;  %9972 = vmatpush3.bf16.xpose.msra.mxu1 %v4317_v30  ;;  %v4323_v31 = vsel %vm3930_vm1, %v4241_v18, 0 }
 0x567   : > { %v4255_v33 = vpop.permute.xlu1 %4254 }
 0x568   : > { %11128 = vmatprep.subr.msk.bf16.mxu1 %vm3930_vm1, %v4255_v33 }
 0x56b   : > { %v4257_v26 = vpop.permute.xlu1 %4256 }
 0x56c   : > { %9942 = vmatmul.mubr.msk.bf16.gmra.mrb[176].mxu1 %vm3930_vm1, %v13042_v24  ;;  %v4243_v24 = vpop.permute.xlu0 %4242 }
 0x56d   : > { %9943 = vmatprep.mubr.msk.bf16.mxu1 %vm3930_vm1, %v13058_v0  ;;  %9974 = vmatpush3.bf16.xpose.msra.mxu1 %v4320_v5  ;;  %v4326_v45 = vsel %vm3930_vm1, %v4243_v24, 0 }
 0x56e   : > { %11129 = vmatprep.subr.msk.bf16.mxu1 %vm3930_vm1, %v4257_v26 }
 0x56f   : > { %v4259_v13 = vpop.permute.xlu1 %4258 }
 0x573   : > { %v4261_v17 = vpop.permute.xlu1 %4260 }
 0x574   : > { %9944 = vmatmul.mubr.msk.bf16.gmra.mrb[180].mxu1 %vm3930_vm1, %v13058_v0  ;;  %v4245_v0 = vpop.permute.xlu0 %4244 }
 0x575   : > { %9945 = vmatprep.mubr.msk.bf16.mxu1 %vm3930_vm1, %v13056_v43  ;;  %9976 = vmatpush3.bf16.xpose.msra.mxu1 %v4323_v31  ;;  %v4329_v23 = vsel %vm3930_vm1, %v4245_v0, 0 }
 0x576   : > { %11130 = vmatprep.subr.msk.bf16.mxu1 %vm3930_vm1, %v4259_v13 }
 0x577   : > { %v4263_v28 = vpop.permute.xlu1 %4262 }
 0x57b   : > { %v4265_v33 = vpop.permute.xlu1 %4264 }
 0x57c   : > { %9946 = vmatmul.mubr.msk.bf16.gmra.mrb[184].mxu1 %vm3930_vm1, %v13056_v43  ;;  %v4247_v43 = vpop.permute.xlu0 %4246 }
 0x57d   : > { %9947 = vmatprep.mubr.msk.bf16.mxu1 %vm3930_vm1, %v13066_v40  ;;  %9978 = vmatpush3.bf16.xpose.msra.mxu1 %v4326_v45  ;;  %v4332_v30 = vsel %vm3930_vm1, %v4247_v43, 0 }
 0x57e   : > { %11131 = vmatprep.subr.msk.bf16.mxu1 %vm3930_vm1, %v4261_v17 }
 0x57f   : > { %v4267_v5 = vpop.permute.xlu1 %4266 }
 0x584   : > { %9948 = vmatmul.mubr.msk.bf16.gmra.mrb[188].mxu1 %vm3930_vm1, %v13066_v40  ;;  %v4249_v40 = vpop.permute.xlu0 %4248 }
 0x585   : > { %9949 = vmatprep.mubr.msk.bf16.mxu1 %vm3930_vm1, %v13064_v10  ;;  %9980 = vmatpush3.bf16.xpose.msra.mxu1 %v4329_v23  ;;  %v4335_v50 = vsel %vm3930_vm1, %v4249_v40, 0 }
 0x586   : > { %11132 = vmatprep.subr.msk.bf16.mxu1 %vm3930_vm1, %v4263_v28 }
 0x58c   : > { %9950 = vmatmul.mubr.msk.bf16.gmra.mrb[192].mxu1 %vm3930_vm1, %v13064_v10  ;;  %v4251_v10 = vpop.permute.xlu0 %4250 }
 0x58d   : > { %9951 = vmatprep.mubr.msk.bf16.mxu1 %vm3930_vm1, %v13074_v29  ;;  %9982 = vmatpush3.bf16.xpose.msra.mxu1 %v4332_v30  ;;  %v4338_v26 = vsel %vm3930_vm1, %v4251_v10, 0 }
 0x58e   : > { %11133 = vmatprep.subr.msk.bf16.mxu1 %vm3930_vm1, %v4265_v33 }
 0x594   : > { %9952 = vmatmul.mubr.msk.bf16.gmra.mrb[196].mxu1 %vm3930_vm1, %v13074_v29  ;;  %v17562_v29 = vpack.c.bf16 %v12978_v52, %v12975_v41  ;;  %v17565_v41 = vpack.c.bf16 %v12905_v55, %v12902_v21  ;;  %v17566_v52 = vpack.c.bf16 %v12994_v34, %v12991_v62  ;;  %v17569_v21 = vpack.c.bf16 %v12924_v38, %v12921_v47 }
 0x595   : > { %9953 = vmatprep.mubr.msk.bf16.mxu1 %vm3930_vm1, %v13072_v3  ;;  %9984 = vmatpush3.bf16.xpose.msra.mxu1 %v4335_v50  ;;  %v17570_v55 = vpack.c.bf16 %v13010_v9, %v13007_v15  ;;  %v17571_v62 = vpack.c.bf16 %v12946_v36, %v12943_v25  ;;  %v17573_v47 = vpack.c.bf16 %v12940_v2, %v12937_v32  ;;  %v17580_v32 = vld [vmem:[#allocation67_spill] sm:$0xff]  ;;  %v17581_v2 = vld [vmem:[#allocation66_spill] sm:$0xff] }
 0x596   : > { %11134 = vmatprep.subr.msk.bf16.mxu1 %vm3930_vm1, %v4267_v5  ;;  %v17574_v9 = vpack.c.bf16 %v13026_v35, %v13023_v37  ;;  %v17575_v38 = vpack.c.bf16 %v12962_v11, %v12959_v57  ;;  %v17582_v36 = vpack.c.bf16 %v17580_v32, %v17581_v2  ;;  %v17583_v37 = vld [vmem:[#allocation70_spill] sm:$0xff]  ;;  %v17584_v57 = vld [vmem:[#allocation73_spill] sm:$0xff]  ;;  %v17585_v11 = vld [vmem:[#allocation72_spill] sm:$0xff] }
 0x59c   : > { %9954 = vmatmul.mubr.msk.bf16.gmra.mrb[200].mxu1 %vm3930_vm1, %v13072_v3  ;;  %v17563_v3 = vpack.c.bf16 %v12911_v27, %v12908_v19  ;;  %v17567_v19 = vpack.c.bf16 %v12930_v58, %v12927_v44  ;;  %v17568_v27 = vpack.c.bf16 %v12988_v16, %v12985_v48  ;;  %v17572_v44 = vpack.c.bf16 %v13004_v46, %v13001_v60  ;;  %v17576_v58 = vld [vmem:[#allocation71_spill] sm:$0xff]  ;;  %v17577_v46 = vld [vmem:[#allocation69_spill] sm:$0xff]  ;;  %v17578_v48 = vld [vmem:[#allocation68_spill] sm:$0xff] }
 0x59d   : > { %9955 = vmatprep.mubr.msk.bf16.mxu1 %vm3930_vm1, %v13082_v7  ;;  %9986 = vmatpush3.bf16.xpose.msra.mxu1 %v4338_v26  ;;  %v17579_v25 = vpack.c.bf16 %v17577_v46, %v17578_v48  ;;  %v17588_v16 = vld [vmem:[#allocation76_spill] sm:$0xff] }
 0x59e   : > { %10131 = vmatprep.subr.bf16.mxu1 %v17562_v29 }
 0x5a4   : > { %9956 = vmatmul.mubr.msk.bf16.gmra.mrb[204].mxu1 %vm3930_vm1, %v13082_v7 }
 0x5a5   : > { %9957 = vmatprep.mubr.msk.bf16.mxu1 %vm3930_vm1, %v13080_v51 }
 0x5ac   : > { %9958 = vmatmul.mubr.msk.bf16.gmra.mrb[208].mxu1 %vm3930_vm1, %v13080_v51  ;;  %v17564_v51 = vpack.c.bf16 %v12972_v1, %v12969_v49  ;;  %v17586_v49 = vld [vmem:[#allocation75_spill] sm:$0xff]  ;;  %v17587_v1 = vld [vmem:[#allocation74_spill] sm:$0xff] }
 0x5ad   : > { %9959 = vmatprep.mubr.msk.bf16.mxu1 %vm3930_vm1, %v13096_v61 }
 0x5b4   : > { %9960 = vmatmul.mubr.msk.bf16.gmra.mrb[212].mxu1 %vm3930_vm1, %v13096_v61 }
 0x5b5   : > { %9961 = vmatprep.mubr.msk.bf16.mxu1 %vm3930_vm1, %v13094_v42 }
 0x5bc   : > { %9962 = vmatmul.mubr.msk.bf16.gmra.mrb[216].mxu1 %vm3930_vm1, %v13094_v42 }
 0x5bd   : > { %9963 = vmatprep.mubr.msk.bf16.mxu1 %vm3930_vm1, %v13112_v8 }
 0x5c4   : > { %9964 = vmatmul.mubr.msk.bf16.gmra.mrb[220].mxu1 %vm3930_vm1, %v13112_v8 }
 0x5c5   : > { %9965 = vmatprep.mubr.msk.bf16.mxu1 %vm3930_vm1, %v13110_v22 }
 0x5cc   : > { %9966 = vmatmul.mubr.msk.bf16.gmra.mrb[224].mxu1 %vm3930_vm1, %v13110_v22 }
 0x5cd   : > { %9967 = vmatprep.mubr.msk.bf16.mxu1 %vm3930_vm1, %v13128_v56 }
 0x5d4   : > { %9968 = vmatmul.mubr.msk.bf16.gmra.mrb[228].mxu1 %vm3930_vm1, %v13128_v56 }
 0x5d5   : > { %9969 = vmatprep.mubr.msk.bf16.mxu1 %vm3930_vm1, %v13126_v63 }
 0x5dc   : > { %9970 = vmatmul.mubr.msk.bf16.gmra.mrb[232].mxu1 %vm3930_vm1, %v13126_v63 }
 0x5dd   : > { %9987 = vmatprep.mubr.msk.bf16.mxu1 %vm3930_vm1, %v13142_v4 }
 0x5e4   : > { %9988 = vmatmul.mubr.msk.bf16.vlgmr.msra.gmra.mrb[236].mxu1 %vm3930_vm1, %v13142_v4 }
 0x5e5   : > { %10132 = vmatpush3.bf16.msra.mxu1 %v17563_v3  ;;  %9989 = vmatprep.mubr.msk.bf16.mxu1 %vm3930_vm1, %v13140_v20 }
 0x5e6   : > { %10133 = vmatprep.subr.bf16.mxu1 %v17564_v51 }
 0x5e9   : > { %10134 = vmatpush3.bf16.msra.mxu1 %v17565_v41 }
 0x5ea   : > { %10135 = vmatprep.subr.bf16.mxu1 %v17566_v52 }
 0x5ec   : > { %9990 = vmatmul.mubr.msk.bf16.gmra.mrb[240].mxu1 %vm3930_vm1, %v13140_v20 }
 0x5ed   : > { %10136 = vmatpush3.bf16.msra.mxu1 %v17567_v19  ;;  %9991 = vmatprep.mubr.msk.bf16.mxu1 %vm3930_vm1, %v13154_v39 }
 0x5ee   : > { %10137 = vmatprep.subr.bf16.mxu1 %v17568_v27 }
 0x5f1   : > { %10138 = vmatpush3.bf16.msra.mxu1 %v17569_v21 }
 0x5f2   : > { %10139 = vmatprep.subr.bf16.mxu1 %v17570_v55 }
 0x5f4   : > { %9992 = vmatmul.mubr.msk.bf16.gmra.mrb[244].mxu1 %vm3930_vm1, %v13154_v39 }
 0x5f5   : > { %10140 = vmatpush3.bf16.msra.mxu1 %v17571_v62  ;;  %9993 = vmatprep.mubr.msk.bf16.mxu1 %vm3930_vm1, %v13152_v53 }
 0x5f6   : > { %10141 = vmatprep.subr.bf16.mxu1 %v17572_v44 }
 0x5f9   : > { %10142 = vmatpush3.bf16.msra.mxu1 %v17573_v47 }
 0x5fa   : > { %10143 = vmatprep.subr.bf16.mxu1 %v17574_v9 }
 0x5fc   : > { %9994 = vmatmul.mubr.msk.bf16.gmra.mrb[248].mxu1 %vm3930_vm1, %v13152_v53 }
 0x5fd   : > { %10144 = vmatpush3.bf16.msra.mxu1 %v17575_v38  ;;  %9995 = vmatprep.mubr.msk.bf16.mxu1 %vm3930_vm1, %v17576_v58 }
 0x5fe   : > { %10145 = vmatprep.subr.bf16.mxu1 %v17579_v25 }
 0x601   : > { %10146 = vmatpush3.bf16.msra.mxu1 %v17582_v36 }
 0x604   : > { %9996 = vmatmul.mubr.msk.bf16.gmra.mrb[252].mxu1 %vm3930_vm1, %v17576_v58 }
 0x605   : > { %9997 = vmatprep.mubr.msk.bf16.mxu1 %vm3930_vm1, %v17583_v37 }
 0x60c   : > { %9998 = vmatmul.mubr.msk.bf16.gmra.mrb[0].mxu1 %vm3930_vm1, %v17583_v37 }
 0x60d   : > { %9999 = vmatprep.mubr.msk.bf16.mxu1 %vm3930_vm1, %v17584_v57 }
 0x614   : > { %10000 = vmatmul.mubr.msk.bf16.gmra.mrb[4].mxu1 %vm3930_vm1, %v17584_v57 }
 0x615   : > { %10001 = vmatprep.mubr.msk.bf16.mxu1 %vm3930_vm1, %v17585_v11 }
 0x61c   : > { %10002 = vmatmul.mubr.msk.bf16.gmra.mrb[8].mxu1 %vm3930_vm1, %v17585_v11 }
 0x61d   : > { %10003 = vmatprep.mubr.msk.bf16.mxu1 %vm3930_vm1, %v17586_v49 }
 0x624   : > { %10004 = vmatmul.mubr.msk.bf16.gmra.mrb[12].mxu1 %vm3930_vm1, %v17586_v49 }
 0x625   : > { %10005 = vmatprep.mubr.msk.bf16.mxu1 %vm3930_vm1, %v17587_v1 }
 0x62c   : > { %10006 = vmatmul.mubr.msk.bf16.gmra.mrb[16].mxu1 %vm3930_vm1, %v17587_v1 }
 0x62d   : > { %10007 = vmatprep.mubr.msk.bf16.mxu1 %vm3930_vm1, %v17588_v16 }
 0x634   : > { %10008 = vmatmul.mubr.msk.bf16.gmra.mrb[20].mxu1 %vm3930_vm1, %v17588_v16 }
 0x635   : > { %10009 = vmatprep.mubr.msk.bf16.mxu1 %vm3930_vm1, %v13200_v12 }
 0x637   : > { %v13420_v34 = vpop.f32.mrb[172].mxu1 }
 0x638   : > { %v13422_v60 = vpop.f32.mrb[173].mxu1 }
 0x639   : > { %v13424_v15 = vpop.f32.mrb[174].mxu1  ;;  %v4557_v35 = vmax.f32 %v13420_v34, %v13422_v60 }
 0x63a   : > { %v13428_v7 = vpop.f32.mrb[175].mxu1 }
 0x63b   : > { %4558 = vmax.xlane.f32.xlu0 %v4557_v35  ;;  %v4560_v42 = vmax.f32 %v13424_v15, %v13428_v7 }
 0x63c   : > { %10010 = vmatmul.mubr.msk.bf16.gmra.mrb[24].mxu1 %vm3930_vm1, %v13200_v12 }
 0x63d   : > { %10011 = vmatprep.mubr.msk.bf16.mxu1 %vm3930_vm1, %v13214_v54  ;;  %4561 = vmax.xlane.f32.xlu1 %v4560_v42 }
 0x63f   : > { %v13436_v61 = vpop.f32.mrb[176].mxu1 }
 0x640   : > { %v13438_v22 = vpop.f32.mrb[177].mxu1 }
 0x641   : > { %v13440_v8 = vpop.f32.mrb[178].mxu1  ;;  %v4563_v63 = vmax.f32 %v13436_v61, %v13438_v22 }
 0x642   : > { %v13444_v56 = vpop.f32.mrb[179].mxu1 }
 0x643   : > { %4564 = vmax.xlane.f32.xlu0 %v4563_v63  ;;  %v4566_v20 = vmax.f32 %v13440_v8, %v13444_v56 }
 0x644   : > { %10012 = vmatmul.mubr.msk.bf16.gmra.mrb[28].mxu1 %vm3930_vm1, %v13214_v54 }
 0x645   : > { %10013 = vmatprep.mubr.msk.bf16.mxu1 %vm3930_vm1, %v13212_v6 }
 0x647   : > { %4567 = vmax.xlane.f32.xlu0 %v4566_v20  ;;  %v13452_v4 = vpop.f32.mrb[180].mxu1 }
 0x648   : > { %v13454_v53 = vpop.f32.mrb[181].mxu1 }
 0x649   : > { %v13456_v39 = vpop.f32.mrb[182].mxu1  ;;  %v4569_v12 = vmax.f32 %v13452_v4, %v13454_v53 }
 0x64a   : > { %v13460_v18 = vpop.f32.mrb[183].mxu1 }
 0x64b   : > { %4570 = vmax.xlane.f32.xlu1 %v4569_v12  ;;  %v4572_v31 = vmax.f32 %v13456_v39, %v13460_v18 }
 0x64c   : > { %10014 = vmatmul.mubr.msk.bf16.gmra.mrb[32].mxu1 %vm3930_vm1, %v13212_v6 }
 0x64d   : > { %10015 = vmatprep.mubr.msk.bf16.mxu1 %vm3930_vm1, %v13226_v14  ;;  %4573 = vmax.xlane.f32.xlu0 %v4572_v31 }
 0x64f   : > { %v13468_v54 = vpop.f32.mrb[184].mxu1 }
 0x650   : > { %v13470_v13 = vpop.f32.mrb[185].mxu1 }
 0x651   : > { %v13472_v24 = vpop.f32.mrb[186].mxu1  ;;  %v4575_v45 = vmax.f32 %v13468_v54, %v13470_v13 }
 0x652   : > { %v13476_v17 = vpop.f32.mrb[187].mxu1 }
 0x653   : > { %4576 = vmax.xlane.f32.xlu1 %v4575_v45  ;;  %v4578_v0 = vmax.f32 %v13472_v24, %v13476_v17 }
 0x654   : > { %10016 = vmatmul.mubr.msk.bf16.gmra.mrb[36].mxu1 %vm3930_vm1, %v13226_v14 }
 0x655   : > { %10017 = vmatprep.mubr.msk.bf16.mxu1 %vm3930_vm1, %v13224_v59  ;;  %4579 = vmax.xlane.f32.xlu0 %v4578_v0 }
 0x657   : > { %v13484_v6 = vpop.f32.mrb[188].mxu1 }
 0x658   : > { %v13486_v23 = vpop.f32.mrb[189].mxu1 }
 0x659   : > { %v13488_v28 = vpop.f32.mrb[190].mxu1  ;;  %v4581_v43 = vmax.f32 %v13484_v6, %v13486_v23 }
 0x65a   : > { %v13492_v30 = vpop.f32.mrb[191].mxu1 }
 0x65b   : > { %4582 = vmax.xlane.f32.xlu1 %v4581_v43  ;;  %v4584_v33 = vmax.f32 %v13488_v28, %v13492_v30 }
 0x65c   : > { %10018 = vmatmul.mubr.msk.bf16.gmra.mrb[40].mxu1 %vm3930_vm1, %v13224_v59 }
 0x65d   : > { %4585 = vmax.xlane.f32.xlu0 %v4584_v33 }
 0x65f   : > { %v13498_v14 = vpop.f32.mrb[192].mxu1 }
 0x660   : > { %v13500_v40 = vpop.f32.mrb[193].mxu1 }
 0x661   : > { %v13502_v50 = vpop.f32.mrb[194].mxu1  ;;  %v4587_v5 = vmax.f32 %v13498_v14, %v13500_v40 }
 0x662   : > { %v13506_v10 = vpop.f32.mrb[195].mxu1 }
 0x663   : > { %4588 = vmax.xlane.f32.xlu1 %v4587_v5  ;;  %v4590_v26 = vmax.f32 %v13502_v50, %v13506_v10 }
 0x665   : > { %4591 = vmax.xlane.f32.xlu0 %v4590_v26 }
 0x667   : > { %v13510_v29 = vpop.f32.mrb[196].mxu1 }
 0x668   : > { %v13512_v59 = vpop.f32.mrb[197].mxu1 }
 0x669   : > { %v13514_v3 = vpop.f32.mrb[198].mxu1  ;;  %v4593_v51 = vmax.f32 %v13510_v29, %v13512_v59 }
 0x66a   : > { %v13518_v41 = vpop.f32.mrb[199].mxu1 }
 0x66b   : > { %4594 = vmax.xlane.f32.xlu1 %v4593_v51  ;;  %v4596_v52 = vmax.f32 %v13514_v3, %v13518_v41 }
 0x66d   : > { %4597 = vmax.xlane.f32.xlu0 %v4596_v52 }
 0x66f   : > { %v13522_v19 = vpop.f32.mrb[200].mxu1 }
 0x670   : > { %v13524_v27 = vpop.f32.mrb[201].mxu1 }
 0x671   : > { %v13526_v21 = vpop.f32.mrb[202].mxu1  ;;  %v4599_v55 = vmax.f32 %v13522_v19, %v13524_v27 }
 0x672   : > { %v13530_v62 = vpop.f32.mrb[203].mxu1 }
 0x673   : > { %4600 = vmax.xlane.f32.xlu1 %v4599_v55  ;;  %v4602_v44 = vmax.f32 %v13526_v21, %v13530_v62 }
 0x675   : > { %4603 = vmax.xlane.f32.xlu0 %v4602_v44 }
 0x677   : > { %v13534_v47 = vpop.f32.mrb[204].mxu1 }
 0x678   : > { %v13536_v9 = vpop.f32.mrb[205].mxu1 }
 0x679   : > { %v13538_v38 = vpop.f32.mrb[206].mxu1  ;;  %v4605_v58 = vmax.f32 %v13534_v47, %v13536_v9 }
 0x67a   : > { %v13542_v46 = vpop.f32.mrb[207].mxu1 }
 0x67b   : > { %4606 = vmax.xlane.f32.xlu1 %v4605_v58  ;;  %v4608_v48 = vmax.f32 %v13538_v38, %v13542_v46 }
 0x67d   : > { %4609 = vmax.xlane.f32.xlu0 %v4608_v48 }
 0x67f   : > { %v13546_v25 = vpop.f32.mrb[208].mxu1 }
 0x680   : > { %v13548_v32 = vpop.f32.mrb[209].mxu1 }
 0x681   : > { %v13550_v2 = vpop.f32.mrb[210].mxu1  ;;  %v4611_v36 = vmax.f32 %v13546_v25, %v13548_v32 }
 0x682   : > { %v13554_v37 = vpop.f32.mrb[211].mxu1 }
 0x683   : > { %4612 = vmax.xlane.f32.xlu1 %v4611_v36  ;;  %v4614_v57 = vmax.f32 %v13550_v2, %v13554_v37 }
 0x685   : > { %4615 = vmax.xlane.f32.xlu0 %v4614_v57 }
 0x687   : > { %v13558_v11 = vpop.f32.mrb[212].mxu1 }
 0x688   : > { %v13560_v49 = vpop.f32.mrb[213].mxu1 }
 0x689   : > { %v13562_v1 = vpop.f32.mrb[214].mxu1  ;;  %v4617_v16 = vmax.f32 %v13558_v11, %v13560_v49 }
 0x68a   : > { %v13566_v35 = vpop.f32.mrb[215].mxu1 }
 0x68b   : > { %4618 = vmax.xlane.f32.xlu1 %v4617_v16  ;;  %v4620_v42 = vmax.f32 %v13562_v1, %v13566_v35 }
 0x68d   : > { %4621 = vmax.xlane.f32.xlu0 %v4620_v42 }
 0x68f   : > { %v13570_v63 = vpop.f32.mrb[216].mxu1 }
 0x690   : > { %v13572_v20 = vpop.f32.mrb[217].mxu1 }
 0x691   : > { %v13574_v12 = vpop.f32.mrb[218].mxu1  ;;  %v4623_v31 = vmax.f32 %v13570_v63, %v13572_v20 }
 0x692   : > { %v13578_v45 = vpop.f32.mrb[219].mxu1 }
 0x693   : > { %17589 = vst [vmem:[#allocation71_spill] sm:$0xff] %v13578_v45  ;;  %4624 = vmax.xlane.f32.xlu1 %v4623_v31  ;;  %v4626_v0 = vmax.f32 %v13574_v12, %v13578_v45 }
 0x695   : > { %4627 = vmax.xlane.f32.xlu0 %v4626_v0 }
 0x697   : > { %v13582_v43 = vpop.f32.mrb[220].mxu1 }
 0x698   : > { %17590 = vst [vmem:[#allocation69_spill] sm:$0xff] %v13582_v43  ;;  %v13584_v33 = vpop.f32.mrb[221].mxu1 }
 0x699   : > { %17591 = vst [vmem:[#allocation68_spill] sm:$0xff] %v13584_v33  ;;  %v13586_v5 = vpop.f32.mrb[222].mxu1  ;;  %v4629_v26 = vmax.f32 %v13582_v43, %v13584_v33 }
 0x69a   : > { %17592 = vst [vmem:[#allocation67_spill] sm:$0xff] %v13586_v5  ;;  %v13590_v51 = vpop.f32.mrb[223].mxu1 }
 0x69b   : > { %17593 = vst [vmem:[#allocation66_spill] sm:$0xff] %v13590_v51  ;;  %4630 = vmax.xlane.f32.xlu1 %v4629_v26  ;;  %v4632_v52 = vmax.f32 %v13586_v5, %v13590_v51 }
 0x69d   : > { %4633 = vmax.xlane.f32.xlu0 %v4632_v52 }
 0x69f   : > { %v13594_v55 = vpop.f32.mrb[224].mxu1 }
 0x6a0   : > { %17594 = vst [vmem:[#allocation70_spill] sm:$0xff] %v13594_v55  ;;  %v13596_v44 = vpop.f32.mrb[225].mxu1 }
 0x6a1   : > { %17595 = vst [vmem:[#allocation73_spill] sm:$0xff] %v13596_v44  ;;  %v13598_v58 = vpop.f32.mrb[226].mxu1  ;;  %v4635_v48 = vmax.f32 %v13594_v55, %v13596_v44 }
 0x6a2   : > { %17596 = vst [vmem:[#allocation72_spill] sm:$0xff] %v13598_v58  ;;  %v13602_v36 = vpop.f32.mrb[227].mxu1 }
 0x6a3   : > { %17597 = vst [vmem:[#allocation75_spill] sm:$0xff] %v13602_v36  ;;  %4636 = vmax.xlane.f32.xlu1 %v4635_v48  ;;  %v4638_v57 = vmax.f32 %v13598_v58, %v13602_v36 }
 0x6a5   : > { %4639 = vmax.xlane.f32.xlu0 %v4638_v57 }
 0x6a7   : > { %v13606_v16 = vpop.f32.mrb[228].mxu1 }
 0x6a8   : > { %17598 = vst [vmem:[#allocation74_spill] sm:$0xff] %v13606_v16  ;;  %v13608_v42 = vpop.f32.mrb[229].mxu1 }
 0x6a9   : > { %17599 = vst [vmem:[#allocation76_spill] sm:$0xff] %v13608_v42  ;;  %v13610_v31 = vpop.f32.mrb[230].mxu1  ;;  %v4641_v0 = vmax.f32 %v13606_v16, %v13608_v42 }
 0x6aa   : > { %17600 = vst [vmem:[#allocation77_spill] sm:$0xff] %v13610_v31  ;;  %v13614_v26 = vpop.f32.mrb[231].mxu1 }
 0x6ab   : > { %17601 = vst [vmem:[#allocation78_spill] sm:$0xff] %v13614_v26  ;;  %4642 = vmax.xlane.f32.xlu1 %v4641_v0  ;;  %v4644_v52 = vmax.f32 %v13610_v31, %v13614_v26 }
 0x6ad   : > { %4645 = vmax.xlane.f32.xlu0 %v4644_v52 }
 0x6af   : > { %v13618_v48 = vpop.f32.mrb[232].mxu1 }
 0x6b0   : > { %17602 = vst [vmem:[#allocation79_spill] sm:$0xff] %v13618_v48  ;;  %v13620_v36 = vpop.f32.mrb[233].mxu1 }
 0x6b1   : > { %17603 = vst [vmem:[#allocation80_spill] sm:$0xff] %v13620_v36  ;;  %v13622_v57 = vpop.f32.mrb[234].mxu1  ;;  %v4647_v58 = vmax.f32 %v13618_v48, %v13620_v36 }
 0x6b2   : > { %17604 = vst [vmem:[#allocation81_spill] sm:$0xff] %v13622_v57  ;;  %v13626_v44 = vpop.f32.mrb[235].mxu1 }
 0x6b3   : > { %17605 = vst [vmem:[#allocation82_spill] sm:$0xff] %v13626_v44  ;;  %4648 = vmax.xlane.f32.xlu1 %v4647_v58  ;;  %v4650_v42 = vmax.f32 %v13622_v57, %v13626_v44 }
 0x6b5   : > { %4651 = vmax.xlane.f32.xlu0 %v4650_v42 }
 0x6b7   : > { %v13630_v0 = vpop.f32.mrb[236].mxu1 }
 0x6b8   : > { %v13632_v26 = vpop.f32.mrb[237].mxu1 }
 0x6b9   : > { %v13634_v52 = vpop.f32.mrb[238].mxu1  ;;  %v4653_v31 = vmax.f32 %v13630_v0, %v13632_v26 }
 0x6ba   : > { %v13638_v16 = vpop.f32.mrb[239].mxu1 }
 0x6bb   : > { %4654 = vmax.xlane.f32.xlu1 %v4653_v31  ;;  %v4656_v36 = vmax.f32 %v13634_v52, %v13638_v16 }
 0x6bd   : > { %4657 = vmax.xlane.f32.xlu0 %v4656_v36 }
 0x6bf   : > { %v13642_v58 = vpop.f32.mrb[240].mxu1 }
 0x6c0   : > { %17606 = vst [vmem:[#allocation83_spill] sm:$0xff] %v13642_v58  ;;  %v13644_v44 = vpop.f32.mrb[241].mxu1 }
 0x6c1   : > { %17607 = vst [vmem:[#allocation84_spill] sm:$0xff] %v13644_v44  ;;  %v13646_v42 = vpop.f32.mrb[242].mxu1  ;;  %v4659_v57 = vmax.f32 %v13642_v58, %v13644_v44 }
 0x6c2   : > { %17608 = vst [vmem:[#allocation85_spill] sm:$0xff] %v13646_v42  ;;  %v13650_v48 = vpop.f32.mrb[243].mxu1 }
 0x6c3   : > { %17609 = vst [vmem:[#allocation86_spill] sm:$0xff] %v13650_v48  ;;  %4660 = vmax.xlane.f32.xlu1 %v4659_v57  ;;  %v4662_v55 = vmax.f32 %v13646_v42, %v13650_v48 }
 0x6c5   : > { %4663 = vmax.xlane.f32.xlu0 %v4662_v55 }
 0x6c7   : > { %v13654_v31 = vpop.f32.mrb[244].mxu1 }
 0x6c8   : > { %17610 = vst [vmem:[#allocation87_spill] sm:$0xff] %v13654_v31  ;;  %v4559_v51 = vpop.xlane.xlu0 %4558  ;;  %v13656_v36 = vpop.f32.mrb[245].mxu1 }
 0x6c9   : > { %17611 = vst [vmem:[#allocation88_spill] sm:$0xff] %v13656_v36  ;;  %v4749_v5 = vsub.f32 %v13420_v34, %v4559_v51  ;;  %v4750_v33 = vsub.f32 %v13422_v60, %v4559_v51  ;;  %v13660_v43 = vpop.f32.mrb[246].mxu1  ;;  %v4665_v44 = vmax.f32 %v13654_v31, %v13656_v36 }
 0x6ca   : > { %v4562_v58 = vpop.xlane.xlu1 %4561  ;;  %v13664_v57 = vpop.f32.mrb[247].mxu1 }
 0x6cb   : > { %v4877_v45 = vmul.f32 1.442695, %v4749_v5  ;;  %v4879_v48 = vmul.f32 1.442695, %v4750_v33  ;;  %v4751_v55 = vsub.f32 %v13424_v15, %v4562_v58  ;;  %v4752_v42 = vsub.f32 %v13428_v7, %v4562_v58  ;;  %4666 = vmax.xlane.f32.xlu1 %v4665_v44 }
 0x6cc   : > { %v4668_v34 = vmax.f32 %v13660_v43, %v13664_v57 }
 0x6cd   : > { %11424 = vpow2.f32 %v4877_v45  ;;  %v4881_v60 = vmul.f32 1.442695, %v4751_v55  ;;  %v4883_v51 = vmul.f32 1.442695, %v4752_v42 }
 0x6ce   : > { %11426 = vpow2.f32 %v4879_v48  ;;  %4669 = vmax.xlane.f32.xlu0 %v4668_v34 }
 0x6cf   : > { %11428 = vpow2.f32 %v4881_v60  ;;  %v13670_v36 = vpop.f32.mrb[248].mxu1 }
 0x6d0   : > { %11430 = vpow2.f32 %v4883_v51  ;;  %v4565_v31 = vpop.xlane.xlu0 %4564  ;;  %v13672_v5 = vpop.f32.mrb[249].mxu1 }
 0x6d1   : > { %17612 = vst [vmem:[#allocation89_spill] sm:$0xff] %v13672_v5  ;;  %v4753_v15 = vsub.f32 %v13436_v61, %v4565_v31  ;;  %v4754_v7 = vsub.f32 %v13438_v22, %v4565_v31  ;;  %v13676_v33 = vpop.f32.mrb[250].mxu1  ;;  %v4671_v45 = vmax.f32 %v13670_v36, %v13672_v5 }
 0x6d2   : > { %17613 = vst [vmem:[#allocation90_spill] sm:$0xff] %v13676_v33  ;;  %v13680_v44 = vpop.f32.mrb[251].mxu1 }
 0x6d3   : > { %17614 = vst [vmem:[#allocation91_spill] sm:$0xff] %v13680_v44  ;;  %v4885_v48 = vmul.f32 1.442695, %v4753_v15  ;;  %v4887_v58 = vmul.f32 1.442695, %v4754_v7  ;;  %4672 = vmax.xlane.f32.xlu1 %v4671_v45  ;;  %v4674_v42 = vmax.f32 %v13676_v33, %v13680_v44 }
 0x6d4   : > { %v4568_v55 = vpop.xlane.xlu0 %4567 }
 0x6d5   : > { %11432 = vpow2.f32 %v4885_v48  ;;  %v4755_v34 = vsub.f32 %v13440_v8, %v4568_v55  ;;  %v4756_v61 = vsub.f32 %v13444_v56, %v4568_v55  ;;  %4675 = vmax.xlane.f32.xlu0 %v4674_v42 }
 0x6d6   : > { %11434 = vpow2.f32 %v4887_v58 }
 0x6d7   : > { %v13686_v22 = vpop.eup %11424  ;;  %v4889_v31 = vmul.f32 1.442695, %v4755_v34  ;;  %v4891_v60 = vmul.f32 1.442695, %v4756_v61  ;;  %v13688_v51 = vpop.f32.mrb[252].mxu1 }
 0x6d8   : > { %17615 = vst [vmem:[#allocation92_spill] sm:$0xff] %v13686_v22  ;;  %v13690_v15 = vpop.eup %11426  ;;  %v4571_v7 = vpop.xlane.xlu1 %4570 }
 0x6d9   : > { %17616 = vst [vmem:[#allocation93_spill] sm:$0xff] %v13690_v15  ;;  %v13692_v45 = vpop.f32.mrb[253].mxu1  ;;  %v13694_v44 = vpop.eup %11428  ;;  %11436 = vpow2.f32 %v4889_v31  ;;  %v4757_v8 = vsub.f32 %v13452_v4, %v4571_v7  ;;  %v4758_v56 = vsub.f32 %v13454_v53, %v4571_v7  ;;  %v5133_v58 = vadd.f32 %v13690_v15, %v13686_v22 }
 0x6da   : > { %17617 = vst [vmem:[#allocation94_spill] sm:$0xff] %v13694_v44  ;;  %v13698_v48 = vpop.f32.mrb[254].mxu1  ;;  %v13702_v42 = vpop.eup %11430  ;;  %11438 = vpow2.f32 %v4891_v60  ;;  %v4677_v61 = vmax.f32 %v13688_v51, %v13692_v45 }
 0x6db   : > { %17618 = vst [vmem:[#allocation95_spill] sm:$0xff] %v13702_v42  ;;  %v4574_v55 = vpop.xlane.xlu0 %4573  ;;  %v13704_v34 = vpop.f32.mrb[255].mxu1  ;;  %v4893_v33 = vmul.f32 1.442695, %v4757_v8  ;;  %v4895_v31 = vmul.f32 1.442695, %v4758_v56  ;;  %5134 = vadd.xlane.f32.xlu1 %v5133_v58  ;;  %v5136_v7 = vadd.f32 %v13702_v42, %v13694_v44 }
 0x6dc   : > { %v4759_v4 = vsub.f32 %v13456_v39, %v4574_v55  ;;  %v4760_v53 = vsub.f32 %v13460_v18, %v4574_v55  ;;  %v4680_v22 = vmax.f32 %v13698_v48, %v13704_v34 }
 0x6dd   : > { %11440 = vpow2.f32 %v4893_v33  ;;  %5137 = vadd.xlane.f32.xlu0 %v5136_v7 }
 0x6de   : > { %v4897_v60 = vmul.f32 1.442695, %v4759_v4  ;;  %v4899_v15 = vmul.f32 1.442695, %v4760_v53  ;;  %11442 = vpow2.f32 %v4895_v31 }
 0x6df   : > { %v13714_v5 = vpop.eup %11432  ;;  %4678 = vmax.xlane.f32.xlu1 %v4677_v61  ;;  %v13716_v8 = vpop.f32.mrb[0].mxu1 }
 0x6e0   : > { %17619 = vst [vmem:[#allocation96_spill] sm:$0xff] %v13714_v5  ;;  %11444 = vpow2.f32 %v4897_v60  ;;  %v13718_v39 = vpop.eup %11434  ;;  %v4577_v18 = vpop.xlane.xlu1 %4576 }
 0x6e1   : > { %17620 = vst [vmem:[#allocation97_spill] sm:$0xff] %v13718_v39  ;;  %11446 = vpow2.f32 %v4899_v15  ;;  %v13720_v56 = vpop.f32.mrb[1].mxu1  ;;  %v4761_v58 = vsub.f32 %v13468_v54, %v4577_v18  ;;  %v4762_v33 = vsub.f32 %v13470_v13, %v4577_v18  ;;  %v5139_v31 = vadd.f32 %v13718_v39, %v13714_v5  ;;  %4681 = vmax.xlane.f32.xlu0 %v4680_v22 }
 0x6e2   : > { %v13724_v55 = vpop.f32.mrb[2].mxu1  ;;  %v4683_v61 = vmax.f32 %v13716_v8, %v13720_v56  ;;  %v4580_v4 = vpop.xlane.xlu0 %4579 }
 0x6e3   : > { %v13730_v53 = vpop.f32.mrb[3].mxu1  ;;  %v13732_v15 = vpop.eup %11436  ;;  %v4901_v7 = vmul.f32 1.442695, %v4761_v58  ;;  %v4903_v60 = vmul.f32 1.442695, %v4762_v33  ;;  %v4763_v54 = vsub.f32 %v13472_v24, %v4580_v4  ;;  %v4764_v13 = vsub.f32 %v13476_v17, %v4580_v4  ;;  %5140 = vadd.xlane.f32.xlu1 %v5139_v31 }
 0x6e4   : > { %17621 = vst [vmem:[#allocation98_spill] sm:$0xff] %v13732_v15  ;;  %v13736_v18 = vpop.eup %11438  ;;  %v4686_v5 = vmax.f32 %v13724_v55, %v13730_v53 }
 0x6e5   : > { %17622 = vst [vmem:[#allocation99_spill] sm:$0xff] %v13736_v18  ;;  %11448 = vpow2.f32 %v4901_v7  ;;  %v4905_v39 = vmul.f32 1.442695, %v4763_v54  ;;  %v4907_v22 = vmul.f32 1.442695, %v4764_v13  ;;  %v5142_v42 = vadd.f32 %v13736_v18, %v13732_v15 }
 0x6e6   : > { %11450 = vpow2.f32 %v4903_v60 }
 0x6e7   : > { %v13742_v44 = vpop.eup %11440  ;;  %11452 = vpow2.f32 %v4905_v39  ;;  %5143 = vadd.xlane.f32.xlu0 %v5142_v42  ;;  %4684 = vmax.xlane.f32.xlu1 %v4683_v61  ;;  %v13744_v24 = vpop.f32.mrb[4].mxu1 }
 0x6e8   : > { %17623 = vst [vmem:[#allocation100_spill] sm:$0xff] %v13742_v44  ;;  %v13746_v17 = vpop.eup %11442  ;;  %11454 = vpow2.f32 %v4907_v22  ;;  %v4583_v58 = vpop.xlane.xlu1 %4582 }
 0x6e9   : > { %17624 = vst [vmem:[#allocation101_spill] sm:$0xff] %v13746_v17  ;;  %v13748_v33 = vpop.f32.mrb[5].mxu1  ;;  %v4765_v4 = vsub.f32 %v13484_v6, %v4583_v58  ;;  %v4766_v7 = vsub.f32 %v13486_v23, %v4583_v58  ;;  %v5145_v42 = vadd.f32 %v13746_v17, %v13742_v44 }
 0x6ea   : > { %17625 = vst [vmem:[#allocation102_spill] sm:$0xff] %v13748_v33  ;;  %v13750_v31 = vpop.eup %11444  ;;  %v13754_v60 = vpop.f32.mrb[6].mxu1  ;;  %v4689_v39 = vmax.f32 %v13744_v24, %v13748_v33 }
 0x6eb   : > { %17626 = vst [vmem:[#allocation103_spill] sm:$0xff] %v13750_v31  ;;  %v13760_v61 = vpop.eup %11446  ;;  %v4586_v54 = vpop.xlane.xlu0 %4585  ;;  %v4909_v22 = vmul.f32 1.442695, %v4765_v4  ;;  %v4911_v15 = vmul.f32 1.442695, %v4766_v7  ;;  %5146 = vadd.xlane.f32.xlu1 %v5145_v42  ;;  %4687 = vmax.xlane.f32.xlu0 %v4686_v5 }
 0x6ec   : > { %17627 = vst [vmem:[#allocation104_spill] sm:$0xff] %v13760_v61  ;;  %v13762_v13 = vpop.f32.mrb[7].mxu1  ;;  %v4767_v18 = vsub.f32 %v13488_v28, %v4586_v54  ;;  %v4768_v6 = vsub.f32 %v13492_v30, %v4586_v54  ;;  %v5148_v17 = vadd.f32 %v13760_v61, %v13750_v31 }
 0x6ed   : > { %v4692_v23 = vmax.f32 %v13754_v60, %v13762_v13  ;;  %11456 = vpow2.f32 %v4909_v22 }
 0x6ee   : > { %v4913_v58 = vmul.f32 1.442695, %v4767_v18  ;;  %v4915_v44 = vmul.f32 1.442695, %v4768_v6  ;;  %11458 = vpow2.f32 %v4911_v15 }
 0x6ef   : > { %v13770_v33 = vpop.eup %11448  ;;  %5149 = vadd.xlane.f32.xlu0 %v5148_v17  ;;  %4690 = vmax.xlane.f32.xlu1 %v4689_v39  ;;  %v13772_v28 = vpop.f32.mrb[8].mxu1 }
 0x6f0   : > { %17628 = vst [vmem:[#allocation105_spill] sm:$0xff] %v13770_v33  ;;  %11460 = vpow2.f32 %v4913_v58  ;;  %v13774_v30 = vpop.eup %11450  ;;  %v4589_v5 = vpop.xlane.xlu1 %4588 }
 0x6f1   : > { %17629 = vst [vmem:[#allocation106_spill] sm:$0xff] %v13774_v30  ;;  %11462 = vpow2.f32 %v4915_v44  ;;  %v13776_v4 = vpop.f32.mrb[9].mxu1  ;;  %v13778_v7 = vpop.eup %11452  ;;  %v4769_v18 = vsub.f32 %v13498_v14, %v4589_v5  ;;  %v4770_v42 = vsub.f32 %v13500_v40, %v4589_v5  ;;  %v5151_v17 = vadd.f32 %v13774_v30, %v13770_v33 }
 0x6f2   : > { %17630 = vst [vmem:[#allocation107_spill] sm:$0xff] %v13778_v7  ;;  %v13782_v15 = vpop.f32.mrb[10].mxu1  ;;  %v4695_v39 = vmax.f32 %v13772_v28, %v13776_v4  ;;  %v13788_v54 = vpop.eup %11454 }
 0x6f3   : > { %17631 = vst [vmem:[#allocation108_spill] sm:$0xff] %v13788_v54  ;;  %v4592_v44 = vpop.xlane.xlu0 %4591  ;;  %v13790_v22 = vpop.f32.mrb[11].mxu1  ;;  %v4917_v6 = vmul.f32 1.442695, %v4769_v18  ;;  %v4919_v58 = vmul.f32 1.442695, %v4770_v42  ;;  %5152 = vadd.xlane.f32.xlu1 %v5151_v17  ;;  %4693 = vmax.xlane.f32.xlu0 %v4692_v23  ;;  %v5154_v30 = vadd.f32 %v13788_v54, %v13778_v7 }
 0x6f4   : > { %v4771_v31 = vsub.f32 %v13502_v50, %v4592_v44  ;;  %v4772_v14 = vsub.f32 %v13506_v10, %v4592_v44  ;;  %v4698_v40 = vmax.f32 %v13782_v15, %v13790_v22 }
 0x6f5   : > { %11464 = vpow2.f32 %v4917_v6 }
 0x6f6   : > { %v4921_v5 = vmul.f32 1.442695, %v4771_v31  ;;  %v4923_v33 = vmul.f32 1.442695, %v4772_v14  ;;  %11466 = vpow2.f32 %v4919_v58 }
 0x6f7   : > { %v13798_v61 = vpop.eup %11456  ;;  %5155 = vadd.xlane.f32.xlu0 %v5154_v30  ;;  %4696 = vmax.xlane.f32.xlu1 %v4695_v39  ;;  %v13800_v50 = vpop.f32.mrb[12].mxu1 }
 0x6f8   : > { %17632 = vst [vmem:[#allocation109_spill] sm:$0xff] %v13798_v61  ;;  %11468 = vpow2.f32 %v4921_v5  ;;  %v13802_v10 = vpop.eup %11458  ;;  %v4595_v23 = vpop.xlane.xlu1 %4594 }
 0x6f9   : > { %17633 = vst [vmem:[#allocation110_spill] sm:$0xff] %v13802_v10  ;;  %11470 = vpow2.f32 %v4923_v33  ;;  %v13804_v18 = vpop.f32.mrb[13].mxu1  ;;  %v4773_v31 = vsub.f32 %v13510_v29, %v4595_v23  ;;  %v4774_v17 = vsub.f32 %v13512_v59, %v4595_v23  ;;  %v5157_v30 = vadd.f32 %v13802_v10, %v13798_v61 }
 0x6fa   : > { %v13806_v42 = vpop.eup %11460  ;;  %v13810_v44 = vpop.f32.mrb[14].mxu1  ;;  %v4701_v39 = vmax.f32 %v13800_v50, %v13804_v18 }
 0x6fb   : > { %17634 = vst [vmem:[#allocation111_spill] sm:$0xff] %v13806_v42  ;;  %v13816_v6 = vpop.eup %11462  ;;  %v4598_v33 = vpop.xlane.xlu0 %4597  ;;  %v4925_v14 = vmul.f32 1.442695, %v4773_v31  ;;  %v4927_v5 = vmul.f32 1.442695, %v4774_v17  ;;  %5158 = vadd.xlane.f32.xlu1 %v5157_v30  ;;  %4699 = vmax.xlane.f32.xlu0 %v4698_v40 }
 0x6fc   : > { %17635 = vst [vmem:[#allocation112_spill] sm:$0xff] %v13816_v6  ;;  %v13818_v58 = vpop.f32.mrb[15].mxu1  ;;  %v4775_v7 = vsub.f32 %v13514_v3, %v4598_v33  ;;  %v4776_v29 = vsub.f32 %v13518_v41, %v4598_v33  ;;  %v5160_v10 = vadd.f32 %v13816_v6, %v13806_v42 }
 0x6fd   : > { %v4704_v59 = vmax.f32 %v13810_v44, %v13818_v58  ;;  %11472 = vpow2.f32 %v4925_v14 }
 0x6fe   : > { %v4929_v23 = vmul.f32 1.442695, %v4775_v7  ;;  %v4931_v61 = vmul.f32 1.442695, %v4776_v29  ;;  %11474 = vpow2.f32 %v4927_v5 }
 0x6ff   : > { %v13826_v54 = vpop.eup %11464  ;;  %5161 = vadd.xlane.f32.xlu0 %v5160_v10  ;;  %4702 = vmax.xlane.f32.xlu1 %v4701_v39  ;;  %v13828_v3 = vpop.f32.mrb[16].mxu1 }
 0x700   : > { %17636 = vst [vmem:[#allocation113_spill] sm:$0xff] %v13826_v54  ;;  %11476 = vpow2.f32 %v4929_v23  ;;  %v13830_v41 = vpop.eup %11466  ;;  %v4601_v40 = vpop.xlane.xlu1 %4600 }
 0x701   : > { %17637 = vst [vmem:[#allocation114_spill] sm:$0xff] %v13830_v41  ;;  %11478 = vpow2.f32 %v4931_v61  ;;  %v13832_v31 = vpop.f32.mrb[17].mxu1  ;;  %v4777_v7 = vsub.f32 %v13522_v19, %v4601_v40  ;;  %v4778_v30 = vsub.f32 %v13524_v27, %v4601_v40  ;;  %v5163_v10 = vadd.f32 %v13830_v41, %v13826_v54 }
 0x702   : > { %v13834_v17 = vpop.eup %11468  ;;  %v13838_v33 = vpop.f32.mrb[18].mxu1  ;;  %v4707_v39 = vmax.f32 %v13828_v3, %v13832_v31 }
 0x703   : > { %17638 = vst [vmem:[#allocation115_spill] sm:$0xff] %v13834_v17  ;;  %v13844_v14 = vpop.eup %11470  ;;  %v4604_v61 = vpop.xlane.xlu0 %4603  ;;  %v4933_v29 = vmul.f32 1.442695, %v4777_v7  ;;  %v4935_v23 = vmul.f32 1.442695, %v4778_v30  ;;  %5164 = vadd.xlane.f32.xlu1 %v5163_v10  ;;  %4705 = vmax.xlane.f32.xlu0 %v4704_v59 }
 0x704   : > { %17639 = vst [vmem:[#allocation116_spill] sm:$0xff] %v13844_v14  ;;  %v13846_v5 = vpop.f32.mrb[19].mxu1  ;;  %v4779_v42 = vsub.f32 %v13526_v21, %v4604_v61  ;;  %v4780_v19 = vsub.f32 %v13530_v62, %v4604_v61  ;;  %v5166_v41 = vadd.f32 %v13844_v14, %v13834_v17 }
 0x705   : > { %17640 = vst [vmem:[#allocation117_spill] sm:$0xff] %v13846_v5  ;;  %v4710_v27 = vmax.f32 %v13838_v33, %v13846_v5  ;;  %11480 = vpow2.f32 %v4933_v29 }
 0x706   : > { %v4937_v40 = vmul.f32 1.442695, %v4779_v42  ;;  %v4939_v54 = vmul.f32 1.442695, %v4780_v19  ;;  %11482 = vpow2.f32 %v4935_v23 }
 0x707   : > { %v13854_v6 = vpop.eup %11472  ;;  %5167 = vadd.xlane.f32.xlu0 %v5166_v41  ;;  %4708 = vmax.xlane.f32.xlu1 %v4707_v39  ;;  %v13856_v21 = vpop.f32.mrb[20].mxu1 }
 0x708   : > { %17641 = vst [vmem:[#allocation118_spill] sm:$0xff] %v13854_v6  ;;  %11484 = vpow2.f32 %v4937_v40  ;;  %17642 = vst [vmem:[#allocation119_spill] sm:$0xff] %v13856_v21  ;;  %v13858_v62 = vpop.eup %11474  ;;  %v4607_v59 = vpop.xlane.xlu1 %4606 }
 0x709   : > { %17643 = vst [vmem:[#allocation120_spill] sm:$0xff] %v13858_v62  ;;  %11486 = vpow2.f32 %v4939_v54  ;;  %v13860_v7 = vpop.f32.mrb[21].mxu1  ;;  %v4781_v42 = vsub.f32 %v13534_v47, %v4607_v59  ;;  %v4782_v10 = vsub.f32 %v13536_v9, %v4607_v59  ;;  %v5169_v41 = vadd.f32 %v13858_v62, %v13854_v6 }
 0x70a   : > { %17644 = vst [vmem:[#allocation121_spill] sm:$0xff] %v13860_v7  ;;  %v13862_v30 = vpop.eup %11476  ;;  %v13866_v61 = vpop.f32.mrb[22].mxu1  ;;  %v4713_v39 = vmax.f32 %v13856_v21, %v13860_v7 }
 0x70b   : > { %17645 = vst [vmem:[#allocation122_spill] sm:$0xff] %v13862_v30  ;;  %17646 = vst [vmem:[#allocation123_spill] sm:$0xff] %v13866_v61  ;;  %v13872_v29 = vpop.eup %11478  ;;  %v4610_v54 = vpop.xlane.xlu0 %4609  ;;  %v4941_v19 = vmul.f32 1.442695, %v4781_v42  ;;  %v4943_v40 = vmul.f32 1.442695, %v4782_v10  ;;  %5170 = vadd.xlane.f32.xlu1 %v5169_v41  ;;  %4711 = vmax.xlane.f32.xlu0 %v4710_v27 }
 0x70c   : > { %17647 = vst [vmem:[#allocation124_spill] sm:$0xff] %v13872_v29  ;;  %v13874_v23 = vpop.f32.mrb[23].mxu1  ;;  %v4783_v17 = vsub.f32 %v13538_v38, %v4610_v54  ;;  %v4784_v47 = vsub.f32 %v13542_v46, %v4610_v54  ;;  %v5172_v62 = vadd.f32 %v13872_v29, %v13862_v30 }
 0x70d   : > { %17648 = vst [vmem:[#allocation125_spill] sm:$0xff] %v13874_v23  ;;  %v4716_v9 = vmax.f32 %v13866_v61, %v13874_v23  ;;  %11488 = vpow2.f32 %v4941_v19 }
 0x70e   : > { %v4945_v59 = vmul.f32 1.442695, %v4783_v17  ;;  %v4947_v6 = vmul.f32 1.442695, %v4784_v47  ;;  %11490 = vpow2.f32 %v4943_v40 }
 0x70f   : > { %v13882_v14 = vpop.eup %11480  ;;  %5173 = vadd.xlane.f32.xlu0 %v5172_v62  ;;  %4714 = vmax.xlane.f32.xlu1 %v4713_v39  ;;  %v13884_v38 = vpop.f32.mrb[24].mxu1 }
 0x710   : > { %17649 = vst [vmem:[#allocation126_spill] sm:$0xff] %v13882_v14  ;;  %11492 = vpow2.f32 %v4945_v59  ;;  %17650 = vst [vmem:[#allocation127_spill] sm:$0xff] %v13884_v38  ;;  %v13886_v46 = vpop.eup %11482  ;;  %v4613_v27 = vpop.xlane.xlu1 %4612 }
 0x711   : > { %17651 = vst [vmem:[#allocation128_spill] sm:$0xff] %v13886_v46  ;;  %11494 = vpow2.f32 %v4947_v6  ;;  %v13888_v42 = vpop.f32.mrb[25].mxu1  ;;  %v4785_v17 = vsub.f32 %v13546_v25, %v4613_v27  ;;  %v4786_v41 = vsub.f32 %v13548_v32, %v4613_v27  ;;  %v5175_v62 = vadd.f32 %v13886_v46, %v13882_v14 }
 0x712   : > { %17652 = vst [vmem:[#allocation129_spill] sm:$0xff] %v13888_v42  ;;  %v13890_v10 = vpop.eup %11484  ;;  %v4719_v54 = vmax.f32 %v13884_v38, %v13888_v42  ;;  %v13896_v19 = vpop.f32.mrb[26].mxu1 }
 0x713   : > { %17653 = vst [vmem:[#allocation130_spill] sm:$0xff] %v13890_v10  ;;  %17654 = vst [vmem:[#allocation131_spill] sm:$0xff] %v13896_v19  ;;  %v13900_v39 = vpop.eup %11486  ;;  %v4616_v6 = vpop.xlane.xlu0 %4615  ;;  %v4949_v47 = vmul.f32 1.442695, %v4785_v17  ;;  %v4951_v59 = vmul.f32 1.442695, %v4786_v41  ;;  %5176 = vadd.xlane.f32.xlu1 %v5175_v62  ;;  %4717 = vmax.xlane.f32.xlu0 %v4716_v9 }
 0x714   : > { %17655 = vst [vmem:[#allocation132_spill] sm:$0xff] %v13900_v39  ;;  %v13902_v40 = vpop.f32.mrb[27].mxu1  ;;  %v4787_v30 = vsub.f32 %v13550_v2, %v4616_v6  ;;  %v4788_v25 = vsub.f32 %v13554_v37, %v4616_v6  ;;  %v5178_v14 = vadd.f32 %v13900_v39, %v13890_v10 }
 0x715   : > { %17656 = vst [vmem:[#allocation133_spill] sm:$0xff] %v13902_v40  ;;  %v4722_v32 = vmax.f32 %v13896_v19, %v13902_v40  ;;  %11496 = vpow2.f32 %v4949_v47 }
 0x716   : > { %v4953_v27 = vmul.f32 1.442695, %v4787_v30  ;;  %v4955_v29 = vmul.f32 1.442695, %v4788_v25  ;;  %11498 = vpow2.f32 %v4951_v59 }
 0x717   : > { %v13910_v46 = vpop.eup %11488  ;;  %5179 = vadd.xlane.f32.xlu0 %v5178_v14  ;;  %4720 = vmax.xlane.f32.xlu1 %v4719_v54  ;;  %v13912_v2 = vpop.f32.mrb[28].mxu1 }
 0x718   : > { %17657 = vst [vmem:[#allocation134_spill] sm:$0xff] %v13910_v46  ;;  %11500 = vpow2.f32 %v4953_v27  ;;  %17658 = vst [vmem:[#allocation135_spill] sm:$0xff] %v13912_v2  ;;  %v13914_v37 = vpop.eup %11490  ;;  %v4619_v9 = vpop.xlane.xlu1 %4618 }
 0x719   : > { %17659 = vst [vmem:[#allocation136_spill] sm:$0xff] %v13914_v37  ;;  %11502 = vpow2.f32 %v4955_v29  ;;  %v13916_v17 = vpop.f32.mrb[29].mxu1  ;;  %v4789_v30 = vsub.f32 %v13558_v11, %v4619_v9  ;;  %v4790_v62 = vsub.f32 %v13560_v49, %v4619_v9  ;;  %v5181_v14 = vadd.f32 %v13914_v37, %v13910_v46 }
 0x71a   : > { %17660 = vst [vmem:[#allocation137_spill] sm:$0xff] %v13916_v17  ;;  %v13918_v41 = vpop.eup %11492  ;;  %v4725_v6 = vmax.f32 %v13912_v2, %v13916_v17  ;;  %v13924_v47 = vpop.f32.mrb[30].mxu1 }
 0x71b   : > { %17661 = vst [vmem:[#allocation138_spill] sm:$0xff] %v13918_v41  ;;  %17662 = vst [vmem:[#allocation139_spill] sm:$0xff] %v13924_v47  ;;  %v13928_v54 = vpop.eup %11494  ;;  %v4622_v29 = vpop.xlane.xlu0 %4621  ;;  %v4957_v25 = vmul.f32 1.442695, %v4789_v30  ;;  %v4959_v27 = vmul.f32 1.442695, %v4790_v62  ;;  %5182 = vadd.xlane.f32.xlu1 %v5181_v14  ;;  %4723 = vmax.xlane.f32.xlu0 %v4722_v32 }
 0x71c   : > { %17663 = vst [vmem:[#allocation140_spill] sm:$0xff] %v13928_v54  ;;  %v13930_v59 = vpop.f32.mrb[31].mxu1  ;;  %v4791_v10 = vsub.f32 %v13562_v1, %v4622_v29  ;;  %v4792_v11 = vsub.f32 %v13566_v35, %v4622_v29  ;;  %v5184_v46 = vadd.f32 %v13928_v54, %v13918_v41 }
 0x71d   : > { %17664 = vst [vmem:[#allocation141_spill] sm:$0xff] %v13930_v59  ;;  %v4728_v49 = vmax.f32 %v13924_v47, %v13930_v59  ;;  %11504 = vpow2.f32 %v4957_v25 }
 0x71e   : > { %v4961_v9 = vmul.f32 1.442695, %v4791_v10  ;;  %v4963_v39 = vmul.f32 1.442695, %v4792_v11  ;;  %11506 = vpow2.f32 %v4959_v27 }
 0x71f   : > { %v13938_v37 = vpop.eup %11496  ;;  %5185 = vadd.xlane.f32.xlu0 %v5184_v46  ;;  %4726 = vmax.xlane.f32.xlu1 %v4725_v6  ;;  %v13940_v1 = vpop.f32.mrb[32].mxu1 }
 0x720   : > { %17665 = vst [vmem:[#allocation142_spill] sm:$0xff] %v13938_v37  ;;  %11508 = vpow2.f32 %v4961_v9  ;;  %17666 = vst [vmem:[#allocation143_spill] sm:$0xff] %v13940_v1  ;;  %v13942_v35 = vpop.eup %11498  ;;  %v13944_v32 = vpop.f32.mrb[33].mxu1 }
 0x721   : > { %17667 = vst [vmem:[#allocation144_spill] sm:$0xff] %v13942_v35  ;;  %11510 = vpow2.f32 %v4963_v39  ;;  %17668 = vst [vmem:[#allocation145_spill] sm:$0xff] %v13944_v32  ;;  %v4731_v10 = vmax.f32 %v13940_v1, %v13944_v32  ;;  %v13950_v62 = vpop.f32.mrb[34].mxu1  ;;  %v5187_v14 = vadd.f32 %v13942_v35, %v13938_v37 }
 0x722   : > { %v13946_v30 = vpop.eup %11500  ;;  %17670 = vst [vmem:[#allocation147_spill] sm:$0xff] %v13950_v62  ;;  %v13956_v46 = vpop.f32.mrb[35].mxu1 }
 0x723   : > { %17669 = vst [vmem:[#allocation146_spill] sm:$0xff] %v13946_v30  ;;  %v13954_v29 = vpop.eup %11502  ;;  %17672 = vst [vmem:[#allocation149_spill] sm:$0xff] %v13956_v46  ;;  %5188 = vadd.xlane.f32.xlu1 %v5187_v14  ;;  %4729 = vmax.xlane.f32.xlu0 %v4728_v49  ;;  %v4734_v39 = vmax.f32 %v13950_v62, %v13956_v46 }
 0x724   : > { %17671 = vst [vmem:[#allocation148_spill] sm:$0xff] %v13954_v29  ;;  %v5190_v6 = vadd.f32 %v13954_v29, %v13946_v30 }
 0x727   : > { %v13962_v25 = vpop.eup %11504  ;;  %5191 = vadd.xlane.f32.xlu0 %v5190_v6  ;;  %4732 = vmax.xlane.f32.xlu1 %v4731_v10  ;;  %v13964_v27 = vpop.f32.mrb[36].mxu1 }
 0x728   : > { %17673 = vst [vmem:[#allocation150_spill] sm:$0xff] %v13962_v25  ;;  %v13966_v11 = vpop.eup %11506  ;;  %v13968_v9 = vpop.f32.mrb[37].mxu1 }
 0x729   : > { %17674 = vst [vmem:[#allocation151_spill] sm:$0xff] %v13966_v11  ;;  %v13974_v14 = vpop.f32.mrb[38].mxu1  ;;  %v5193_v30 = vadd.f32 %v13966_v11, %v13962_v25  ;;  %v4628_v10 = vpop.xlane.xlu0 %4627 }
 0x72a   : > { %v13970_v37 = vpop.eup %11508  ;;  %v13980_v6 = vpop.f32.mrb[39].mxu1  ;;  %v4795_v61 = vsub.f32 %v13574_v12, %v4628_v10 }
 0x72b   : > { %17675 = vst [vmem:[#allocation152_spill] sm:$0xff] %v13970_v37  ;;  %v13978_v29 = vpop.eup %11510  ;;  %5194 = vadd.xlane.f32.xlu1 %v5193_v30  ;;  %4735 = vmax.xlane.f32.xlu0 %v4734_v39  ;;  %v4625_v30 = vpop.xlane.xlu1 %4624 }
 0x72c   : > { %17676 = vst [vmem:[#allocation153_spill] sm:$0xff] %v13978_v29  ;;  %v5196_v35 = vadd.f32 %v13978_v29, %v13970_v37  ;;  %v4793_v47 = vsub.f32 %v13570_v63, %v4625_v30  ;;  %v4794_v2 = vsub.f32 %v13572_v20, %v4625_v30  ;;  %v17677_v20 = vld [vmem:[#allocation71_spill] sm:$0xff] }
 0x72d   : > { %v13998_v62 = vpop.xlane.xlu0 %4633 }
 0x72e   : > { %v4965_v7 = vmul.f32 1.442695, %v4793_v47  ;;  %v4967_v63 = vmul.f32 1.442695, %v4794_v2 }
 0x72f   : > { %5197 = vadd.xlane.f32.xlu0 %v5196_v35  ;;  %v13986_v41 = vpop.f32.mrb[40].mxu1  ;;  %v4631_v46 = vpop.xlane.xlu1 %4630 }
 0x730   : > { %v13988_v49 = vpop.f32.mrb[41].mxu1 }
 0x731   : > { %v13992_v11 = vpop.f32.mrb[42].mxu1 }
 0x732   : > { %v13994_v54 = vpop.f32.mrb[43].mxu1  ;;  %v14002_v37 = vpop.xlane.xlu0 %4639 }
 0x733   : > { %v14000_v35 = vpop.xlane.xlu1 %4636 }
 0x738   : > { %v14004_v29 = vpop.xlane.xlu1 %4642 }
 0x73a   : > { %v14006_v32 = vpop.xlane.xlu0 %4645 }
 0x740   : > { %v14008_v25 = vpop.xlane.xlu1 %4648 }
 0x742   : > { %v14010_v1 = vpop.xlane.xlu0 %4651 }
 0x748   : > { %v4655_v59 = vpop.xlane.xlu1 %4654 }
 0x749   : > { %v4813_v39 = vsub.f32 %v13630_v0, %v4655_v59  ;;  %v4814_v17 = vsub.f32 %v13632_v26, %v4655_v59  ;;  %v4969_v0 = vmul.f32 1.442695, %v4795_v61  ;;  %v4796_v59 = vsub.f32 %v17677_v20, %v4628_v10 }
 0x74a   : > { %v4658_v40 = vpop.xlane.xlu0 %4657 }
 0x74b   : > { %v5005_v19 = vmul.f32 1.442695, %v4813_v39  ;;  %v5007_v42 = vmul.f32 1.442695, %v4814_v17  ;;  %v4815_v38 = vsub.f32 %v13634_v52, %v4658_v40  ;;  %v4816_v23 = vsub.f32 %v13638_v16, %v4658_v40  ;;  %v17678_v17 = vld [vmem:[#allocation83_spill] sm:$0xff]  ;;  %v17679_v52 = vld [vmem:[#allocation84_spill] sm:$0xff] }
 0x74c   : > { %v17680_v16 = vld [vmem:[#allocation69_spill] sm:$0xff] }
 0x74d   : > { %11512 = vpow2.f32 %v5005_v19  ;;  %v5009_v21 = vmul.f32 1.442695, %v4815_v38  ;;  %v5011_v5 = vmul.f32 1.442695, %v4816_v23  ;;  %v4797_v12 = vsub.f32 %v17680_v16, %v4631_v46  ;;  %v17681_v23 = vld [vmem:[#allocation85_spill] sm:$0xff]  ;;  %v17686_v16 = vld [vmem:[#allocation88_spill] sm:$0xff] }
 0x74e   : > { %11514 = vpow2.f32 %v5007_v42  ;;  %v17682_v42 = vld [vmem:[#allocation86_spill] sm:$0xff] }
 0x74f   : > { %11516 = vpow2.f32 %v5009_v21  ;;  %v4973_v20 = vmul.f32 1.442695, %v4797_v12 }
 0x750   : > { %11518 = vpow2.f32 %v5011_v5  ;;  %v4661_v26 = vpop.xlane.xlu1 %4660  ;;  %v17683_v5 = vld [vmem:[#allocation68_spill] sm:$0xff] }
 0x751   : > { %11520 = vpow2.f32 %v4965_v7  ;;  %v4817_v30 = vsub.f32 %v17678_v17, %v4661_v26  ;;  %v4818_v39 = vsub.f32 %v17679_v52, %v4661_v26  ;;  %v4798_v61 = vsub.f32 %v17683_v5, %v4631_v46  ;;  %v17685_v46 = vld [vmem:[#allocation87_spill] sm:$0xff] }
 0x752   : > { %11522 = vpow2.f32 %v4967_v63  ;;  %v4664_v40 = vpop.xlane.xlu0 %4663  ;;  %v4971_v7 = vmul.f32 1.442695, %v4796_v59  ;;  %v17684_v63 = vld [vmem:[#allocation67_spill] sm:$0xff] }
 0x753   : > { %v5013_v19 = vmul.f32 1.442695, %v4817_v30  ;;  %v5015_v38 = vmul.f32 1.442695, %v4818_v39  ;;  %v4819_v2 = vsub.f32 %v17681_v23, %v4664_v40  ;;  %v4820_v21 = vsub.f32 %v17682_v42, %v4664_v40 }
 0x754   : > { %11524 = vpow2.f32 %v4969_v0  ;;  %v4799_v17 = vsub.f32 %v17684_v63, %v13998_v62  ;;  %v4975_v52 = vmul.f32 1.442695, %v4798_v61 }
 0x755   : > { %11526 = vpow2.f32 %v5013_v19  ;;  %v5017_v47 = vmul.f32 1.442695, %v4819_v2  ;;  %v5019_v10 = vmul.f32 1.442695, %v4820_v21 }
 0x756   : > { %11528 = vpow2.f32 %v5015_v38  ;;  %v17687_v38 = vld [vmem:[#allocation66_spill] sm:$0xff]  ;;  %v4977_v42 = vmul.f32 1.442695, %v4799_v17 }
 0x757   : > { %v14026_v26 = vpop.eup %11512  ;;  %11530 = vpow2.f32 %v5017_v47  ;;  %v4800_v23 = vsub.f32 %v17687_v38, %v13998_v62 }
 0x758   : > { %v14030_v30 = vpop.eup %11514  ;;  %11532 = vpow2.f32 %v5019_v10  ;;  %v4667_v39 = vpop.xlane.xlu1 %4666  ;;  %v17689_v10 = vld [vmem:[#allocation70_spill] sm:$0xff] }
 0x759   : > { %v14032_v0 = vpop.eup %11516  ;;  %11534 = vpow2.f32 %v4971_v7  ;;  %v4821_v59 = vsub.f32 %v17685_v46, %v4667_v39  ;;  %v4822_v40 = vsub.f32 %v17686_v16, %v4667_v39  ;;  %v5229_v12 = vadd.f32 %v14030_v30, %v14026_v26 }
 0x75a   : > { %v14038_v19 = vpop.eup %11518  ;;  %11536 = vpow2.f32 %v4973_v20  ;;  %v4801_v63 = vsub.f32 %v17689_v10, %v14000_v35  ;;  %v4979_v39 = vmul.f32 1.442695, %v4800_v23  ;;  %v17693_v23 = vld [vmem:[#allocation89_spill] sm:$0xff] }
 0x75b   : > { %v14042_v2 = vpop.eup %11520  ;;  %v5021_v21 = vmul.f32 1.442695, %v4821_v59  ;;  %v5023_v5 = vmul.f32 1.442695, %v4822_v40  ;;  %v4670_v61 = vpop.xlane.xlu0 %4669  ;;  %5230 = vadd.xlane.f32.xlu1 %v5229_v12  ;;  %v5232_v7 = vadd.f32 %v14038_v19, %v14032_v0  ;;  %11538 = vpow2.f32 %v4975_v52 }
 0x75c   : > { %17688 = vst [vmem:[#allocation71_spill] sm:$0xff] %v14042_v2  ;;  %v14046_v47 = vpop.eup %11522  ;;  %v4823_v20 = vsub.f32 %v13660_v43, %v4670_v61  ;;  %v4824_v62 = vsub.f32 %v13664_v57, %v4670_v61  ;;  %v17691_v52 = vmax.f32 %v13964_v27, %v13968_v9  ;;  %v4981_v43 = vmul.f32 1.442695, %v4801_v63  ;;  %v17697_v63 = vld [vmem:[#allocation72_spill] sm:$0xff] }
 0x75d   : > { %11540 = vpow2.f32 %v5021_v21  ;;  %5233 = vadd.xlane.f32.xlu0 %v5232_v7  ;;  %v17696_v7 = vld [vmem:[#allocation73_spill] sm:$0xff] }
 0x75e   : > { %v14052_v17 = vpop.eup %11524  ;;  %11542 = vpow2.f32 %v5023_v5  ;;  %v5025_v46 = vmul.f32 1.442695, %v4823_v20  ;;  %v5027_v59 = vmul.f32 1.442695, %v4824_v62  ;;  %v17694_v5 = vmax.f32 %v13974_v14, %v13980_v6 }
 0x75f   : > { %v14054_v16 = vpop.eup %11526  ;;  %11544 = vpow2.f32 %v4977_v42  ;;  %4738 = vmax.xlane.f32.xlu1 %v17691_v52  ;;  %v4802_v10 = vsub.f32 %v17696_v7, %v14000_v35  ;;  %v4803_v20 = vsub.f32 %v17697_v63, %v14002_v37  ;;  %v17698_v52 = vld [vmem:[#allocation90_spill] sm:$0xff]  ;;  %v5199_v35 = vadd.f32 %v14046_v47, %v14042_v2  ;;  %v17701_v7 = vld [vmem:[#allocation75_spill] sm:$0xff] }
 0x760   : > { %17690 = vst [vmem:[#allocation83_spill] sm:$0xff] %v14054_v16  ;;  %v14059_v40 = vpop.eup %11528  ;;  %11546 = vpow2.f32 %v5025_v46  ;;  %v4673_v57 = vpop.xlane.xlu1 %4672  ;;  %v4804_v63 = vsub.f32 %v17701_v7, %v14002_v37 }
 0x761   : > { %17692 = vst [vmem:[#allocation84_spill] sm:$0xff] %v14059_v40  ;;  %v14061_v12 = vpop.eup %11530  ;;  %11548 = vpow2.f32 %v5027_v59  ;;  %v4825_v38 = vsub.f32 %v13670_v36, %v4673_v57  ;;  %v4826_v21 = vsub.f32 %v17693_v23, %v4673_v57  ;;  %4741 = vmax.xlane.f32.xlu0 %v17694_v5  ;;  %v5235_v42 = vadd.f32 %v14059_v40, %v14054_v16  ;;  %v17699_v23 = vld [vmem:[#allocation91_spill] sm:$0xff] }
 0x762   : > { %v14070_v61 = vpop.eup %11532  ;;  %11550 = vpow2.f32 %v4979_v39  ;;  %v4676_v62 = vpop.xlane.xlu0 %4675 }
 0x763   : > { %17695 = vst [vmem:[#allocation69_spill] sm:$0xff] %v14070_v61  ;;  %v14076_v36 = vpop.eup %11534  ;;  %v5029_v46 = vmul.f32 1.442695, %v4825_v38  ;;  %v5031_v59 = vmul.f32 1.442695, %v4826_v21  ;;  %v4827_v57 = vsub.f32 %v17698_v52, %v4676_v62  ;;  %v4828_v5 = vsub.f32 %v17699_v23, %v4676_v62  ;;  %5236 = vadd.xlane.f32.xlu1 %v5235_v42  ;;  %v17703_v42 = vld [vmem:[#allocation74_spill] sm:$0xff] }
 0x764   : > { %v14080_v40 = vpop.eup %11536  ;;  %11552 = vpow2.f32 %v4981_v43  ;;  %v5238_v39 = vadd.f32 %v14070_v61, %v14061_v12  ;;  %v4983_v52 = vmul.f32 1.442695, %v4802_v10  ;;  %v4805_v62 = vsub.f32 %v17703_v42, %v14004_v29  ;;  %v17705_v61 = vld [vmem:[#allocation76_spill] sm:$0xff] }
 0x765   : > { %17700 = vst [vmem:[#allocation85_spill] sm:$0xff] %v14080_v40  ;;  %11554 = vpow2.f32 %v5029_v46  ;;  %v5033_v38 = vmul.f32 1.442695, %v4827_v57  ;;  %v5035_v21 = vmul.f32 1.442695, %v4828_v5  ;;  %v14088_v16 = vpop.eup %11538  ;;  %v4806_v2 = vsub.f32 %v17705_v61, %v14004_v29  ;;  %v17706_v46 = vld [vmem:[#allocation77_spill] sm:$0xff] }
 0x766   : > { %17702 = vst [vmem:[#allocation86_spill] sm:$0xff] %v14088_v16  ;;  %11556 = vpow2.f32 %v5031_v59  ;;  %5239 = vadd.xlane.f32.xlu0 %v5238_v39  ;;  %v4985_v23 = vmul.f32 1.442695, %v4803_v20  ;;  %v4807_v57 = vsub.f32 %v17706_v46, %v14006_v32  ;;  %v5202_v5 = vadd.f32 %v14076_v36, %v14052_v17 }
 0x767   : > { %v14092_v43 = vpop.eup %11540  ;;  %11558 = vpow2.f32 %v5033_v38  ;;  %5200 = vadd.xlane.f32.xlu1 %v5199_v35  ;;  %v4987_v39 = vmul.f32 1.442695, %v4804_v63  ;;  %v4989_v61 = vmul.f32 1.442695, %v4805_v62  ;;  %v4991_v7 = vmul.f32 1.442695, %v4806_v2 }
 0x768   : > { %17704 = vst [vmem:[#allocation68_spill] sm:$0xff] %v14092_v43  ;;  %v14096_v37 = vpop.eup %11542  ;;  %11560 = vpow2.f32 %v5035_v21  ;;  %v5135_v10 = vpop.xlane.xlu1 %5134  ;;  %v4993_v42 = vmul.f32 1.442695, %v4807_v57 }
 0x769   : > { %v14102_v59 = vpop.eup %11544  ;;  %11562 = vrcp.f32 %v5135_v10  ;;  %v5241_v20 = vadd.f32 %v14096_v37, %v14092_v43 }
 0x76a   : > { %17707 = vst [vmem:[#allocation67_spill] sm:$0xff] %v14102_v59  ;;  %v14106_v29 = vpop.eup %11546  ;;  %11564 = vpow2.f32 %v4983_v52  ;;  %5203 = vadd.xlane.f32.xlu0 %v5202_v5  ;;  %v5138_v38 = vpop.xlane.xlu0 %5137 }
 0x76b   : > { %v14108_v35 = vpop.eup %11548  ;;  %11566 = vpow2.f32 %v4985_v23  ;;  %5242 = vadd.xlane.f32.xlu1 %v5241_v20  ;;  %v17712_v20 = vmax.f32 %v13986_v41, %v13988_v49 }
 0x76c   : > { %17708 = vst [vmem:[#allocation87_spill] sm:$0xff] %v14108_v35  ;;  %v14110_v21 = vpop.eup %11550  ;;  %11568 = vrcp.f32 %v5138_v38  ;;  %v4679_v63 = vpop.xlane.xlu1 %4678  ;;  %v5244_v46 = vadd.f32 %v14108_v35, %v14106_v29 }
 0x76d   : > { %17709 = vst [vmem:[#allocation88_spill] sm:$0xff] %v14110_v21  ;;  %11570 = vpow2.f32 %v4987_v39  ;;  %v4829_v10 = vsub.f32 %v13688_v51, %v4679_v63  ;;  %v4830_v52 = vsub.f32 %v13692_v45, %v4679_v63  ;;  %v17714_v51 = vld [vmem:[#allocation78_spill] sm:$0xff] }
 0x76e   : > { %v14116_v62 = vpop.eup %11552  ;;  %11572 = vpow2.f32 %v4989_v61  ;;  %5245 = vadd.xlane.f32.xlu0 %v5244_v46  ;;  %v4682_v57 = vpop.xlane.xlu0 %4681  ;;  %v4808_v39 = vsub.f32 %v17714_v51, %v14006_v32  ;;  %v17717_v32 = vmax.f32 %v13992_v11, %v13994_v54 }
 0x76f   : > { %17710 = vst [vmem:[#allocation66_spill] sm:$0xff] %v14116_v62  ;;  %v14118_v2 = vpop.eup %11554  ;;  %11574 = vpow2.f32 %v4991_v7  ;;  %v5037_v23 = vmul.f32 1.442695, %v4829_v10  ;;  %v5039_v5 = vmul.f32 1.442695, %v4830_v52  ;;  %4744 = vmax.xlane.f32.xlu1 %v17712_v20  ;;  %v4831_v45 = vsub.f32 %v13698_v48, %v4682_v57 }
 0x770   : > { %17711 = vst [vmem:[#allocation70_spill] sm:$0xff] %v14118_v2  ;;  %v14123_v38 = vpop.eup %11556  ;;  %11576 = vpow2.f32 %v4993_v42  ;;  %v4832_v61 = vsub.f32 %v13704_v34, %v4682_v57  ;;  %v5141_v63 = vpop.xlane.xlu1 %5140  ;;  %v17718_v57 = vld [vmem:[#allocation79_spill] sm:$0xff] }
 0x771   : > { %17713 = vst [vmem:[#allocation89_spill] sm:$0xff] %v14123_v38  ;;  %v14129_v46 = vpop.eup %11558  ;;  %11578 = vpow2.f32 %v5037_v23  ;;  %v5247_v7 = vadd.f32 %v14123_v38, %v14118_v2  ;;  %v5041_v52 = vmul.f32 1.442695, %v4831_v45  ;;  %v4995_v23 = vmul.f32 1.442695, %v4808_v39 }
 0x772   : > { %17715 = vst [vmem:[#allocation73_spill] sm:$0xff] %v14129_v46  ;;  %v14133_v10 = vpop.eup %11560  ;;  %11580 = vpow2.f32 %v5039_v5  ;;  %v5043_v20 = vmul.f32 1.442695, %v4832_v61  ;;  %4747 = vmax.xlane.f32.xlu0 %v17717_v32  ;;  %v4809_v51 = vsub.f32 %v17718_v57, %v14008_v25  ;;  %v5208_v39 = vadd.f32 %v14110_v21, %v14102_v59  ;;  %v17719_v57 = vld [vmem:[#allocation93_spill] sm:$0xff] }
 0x773   : > { %17716 = vst [vmem:[#allocation72_spill] sm:$0xff] %v14133_v10  ;;  %v11563_v42 = vpop.eup %11562  ;;  %11582 = vrcp.f32 %v5141_v63  ;;  %5248 = vadd.xlane.f32.xlu1 %v5247_v7  ;;  %v5250_v48 = vadd.f32 %v14133_v10, %v14129_v46  ;;  %v5205_v7 = vadd.f32 %v14088_v16, %v14080_v40  ;;  %v17720_v46 = vld [vmem:[#allocation94_spill] sm:$0xff]  ;;  %v17724_v16 = vld [vmem:[#allocation92_spill] sm:$0xff] }
 0x774   : > { %v14140_v34 = vpop.eup %11564  ;;  %11584 = vpow2.f32 %v5041_v52  ;;  %v5144_v5 = vpop.xlane.xlu0 %5143  ;;  %v5390_v52 = vmul.f32 %v11563_v42, %v17719_v57  ;;  %v4997_v40 = vmul.f32 1.442695, %v4809_v51  ;;  %v5389_v59 = vmul.f32 %v11563_v42, %v17724_v16 }
 0x775   : > { %v4685_v45 = vpop.xlane.xlu1 %4684  ;;  %v14144_v61 = vpop.eup %11566  ;;  %11586 = vpow2.f32 %v5043_v20 }
 0x776   : > { %v4833_v32 = vsub.f32 %v13716_v8, %v4685_v45  ;;  %v4834_v63 = vsub.f32 %v13720_v56, %v4685_v45  ;;  %v11569_v10 = vpop.eup %11568  ;;  %11588 = vrcp.f32 %v5144_v5  ;;  %5251 = vadd.xlane.f32.xlu0 %v5250_v48  ;;  %v17721_v8 = vld [vmem:[#allocation95_spill] sm:$0xff]  ;;  %v17723_v5 = vld [vmem:[#allocation80_spill] sm:$0xff] }
 0x777   : > { %v14153_v38 = vpop.eup %11570  ;;  %v5391_v2 = vmul.f32 %v11569_v10, %v17720_v46  ;;  %5206 = vadd.xlane.f32.xlu1 %v5205_v7  ;;  %v5392_v56 = vmul.f32 %v11569_v10, %v17721_v8  ;;  %11590 = vpow2.f32 %v4995_v23  ;;  %v4810_v48 = vsub.f32 %v17723_v5, %v14008_v25  ;;  %v17727_v5 = vld [vmem:[#allocation82_spill] sm:$0xff] }
 0x778   : > { %v5045_v20 = vmul.f32 1.442695, %v4833_v32  ;;  %v5047_v43 = vmul.f32 1.442695, %v4834_v63  ;;  %v14157_v45 = vpop.eup %11572  ;;  %v4688_v57 = vpop.xlane.xlu0 %4687 }
 0x779   : > { %17722 = vst [vmem:[#allocation90_spill] sm:$0xff] %v14157_v45  ;;  %v5147_v21 = vpop.xlane.xlu1 %5146  ;;  %v14162_v35 = vpop.eup %11574  ;;  %v4835_v46 = vsub.f32 %v13724_v55, %v4688_v57  ;;  %v4836_v32 = vsub.f32 %v13730_v53, %v4688_v57  ;;  %v5518_v63 = vpack.c.bf16 %v5392_v56, %v5390_v52  ;;  %v5517_v23 = vpack.c.bf16 %v5391_v2, %v5389_v59  ;;  %v17725_v55 = vld [vmem:[#allocation81_spill] sm:$0xff]  ;;  %v17726_v59 = vld [vmem:[#allocation102_spill] sm:$0xff] }
 0x77a   : > { %11592 = vpow2.f32 %v5045_v20  ;;  %v14166_v10 = vpop.eup %11576  ;;  %5209 = vadd.xlane.f32.xlu0 %v5208_v39  ;;  %v4999_v51 = vmul.f32 1.442695, %v4810_v48  ;;  %v4811_v20 = vsub.f32 %v17725_v55, %v14010_v1  ;;  %v4812_v48 = vsub.f32 %v17727_v5, %v14010_v1  ;;  %v17729_v1 = vld [vmem:[#allocation99_spill] sm:$0xff] }
 0x77b   : > { %11594 = vpow2.f32 %v5047_v43  ;;  %v14168_v7 = vpop.eup %11578  ;;  %v5049_v25 = vmul.f32 1.442695, %v4835_v46  ;;  %v5051_v16 = vmul.f32 1.442695, %v4836_v32  ;;  %5645 = vmatprep.mubr.bf16.mxu0 %v5518_v63 }
 0x77c   : > { %11596 = vrcp.f32 %v5147_v21  ;;  %v14170_v42 = vpop.eup %11580  ;;  %5646 = vmatmul.mubr.bf16.vlgmr.msra.gmra.mrb[148].mxu0 %v5517_v23  ;;  %v5150_v53 = vpop.xlane.xlu0 %5149  ;;  %v5001_v32 = vmul.f32 1.442695, %v4811_v20 }
 0x77d   : > { %11598 = vpow2.f32 %v4997_v40  ;;  %v4691_v52 = vpop.xlane.xlu1 %4690  ;;  %v11583_v8 = vpop.eup %11582  ;;  %v5253_v21 = vadd.f32 %v14170_v42, %v14168_v7  ;;  %v5211_v40 = vadd.f32 %v14140_v34, %v14116_v62 }
 0x77e   : > { %11600 = vpow2.f32 %v5049_v25  ;;  %v4837_v43 = vsub.f32 %v13744_v24, %v4691_v52  ;;  %v4838_v2 = vsub.f32 %v17726_v59, %v4691_v52  ;;  %v14178_v39 = vpop.eup %11584 }
 0x77f   : > { %11602 = vpow2.f32 %v5051_v16  ;;  %v14182_v56 = vpop.eup %11586  ;;  %5254 = vadd.xlane.f32.xlu1 %v5253_v21  ;;  %v17728_v16 = vld [vmem:[#allocation97_spill] sm:$0xff] }
 0x780   : > { %11604 = vrcp.f32 %v5150_v53  ;;  %v5053_v57 = vmul.f32 1.442695, %v4837_v43  ;;  %v5055_v46 = vmul.f32 1.442695, %v4838_v2  ;;  %v11589_v24 = vpop.eup %11588  ;;  %v4694_v23 = vpop.xlane.xlu0 %4693  ;;  %v5256_v25 = vadd.f32 %v14182_v56, %v14178_v39  ;;  %v17731_v2 = vld [vmem:[#allocation98_spill] sm:$0xff] }
 0x781   : > { %11606 = vpow2.f32 %v4999_v51  ;;  %v5153_v63 = vpop.xlane.xlu1 %5152  ;;  %v5394_v55 = vmul.f32 %v11583_v8, %v17728_v16  ;;  %v4839_v52 = vsub.f32 %v13754_v60, %v4694_v23  ;;  %v4840_v59 = vsub.f32 %v13762_v13, %v4694_v23  ;;  %v14192_v43 = vpop.eup %11590  ;;  %v17730_v51 = vld [vmem:[#allocation96_spill] sm:$0xff] }
 0x782   : > { %11608 = vpow2.f32 %v5053_v57  ;;  %v5396_v53 = vmul.f32 %v11589_v24, %v17729_v1  ;;  %5257 = vadd.xlane.f32.xlu0 %v5256_v25  ;;  %v5393_v20 = vmul.f32 %v11583_v8, %v17730_v51  ;;  %v5395_v21 = vmul.f32 %v11589_v24, %v17731_v2 }
 0x783   : > { %11610 = vpow2.f32 %v5055_v46  ;;  %v5057_v62 = vmul.f32 1.442695, %v4839_v52  ;;  %v5059_v16 = vmul.f32 1.442695, %v4840_v59  ;;  %5212 = vadd.xlane.f32.xlu1 %v5211_v40  ;;  %v5003_v13 = vmul.f32 1.442695, %v4812_v48 }
 0x784   : > { %v14196_v5 = vpop.eup %11592  ;;  %11612 = vrcp.f32 %v5153_v63  ;;  %v5520_v57 = vpack.c.bf16 %v5396_v53, %v5394_v55  ;;  %v5156_v23 = vpop.xlane.xlu0 %5155  ;;  %v5214_v46 = vadd.f32 %v14153_v38, %v14144_v61  ;;  %v5519_v25 = vpack.c.bf16 %v5395_v21, %v5393_v20  ;;  %v17733_v53 = vld [vmem:[#allocation101_spill] sm:$0xff] }
 0x785   : > { %v14198_v60 = vpop.eup %11594  ;;  %11614 = vpow2.f32 %v5001_v32  ;;  %v4697_v1 = vpop.xlane.xlu1 %4696  ;;  %v5217_v59 = vadd.f32 %v14162_v35, %v14157_v45 }
 0x786   : > { %v11597_v8 = vpop.eup %11596  ;;  %11616 = vpow2.f32 %v5057_v62  ;;  %v4841_v24 = vsub.f32 %v13772_v28, %v4697_v1  ;;  %v4842_v63 = vsub.f32 %v13776_v4, %v4697_v1  ;;  %5653 = vmatprep.mubr.bf16.mxu0 %v5520_v57  ;;  %v5259_v40 = vadd.f32 %v14198_v60, %v14196_v5  ;;  %5215 = vadd.xlane.f32.xlu0 %v5214_v46  ;;  %v17736_v1 = vld [vmem:[#allocation100_spill] sm:$0xff] }
 0x787   : > { %v14206_v55 = vpop.eup %11598  ;;  %11618 = vpow2.f32 %v5059_v16  ;;  %5654 = vmatmul.mubr.bf16.gmra.mrb[152].mxu0 %v5519_v25  ;;  %v5398_v51 = vmul.f32 %v11597_v8, %v17733_v53  ;;  %v5397_v46 = vmul.f32 %v11597_v8, %v17736_v1  ;;  %v17737_v25 = vld [vmem:[#allocation103_spill] sm:$0xff]  ;;  %v17738_v1 = vld [vmem:[#allocation106_spill] sm:$0xff] }
 0x788   : > { %17732 = vst [vmem:[#allocation91_spill] sm:$0xff] %v14206_v55  ;;  %v14208_v48 = vpop.eup %11600  ;;  %11620 = vrcp.f32 %v5156_v23  ;;  %v5061_v32 = vmul.f32 1.442695, %v4841_v24  ;;  %v5063_v52 = vmul.f32 1.442695, %v4842_v63  ;;  %5260 = vadd.xlane.f32.xlu1 %v5259_v40  ;;  %v4700_v4 = vpop.xlane.xlu0 %4699 }
 0x789   : > { %v14210_v62 = vpop.eup %11602  ;;  %11622 = vpow2.f32 %v5003_v13  ;;  %v5159_v28 = vpop.xlane.xlu1 %5158  ;;  %v4843_v2 = vsub.f32 %v13782_v15, %v4700_v4  ;;  %v4844_v21 = vsub.f32 %v13790_v22, %v4700_v4  ;;  %v17735_v13 = vld [vmem:[#allocation104_spill] sm:$0xff] }
 0x78a   : > { %v11605_v20 = vpop.eup %11604  ;;  %11624 = vpow2.f32 %v5061_v32  ;;  %v5262_v16 = vadd.f32 %v14210_v62, %v14208_v48 }
 0x78b   : > { %v14219_v57 = vpop.eup %11606  ;;  %11626 = vpow2.f32 %v5063_v52  ;;  %v5400_v23 = vmul.f32 %v11605_v20, %v17735_v13  ;;  %v5399_v24 = vmul.f32 %v11605_v20, %v17737_v25  ;;  %v5065_v40 = vmul.f32 1.442695, %v4843_v2 }
 0x78c   : > { %17734 = vst [vmem:[#allocation75_spill] sm:$0xff] %v14219_v57  ;;  %v14224_v63 = vpop.eup %11608  ;;  %11628 = vrcp.f32 %v5159_v28  ;;  %v5067_v32 = vmul.f32 1.442695, %v4844_v21  ;;  %5218 = vadd.xlane.f32.xlu1 %v5217_v59  ;;  %5263 = vadd.xlane.f32.xlu0 %v5262_v16  ;;  %v5162_v22 = vpop.xlane.xlu0 %5161  ;;  %v5220_v59 = vadd.f32 %v14192_v43, %v14166_v10 }
 0x78d   : > { %v14226_v15 = vpop.eup %11610  ;;  %v4703_v4 = vpop.xlane.xlu1 %4702  ;;  %v5522_v53 = vpack.c.bf16 %v5400_v23, %v5398_v51  ;;  %v5521_v45 = vpack.c.bf16 %v5399_v24, %v5397_v46  ;;  %11630 = vpow2.f32 %v5065_v40  ;;  %v5223_v23 = vadd.f32 %v14219_v57, %v14206_v55 }
 0x78e   : > { %v11613_v52 = vpop.eup %11612  ;;  %v4845_v13 = vsub.f32 %v13800_v50, %v4703_v4  ;;  %v4846_v8 = vsub.f32 %v13804_v18, %v4703_v4  ;;  %v5265_v20 = vadd.f32 %v14226_v15, %v14224_v63  ;;  %11632 = vpow2.f32 %v5067_v32 }
 0x78f   : > { %v14232_v28 = vpop.eup %11614  ;;  %5661 = vmatprep.mubr.bf16.mxu0 %v5522_v53  ;;  %11634 = vrcp.f32 %v5162_v22  ;;  %v5402_v46 = vmul.f32 %v11613_v52, %v17738_v1  ;;  %v17739_v22 = vld [vmem:[#allocation108_spill] sm:$0xff]  ;;  %v17740_v53 = vld [vmem:[#allocation105_spill] sm:$0xff] }
 0x790   : > { %v14236_v2 = vpop.eup %11616  ;;  %v5069_v51 = vmul.f32 1.442695, %v4845_v13  ;;  %v5071_v21 = vmul.f32 1.442695, %v4846_v8  ;;  %5662 = vmatmul.mubr.bf16.gmra.mrb[156].mxu0 %v5521_v45  ;;  %5266 = vadd.xlane.f32.xlu1 %v5265_v20  ;;  %v4706_v16 = vpop.xlane.xlu0 %4705  ;;  %v5401_v13 = vmul.f32 %v11613_v52, %v17740_v53  ;;  %v17741_v8 = vld [vmem:[#allocation107_spill] sm:$0xff] }
 0x791   : > { %v14238_v50 = vpop.eup %11618  ;;  %5221 = vadd.xlane.f32.xlu0 %v5220_v59  ;;  %v5165_v18 = vpop.xlane.xlu1 %5164  ;;  %v4847_v24 = vsub.f32 %v13810_v44, %v4706_v16  ;;  %v4848_v40 = vsub.f32 %v13818_v58, %v4706_v16 }
 0x792   : > { %v11621_v25 = vpop.eup %11620  ;;  %11636 = vpow2.f32 %v5069_v51  ;;  %v5268_v45 = vadd.f32 %v14238_v50, %v14236_v2 }
 0x793   : > { %v14247_v32 = vpop.eup %11622  ;;  %11638 = vpow2.f32 %v5071_v21  ;;  %v5404_v4 = vmul.f32 %v11621_v25, %v17739_v22  ;;  %v5403_v20 = vmul.f32 %v11621_v25, %v17741_v8  ;;  %v5073_v51 = vmul.f32 1.442695, %v4847_v24 }
 0x794   : > { %v14252_v59 = vpop.eup %11624  ;;  %11640 = vrcp.f32 %v5165_v18  ;;  %v5075_v1 = vmul.f32 1.442695, %v4848_v40  ;;  %5224 = vadd.xlane.f32.xlu1 %v5223_v23  ;;  %v5168_v58 = vpop.xlane.xlu0 %5167  ;;  %v5226_v18 = vadd.f32 %v14247_v32, %v14232_v28 }
 0x795   : > { %v14254_v44 = vpop.eup %11626  ;;  %5269 = vadd.xlane.f32.xlu0 %v5268_v45  ;;  %v4709_v16 = vpop.xlane.xlu1 %4708  ;;  %v5524_v55 = vpack.c.bf16 %v5404_v4, %v5402_v46  ;;  %v5523_v57 = vpack.c.bf16 %v5403_v20, %v5401_v13  ;;  %11642 = vpow2.f32 %v5073_v51  ;;  %v17744_v45 = vld [vmem:[#allocation110_spill] sm:$0xff]  ;;  %v17745_v13 = vld [vmem:[#allocation117_spill] sm:$0xff]  ;;  %v17746_v51 = vld [vmem:[#allocation112_spill] sm:$0xff] }
 0x796   : > { %17742 = vst [vmem:[#allocation74_spill] sm:$0xff] %v14254_v44  ;;  %v11629_v21 = vpop.eup %11628  ;;  %v4849_v22 = vsub.f32 %v13828_v3, %v4709_v16  ;;  %v4850_v52 = vsub.f32 %v13832_v31, %v4709_v16  ;;  %v5271_v25 = vadd.f32 %v14254_v44, %v14252_v59  ;;  %11644 = vpow2.f32 %v5075_v1  ;;  %v17747_v1 = vld [vmem:[#allocation109_spill] sm:$0xff]  ;;  %v17748_v16 = vld [vmem:[#allocation111_spill] sm:$0xff] }
 0x797   : > { %5669 = vmatprep.mubr.bf16.mxu0 %v5524_v55  ;;  %v14262_v23 = vpop.eup %11630  ;;  %11646 = vrcp.f32 %v5168_v58  ;;  %v5406_v4 = vmul.f32 %v11629_v21, %v17744_v45  ;;  %v5405_v58 = vmul.f32 %v11629_v21, %v17747_v1  ;;  %v17752_v44 = vld [vmem:[#allocation121_spill] sm:$0xff]  ;;  %v17755_v1 = vld [vmem:[#allocation114_spill] sm:$0xff] }
 0x798   : > { %v5077_v24 = vmul.f32 1.442695, %v4849_v22  ;;  %v5079_v46 = vmul.f32 1.442695, %v4850_v52  ;;  %5670 = vmatmul.mubr.bf16.gmra.mrb[160].mxu0 %v5523_v57  ;;  %5272 = vadd.xlane.f32.xlu1 %v5271_v25  ;;  %v14264_v40 = vpop.eup %11632  ;;  %v4712_v31 = vpop.xlane.xlu0 %4711 }
 0x799   : > { %17743 = vst [vmem:[#allocation76_spill] sm:$0xff] %v14264_v40  ;;  %5227 = vadd.xlane.f32.xlu0 %v5226_v18  ;;  %v5171_v3 = vpop.xlane.xlu1 %5170  ;;  %v11635_v53 = vpop.eup %11634  ;;  %v4851_v55 = vsub.f32 %v13838_v33, %v4712_v31  ;;  %v4852_v8 = vsub.f32 %v17745_v13, %v4712_v31  ;;  %v5274_v20 = vadd.f32 %v14264_v40, %v14262_v23 }
 0x79a   : > { %11648 = vpow2.f32 %v5077_v24  ;;  %v5408_v57 = vmul.f32 %v11635_v53, %v17746_v51  ;;  %v5407_v22 = vmul.f32 %v11635_v53, %v17748_v16 }
 0x79b   : > { %11650 = vpow2.f32 %v5079_v46  ;;  %v5081_v25 = vmul.f32 1.442695, %v4851_v55  ;;  %v5083_v18 = vmul.f32 1.442695, %v4852_v8  ;;  %v17751_v46 = vld [vmem:[#allocation119_spill] sm:$0xff] }
 0x79c   : > { %v14274_v52 = vpop.eup %11636  ;;  %11652 = vrcp.f32 %v5171_v3  ;;  %v5174_v33 = vpop.xlane.xlu0 %5173  ;;  %v5526_v45 = vpack.c.bf16 %v5408_v57, %v5406_v4  ;;  %v5525_v13 = vpack.c.bf16 %v5407_v22, %v5405_v58 }
 0x79d   : > { %17749 = vst [vmem:[#allocation77_spill] sm:$0xff] %v14274_v52  ;;  %v14276_v24 = vpop.eup %11638  ;;  %5275 = vadd.xlane.f32.xlu0 %v5274_v20  ;;  %v4715_v31 = vpop.xlane.xlu1 %4714  ;;  %11654 = vpow2.f32 %v5081_v25  ;;  %v17757_v25 = vld [vmem:[#allocation125_spill] sm:$0xff] }
 0x79e   : > { %17750 = vst [vmem:[#allocation78_spill] sm:$0xff] %v14276_v24  ;;  %v11641_v40 = vpop.eup %11640  ;;  %v4853_v51 = vsub.f32 %v17751_v46, %v4715_v31  ;;  %v4854_v21 = vsub.f32 %v17752_v44, %v4715_v31  ;;  %v5277_v53 = vadd.f32 %v14276_v24, %v14274_v52  ;;  %11656 = vpow2.f32 %v5083_v18  ;;  %5677 = vmatprep.mubr.bf16.mxu0 %v5526_v45  ;;  %v17756_v44 = vld [vmem:[#allocation123_spill] sm:$0xff] }
 0x79f   : > { %v14282_v3 = vpop.eup %11642  ;;  %11658 = vrcp.f32 %v5174_v33  ;;  %v5410_v58 = vmul.f32 %v11641_v40, %v17755_v1  ;;  %v17758_v33 = vld [vmem:[#allocation116_spill] sm:$0xff] }
 0x7a0   : > { %17753 = vst [vmem:[#allocation79_spill] sm:$0xff] %v14282_v3  ;;  %v5085_v55 = vmul.f32 1.442695, %v4853_v51  ;;  %v5087_v8 = vmul.f32 1.442695, %v4854_v21  ;;  %5678 = vmatmul.mubr.bf16.gmra.mrb[164].mxu0 %v5525_v13  ;;  %5278 = vadd.xlane.f32.xlu1 %v5277_v53  ;;  %v14284_v4 = vpop.eup %11644  ;;  %v4718_v57 = vpop.xlane.xlu0 %4717  ;;  %v17759_v13 = vld [vmem:[#allocation113_spill] sm:$0xff] }
 0x7a1   : > { %17754 = vst [vmem:[#allocation93_spill] sm:$0xff] %v14284_v4  ;;  %v5177_v20 = vpop.xlane.xlu1 %5176  ;;  %v11647_v16 = vpop.eup %11646  ;;  %v4855_v22 = vsub.f32 %v17756_v44, %v4718_v57  ;;  %v4856_v18 = vsub.f32 %v17757_v25, %v4718_v57  ;;  %v5280_v31 = vadd.f32 %v14284_v4, %v14282_v3  ;;  %v5409_v46 = vmul.f32 %v11641_v40, %v17759_v13  ;;  %v17760_v51 = vld [vmem:[#allocation115_spill] sm:$0xff]  ;;  %v17764_v3 = vld [vmem:[#allocation129_spill] sm:$0xff]  ;;  %v17767_v13 = vld [vmem:[#allocation120_spill] sm:$0xff] }
 0x7a2   : > { %11660 = vpow2.f32 %v5085_v55  ;;  %v5412_v45 = vmul.f32 %v11647_v16, %v17758_v33  ;;  %v5411_v21 = vmul.f32 %v11647_v16, %v17760_v51 }
 0x7a3   : > { %11662 = vpow2.f32 %v5087_v8  ;;  %v5089_v1 = vmul.f32 1.442695, %v4855_v22  ;;  %v5091_v24 = vmul.f32 1.442695, %v4856_v18  ;;  %5281 = vadd.xlane.f32.xlu0 %v5280_v31  ;;  %v17763_v8 = vld [vmem:[#allocation127_spill] sm:$0xff] }
 0x7a4   : > { %v14294_v53 = vpop.eup %11648  ;;  %11664 = vrcp.f32 %v5177_v20  ;;  %v5180_v44 = vpop.xlane.xlu0 %5179  ;;  %v5528_v25 = vpack.c.bf16 %v5412_v45, %v5410_v58  ;;  %v5527_v52 = vpack.c.bf16 %v5411_v21, %v5409_v46 }
 0x7a5   : > { %17761 = vst [vmem:[#allocation94_spill] sm:$0xff] %v14294_v53  ;;  %v14296_v55 = vpop.eup %11650  ;;  %v4721_v57 = vpop.xlane.xlu1 %4720  ;;  %11666 = vpow2.f32 %v5089_v1  ;;  %v17769_v1 = vld [vmem:[#allocation133_spill] sm:$0xff] }
 0x7a6   : > { %17762 = vst [vmem:[#allocation95_spill] sm:$0xff] %v14296_v55  ;;  %v11653_v4 = vpop.eup %11652  ;;  %v4857_v33 = vsub.f32 %v17763_v8, %v4721_v57  ;;  %v4858_v40 = vsub.f32 %v17764_v3, %v4721_v57  ;;  %v5283_v16 = vadd.f32 %v14296_v55, %v14294_v53  ;;  %11668 = vpow2.f32 %v5091_v24  ;;  %5685 = vmatprep.mubr.bf16.mxu0 %v5528_v25  ;;  %v17768_v3 = vld [vmem:[#allocation131_spill] sm:$0xff] }
 0x7a7   : > { %v14302_v20 = vpop.eup %11654  ;;  %11670 = vrcp.f32 %v5180_v44  ;;  %v5414_v46 = vmul.f32 %v11653_v4, %v17767_v13  ;;  %v17770_v44 = vld [vmem:[#allocation124_spill] sm:$0xff] }
 0x7a8   : > { %17765 = vst [vmem:[#allocation80_spill] sm:$0xff] %v14302_v20  ;;  %v5093_v22 = vmul.f32 1.442695, %v4857_v33  ;;  %v5095_v18 = vmul.f32 1.442695, %v4858_v40  ;;  %5686 = vmatmul.mubr.bf16.gmra.mrb[168].mxu0 %v5527_v52  ;;  %5284 = vadd.xlane.f32.xlu1 %v5283_v16  ;;  %v14304_v58 = vpop.eup %11656  ;;  %v4724_v45 = vpop.xlane.xlu0 %4723  ;;  %v17771_v52 = vld [vmem:[#allocation118_spill] sm:$0xff] }
 0x7a9   : > { %17766 = vst [vmem:[#allocation92_spill] sm:$0xff] %v14304_v58  ;;  %v5183_v31 = vpop.xlane.xlu1 %5182  ;;  %v11659_v51 = vpop.eup %11658  ;;  %v4859_v21 = vsub.f32 %v17768_v3, %v4724_v45  ;;  %v4860_v24 = vsub.f32 %v17769_v1, %v4724_v45  ;;  %v5286_v57 = vadd.f32 %v14304_v58, %v14302_v20  ;;  %v5413_v8 = vmul.f32 %v11653_v4, %v17771_v52  ;;  %v17772_v33 = vld [vmem:[#allocation122_spill] sm:$0xff]  ;;  %v17776_v20 = vld [vmem:[#allocation137_spill] sm:$0xff]  ;;  %v17779_v52 = vld [vmem:[#allocation128_spill] sm:$0xff] }
 0x7aa   : > { %11672 = vpow2.f32 %v5093_v22  ;;  %v5416_v25 = vmul.f32 %v11659_v51, %v17770_v44  ;;  %v5415_v40 = vmul.f32 %v11659_v51, %v17772_v33 }
 0x7ab   : > { %11674 = vpow2.f32 %v5095_v18  ;;  %v5097_v13 = vmul.f32 1.442695, %v4859_v21  ;;  %v5099_v55 = vmul.f32 1.442695, %v4860_v24  ;;  %5287 = vadd.xlane.f32.xlu0 %v5286_v57  ;;  %v17775_v18 = vld [vmem:[#allocation135_spill] sm:$0xff] }
 0x7ac   : > { %v14314_v16 = vpop.eup %11660  ;;  %11676 = vrcp.f32 %v5183_v31  ;;  %v5186_v3 = vpop.xlane.xlu0 %5185  ;;  %v5530_v1 = vpack.c.bf16 %v5416_v25, %v5414_v46  ;;  %v5529_v53 = vpack.c.bf16 %v5415_v40, %v5413_v8 }
 0x7ad   : > { %17773 = vst [vmem:[#allocation81_spill] sm:$0xff] %v14314_v16  ;;  %v14316_v22 = vpop.eup %11662  ;;  %v4727_v45 = vpop.xlane.xlu1 %4726  ;;  %11678 = vpow2.f32 %v5097_v13  ;;  %v17781_v13 = vld [vmem:[#allocation141_spill] sm:$0xff] }
 0x7ae   : > { %17774 = vst [vmem:[#allocation102_spill] sm:$0xff] %v14316_v22  ;;  %v11665_v58 = vpop.eup %11664  ;;  %v4861_v44 = vsub.f32 %v17775_v18, %v4727_v45  ;;  %v4862_v4 = vsub.f32 %v17776_v20, %v4727_v45  ;;  %v5289_v51 = vadd.f32 %v14316_v22, %v14314_v16  ;;  %11680 = vpow2.f32 %v5099_v55  ;;  %5693 = vmatprep.mubr.bf16.mxu0 %v5530_v1  ;;  %v17780_v20 = vld [vmem:[#allocation139_spill] sm:$0xff] }
 0x7af   : > { %v14322_v31 = vpop.eup %11666  ;;  %11682 = vrcp.f32 %v5186_v3  ;;  %v5418_v8 = vmul.f32 %v11665_v58, %v17779_v52  ;;  %v17782_v3 = vld [vmem:[#allocation132_spill] sm:$0xff] }
 0x7b0   : > { %17777 = vst [vmem:[#allocation82_spill] sm:$0xff] %v14322_v31  ;;  %v5101_v21 = vmul.f32 1.442695, %v4861_v44  ;;  %v5103_v24 = vmul.f32 1.442695, %v4862_v4  ;;  %5694 = vmatmul.mubr.bf16.gmra.mrb[172].mxu0 %v5529_v53  ;;  %5290 = vadd.xlane.f32.xlu1 %v5289_v51  ;;  %v14324_v46 = vpop.eup %11668  ;;  %v4730_v25 = vpop.xlane.xlu0 %4729  ;;  %v17783_v53 = vld [vmem:[#allocation126_spill] sm:$0xff] }
 0x7b1   : > { %17778 = vst [vmem:[#allocation97_spill] sm:$0xff] %v14324_v46  ;;  %v5189_v57 = vpop.xlane.xlu1 %5188  ;;  %v11671_v33 = vpop.eup %11670  ;;  %v4863_v40 = vsub.f32 %v17780_v20, %v4730_v25  ;;  %v4864_v55 = vsub.f32 %v17781_v13, %v4730_v25  ;;  %v5292_v45 = vadd.f32 %v14324_v46, %v14322_v31  ;;  %v5417_v18 = vmul.f32 %v11665_v58, %v17783_v53  ;;  %v17784_v44 = vld [vmem:[#allocation130_spill] sm:$0xff]  ;;  %v17787_v31 = vld [vmem:[#allocation145_spill] sm:$0xff] }
 0x7b2   : > { %11684 = vpow2.f32 %v5101_v21  ;;  %v5420_v1 = vmul.f32 %v11671_v33, %v17782_v3  ;;  %v5419_v4 = vmul.f32 %v11671_v33, %v17784_v44 }
 0x7b3   : > { %11686 = vpow2.f32 %v5103_v24  ;;  %v5105_v22 = vmul.f32 1.442695, %v4863_v40  ;;  %v5107_v52 = vmul.f32 1.442695, %v4864_v55  ;;  %5293 = vadd.xlane.f32.xlu0 %v5292_v45  ;;  %v17786_v24 = vld [vmem:[#allocation143_spill] sm:$0xff] }
 0x7b4   : > { %v14334_v51 = vpop.eup %11672  ;;  %11688 = vrcp.f32 %v5189_v57  ;;  %v5192_v20 = vpop.xlane.xlu0 %5191  ;;  %v5532_v13 = vpack.c.bf16 %v5420_v1, %v5418_v8  ;;  %v5531_v16 = vpack.c.bf16 %v5419_v4, %v5417_v18  ;;  %v17789_v18 = vld [vmem:[#allocation147_spill] sm:$0xff]  ;;  %v17790_v4 = vld [vmem:[#allocation149_spill] sm:$0xff] }
 0x7b5   : > { %v14336_v21 = vpop.eup %11674  ;;  %v4733_v25 = vpop.xlane.xlu1 %4732  ;;  %11690 = vpow2.f32 %v5105_v22  ;;  %v17788_v22 = vld [vmem:[#allocation136_spill] sm:$0xff] }
 0x7b6   : > { %17785 = vst [vmem:[#allocation99_spill] sm:$0xff] %v14336_v21  ;;  %v11677_v46 = vpop.eup %11676  ;;  %v4865_v3 = vsub.f32 %v17786_v24, %v4733_v25  ;;  %v4866_v58 = vsub.f32 %v17787_v31, %v4733_v25  ;;  %v5295_v33 = vadd.f32 %v14336_v21, %v14334_v51  ;;  %11692 = vpow2.f32 %v5107_v52  ;;  %5701 = vmatprep.mubr.bf16.mxu0 %v5532_v13 }
 0x7b7   : > { %v14342_v40 = vpop.eup %11678  ;;  %11694 = vrcp.f32 %v5192_v20  ;;  %v5422_v1 = vmul.f32 %v11677_v46, %v17788_v22  ;;  %v17791_v20 = vld [vmem:[#allocation140_spill] sm:$0xff] }
 0x7b8   : > { %v5109_v55 = vmul.f32 1.442695, %v4865_v3  ;;  %v5111_v57 = vmul.f32 1.442695, %v4866_v58  ;;  %5702 = vmatmul.mubr.bf16.gmra.mrb[176].mxu0 %v5531_v16  ;;  %5296 = vadd.xlane.f32.xlu1 %v5295_v33  ;;  %v14344_v8 = vpop.eup %11680  ;;  %v4736_v45 = vpop.xlane.xlu0 %4735  ;;  %v17792_v16 = vld [vmem:[#allocation134_spill] sm:$0xff] }
 0x7b9   : > { %v11683_v53 = vpop.eup %11682  ;;  %v5195_v31 = vpop.xlane.xlu1 %5194  ;;  %v4867_v44 = vsub.f32 %v17789_v18, %v4736_v45  ;;  %v4868_v52 = vsub.f32 %v17790_v4, %v4736_v45  ;;  %v5298_v25 = vadd.f32 %v14344_v8, %v14342_v40  ;;  %v5421_v24 = vmul.f32 %v11677_v46, %v17792_v16  ;;  %v17793_v3 = vld [vmem:[#allocation138_spill] sm:$0xff] }
 0x7ba   : > { %11696 = vpow2.f32 %v5109_v55  ;;  %v5424_v13 = vmul.f32 %v11683_v53, %v17791_v20  ;;  %v5423_v58 = vmul.f32 %v11683_v53, %v17793_v3  ;;  %v17796_v16 = vld [vmem:[#allocation142_spill] sm:$0xff] }
 0x7bb   : > { %11698 = vpow2.f32 %v5111_v57  ;;  %v5113_v22 = vmul.f32 1.442695, %v4867_v44  ;;  %v5115_v21 = vmul.f32 1.442695, %v4868_v52  ;;  %5299 = vadd.xlane.f32.xlu0 %v5298_v25  ;;  %v17795_v25 = vld [vmem:[#allocation148_spill] sm:$0xff]  ;;  %v17797_v3 = vld [vmem:[#allocation146_spill] sm:$0xff] }
 0x7bc   : > { %v14354_v33 = vpop.eup %11684  ;;  %11700 = vrcp.f32 %v5195_v31  ;;  %v5198_v18 = vpop.xlane.xlu0 %5197  ;;  %v5534_v45 = vpack.c.bf16 %v5424_v13, %v5422_v1  ;;  %v5533_v4 = vpack.c.bf16 %v5423_v58, %v5421_v24  ;;  %v17794_v1 = vld [vmem:[#allocation144_spill] sm:$0xff] }
 0x7bd   : > { %v14356_v55 = vpop.eup %11686  ;;  %11702 = vpow2.f32 %v5113_v22 }
 0x7be   : > { %v5301_v57 = vadd.f32 %v14356_v55, %v14354_v33  ;;  %v11689_v20 = vpop.eup %11688  ;;  %11704 = vpow2.f32 %v5115_v21  ;;  %5709 = vmatprep.mubr.bf16.mxu0 %v5534_v45 }
 0x7bf   : > { %v14360_v46 = vpop.eup %11690  ;;  %11706 = vrcp.f32 %v5198_v18  ;;  %v5426_v52 = vmul.f32 %v11689_v20, %v17794_v1  ;;  %v5425_v24 = vmul.f32 %v11689_v20, %v17796_v16 }
 0x7c0   : > { %5710 = vmatmul.mubr.bf16.gmra.mrb[180].mxu0 %v5533_v4  ;;  %5302 = vadd.xlane.f32.xlu1 %v5301_v57  ;;  %v14362_v53 = vpop.eup %11692 }
 0x7c1   : > { %v11695_v44 = vpop.eup %11694  ;;  %v5304_v31 = vadd.f32 %v14362_v53, %v14360_v46 }
 0x7c2   : > { %v5428_v13 = vmul.f32 %v11695_v44, %v17795_v25  ;;  %v5427_v21 = vmul.f32 %v11695_v44, %v17797_v3  ;;  %v17800_v25 = vld [vmem:[#allocation151_spill] sm:$0xff] }
 0x7c3   : > { %5305 = vadd.xlane.f32.xlu0 %v5304_v31 }
 0x7c4   : > { %v14370_v58 = vpop.eup %11696  ;;  %v5536_v18 = vpack.c.bf16 %v5428_v13, %v5426_v52  ;;  %v5535_v45 = vpack.c.bf16 %v5427_v21, %v5425_v24  ;;  %v17801_v52 = vld [vmem:[#allocation153_spill] sm:$0xff]  ;;  %v17802_v24 = vld [vmem:[#allocation150_spill] sm:$0xff]  ;;  %v17803_v21 = vld [vmem:[#allocation152_spill] sm:$0xff] }
 0x7c5   : > { %17798 = vst [vmem:[#allocation96_spill] sm:$0xff] %v14370_v58  ;;  %v14372_v22 = vpop.eup %11698 }
 0x7c6   : > { %17799 = vst [vmem:[#allocation98_spill] sm:$0xff] %v14372_v22  ;;  %v5307_v4 = vadd.f32 %v14372_v22, %v14370_v58  ;;  %v11701_v57 = vpop.eup %11700  ;;  %5717 = vmatprep.mubr.bf16.mxu0 %v5536_v18 }
 0x7c7   : > { %v14376_v1 = vpop.eup %11702  ;;  %v5430_v16 = vmul.f32 %v11701_v57, %v17800_v25  ;;  %v5429_v3 = vmul.f32 %v11701_v57, %v17802_v24 }
 0x7c8   : > { %5718 = vmatmul.mubr.bf16.gmra.mrb[184].mxu0 %v5535_v45  ;;  %5308 = vadd.xlane.f32.xlu1 %v5307_v4  ;;  %v14378_v20 = vpop.eup %11704  ;;  %v11418_v45 = vld [vmem:[%s794_s28] sm:$0xff]   ;;  %v11419_v4 = vld [vmem:[%s794_s28 + $0x8] sm:$0xff]   ;;  %s803_s28 = scalar_lea.vmem %s17186_s15, %s11957_s23 }
 0x7c9   : > { %v11707_v44 = vpop.eup %11706  ;;  %v5310_v31 = vadd.f32 %v14378_v20, %v14376_v1  ;;  %10611 = vmatprep.subr.bf16.mxu0 %v11418_v45 }
 0x7ca   : > { %v5432_v13 = vmul.f32 %v11707_v44, %v17801_v52  ;;  %v5431_v22 = vmul.f32 %v11707_v44, %v17803_v21  ;;  %10612 = vmatpush3.bf16.msra.mxu0 %v11418_v45 }
 0x7cb   : > { %5311 = vadd.xlane.f32.xlu0 %v5310_v31  ;;  %10613 = vmatprep.subr.bf16.mxu0 %v11419_v4 }
 0x7cc   : > { %v5538_v18 = vpack.c.bf16 %v5432_v13, %v5430_v16  ;;  %v5537_v58 = vpack.c.bf16 %v5431_v22, %v5429_v3 }
 0x7ce   : > { %5725 = vmatprep.mubr.bf16.mxu0 %v5538_v18  ;;  %10614 = vmatpush3.bf16.msra.mxu0 %v11419_v4 }
 0x7d0   : > { %5726 = vmatmul.mubr.bf16.gmra.mrb[188].mxu0 %v5537_v58 }
 0x7e8   : > { %v5231_v25 = vpop.xlane.xlu1 %5230 }
 0x7e9   : > { %11708 = vrcp.f32 %v5231_v25 }
 0x7ea   : > { %v5234_v57 = vpop.xlane.xlu0 %5233 }
 0x7eb   : > { %11710 = vrcp.f32 %v5234_v57 }
 0x7ec   : > { %v4739_v44 = vpop.xlane.xlu1 %4738 }
 0x7ed   : > { %v4869_v22 = vsub.f32 %v13964_v27, %v4739_v44  ;;  %v4870_v58 = vsub.f32 %v13968_v9, %v4739_v44 }
 0x7ee   : > { %v4742_v31 = vpop.xlane.xlu0 %4741 }
 0x7ef   : > { %v5117_v16 = vmul.f32 1.442695, %v4869_v22  ;;  %v5119_v52 = vmul.f32 1.442695, %v4870_v58  ;;  %v4871_v13 = vsub.f32 %v13974_v14, %v4742_v31  ;;  %v4872_v24 = vsub.f32 %v13980_v6, %v4742_v31 }
 0x7f0   : > { %v5237_v3 = vpop.xlane.xlu1 %5236 }
 0x7f1   : > { %11712 = vpow2.f32 %v5117_v16  ;;  %v5121_v21 = vmul.f32 1.442695, %v4871_v13  ;;  %v5123_v18 = vmul.f32 1.442695, %v4872_v24 }
 0x7f2   : > { %11714 = vpow2.f32 %v5119_v52 }
 0x7f3   : > { %v11709_v45 = vpop.eup %11708  ;;  %11716 = vpow2.f32 %v5121_v21  ;;  %v5240_v4 = vpop.xlane.xlu0 %5239 }
 0x7f4   : > { %11718 = vpow2.f32 %v5123_v18  ;;  %v5201_v25 = vpop.xlane.xlu1 %5200  ;;  %v5453_v9 = vmul.f32 %v11709_v45, %v14026_v26  ;;  %v5454_v14 = vmul.f32 %v11709_v45, %v14030_v30 }
 0x7f5   : > { %v11711_v27 = vpop.eup %11710  ;;  %11720 = vrcp.f32 %v5237_v3 }
 0x7f6   : > { %v5455_v57 = vmul.f32 %v11711_v27, %v14032_v0  ;;  %11722 = vrcp.f32 %v5240_v4  ;;  %v5456_v6 = vmul.f32 %v11711_v27, %v14038_v19 }
 0x7f7   : > { %11724 = vrcp.f32 %v5201_v25  ;;  %v5204_v44 = vpop.xlane.xlu0 %5203 }
 0x7f8   : > { %v5549_v22 = vpack.c.bf16 %v5455_v57, %v5453_v9  ;;  %11726 = vrcp.f32 %v5204_v44  ;;  %v5243_v58 = vpop.xlane.xlu1 %5242  ;;  %v5550_v31 = vpack.c.bf16 %v5456_v6, %v5454_v14  ;;  %v17805_v9 = vld [vmem:[#allocation83_spill] sm:$0xff] }
 0x7f9   : > { %11728 = vrcp.f32 %v5243_v58 }
 0x7fa   : > { %5806 = vmatprep.mubr.bf16.mxu1 %v5550_v31  ;;  %v17807_v31 = vld [vmem:[#allocation69_spill] sm:$0xff] }
 0x7fb   : > { %v14398_v16 = vpop.eup %11712  ;;  %v5246_v52 = vpop.xlane.xlu0 %5245  ;;  %5807 = vmatmul.mubr.bf16.vlgmr.msra.gmra.mrb[44].mxu1 %v5549_v22  ;;  %v17806_v22 = vld [vmem:[#allocation84_spill] sm:$0xff] }
 0x7fc   : > { %v14400_v26 = vpop.eup %11714  ;;  %11730 = vrcp.f32 %v5246_v52  ;;  %v4745_v0 = vpop.xlane.xlu1 %4744 }
 0x7fd   : > { %v14402_v13 = vpop.eup %11716  ;;  %v4873_v30 = vsub.f32 %v13986_v41, %v4745_v0  ;;  %v4874_v19 = vsub.f32 %v13988_v49, %v4745_v0  ;;  %v5313_v24 = vadd.f32 %v14400_v26, %v14398_v16 }
 0x7fe   : > { %v14408_v3 = vpop.eup %11718 }
 0x7ff   : > { %17804 = vst [vmem:[#allocation101_spill] sm:$0xff] %v14408_v3  ;;  %v11721_v21 = vpop.eup %11720  ;;  %v5125_v18 = vmul.f32 1.442695, %v4873_v30  ;;  %v5127_v45 = vmul.f32 1.442695, %v4874_v19  ;;  %5314 = vadd.xlane.f32.xlu1 %v5313_v24  ;;  %v4748_v4 = vpop.xlane.xlu0 %4747  ;;  %v5316_v25 = vadd.f32 %v14408_v3, %v14402_v13 }
 0x800   : > { %v11723_v27 = vpop.eup %11722  ;;  %v5457_v57 = vmul.f32 %v11721_v21, %v17805_v9  ;;  %v4875_v41 = vsub.f32 %v13992_v11, %v4748_v4  ;;  %v4876_v49 = vsub.f32 %v13994_v54, %v4748_v4  ;;  %v5249_v14 = vpop.xlane.xlu1 %5248  ;;  %v5458_v58 = vmul.f32 %v11721_v21, %v17806_v22 }
 0x801   : > { %v11725_v6 = vpop.eup %11724  ;;  %v5459_v44 = vmul.f32 %v11723_v27, %v14061_v12  ;;  %11732 = vpow2.f32 %v5125_v18  ;;  %5317 = vadd.xlane.f32.xlu0 %v5316_v25  ;;  %v5460_v52 = vmul.f32 %v11723_v27, %v17807_v31  ;;  %v17808_v18 = vld [vmem:[#allocation71_spill] sm:$0xff] }
 0x802   : > { %v11727_v0 = vpop.eup %11726  ;;  %11734 = vpow2.f32 %v5127_v45  ;;  %v5129_v30 = vmul.f32 1.442695, %v4875_v41  ;;  %v5131_v19 = vmul.f32 1.442695, %v4876_v49  ;;  %v5434_v24 = vmul.f32 %v11725_v6, %v14046_v47  ;;  %v17809_v49 = vld [vmem:[#allocation87_spill] sm:$0xff] }
 0x803   : > { %v5551_v9 = vpack.c.bf16 %v5459_v44, %v5457_v57  ;;  %11736 = vrcp.f32 %v5249_v14  ;;  %v5252_v11 = vpop.xlane.xlu0 %5251  ;;  %v5552_v54 = vpack.c.bf16 %v5460_v52, %v5458_v58  ;;  %v5436_v4 = vmul.f32 %v11727_v0, %v14076_v36  ;;  %v11729_v3 = vpop.eup %11728  ;;  %v17810_v44 = vld [vmem:[#allocation68_spill] sm:$0xff] }
 0x804   : > { %11738 = vpow2.f32 %v5129_v30  ;;  %v5207_v12 = vpop.xlane.xlu1 %5206  ;;  %v5433_v25 = vmul.f32 %v11725_v6, %v17808_v18  ;;  %v5435_v21 = vmul.f32 %v11727_v0, %v14052_v17  ;;  %v5462_v36 = vmul.f32 %v11729_v3, %v14096_v37 }
 0x805   : > { %11740 = vpow2.f32 %v5131_v19  ;;  %5814 = vmatprep.mubr.bf16.mxu1 %v5552_v54  ;;  %v5540_v45 = vpack.c.bf16 %v5436_v4, %v5434_v24  ;;  %v5461_v6 = vmul.f32 %v11729_v3, %v17810_v44  ;;  %v17811_v54 = vld [vmem:[#allocation70_spill] sm:$0xff] }
 0x806   : > { %v11731_v27 = vpop.eup %11730  ;;  %11742 = vrcp.f32 %v5252_v11  ;;  %5815 = vmatmul.mubr.bf16.gmra.mrb[48].mxu1 %v5551_v9  ;;  %v5539_v47 = vpack.c.bf16 %v5435_v21, %v5433_v25  ;;  %v17813_v25 = vld [vmem:[#allocation89_spill] sm:$0xff] }
 0x807   : > { %v5463_v57 = vmul.f32 %v11731_v27, %v14106_v29  ;;  %11744 = vrcp.f32 %v5207_v12  ;;  %v5210_v41 = vpop.xlane.xlu0 %5209  ;;  %5733 = vmatprep.mubr.bf16.mxu0 %v5540_v45  ;;  %v5464_v14 = vmul.f32 %v11731_v27, %v17809_v49  ;;  %v17812_v12 = vld [vmem:[#allocation73_spill] sm:$0xff]  ;;  %v17814_v45 = vld [vmem:[#allocation72_spill] sm:$0xff] }
 0x808   : > { %11746 = vrcp.f32 %v5210_v41  ;;  %5734 = vmatmul.mubr.bf16.gmra.mrb[192].mxu0 %v5539_v47 }
 0x809   : > { %v5554_v17 = vpack.c.bf16 %v5464_v14, %v5462_v36  ;;  %v5553_v22 = vpack.c.bf16 %v5463_v57, %v5461_v6  ;;  %v17815_v57 = vld [vmem:[#allocation86_spill] sm:$0xff]  ;;  %v17816_v36 = vld [vmem:[#allocation85_spill] sm:$0xff] }
 0x80b   : > { %v14426_v58 = vpop.eup %11732  ;;  %5822 = vmatprep.mubr.bf16.mxu1 %v5554_v17  ;;  %v17817_v17 = vld [vmem:[#allocation88_spill] sm:$0xff] }
 0x80c   : > { %v14428_v31 = vpop.eup %11734  ;;  %v5255_v52 = vpop.xlane.xlu1 %5254 }
 0x80d   : > { %v11737_v29 = vpop.eup %11736  ;;  %v5319_v0 = vadd.f32 %v14428_v31, %v14426_v58  ;;  %11748 = vrcp.f32 %v5255_v52  ;;  %v17818_v52 = vld [vmem:[#allocation67_spill] sm:$0xff] }
 0x80e   : > { %v14432_v30 = vpop.eup %11738  ;;  %5823 = vmatmul.mubr.bf16.gmra.mrb[52].mxu1 %v5553_v22  ;;  %v5465_v4 = vmul.f32 %v11737_v29, %v17811_v54  ;;  %v5466_v21 = vmul.f32 %v11737_v29, %v17813_v25 }
 0x80f   : > { %v14434_v37 = vpop.eup %11740  ;;  %v5258_v3 = vpop.xlane.xlu0 %5257  ;;  %5320 = vadd.xlane.f32.xlu1 %v5319_v0 }
 0x810   : > { %v11743_v19 = vpop.eup %11742  ;;  %11750 = vrcp.f32 %v5258_v3  ;;  %v5213_v24 = vpop.xlane.xlu1 %5212  ;;  %v5322_v9 = vadd.f32 %v14434_v37, %v14432_v30 }
 0x811   : > { %v11745_v11 = vpop.eup %11744  ;;  %v5467_v18 = vmul.f32 %v11743_v19, %v17812_v12  ;;  %v5468_v27 = vmul.f32 %v11743_v19, %v17814_v45  ;;  %11752 = vrcp.f32 %v5213_v24 }
 0x812   : > { %v11747_v47 = vpop.eup %11746  ;;  %5323 = vadd.xlane.f32.xlu0 %v5322_v9  ;;  %v5438_v41 = vmul.f32 %v11745_v11, %v17815_v57  ;;  %v5437_v49 = vmul.f32 %v11745_v11, %v17816_v36 }
 0x813   : > { %v5555_v14 = vpack.c.bf16 %v5467_v18, %v5465_v4  ;;  %v5216_v44 = vpop.xlane.xlu0 %5215  ;;  %v5556_v6 = vpack.c.bf16 %v5468_v27, %v5466_v21  ;;  %v5440_v22 = vmul.f32 %v11747_v47, %v17817_v17  ;;  %v5439_v0 = vmul.f32 %v11747_v47, %v17818_v52 }
 0x814   : > { %11754 = vrcp.f32 %v5216_v44 }
 0x815   : > { %v5261_v3 = vpop.xlane.xlu1 %5260  ;;  %5830 = vmatprep.mubr.bf16.mxu1 %v5556_v6  ;;  %v5542_v29 = vpack.c.bf16 %v5440_v22, %v5438_v41  ;;  %v5541_v54 = vpack.c.bf16 %v5439_v0, %v5437_v49 }
 0x816   : > { %5831 = vmatmul.mubr.bf16.gmra.mrb[56].mxu1 %v5555_v14  ;;  %11756 = vrcp.f32 %v5261_v3 }
 0x817   : > { %5741 = vmatprep.mubr.bf16.mxu0 %v5542_v29  ;;  %v11749_v19 = vpop.eup %11748 }
 0x818   : > { %5742 = vmatmul.mubr.bf16.gmra.mrb[196].mxu0 %v5541_v54  ;;  %v5469_v4 = vmul.f32 %v11749_v19, %v14168_v7  ;;  %v5470_v18 = vmul.f32 %v11749_v19, %v14170_v42  ;;  %v17819_v7 = vld [vmem:[#allocation66_spill] sm:$0xff] }
 0x819   : > { %v5219_v24 = vpop.xlane.xlu1 %5218  ;;  %v5264_v9 = vpop.xlane.xlu0 %5263 }
 0x81a   : > { %v11751_v11 = vpop.eup %11750  ;;  %11758 = vrcp.f32 %v5264_v9 }
 0x81b   : > { %v5471_v12 = vmul.f32 %v11751_v11, %v14178_v39  ;;  %v5472_v25 = vmul.f32 %v11751_v11, %v14182_v56  ;;  %v11753_v21 = vpop.eup %11752  ;;  %11760 = vrcp.f32 %v5219_v24 }
 0x81c   : > { %v5442_v36 = vmul.f32 %v11753_v21, %v14140_v34  ;;  %v5441_v14 = vmul.f32 %v11753_v21, %v17819_v7 }
 0x81d   : > { %v5267_v45 = vpop.xlane.xlu1 %5266  ;;  %v5557_v27 = vpack.c.bf16 %v5471_v12, %v5469_v4  ;;  %v5558_v57 = vpack.c.bf16 %v5472_v25, %v5470_v18  ;;  %v17820_v4 = vld [vmem:[#allocation90_spill] sm:$0xff] }
 0x81e   : > { %v5222_v47 = vpop.xlane.xlu0 %5221  ;;  %v11755_v41 = vpop.eup %11754 }
 0x81f   : > { %11762 = vrcp.f32 %v5222_v47  ;;  %5838 = vmatprep.mubr.bf16.mxu1 %v5558_v57  ;;  %v5444_v49 = vmul.f32 %v11755_v41, %v14153_v38  ;;  %v5443_v39 = vmul.f32 %v11755_v41, %v14144_v61 }
 0x820   : > { %11764 = vrcp.f32 %v5267_v45  ;;  %5839 = vmatmul.mubr.bf16.gmra.mrb[60].mxu1 %v5557_v27  ;;  %v11757_v17 = vpop.eup %11756 }
 0x821   : > { %v5225_v42 = vpop.xlane.xlu1 %5224  ;;  %v5544_v44 = vpack.c.bf16 %v5444_v49, %v5442_v36  ;;  %v5543_v6 = vpack.c.bf16 %v5443_v39, %v5441_v14  ;;  %v5473_v34 = vmul.f32 %v11757_v17, %v14196_v5  ;;  %v5474_v61 = vmul.f32 %v11757_v17, %v14198_v60  ;;  %v17821_v49 = vld [vmem:[#allocation75_spill] sm:$0xff] }
 0x822   : > { %v5270_v56 = vpop.xlane.xlu0 %5269 }
 0x823   : > { %11766 = vrcp.f32 %v5270_v56  ;;  %5749 = vmatprep.mubr.bf16.mxu0 %v5544_v44 }
 0x824   : > { %11768 = vrcp.f32 %v5225_v42  ;;  %v11759_v22 = vpop.eup %11758  ;;  %5750 = vmatmul.mubr.bf16.gmra.mrb[200].mxu0 %v5543_v6 }
 0x825   : > { %v5475_v38 = vmul.f32 %v11759_v22, %v14208_v48  ;;  %v5273_v52 = vpop.xlane.xlu1 %5272  ;;  %v5476_v3 = vmul.f32 %v11759_v22, %v14210_v62  ;;  %v11761_v29 = vpop.eup %11760  ;;  %v17823_v22 = vld [vmem:[#allocation74_spill] sm:$0xff] }
 0x826   : > { %v5228_v0 = vpop.xlane.xlu0 %5227  ;;  %v5446_v11 = vmul.f32 %v11761_v29, %v14162_v35  ;;  %v5445_v48 = vmul.f32 %v11761_v29, %v17820_v4  ;;  %v17825_v29 = vld [vmem:[#allocation77_spill] sm:$0xff] }
 0x827   : > { %11770 = vrcp.f32 %v5228_v0  ;;  %v5559_v54 = vpack.c.bf16 %v5475_v38, %v5473_v34  ;;  %v5560_v19 = vpack.c.bf16 %v5476_v3, %v5474_v61  ;;  %v17824_v38 = vld [vmem:[#allocation76_spill] sm:$0xff] }
 0x828   : > { %11772 = vrcp.f32 %v5273_v52 }
 0x829   : > { %v11763_v24 = vpop.eup %11762  ;;  %5846 = vmatprep.mubr.bf16.mxu1 %v5560_v19 }
 0x82a   : > { %v5276_v9 = vpop.xlane.xlu0 %5275  ;;  %v5448_v5 = vmul.f32 %v11763_v24, %v14192_v43  ;;  %v5447_v12 = vmul.f32 %v11763_v24, %v14166_v10  ;;  %v11765_v18 = vpop.eup %11764  ;;  %5847 = vmatmul.mubr.bf16.gmra.mrb[64].mxu1 %v5559_v54  ;;  %v17827_v24 = vld [vmem:[#allocation78_spill] sm:$0xff] }
 0x82b   : > { %11774 = vrcp.f32 %v5276_v9  ;;  %v5477_v27 = vmul.f32 %v11765_v18, %v14224_v63  ;;  %v5478_v35 = vmul.f32 %v11765_v18, %v14226_v15  ;;  %v17822_v63 = vld [vmem:[#allocation91_spill] sm:$0xff] }
 0x82c   : > { %v5546_v60 = vpack.c.bf16 %v5448_v5, %v5446_v11  ;;  %v5545_v62 = vpack.c.bf16 %v5447_v12, %v5445_v48  ;;  %v17828_v11 = vld [vmem:[#allocation93_spill] sm:$0xff] }
 0x82d   : > { %v11767_v25 = vpop.eup %11766  ;;  %v5279_v21 = vpop.xlane.xlu1 %5278 }
 0x82e   : > { %v11769_v45 = vpop.eup %11768  ;;  %v5479_v47 = vmul.f32 %v11767_v25, %v14236_v2  ;;  %5757 = vmatprep.mubr.bf16.mxu0 %v5546_v60  ;;  %v5480_v43 = vmul.f32 %v11767_v25, %v14238_v50  ;;  %11776 = vrcp.f32 %v5279_v21  ;;  %v17830_v21 = vld [vmem:[#allocation80_spill] sm:$0xff] }
 0x82f   : > { %5758 = vmatmul.mubr.bf16.gmra.mrb[204].mxu0 %v5545_v62  ;;  %v5450_v7 = vmul.f32 %v11769_v45, %v17821_v49  ;;  %v5449_v39 = vmul.f32 %v11769_v45, %v17822_v63  ;;  %v17829_v62 = vld [vmem:[#allocation94_spill] sm:$0xff] }
 0x830   : > { %v5561_v57 = vpack.c.bf16 %v5479_v47, %v5477_v27  ;;  %v5562_v10 = vpack.c.bf16 %v5480_v43, %v5478_v35  ;;  %v5282_v36 = vpop.xlane.xlu0 %5281  ;;  %v17831_v47 = vld [vmem:[#allocation95_spill] sm:$0xff]  ;;  %v17832_v43 = vld [vmem:[#allocation92_spill] sm:$0xff] }
 0x831   : > { %v11771_v41 = vpop.eup %11770  ;;  %11778 = vrcp.f32 %v5282_v36 }
 0x832   : > { %5854 = vmatprep.mubr.bf16.mxu1 %v5562_v10  ;;  %v5452_v14 = vmul.f32 %v11771_v41, %v14247_v32  ;;  %v5451_v2 = vmul.f32 %v11771_v41, %v14232_v28  ;;  %v11773_v42 = vpop.eup %11772 }
 0x833   : > { %5855 = vmatmul.mubr.bf16.gmra.mrb[68].mxu1 %v5561_v57  ;;  %v5481_v6 = vmul.f32 %v11773_v42, %v14252_v59  ;;  %v5482_v34 = vmul.f32 %v11773_v42, %v17823_v22  ;;  %v17826_v59 = vld [vmem:[#allocation79_spill] sm:$0xff] }
 0x834   : > { %v5548_v15 = vpack.c.bf16 %v5452_v14, %v5450_v7  ;;  %v5547_v50 = vpack.c.bf16 %v5451_v2, %v5449_v39  ;;  %v17833_v14 = vld [vmem:[#allocation81_spill] sm:$0xff]  ;;  %v17834_v39 = vld [vmem:[#allocation82_spill] sm:$0xff] }
 0x835   : > { %v11775_v56 = vpop.eup %11774  ;;  %v5285_v44 = vpop.xlane.xlu1 %5284 }
 0x836   : > { %v5483_v17 = vmul.f32 %v11775_v56, %v14262_v23  ;;  %5765 = vmatprep.mubr.bf16.mxu0 %v5548_v15  ;;  %v5484_v52 = vmul.f32 %v11775_v56, %v17824_v38  ;;  %11780 = vrcp.f32 %v5285_v44  ;;  %v17835_v15 = vld [vmem:[#allocation102_spill] sm:$0xff]  ;;  %v17836_v56 = vld [vmem:[#allocation97_spill] sm:$0xff] }
 0x837   : > { %5766 = vmatmul.mubr.bf16.gmra.mrb[208].mxu0 %v5547_v50 }
 0x838   : > { %v5563_v32 = vpack.c.bf16 %v5483_v17, %v5481_v6  ;;  %v5564_v0 = vpack.c.bf16 %v5484_v52, %v5482_v34  ;;  %v5288_v28 = vpop.xlane.xlu0 %5287  ;;  %v11777_v61 = vpop.eup %11776 }
 0x839   : > { %11782 = vrcp.f32 %v5288_v28  ;;  %v5485_v54 = vmul.f32 %v11777_v61, %v17825_v29  ;;  %v5486_v9 = vmul.f32 %v11777_v61, %v17827_v24 }
 0x83a   : > { %5862 = vmatprep.mubr.bf16.mxu1 %v5564_v0 }
 0x83b   : > { %5863 = vmatmul.mubr.bf16.gmra.mrb[72].mxu1 %v5563_v32  ;;  %v11779_v3 = vpop.eup %11778 }
 0x83c   : > { %v5487_v19 = vmul.f32 %v11779_v3, %v17826_v59  ;;  %v5488_v5 = vmul.f32 %v11779_v3, %v17828_v11 }
 0x83d   : > { %v5291_v23 = vpop.xlane.xlu1 %5290 }
 0x83e   : > { %v5565_v4 = vpack.c.bf16 %v5487_v19, %v5485_v54  ;;  %v5566_v48 = vpack.c.bf16 %v5488_v5, %v5486_v9  ;;  %11784 = vrcp.f32 %v5291_v23  ;;  %v17837_v19 = vld [vmem:[#allocation99_spill] sm:$0xff] }
 0x840   : > { %v5294_v12 = vpop.xlane.xlu0 %5293  ;;  %5870 = vmatprep.mubr.bf16.mxu1 %v5566_v48  ;;  %v11781_v18 = vpop.eup %11780 }
 0x841   : > { %11786 = vrcp.f32 %v5294_v12  ;;  %v5489_v25 = vmul.f32 %v11781_v18, %v17829_v62  ;;  %v5490_v35 = vmul.f32 %v11781_v18, %v17831_v47 }
 0x843   : > { %5871 = vmatmul.mubr.bf16.gmra.mrb[76].mxu1 %v5565_v4  ;;  %v11783_v60 = vpop.eup %11782 }
 0x844   : > { %v5491_v45 = vmul.f32 %v11783_v60, %v17830_v21  ;;  %v5492_v57 = vmul.f32 %v11783_v60, %v17832_v43 }
 0x845   : > { %v5297_v27 = vpop.xlane.xlu1 %5296 }
 0x846   : > { %v5567_v10 = vpack.c.bf16 %v5491_v45, %v5489_v25  ;;  %v5568_v41 = vpack.c.bf16 %v5492_v57, %v5490_v35  ;;  %11788 = vrcp.f32 %v5297_v27 }
 0x848   : > { %v5300_v36 = vpop.xlane.xlu0 %5299  ;;  %5878 = vmatprep.mubr.bf16.mxu1 %v5568_v41  ;;  %v11785_v49 = vpop.eup %11784 }
 0x849   : > { %11790 = vrcp.f32 %v5300_v36  ;;  %v5493_v63 = vmul.f32 %v11785_v49, %v17833_v14  ;;  %v5494_v50 = vmul.f32 %v11785_v49, %v17835_v15  ;;  %v17838_v36 = vld [vmem:[#allocation96_spill] sm:$0xff]  ;;  %v17839_v14 = vld [vmem:[#allocation98_spill] sm:$0xff] }
 0x84b   : > { %5879 = vmatmul.mubr.bf16.gmra.mrb[80].mxu1 %v5567_v10  ;;  %v11787_v7 = vpop.eup %11786 }
 0x84c   : > { %v5495_v2 = vmul.f32 %v11787_v7, %v17834_v39  ;;  %v5496_v44 = vmul.f32 %v11787_v7, %v17836_v56 }
 0x84d   : > { %v5303_v42 = vpop.xlane.xlu1 %5302 }
 0x84e   : > { %v5569_v6 = vpack.c.bf16 %v5495_v2, %v5493_v63  ;;  %v5570_v17 = vpack.c.bf16 %v5496_v44, %v5494_v50  ;;  %11792 = vrcp.f32 %v5303_v42 }
 0x84f   : > { %v10035_v22 = vpop.f32.mrb[148].mxu0 }
 0x850   : > { %v5306_v34 = vpop.xlane.xlu0 %5305  ;;  %v10036_v38 = vpop.f32.mrb[149].mxu0  ;;  %5886 = vmatprep.mubr.bf16.mxu1 %v5570_v17 }
 0x851   : > { %v11789_v52 = vpop.eup %11788  ;;  %11794 = vrcp.f32 %v5306_v34  ;;  %v10037_v32 = vadd.f32 %v10036_v38, %v10035_v22  ;;  %v10038_v0 = vpop.f32.mrb[150].mxu0 }
 0x852   : > { %v10039_v28 = vpop.f32.mrb[151].mxu0  ;;  %v5497_v29 = vmul.f32 %v11789_v52, %v14334_v51  ;;  %v5498_v23 = vmul.f32 %v11789_v52, %v17837_v19 }
 0x853   : > { %5887 = vmatmul.mubr.bf16.gmra.mrb[84].mxu1 %v5569_v6  ;;  %v11791_v61 = vpop.eup %11790  ;;  %v10040_v3 = vadd.f32 %v10039_v28, %v10038_v0 }
 0x854   : > { %v5499_v54 = vmul.f32 %v11791_v61, %v14342_v40  ;;  %v5500_v24 = vmul.f32 %v11791_v61, %v14344_v8 }
 0x855   : > { %v5309_v59 = vpop.xlane.xlu1 %5308  ;;  %v5935_v9 = vpack.c.bf16 %v10040_v3, %v10037_v32 }
 0x856   : > { %v5571_v11 = vpack.c.bf16 %v5499_v54, %v5497_v29  ;;  %11796 = vrcp.f32 %v5309_v59  ;;  %v5572_v5 = vpack.c.bf16 %v5500_v24, %v5498_v23 }
 0x857   : > { %10615 = vmatprep.mubr.msk.bf16.mxu0 %vm3930_vm1, %v5935_v9 }
 0x858   : > { %v5312_v4 = vpop.xlane.xlu0 %5311  ;;  %5894 = vmatprep.mubr.bf16.mxu1 %v5572_v5  ;;  %v11793_v48 = vpop.eup %11792 }
 0x859   : > { %11798 = vrcp.f32 %v5312_v4  ;;  %v5501_v62 = vmul.f32 %v11793_v48, %v14354_v33  ;;  %v5502_v21 = vmul.f32 %v11793_v48, %v14356_v55 }
 0x85a   : > { %v10041_v12 = vpop.f32.mrb[152].mxu0 }
 0x85b   : > { %5895 = vmatmul.mubr.bf16.gmra.mrb[88].mxu1 %v5571_v11  ;;  %v10042_v51 = vpop.f32.mrb[153].mxu0  ;;  %v11795_v18 = vpop.eup %11794 }
 0x85c   : > { %v10043_v40 = vadd.f32 %v10042_v51, %v10041_v12  ;;  %v10044_v60 = vpop.f32.mrb[154].mxu0  ;;  %v5503_v8 = vmul.f32 %v11795_v18, %v14360_v46  ;;  %v5504_v45 = vmul.f32 %v11795_v18, %v14362_v53 }
 0x85d   : > { %v10045_v25 = vpop.f32.mrb[155].mxu0 }
 0x85e   : > { %v10046_v27 = vadd.f32 %v10045_v25, %v10044_v60  ;;  %v5573_v47 = vpack.c.bf16 %v5503_v8, %v5501_v62  ;;  %v5574_v35 = vpack.c.bf16 %v5504_v45, %v5502_v21 }
 0x860   : > { %v5936_v43 = vpack.c.bf16 %v10046_v27, %v10043_v40  ;;  %v11797_v57 = vpop.eup %11796  ;;  %5902 = vmatprep.mubr.bf16.mxu1 %v5574_v35 }
 0x861   : > { %v5505_v33 = vmul.f32 %v11797_v57, %v17838_v36  ;;  %v5506_v53 = vmul.f32 %v11797_v57, %v17839_v14 }
 0x862   : > { %10616 = vmatmul.mubr.msk.bf16.vlgmr.msra.gmra.mrb[212].mxu0 %vm3930_vm1, %v5936_v43 }
 0x863   : > { %v10047_v10 = vpop.f32.mrb[156].mxu0  ;;  %5903 = vmatmul.mubr.bf16.gmra.mrb[92].mxu1 %v5573_v47  ;;  %v11799_v41 = vpop.eup %11798 }
 0x864   : > { %v10048_v49 = vpop.f32.mrb[157].mxu0  ;;  %v5507_v46 = vmul.f32 %v11799_v41, %v14376_v1  ;;  %v5508_v63 = vmul.f32 %v11799_v41, %v14378_v20 }
 0x865   : > { %v10049_v7 = vadd.f32 %v10048_v49, %v10047_v10  ;;  %v10050_v55 = vpop.f32.mrb[158].mxu0 }
 0x866   : > { %v10051_v39 = vpop.f32.mrb[159].mxu0  ;;  %v5575_v2 = vpack.c.bf16 %v5507_v46, %v5505_v33  ;;  %v5576_v15 = vpack.c.bf16 %v5508_v63, %v5506_v53  ;;  %v17840_v53 = vld [vmem:[#allocation101_spill] sm:$0xff] }
 0x867   : > { %v10052_v42 = vadd.f32 %v10051_v39, %v10050_v55 }
 0x868   : > { %5910 = vmatprep.mubr.bf16.mxu1 %v5576_v15 }
 0x869   : > { %v5937_v50 = vpack.c.bf16 %v10052_v42, %v10049_v7 }
 0x86b   : > { %v10053_v56 = vpop.f32.mrb[160].mxu0  ;;  %5911 = vmatmul.mubr.bf16.gmra.mrb[96].mxu1 %v5575_v2  ;;  %10619 = vmatprep.mubr.msk.bf16.mxu0 %vm3930_vm1, %v5937_v50 }
 0x86c   : > { %v10054_v44 = vpop.f32.mrb[161].mxu0 }
 0x86d   : > { %v10055_v6 = vadd.f32 %v10054_v44, %v10053_v56  ;;  %v10056_v17 = vpop.f32.mrb[162].mxu0 }
 0x86e   : > { %v10057_v1 = vpop.f32.mrb[163].mxu0 }
 0x86f   : > { %v10058_v22 = vadd.f32 %v10057_v1, %v10056_v17 }
 0x871   : > { %v5938_v34 = vpack.c.bf16 %v10058_v22, %v10055_v6 }
 0x873   : > { %v10059_v38 = vpop.f32.mrb[164].mxu0  ;;  %10620 = vmatmul.mubr.msk.bf16.gmra.mrb[216].mxu0 %vm3930_vm1, %v5938_v34 }
 0x874   : > { %v10060_v20 = vpop.f32.mrb[165].mxu0 }
 0x875   : > { %v10061_v52 = vadd.f32 %v10060_v20, %v10059_v38  ;;  %v10062_v32 = vpop.f32.mrb[166].mxu0 }
 0x876   : > { %v10063_v0 = vpop.f32.mrb[167].mxu0 }
 0x877   : > { %v10064_v28 = vadd.f32 %v10063_v0, %v10062_v32 }
 0x879   : > { %v5939_v61 = vpack.c.bf16 %v10064_v28, %v10061_v52 }
 0x87b   : > { %v10065_v3 = vpop.f32.mrb[168].mxu0  ;;  %10623 = vmatprep.mubr.msk.bf16.mxu0 %vm3930_vm1, %v5939_v61 }
 0x87c   : > { %v10066_v29 = vpop.f32.mrb[169].mxu0 }
 0x87d   : > { %v10067_v54 = vadd.f32 %v10066_v29, %v10065_v3  ;;  %v10068_v59 = vpop.f32.mrb[170].mxu0 }
 0x87e   : > { %v10069_v19 = vpop.f32.mrb[171].mxu0 }
 0x87f   : > { %v10070_v23 = vadd.f32 %v10069_v19, %v10068_v59 }
 0x881   : > { %v5940_v24 = vpack.c.bf16 %v10070_v23, %v10067_v54 }
 0x883   : > { %v10071_v9 = vpop.f32.mrb[172].mxu0  ;;  %10624 = vmatmul.mubr.msk.bf16.gmra.mrb[220].mxu0 %vm3930_vm1, %v5940_v24 }
 0x884   : > { %v10072_v11 = vpop.f32.mrb[173].mxu0 }
 0x885   : > { %v10073_v5 = vadd.f32 %v10072_v11, %v10071_v9  ;;  %v10074_v4 = vpop.f32.mrb[174].mxu0 }
 0x886   : > { %v10075_v48 = vpop.f32.mrb[175].mxu0 }
 0x887   : > { %v10076_v12 = vadd.f32 %v10075_v48, %v10074_v4 }
 0x889   : > { %v5941_v51 = vpack.c.bf16 %v10076_v12, %v10073_v5 }
 0x88b   : > { %v10077_v18 = vpop.f32.mrb[176].mxu0  ;;  %10627 = vmatprep.mubr.msk.bf16.mxu0 %vm3930_vm1, %v5941_v51 }
 0x88c   : > { %v10078_v40 = vpop.f32.mrb[177].mxu0  ;;  %v5315_v8 = vpop.xlane.xlu1 %5314 }
 0x88d   : > { %v10079_v60 = vadd.f32 %v10078_v40, %v10077_v18  ;;  %v10080_v62 = vpop.f32.mrb[178].mxu0  ;;  %11800 = vrcp.f32 %v5315_v8 }
 0x88e   : > { %v10081_v25 = vpop.f32.mrb[179].mxu0  ;;  %v5318_v45 = vpop.xlane.xlu0 %5317 }
 0x88f   : > { %v10082_v21 = vadd.f32 %v10081_v25, %v10080_v62  ;;  %11802 = vrcp.f32 %v5318_v45 }
 0x891   : > { %v5942_v27 = vpack.c.bf16 %v10082_v21, %v10079_v60 }
 0x893   : > { %v10083_v47 = vpop.f32.mrb[180].mxu0  ;;  %10628 = vmatmul.mubr.msk.bf16.gmra.mrb[224].mxu0 %vm3930_vm1, %v5942_v27 }
 0x894   : > { %v10084_v35 = vpop.f32.mrb[181].mxu0 }
 0x895   : > { %v10085_v43 = vadd.f32 %v10084_v35, %v10083_v47  ;;  %v10086_v57 = vpop.f32.mrb[182].mxu0 }
 0x896   : > { %v10087_v10 = vpop.f32.mrb[183].mxu0 }
 0x897   : > { %v10088_v41 = vadd.f32 %v10087_v10, %v10086_v57  ;;  %v11801_v36 = vpop.eup %11800 }
 0x898   : > { %v5509_v46 = vmul.f32 %v11801_v36, %v14398_v16  ;;  %v5510_v14 = vmul.f32 %v11801_v36, %v14400_v26 }
 0x899   : > { %v5943_v33 = vpack.c.bf16 %v10088_v41, %v10085_v43  ;;  %v11803_v49 = vpop.eup %11802 }
 0x89a   : > { %v5511_v7 = vmul.f32 %v11803_v49, %v14402_v13  ;;  %v5512_v63 = vmul.f32 %v11803_v49, %v17840_v53 }
 0x89b   : > { %v10089_v55 = vpop.f32.mrb[184].mxu0  ;;  %10631 = vmatprep.mubr.msk.bf16.mxu0 %vm3930_vm1, %v5943_v33 }
 0x89c   : > { %v10090_v39 = vpop.f32.mrb[185].mxu0  ;;  %v5577_v2 = vpack.c.bf16 %v5511_v7, %v5509_v46  ;;  %v5321_v50 = vpop.xlane.xlu1 %5320  ;;  %v5578_v56 = vpack.c.bf16 %v5512_v63, %v5510_v14 }
 0x89d   : > { %v10091_v42 = vadd.f32 %v10090_v39, %v10089_v55  ;;  %v10092_v15 = vpop.f32.mrb[186].mxu0  ;;  %11804 = vrcp.f32 %v5321_v50 }
 0x89e   : > { %v10093_v44 = vpop.f32.mrb[187].mxu0  ;;  %5918 = vmatprep.mubr.bf16.mxu1 %v5578_v56 }
 0x89f   : > { %v10094_v6 = vadd.f32 %v10093_v44, %v10092_v15  ;;  %v5324_v16 = vpop.xlane.xlu0 %5323  ;;  %5919 = vmatmul.mubr.bf16.gmra.mrb[100].mxu1 %v5577_v2 }
 0x8a0   : > { %11806 = vrcp.f32 %v5324_v16 }
 0x8a1   : > { %v5944_v13 = vpack.c.bf16 %v10094_v6, %v10091_v42 }
 0x8a3   : > { %v10095_v17 = vpop.f32.mrb[188].mxu0  ;;  %10632 = vmatmul.mubr.msk.bf16.gmra.mrb[228].mxu0 %vm3930_vm1, %v5944_v13 }
 0x8a4   : > { %v10096_v26 = vpop.f32.mrb[189].mxu0 }
 0x8a5   : > { %v10097_v1 = vadd.f32 %v10096_v26, %v10095_v17  ;;  %v10098_v22 = vpop.f32.mrb[190].mxu0 }
 0x8a6   : > { %v10099_v34 = vpop.f32.mrb[191].mxu0 }
 0x8a7   : > { %v10100_v38 = vadd.f32 %v10099_v34, %v10098_v22  ;;  %v11805_v20 = vpop.eup %11804 }
 0x8a8   : > { %v5513_v0 = vmul.f32 %v11805_v20, %v14426_v58  ;;  %v5514_v61 = vmul.f32 %v11805_v20, %v14428_v31 }
 0x8a9   : > { %v5945_v52 = vpack.c.bf16 %v10100_v38, %v10097_v1 }
 0x8aa   : > { %v11807_v32 = vpop.eup %11806 }
 0x8ab   : > { %10635 = vmatprep.mubr.msk.bf16.mxu0 %vm3930_vm1, %v5945_v52  ;;  %v5515_v28 = vmul.f32 %v11807_v32, %v14432_v30  ;;  %v5516_v3 = vmul.f32 %v11807_v32, %v14434_v37 }
 0x8ad   : > { %v5579_v29 = vpack.c.bf16 %v5515_v28, %v5513_v0  ;;  %v5580_v54 = vpack.c.bf16 %v5516_v3, %v5514_v61 }
 0x8af   : > { %5926 = vmatprep.mubr.bf16.mxu1 %v5580_v54 }
 0x8b0   : > { %5927 = vmatmul.mubr.bf16.gmra.mrb[104].mxu1 %v5579_v29 }
 0x8ce   : > { %v10147_v59 = vpop.f32.mrb[44].mxu1 }
 0x8cf   : > { %v10148_v19 = vpop.f32.mrb[45].mxu1 }
 0x8d0   : > { %v14517_v23 = vadd.f32 %v10148_v19, %v10147_v59  ;;  %v10150_v24 = vpop.f32.mrb[46].mxu1 }
 0x8d1   : > { %v10151_v9 = vpop.f32.mrb[47].mxu1 }
 0x8d2   : > { %v14519_v11 = vadd.f32 %v10151_v9, %v10150_v24 }
 0x8d4   : > { %v5951_v58 = vpack.c.bf16 %v14519_v11, %v14517_v23 }
 0x8d9   : > { %v10153_v30 = vpop.f32.mrb[48].mxu1 }
 0x8da   : > { %v10154_v5 = vpop.f32.mrb[49].mxu1 }
 0x8db   : > { %v14523_v31 = vadd.f32 %v10154_v5, %v10153_v30  ;;  %v10156_v37 = vpop.f32.mrb[50].mxu1  ;;  %v10101_v4 = vpop.f32.mrb[192].mxu0 }
 0x8dc   : > { %v10157_v48 = vpop.f32.mrb[51].mxu1  ;;  %v10102_v12 = vpop.f32.mrb[193].mxu0 }
 0x8dd   : > { %v14525_v51 = vadd.f32 %v10157_v48, %v10156_v37  ;;  %v10103_v18 = vadd.f32 %v10102_v12, %v10101_v4  ;;  %v10104_v40 = vpop.f32.mrb[194].mxu0 }
 0x8de   : > { %v10105_v60 = vpop.f32.mrb[195].mxu0 }
 0x8df   : > { %v5952_v62 = vpack.c.bf16 %v14525_v51, %v14523_v31  ;;  %v10106_v8 = vadd.f32 %v10105_v60, %v10104_v40 }
 0x8e1   : > { %v5946_v25 = vpack.c.bf16 %v10106_v8, %v10103_v18  ;;  %v10159_v21 = vpop.f32.mrb[52].mxu1 }
 0x8e2   : > { %v10160_v45 = vpop.f32.mrb[53].mxu1 }
 0x8e3   : > { %v14529_v27 = vadd.f32 %v10160_v45, %v10159_v21  ;;  %v10162_v47 = vpop.f32.mrb[54].mxu1  ;;  %10636 = vmatmul.mubr.msk.bf16.gmra.mrb[232].mxu0 %vm3930_vm1, %v5946_v25 }
 0x8e4   : > { %v10163_v35 = vpop.f32.mrb[55].mxu1 }
 0x8e5   : > { %v14532_v43 = vadd.f32 %v10163_v35, %v10162_v47 }
 0x8e7   : > { %v5953_v57 = vpack.c.bf16 %v14532_v43, %v14529_v27 }
 0x8e9   : > { %v10165_v10 = vpop.f32.mrb[56].mxu1 }
 0x8ea   : > { %v10166_v41 = vpop.f32.mrb[57].mxu1 }
 0x8eb   : > { %v14536_v36 = vadd.f32 %v10166_v41, %v10165_v10  ;;  %v10168_v33 = vpop.f32.mrb[58].mxu1  ;;  %v10107_v49 = vpop.f32.mrb[196].mxu0 }
 0x8ec   : > { %v10169_v46 = vpop.f32.mrb[59].mxu1  ;;  %v10108_v7 = vpop.f32.mrb[197].mxu0 }
 0x8ed   : > { %v14538_v55 = vadd.f32 %v10169_v46, %v10168_v33  ;;  %v10109_v14 = vadd.f32 %v10108_v7, %v10107_v49  ;;  %v10110_v53 = vpop.f32.mrb[198].mxu0 }
 0x8ee   : > { %v10111_v63 = vpop.f32.mrb[199].mxu0 }
 0x8ef   : > { %v5954_v39 = vpack.c.bf16 %v14538_v55, %v14536_v36  ;;  %v10112_v2 = vadd.f32 %v10111_v63, %v10110_v53 }
 0x8f1   : > { %v5947_v42 = vpack.c.bf16 %v10112_v2, %v10109_v14 }
 0x8f3   : > { %v10171_v15 = vpop.f32.mrb[60].mxu1  ;;  %10639 = vmatprep.mubr.msk.bf16.mxu0 %vm3930_vm1, %v5947_v42 }
 0x8f4   : > { %v10172_v50 = vpop.f32.mrb[61].mxu1 }
 0x8f5   : > { %v14543_v56 = vadd.f32 %v10172_v50, %v10171_v15  ;;  %v10174_v44 = vpop.f32.mrb[62].mxu1 }
 0x8f6   : > { %v10175_v6 = vpop.f32.mrb[63].mxu1 }
 0x8f7   : > { %v14545_v16 = vadd.f32 %v10175_v6, %v10174_v44  ;;  %v10113_v13 = vpop.f32.mrb[200].mxu0 }
 0x8f8   : > { %v10114_v17 = vpop.f32.mrb[201].mxu0 }
 0x8f9   : > { %v5955_v26 = vpack.c.bf16 %v14545_v16, %v14543_v56  ;;  %v10115_v1 = vadd.f32 %v10114_v17, %v10113_v13  ;;  %v10116_v22 = vpop.f32.mrb[202].mxu0 }
 0x8fa   : > { %v10117_v34 = vpop.f32.mrb[203].mxu0 }
 0x8fb   : > { %v10118_v38 = vadd.f32 %v10117_v34, %v10116_v22 }
 0x8fd   : > { %v5948_v20 = vpack.c.bf16 %v10118_v38, %v10115_v1  ;;  %v10177_v52 = vpop.f32.mrb[64].mxu1 }
 0x8fe   : > { %v10178_v32 = vpop.f32.mrb[65].mxu1 }
 0x8ff   : > { %v10179_v0 = vadd.f32 %v10178_v32, %v10177_v52  ;;  %v10180_v28 = vpop.f32.mrb[66].mxu1  ;;  %10640 = vmatmul.mubr.msk.bf16.gmra.mrb[236].mxu0 %vm3930_vm1, %v5948_v20 }
 0x900   : > { %v10181_v61 = vpop.f32.mrb[67].mxu1 }
 0x901   : > { %v10182_v3 = vadd.f32 %v10181_v61, %v10180_v28 }
 0x902   : > { %v10119_v29 = vpop.f32.mrb[204].mxu0 }
 0x903   : > { %v10120_v54 = vpop.f32.mrb[205].mxu0  ;;  %v5956_v59 = vpack.c.bf16 %v10182_v3, %v10179_v0 }
 0x904   : > { %v10121_v19 = vadd.f32 %v10120_v54, %v10119_v29  ;;  %v10122_v24 = vpop.f32.mrb[206].mxu0 }
 0x905   : > { %v10123_v9 = vpop.f32.mrb[207].mxu0 }
 0x906   : > { %v10124_v30 = vadd.f32 %v10123_v9, %v10122_v24  ;;  %v10183_v5 = vpop.f32.mrb[68].mxu1 }
 0x907   : > { %v10184_v37 = vpop.f32.mrb[69].mxu1 }
 0x908   : > { %v5949_v4 = vpack.c.bf16 %v10124_v30, %v10121_v19  ;;  %v10185_v48 = vadd.f32 %v10184_v37, %v10183_v5  ;;  %v10186_v12 = vpop.f32.mrb[70].mxu1 }
 0x909   : > { %v10187_v18 = vpop.f32.mrb[71].mxu1 }
 0x90a   : > { %v10188_v40 = vadd.f32 %v10187_v18, %v10186_v12  ;;  %v10125_v60 = vpop.f32.mrb[208].mxu0  ;;  %10643 = vmatprep.mubr.msk.bf16.mxu0 %vm3930_vm1, %v5949_v4 }
 0x90b   : > { %v10126_v8 = vpop.f32.mrb[209].mxu0 }
 0x90c   : > { %v5957_v25 = vpack.c.bf16 %v10188_v40, %v10185_v48  ;;  %v10127_v21 = vadd.f32 %v10126_v8, %v10125_v60  ;;  %v10128_v45 = vpop.f32.mrb[210].mxu0 }
 0x90d   : > { %v10129_v47 = vpop.f32.mrb[211].mxu0 }
 0x90e   : > { %v10130_v35 = vadd.f32 %v10129_v47, %v10128_v45  ;;  %v10189_v10 = vpop.f32.mrb[72].mxu1 }
 0x90f   : > { %v10190_v41 = vpop.f32.mrb[73].mxu1 }
 0x910   : > { %v5950_v33 = vpack.c.bf16 %v10130_v35, %v10127_v21  ;;  %v10191_v49 = vadd.f32 %v10190_v41, %v10189_v10  ;;  %v10192_v46 = vpop.f32.mrb[74].mxu1 }
 0x911   : > { %v10193_v7 = vpop.f32.mrb[75].mxu1 }
 0x912   : > { %v10194_v14 = vadd.f32 %v10193_v7, %v10192_v46  ;;  %10644 = vmatmul.mubr.msk.bf16.gmra.mrb[240].mxu0 %vm3930_vm1, %v5950_v33 }
 0x913   : > { %10647 = vmatprep.mubr.msk.bf16.mxu0 %vm3930_vm1, %v5951_v58 }
 0x914   : > { %v5958_v53 = vpack.c.bf16 %v10194_v14, %v10191_v49 }
 0x916   : > { %v10195_v63 = vpop.f32.mrb[76].mxu1 }
 0x917   : > { %v10196_v2 = vpop.f32.mrb[77].mxu1 }
 0x918   : > { %v10197_v42 = vadd.f32 %v10196_v2, %v10195_v63  ;;  %v10198_v15 = vpop.f32.mrb[78].mxu1 }
 0x919   : > { %v10199_v50 = vpop.f32.mrb[79].mxu1 }
 0x91a   : > { %v10200_v56 = vadd.f32 %v10199_v50, %v10198_v15  ;;  %10648 = vmatmul.mubr.msk.bf16.gmra.mrb[244].mxu0 %vm3930_vm1, %v5952_v62 }
 0x91b   : > { %10651 = vmatprep.mubr.msk.bf16.mxu0 %vm3930_vm1, %v5953_v57 }
 0x91c   : > { %v5959_v23 = vpack.c.bf16 %v10200_v56, %v10197_v42  ;;  %v14593_v56 = vld [vmem:[%s797_s30] ss:$0 sm:$0xff] }
 0x91e   : > { %v10201_v11 = vpop.f32.mrb[80].mxu1 }
 0x91f   : > { %v10202_v58 = vpop.f32.mrb[81].mxu1 }
 0x920   : > { %v10203_v44 = vadd.f32 %v10202_v58, %v10201_v11  ;;  %v10204_v6 = vpop.f32.mrb[82].mxu1 }
 0x921   : > { %v10205_v16 = vpop.f32.mrb[83].mxu1 }
 0x922   : > { %v10206_v13 = vadd.f32 %v10205_v16, %v10204_v6  ;;  %10652 = vmatmul.mubr.msk.bf16.gmra.mrb[248].mxu0 %vm3930_vm1, %v5954_v39 }
 0x923   : > { %10655 = vmatprep.mubr.msk.bf16.mxu0 %vm3930_vm1, %v5955_v26 }
 0x924   : > { %v5960_v31 = vpack.c.bf16 %v10206_v13, %v10203_v44 }
 0x926   : > { %v10207_v51 = vpop.f32.mrb[84].mxu1 }
 0x927   : > { %v10208_v62 = vpop.f32.mrb[85].mxu1 }
 0x928   : > { %v10209_v27 = vadd.f32 %v10208_v62, %v10207_v51  ;;  %v10210_v43 = vpop.f32.mrb[86].mxu1 }
 0x929   : > { %v10211_v57 = vpop.f32.mrb[87].mxu1 }
 0x92a   : > { %v10212_v17 = vadd.f32 %v10211_v57, %v10210_v43  ;;  %10656 = vmatmul.mubr.msk.bf16.gmra.mrb[252].mxu0 %vm3930_vm1, %v5956_v59 }
 0x92b   : > { %10659 = vmatprep.mubr.msk.bf16.mxu0 %vm3930_vm1, %v5957_v25 }
 0x92c   : > { %v5961_v1 = vpack.c.bf16 %v10212_v17, %v10209_v27 }
 0x92e   : > { %v10213_v22 = vpop.f32.mrb[88].mxu1 }
 0x92f   : > { %v10214_v34 = vpop.f32.mrb[89].mxu1 }
 0x930   : > { %v10215_v38 = vadd.f32 %v10214_v34, %v10213_v22  ;;  %v10216_v36 = vpop.f32.mrb[90].mxu1 }
 0x931   : > { %v10217_v55 = vpop.f32.mrb[91].mxu1 }
 0x932   : > { %v10218_v39 = vadd.f32 %v10217_v55, %v10216_v36  ;;  %10660 = vmatmul.mubr.msk.bf16.gmra.mrb[0].mxu0 %vm3930_vm1, %v5958_v53 }
 0x933   : > { %10663 = vmatprep.mubr.msk.bf16.mxu0 %vm3930_vm1, %v5959_v23 }
 0x934   : > { %v5962_v26 = vpack.c.bf16 %v10218_v39, %v10215_v38 }
 0x935   : > { %v10617_v20 = vpop.f32.mrb[212].mxu0 }
 0x936   : > { %v10219_v52 = vpop.f32.mrb[92].mxu1  ;;  %v6120_v32 = vpop.f32.mrb[213].mxu0  ;;  %v14604_v27 = vadd.f32 %v10617_v20, %v14593_v56 }
 0x937   : > { %v10220_v0 = vpop.f32.mrb[93].mxu1  ;;  %v10618_v28 = vpop.f32.mrb[214].mxu0  ;;  %v14599_v16 = vadd.f32 %v14593_v56, %v6120_v32 }
 0x938   : > { %v10221_v61 = vadd.f32 %v10220_v0, %v10219_v52  ;;  %v10222_v3 = vpop.f32.mrb[94].mxu1  ;;  %v6123_v29 = vpop.f32.mrb[215].mxu0  ;;  %v6378_v17 = vsel %vm2102_vm0, %v14604_v27, 0.0 }
 0x939   : > { %v10223_v54 = vpop.f32.mrb[95].mxu1  ;;  %v14596_v11 = vadd.f32 %v14593_v56, %v6123_v29  ;;  %v6375_v43 = vsel %vm2102_vm0, %v14599_v16, 0.0 }
 0x93a   : > { %v10224_v59 = vadd.f32 %v10223_v54, %v10222_v3  ;;  %10664 = vmatmul.mubr.msk.bf16.gmra.mrb[4].mxu0 %vm3930_vm1, %v5960_v31 }
 0x93b   : > { %10667 = vmatprep.mubr.msk.bf16.mxu0 %vm3930_vm1, %v5961_v1  ;;  %v6376_v51 = vsel %vm2102_vm0, %v14596_v11, 0.0  ;;  %v14612_v1 = vadd.f32 %v10618_v28, %v14593_v56 }
 0x93c   : > { %v5963_v19 = vpack.c.bf16 %v10224_v59, %v10221_v61  ;;  %v6377_v57 = vadd.f32 %v6376_v51, %v6375_v43 }
 0x93d   : > { %v6380_v38 = vsel %vm2102_vm0, %v14612_v1, 0.0 }
 0x93e   : > { %v10225_v24 = vpop.f32.mrb[96].mxu1  ;;  %v6379_v34 = vadd.f32 %v6378_v17, %v6377_v57 }
 0x93f   : > { %v10226_v9 = vpop.f32.mrb[97].mxu1 }
 0x940   : > { %v10227_v30 = vadd.f32 %v10226_v9, %v10225_v24  ;;  %v10228_v5 = vpop.f32.mrb[98].mxu1  ;;  %v6381_v39 = vadd.f32 %v6380_v38, %v6379_v34 }
 0x941   : > { %v10229_v37 = vpop.f32.mrb[99].mxu1 }
 0x942   : > { %v10230_v4 = vadd.f32 %v10229_v37, %v10228_v5  ;;  %10668 = vmatmul.mubr.msk.bf16.gmra.mrb[8].mxu0 %vm3930_vm1, %v5962_v26 }
 0x943   : > { %10671 = vmatprep.mubr.msk.bf16.mxu0 %vm3930_vm1, %v5963_v19 }
 0x944   : > { %v5964_v48 = vpack.c.bf16 %v10230_v4, %v10227_v30 }
 0x946   : > { %v10621_v12 = vpop.f32.mrb[216].mxu0 }
 0x947   : > { %v6136_v18 = vpop.f32.mrb[217].mxu0  ;;  %v14627_v52 = vadd.f32 %v10621_v12, %v14593_v56 }
 0x948   : > { %v10622_v40 = vpop.f32.mrb[218].mxu0  ;;  %v14615_v22 = vadd.f32 %v14593_v56, %v6136_v18 }
 0x949   : > { %v6139_v60 = vpop.f32.mrb[219].mxu0  ;;  %v6386_v0 = vsel %vm2102_vm0, %v14627_v52, 0.0  ;;  %v14632_v28 = vadd.f32 %v10622_v40, %v14593_v56 }
 0x94a   : > { %10672 = vmatmul.mubr.msk.bf16.gmra.mrb[12].mxu0 %vm3930_vm1, %v5964_v48  ;;  %v6382_v36 = vsel %vm2102_vm0, %v14615_v22, 0.0  ;;  %v14622_v55 = vadd.f32 %v14593_v56, %v6139_v60 }
 0x94b   : > { %v6383_v26 = vadd.f32 %v6382_v36, %v6381_v39  ;;  %v6388_v29 = vsel %vm2102_vm0, %v14632_v28, 0.0 }
 0x94c   : > { %v6384_v20 = vsel %vm2102_vm0, %v14622_v55, 0.0 }
 0x94d   : > { %v6385_v32 = vadd.f32 %v6384_v20, %v6383_v26 }
 0x94f   : > { %v6387_v3 = vadd.f32 %v6386_v0, %v6385_v32 }
 0x951   : > { %v6389_v19 = vadd.f32 %v6388_v29, %v6387_v3 }
 0x956   : > { %v10625_v8 = vpop.f32.mrb[220].mxu0 }
 0x957   : > { %v6152_v25 = vpop.f32.mrb[221].mxu0  ;;  %v14647_v30 = vadd.f32 %v10625_v8, %v14593_v56 }
 0x958   : > { %v10626_v21 = vpop.f32.mrb[222].mxu0  ;;  %v14635_v61 = vadd.f32 %v14593_v56, %v6152_v25 }
 0x959   : > { %v6155_v45 = vpop.f32.mrb[223].mxu0  ;;  %v6394_v37 = vsel %vm2102_vm0, %v14647_v30, 0.0  ;;  %v14652_v4 = vadd.f32 %v10626_v21, %v14593_v56 }
 0x95a   : > { %v6390_v54 = vsel %vm2102_vm0, %v14635_v61, 0.0  ;;  %v14642_v59 = vadd.f32 %v14593_v56, %v6155_v45 }
 0x95b   : > { %v6391_v24 = vadd.f32 %v6390_v54, %v6389_v19  ;;  %v6396_v18 = vsel %vm2102_vm0, %v14652_v4, 0.0 }
 0x95c   : > { %v6392_v9 = vsel %vm2102_vm0, %v14642_v59, 0.0 }
 0x95d   : > { %v6393_v5 = vadd.f32 %v6392_v9, %v6391_v24 }
 0x95f   : > { %v6395_v12 = vadd.f32 %v6394_v37, %v6393_v5 }
 0x961   : > { %v6397_v8 = vadd.f32 %v6396_v18, %v6395_v12 }
 0x966   : > { %v14578_v47 = vpop.f32.mrb[224].mxu0 }
 0x967   : > { %v6168_v35 = vpop.f32.mrb[225].mxu0  ;;  %v14668_v21 = vadd.f32 %v14578_v47, %v14593_v56 }
 0x968   : > { %v14580_v10 = vpop.f32.mrb[226].mxu0  ;;  %v14655_v48 = vadd.f32 %v14593_v56, %v6168_v35 }
 0x969   : > { %v6171_v41 = vpop.f32.mrb[227].mxu0 }
 0x96a   : > { %v6398_v40 = vsel %vm2102_vm0, %v14655_v48, 0.0  ;;  %v14662_v60 = vadd.f32 %v14593_v56, %v6171_v41 }
 0x96b   : > { %v6399_v25 = vadd.f32 %v6398_v40, %v6397_v8 }
 0x96c   : > { %v6400_v45 = vsel %vm2102_vm0, %v14662_v60, 0.0 }
 0x96d   : > { %v6401_v35 = vadd.f32 %v6400_v45, %v6399_v25 }
 0x972   : > { %v10231_v33 = vpop.f32.mrb[100].mxu1 }
 0x973   : > { %v10232_v49 = vpop.f32.mrb[101].mxu1 }
 0x974   : > { %v10233_v46 = vadd.f32 %v10232_v49, %v10231_v33  ;;  %v10234_v7 = vpop.f32.mrb[102].mxu1 }
 0x975   : > { %v10235_v53 = vpop.f32.mrb[103].mxu1 }
 0x976   : > { %v14582_v14 = vpop.f32.mrb[228].mxu0  ;;  %v10236_v63 = vadd.f32 %v10235_v53, %v10234_v7  ;;  %v14674_v7 = vadd.f32 %v14580_v10, %v14593_v56 }
 0x977   : > { %v6184_v2 = vpop.f32.mrb[229].mxu0 }
 0x978   : > { %v14584_v42 = vpop.f32.mrb[230].mxu0  ;;  %v5965_v15 = vpack.c.bf16 %v10236_v63, %v10233_v46  ;;  %v6402_v46 = vsel %vm2102_vm0, %v14668_v21, 0.0  ;;  %v14677_v41 = vadd.f32 %v14593_v56, %v6184_v2  ;;  %v6404_v47 = vsel %vm2102_vm0, %v14674_v7, 0.0 }
 0x979   : > { %v14586_v50 = vpop.f32.mrb[231].mxu0  ;;  %v6403_v63 = vadd.f32 %v6402_v46, %v6401_v35  ;;  %v14691_v2 = vadd.f32 %v14582_v14, %v14593_v56  ;;  %v14697_v51 = vadd.f32 %v14584_v42, %v14593_v56 }
 0x97a   : > { %10675 = vmatprep.mubr.msk.bf16.mxu0 %vm3930_vm1, %v5965_v15 }
 0x97b   : > { %v6412_v43 = vsel %vm2102_vm0, %v14697_v51, 0.0 }
 0x983   : > { %v10237_v23 = vpop.f32.mrb[104].mxu1 }
 0x984   : > { %v10238_v58 = vpop.f32.mrb[105].mxu1 }
 0x985   : > { %v10239_v44 = vadd.f32 %v10238_v58, %v10237_v23  ;;  %v10240_v6 = vpop.f32.mrb[106].mxu1  ;;  %v6406_v23 = vsel %vm2102_vm0, %v14677_v41, 0.0  ;;  %v14685_v58 = vadd.f32 %v14593_v56, %v14586_v50 }
 0x986   : > { %v10241_v13 = vpop.f32.mrb[107].mxu1 }
 0x987   : > { %v10242_v31 = vadd.f32 %v10241_v13, %v10240_v6  ;;  %v6408_v10 = vsel %vm2102_vm0, %v14685_v58, 0.0 }
 0x989   : > { %v5966_v62 = vpack.c.bf16 %v10242_v31, %v10239_v44  ;;  %v6405_v44 = vadd.f32 %v6404_v47, %v6403_v63  ;;  %v6410_v31 = vsel %vm2102_vm0, %v14691_v2, 0.0 }
 0x98b   : > { %10676 = vmatmul.mubr.msk.bf16.gmra.mrb[16].mxu0 %vm3930_vm1, %v5966_v62  ;;  %v6407_v6 = vadd.f32 %v6406_v23, %v6405_v44 }
 0x98d   : > { %v6409_v13 = vadd.f32 %v6408_v10, %v6407_v6 }
 0x98f   : > { %v6411_v62 = vadd.f32 %v6410_v31, %v6409_v13 }
 0x991   : > { %v6413_v17 = vadd.f32 %v6412_v43, %v6411_v62 }
 0x9b6   : > { %v10637_v33 = vpop.f32.mrb[232].mxu0 }
 0x9b7   : > { %v6200_v49 = vpop.f32.mrb[233].mxu0  ;;  %v14712_v42 = vadd.f32 %v10637_v33, %v14593_v56 }
 0x9b8   : > { %v10638_v53 = vpop.f32.mrb[234].mxu0  ;;  %v14700_v50 = vadd.f32 %v14593_v56, %v6200_v49 }
 0x9b9   : > { %v6203_v15 = vpop.f32.mrb[235].mxu0  ;;  %v6418_v20 = vsel %vm2102_vm0, %v14712_v42, 0.0  ;;  %v14717_v32 = vadd.f32 %v10638_v53, %v14593_v56 }
 0x9ba   : > { %v6414_v57 = vsel %vm2102_vm0, %v14700_v50, 0.0  ;;  %v14707_v14 = vadd.f32 %v14593_v56, %v6203_v15 }
 0x9bb   : > { %v6415_v34 = vadd.f32 %v6414_v57, %v6413_v17  ;;  %v6420_v19 = vsel %vm2102_vm0, %v14717_v32, 0.0 }
 0x9bc   : > { %v6416_v38 = vsel %vm2102_vm0, %v14707_v14, 0.0 }
 0x9bd   : > { %v6417_v36 = vadd.f32 %v6416_v38, %v6415_v34 }
 0x9bf   : > { %v6419_v29 = vadd.f32 %v6418_v20, %v6417_v36 }
 0x9c1   : > { %v6421_v5 = vadd.f32 %v6420_v19, %v6419_v29 }
 0x9d2   : > { %v10641_v39 = vpop.f32.mrb[236].mxu0 }
 0x9d3   : > { %v6216_v26 = vpop.f32.mrb[237].mxu0  ;;  %v14732_v18 = vadd.f32 %v10641_v39, %v14593_v56 }
 0x9d4   : > { %v14720_v0 = vadd.f32 %v14593_v56, %v6216_v26  ;;  %v10642_v3 = vpop.f32.mrb[238].mxu0 }
 0x9d5   : > { %v6219_v54 = vpop.f32.mrb[239].mxu0  ;;  %v6426_v8 = vsel %vm2102_vm0, %v14732_v18, 0.0  ;;  %v14737_v25 = vadd.f32 %v10642_v3, %v14593_v56 }
 0x9d6   : > { %v6422_v24 = vsel %vm2102_vm0, %v14720_v0, 0.0  ;;  %v14727_v9 = vadd.f32 %v14593_v56, %v6219_v54 }
 0x9d7   : > { %v6423_v37 = vadd.f32 %v6422_v24, %v6421_v5  ;;  %v6428_v49 = vsel %vm2102_vm0, %v14737_v25, 0.0 }
 0x9d8   : > { %v6424_v12 = vsel %vm2102_vm0, %v14727_v9, 0.0 }
 0x9d9   : > { %v6425_v40 = vadd.f32 %v6424_v12, %v6423_v37 }
 0x9db   : > { %v6427_v45 = vadd.f32 %v6426_v8, %v6425_v40 }
 0x9dd   : > { %v6429_v63 = vadd.f32 %v6428_v49, %v6427_v45 }
 0x9e5   : > { %v10645_v35 = vpop.f32.mrb[240].mxu0 }
 0x9e6   : > { %v6232_v33 = vpop.f32.mrb[241].mxu0  ;;  %v14745_v47 = vadd.f32 %v10645_v35, %v14593_v56 }
 0x9e7   : > { %v14742_v46 = vadd.f32 %v14593_v56, %v6232_v33  ;;  %v10646_v53 = vpop.f32.mrb[242].mxu0 }
 0x9e8   : > { %v6235_v15 = vpop.f32.mrb[243].mxu0  ;;  %v6434_v31 = vsel %vm2102_vm0, %v14745_v47, 0.0  ;;  %v14757_v62 = vadd.f32 %v10646_v53, %v14593_v56 }
 0x9e9   : > { %v6430_v23 = vsel %vm2102_vm0, %v14742_v46, 0.0  ;;  %v14750_v44 = vadd.f32 %v14593_v56, %v6235_v15 }
 0x9ea   : > { %v6431_v6 = vadd.f32 %v6430_v23, %v6429_v63  ;;  %v6436_v39 = vsel %vm2102_vm0, %v14757_v62, 0.0 }
 0x9eb   : > { %v6432_v10 = vsel %vm2102_vm0, %v14750_v44, 0.0 }
 0x9ec   : > { %v6433_v13 = vadd.f32 %v6432_v10, %v6431_v6 }
 0x9ed   : > { %v10649_v43 = vpop.f32.mrb[244].mxu0 }
 0x9ee   : > { %v6435_v57 = vadd.f32 %v6434_v31, %v6433_v13  ;;  %v6248_v17 = vpop.f32.mrb[245].mxu0  ;;  %v14772_v12 = vadd.f32 %v10649_v43, %v14593_v56 }
 0x9ef   : > { %v14760_v34 = vadd.f32 %v14593_v56, %v6248_v17  ;;  %v10650_v38 = vpop.f32.mrb[246].mxu0 }
 0x9f0   : > { %v6251_v36 = vpop.f32.mrb[247].mxu0  ;;  %v6437_v26 = vadd.f32 %v6436_v39, %v6435_v57  ;;  %v6442_v8 = vsel %vm2102_vm0, %v14772_v12, 0.0  ;;  %v14777_v45 = vadd.f32 %v10650_v38, %v14593_v56 }
 0x9f1   : > { %v6438_v20 = vsel %vm2102_vm0, %v14760_v34, 0.0  ;;  %v14767_v3 = vadd.f32 %v14593_v56, %v6251_v36 }
 0x9f2   : > { %v6439_v54 = vadd.f32 %v6438_v20, %v6437_v26  ;;  %v6444_v23 = vsel %vm2102_vm0, %v14777_v45, 0.0 }
 0x9f3   : > { %v6440_v24 = vsel %vm2102_vm0, %v14767_v3, 0.0 }
 0x9f4   : > { %v6441_v40 = vadd.f32 %v6440_v24, %v6439_v54 }
 0x9f5   : > { %v10653_v29 = vpop.f32.mrb[248].mxu0 }
 0x9f6   : > { %v6264_v19 = vpop.f32.mrb[249].mxu0  ;;  %v6443_v33 = vadd.f32 %v6442_v8, %v6441_v40  ;;  %v14792_v39 = vadd.f32 %v10653_v29, %v14593_v56 }
 0x9f7   : > { %v10654_v5 = vpop.f32.mrb[250].mxu0  ;;  %v14780_v53 = vadd.f32 %v14593_v56, %v6264_v19 }
 0x9f8   : > { %v6267_v37 = vpop.f32.mrb[251].mxu0  ;;  %v6445_v6 = vadd.f32 %v6444_v23, %v6443_v33  ;;  %17843 = vst [vmem:[#allocation103_spill] sm:$0xff] %v14792_v39  ;;  %v6450_v20 = vsel %vm2102_vm0, %v14792_v39, 0.0  ;;  %v14797_v54 = vadd.f32 %v10654_v5, %v14593_v56 }
 0x9f9   : > { %17841 = vst [vmem:[#allocation104_spill] sm:$0xff] %v14780_v53  ;;  %v6446_v10 = vsel %vm2102_vm0, %v14780_v53, 0.0  ;;  %v14787_v13 = vadd.f32 %v14593_v56, %v6267_v37 }
 0x9fa   : > { %v6447_v43 = vadd.f32 %v6446_v10, %v6445_v6  ;;  %17844 = vst [vmem:[#allocation106_spill] sm:$0xff] %v14797_v54  ;;  %v6452_v23 = vsel %vm2102_vm0, %v14797_v54, 0.0 }
 0x9fb   : > { %17842 = vst [vmem:[#allocation100_spill] sm:$0xff] %v14787_v13  ;;  %v6448_v17 = vsel %vm2102_vm0, %v14787_v13, 0.0 }
 0x9fc   : > { %v6449_v26 = vadd.f32 %v6448_v17, %v6447_v43 }
 0x9fd   : > { %v10657_v35 = vpop.f32.mrb[252].mxu0 }
 0x9fe   : > { %v6280_v49 = vpop.f32.mrb[253].mxu0  ;;  %v6451_v24 = vadd.f32 %v6450_v20, %v6449_v26  ;;  %v14812_v39 = vadd.f32 %v10657_v35, %v14593_v56 }
 0x9ff   : > { %v10658_v63 = vpop.f32.mrb[254].mxu0  ;;  %v14800_v40 = vadd.f32 %v14593_v56, %v6280_v49 }
 0xa00   : > { %v6283_v15 = vpop.f32.mrb[255].mxu0  ;;  %v6453_v29 = vadd.f32 %v6452_v23, %v6451_v24  ;;  %17847 = vst [vmem:[#allocation107_spill] sm:$0xff] %v14812_v39  ;;  %v6458_v24 = vsel %vm2102_vm0, %v14812_v39, 0.0  ;;  %v14817_v23 = vadd.f32 %v10658_v63, %v14593_v56 }
 0xa01   : > { %17845 = vst [vmem:[#allocation108_spill] sm:$0xff] %v14800_v40  ;;  %v6454_v6 = vsel %vm2102_vm0, %v14800_v40, 0.0  ;;  %v14807_v10 = vadd.f32 %v14593_v56, %v6283_v15 }
 0xa02   : > { %v6455_v43 = vadd.f32 %v6454_v6, %v6453_v29  ;;  %17848 = vst [vmem:[#allocation110_spill] sm:$0xff] %v14817_v23  ;;  %v6460_v53 = vsel %vm2102_vm0, %v14817_v23, 0.0 }
 0xa03   : > { %17846 = vst [vmem:[#allocation105_spill] sm:$0xff] %v14807_v10  ;;  %v6456_v26 = vsel %vm2102_vm0, %v14807_v10, 0.0 }
 0xa04   : > { %v6457_v13 = vadd.f32 %v6456_v26, %v6455_v43 }
 0xa05   : > { %v10661_v31 = vpop.f32.mrb[0].mxu0 }
 0xa06   : > { %v6296_v57 = vpop.f32.mrb[1].mxu0  ;;  %v6459_v40 = vadd.f32 %v6458_v24, %v6457_v13  ;;  %v14832_v24 = vadd.f32 %v10661_v31, %v14593_v56 }
 0xa07   : > { %v10662_v38 = vpop.f32.mrb[2].mxu0  ;;  %v14820_v29 = vadd.f32 %v14593_v56, %v6296_v57 }
 0xa08   : > { %v6299_v36 = vpop.f32.mrb[3].mxu0  ;;  %v6461_v35 = vadd.f32 %v6460_v53, %v6459_v40  ;;  %v6466_v39 = vsel %vm2102_vm0, %v14832_v24, 0.0  ;;  %v14837_v23 = vadd.f32 %v10662_v38, %v14593_v56 }
 0xa09   : > { %v6462_v43 = vsel %vm2102_vm0, %v14820_v29, 0.0  ;;  %v14827_v26 = vadd.f32 %v14593_v56, %v6299_v36 }
 0xa0a   : > { %v6463_v63 = vadd.f32 %v6462_v43, %v6461_v35  ;;  %v6468_v36 = vsel %vm2102_vm0, %v14837_v23, 0.0 }
 0xa0b   : > { %v6464_v13 = vsel %vm2102_vm0, %v14827_v26, 0.0 }
 0xa0c   : > { %v6465_v57 = vadd.f32 %v6464_v13, %v6463_v63 }
 0xa0d   : > { %v10665_v19 = vpop.f32.mrb[4].mxu0 }
 0xa0e   : > { %v6312_v37 = vpop.f32.mrb[5].mxu0  ;;  %v6467_v53 = vadd.f32 %v6466_v39, %v6465_v57  ;;  %v14852_v38 = vadd.f32 %v10665_v19, %v14593_v56 }
 0xa0f   : > { %v10666_v8 = vpop.f32.mrb[6].mxu0  ;;  %v14840_v40 = vadd.f32 %v14593_v56, %v6312_v37 }
 0xa10   : > { %v6315_v33 = vpop.f32.mrb[7].mxu0  ;;  %v6469_v35 = vadd.f32 %v6468_v36, %v6467_v53  ;;  %17850 = vst [vmem:[#allocation112_spill] sm:$0xff] %v14852_v38  ;;  %v6474_v37 = vsel %vm2102_vm0, %v14852_v38, 0.0  ;;  %v14857_v57 = vadd.f32 %v10666_v8, %v14593_v56 }
 0xa11   : > { %v6470_v43 = vsel %vm2102_vm0, %v14840_v40, 0.0  ;;  %v14847_v31 = vadd.f32 %v14593_v56, %v6315_v33 }
 0xa12   : > { %v6471_v63 = vadd.f32 %v6470_v43, %v6469_v35  ;;  %17851 = vst [vmem:[#allocation109_spill] sm:$0xff] %v14857_v57  ;;  %v6476_v33 = vsel %vm2102_vm0, %v14857_v57, 0.0 }
 0xa13   : > { %17849 = vst [vmem:[#allocation117_spill] sm:$0xff] %v14847_v31  ;;  %v6472_v13 = vsel %vm2102_vm0, %v14847_v31, 0.0 }
 0xa14   : > { %v6473_v39 = vadd.f32 %v6472_v13, %v6471_v63 }
 0xa15   : > { %v10669_v5 = vpop.f32.mrb[8].mxu0 }
 0xa16   : > { %v6328_v17 = vpop.f32.mrb[9].mxu0  ;;  %v6475_v53 = vadd.f32 %v6474_v37, %v6473_v39  ;;  %v14872_v8 = vadd.f32 %v10669_v5, %v14593_v56 }
 0xa17   : > { %v10670_v49 = vpop.f32.mrb[10].mxu0  ;;  %v14860_v36 = vadd.f32 %v14593_v56, %v6328_v17 }
 0xa18   : > { %v6331_v20 = vpop.f32.mrb[11].mxu0  ;;  %v6477_v35 = vadd.f32 %v6476_v33, %v6475_v53  ;;  %17854 = vst [vmem:[#allocation121_spill] sm:$0xff] %v14872_v8  ;;  %v6482_v17 = vsel %vm2102_vm0, %v14872_v8, 0.0  ;;  %v14877_v37 = vadd.f32 %v10670_v49, %v14593_v56 }
 0xa19   : > { %17852 = vst [vmem:[#allocation111_spill] sm:$0xff] %v14860_v36  ;;  %v6478_v43 = vsel %vm2102_vm0, %v14860_v36, 0.0  ;;  %v14867_v19 = vadd.f32 %v14593_v56, %v6331_v20 }
 0xa1a   : > { %v6479_v63 = vadd.f32 %v6478_v43, %v6477_v35  ;;  %17855 = vst [vmem:[#allocation114_spill] sm:$0xff] %v14877_v37  ;;  %v6484_v20 = vsel %vm2102_vm0, %v14877_v37, 0.0 }
 0xa1b   : > { %17853 = vst [vmem:[#allocation119_spill] sm:$0xff] %v14867_v19  ;;  %v6480_v13 = vsel %vm2102_vm0, %v14867_v19, 0.0 }
 0xa1c   : > { %v6481_v39 = vadd.f32 %v6480_v13, %v6479_v63 }
 0xa1d   : > { %v10673_v15 = vpop.f32.mrb[12].mxu0 }
 0xa1e   : > { %v6344_v54 = vpop.f32.mrb[13].mxu0  ;;  %v6483_v53 = vadd.f32 %v6482_v17, %v6481_v39  ;;  %v14892_v49 = vadd.f32 %v10673_v15, %v14593_v56 }
 0xa1f   : > { %v10674_v6 = vpop.f32.mrb[14].mxu0  ;;  %v14880_v33 = vadd.f32 %v14593_v56, %v6344_v54 }
 0xa20   : > { %v6347_v10 = vpop.f32.mrb[15].mxu0  ;;  %v6485_v35 = vadd.f32 %v6484_v20, %v6483_v53  ;;  %17858 = vst [vmem:[#allocation116_spill] sm:$0xff] %v14892_v49  ;;  %v6490_v54 = vsel %vm2102_vm0, %v14892_v49, 0.0  ;;  %v14897_v17 = vadd.f32 %v10674_v6, %v14593_v56 }
 0xa21   : > { %17856 = vst [vmem:[#allocation123_spill] sm:$0xff] %v14880_v33  ;;  %v6486_v43 = vsel %vm2102_vm0, %v14880_v33, 0.0  ;;  %v14887_v5 = vadd.f32 %v14593_v56, %v6347_v10 }
 0xa22   : > { %v6487_v63 = vadd.f32 %v6486_v43, %v6485_v35  ;;  %17859 = vst [vmem:[#allocation113_spill] sm:$0xff] %v14897_v17  ;;  %v6492_v10 = vsel %vm2102_vm0, %v14897_v17, 0.0 }
 0xa23   : > { %17857 = vst [vmem:[#allocation125_spill] sm:$0xff] %v14887_v5  ;;  %v6488_v13 = vsel %vm2102_vm0, %v14887_v5, 0.0 }
 0xa24   : > { %v6489_v39 = vadd.f32 %v6488_v13, %v6487_v63 }
 0xa26   : > { %v6491_v53 = vadd.f32 %v6490_v54, %v6489_v39 }
 0xa28   : > { %v6493_v5 = vadd.f32 %v6492_v10, %v6491_v53 }
 0xa5e   : > { %v10677_v20 = vpop.f32.mrb[16].mxu0 }
 0xa5f   : > { %v6360_v33 = vpop.f32.mrb[17].mxu0  ;;  %v6369_v15 = vadd.f32 %v10677_v20, %v14593_v56 }
 0xa60   : > { %v6361_v35 = vadd.f32 %v14593_v56, %v6360_v33  ;;  %v10678_v43 = vpop.f32.mrb[18].mxu0 }
 0xa61   : > { %v6363_v37 = vpop.f32.mrb[19].mxu0  ;;  %v6372_v6 = vadd.f32 %v10678_v43, %v14593_v56  ;;  %v6498_v8 = vsel %vm2102_vm0, %v6369_v15, 0.0 }
 0xa62   : > { %v6494_v63 = vsel %vm2102_vm0, %v6361_v35, 0.0  ;;  %v6364_v13 = vadd.f32 %v14593_v56, %v6363_v37 }
 0xa63   : > { %v6495_v49 = vadd.f32 %v6494_v63, %v6493_v5  ;;  %v6500_v33 = vsel %vm2102_vm0, %v6372_v6, 0.0 }
 0xa64   : > { %v6496_v39 = vsel %vm2102_vm0, %v6364_v13, 0.0 }
 0xa65   : > { %v6497_v54 = vadd.f32 %v6496_v39, %v6495_v49 }
 0xa67   : > { %v6499_v17 = vadd.f32 %v6498_v8, %v6497_v54 }
 0xa69   : > { %v6501_v19 = vadd.f32 %v6500_v33, %v6499_v17 }
 0xa6b   : > { %v6502_v53 = vrot.slane %v6501_v19, 4 }
 0xa6d   : > { %v6503_v10 = vadd.f32 %v6502_v53, %v6501_v19 }
 0xa6f   : > { %v6504_v36 = vrot.slane %v6503_v10, 2 }
 0xa71   : > { %v6505_v20 = vadd.f32 %v6504_v36, %v6503_v10 }
 0xa73   : > { %v6506_v57 = vrot.slane %v6505_v20, 1 }
 0xa75   : > { %v6507_v38 = vadd.f32 %v6506_v57, %v6505_v20 }
 0xa77   : > { %v14909_v31 = vmul.f32 0.001953125, %v6507_v38 }
 0xa79   : > { %v14912_v37 = vsub.f32 %v6361_v35, %v14909_v31  ;;  %v14915_v56 = vsub.f32 %v6364_v13, %v14909_v31  ;;  %v14918_v5 = vsub.f32 %v6369_v15, %v14909_v31  ;;  %v14921_v8 = vsub.f32 %v6372_v6, %v14909_v31 }
 0xa7a   : > { %v14925_v19 = vsub.f32 %v14599_v16, %v14909_v31  ;;  %v14929_v38 = vsub.f32 %v14596_v11, %v14909_v31  ;;  %v14933_v57 = vsub.f32 %v14604_v27, %v14909_v31  ;;  %v14937_v36 = vsub.f32 %v14612_v1, %v14909_v31 }
 0xa7b   : > { %v14945_v16 = vsub.f32 %v14615_v22, %v14909_v31  ;;  %v14951_v27 = vsub.f32 %v14622_v55, %v14909_v31  ;;  %v14959_v63 = vsub.f32 %v14627_v52, %v14909_v31  ;;  %v14966_v55 = vsub.f32 %v14632_v28, %v14909_v31 }
 0xa7c   : > { %v6574_v49 = vmul.f32 %v14925_v19, %v14925_v19  ;;  %v6575_v17 = vmul.f32 %v14929_v38, %v14929_v38  ;;  %v6576_v11 = vmul.f32 %v14933_v57, %v14933_v57  ;;  %v6577_v1 = vmul.f32 %v14937_v36, %v14937_v36 }
 0xa7d   : > { %v6578_v22 = vmul.f32 %v14945_v16, %v14945_v16  ;;  %v6579_v39 = vmul.f32 %v14951_v27, %v14951_v27  ;;  %v14973_v52 = vsub.f32 %v14635_v61, %v14909_v31  ;;  %v6580_v53 = vmul.f32 %v14959_v63, %v14959_v63 }
 0xa7e   : > { %v6638_v35 = vsel %vm2102_vm0, %v6574_v49, 0.0  ;;  %v6639_v43 = vsel %vm2102_vm0, %v6575_v17, 0.0  ;;  %v6641_v13 = vsel %vm2102_vm0, %v6576_v11, 0.0  ;;  %v6643_v54 = vsel %vm2102_vm0, %v6577_v1, 0.0 }
 0xa7f   : > { %v6640_v15 = vadd.f32 %v6639_v43, %v6638_v35  ;;  %v6645_v10 = vsel %vm2102_vm0, %v6578_v22, 0.0  ;;  %v14980_v28 = vsub.f32 %v14642_v59, %v14909_v31  ;;  %v6581_v49 = vmul.f32 %v14966_v55, %v14966_v55 }
 0xa80   : > { %v6647_v17 = vsel %vm2102_vm0, %v6579_v39, 0.0  ;;  %v14987_v61 = vsub.f32 %v14647_v30, %v14909_v31  ;;  %v6582_v1 = vmul.f32 %v14973_v52, %v14973_v52  ;;  %v6649_v35 = vsel %vm2102_vm0, %v6580_v53, 0.0 }
 0xa81   : > { %v6642_v6 = vadd.f32 %v6641_v13, %v6640_v15  ;;  %v14994_v59 = vsub.f32 %v14652_v4, %v14909_v31  ;;  %v6583_v15 = vmul.f32 %v14980_v28, %v14980_v28  ;;  %v6651_v22 = vsel %vm2102_vm0, %v6581_v49, 0.0 }
 0xa82   : > { %v15001_v30 = vsub.f32 %v14655_v48, %v14909_v31  ;;  %v6653_v39 = vsel %vm2102_vm0, %v6582_v1, 0.0  ;;  %v15008_v4 = vsub.f32 %v14662_v60, %v14909_v31  ;;  %v15015_v48 = vsub.f32 %v14668_v21, %v14909_v31 }
 0xa83   : > { %v6644_v33 = vadd.f32 %v6643_v54, %v6642_v6  ;;  %v6584_v6 = vmul.f32 %v14987_v61, %v14987_v61  ;;  %v6655_v53 = vsel %vm2102_vm0, %v6583_v15, 0.0  ;;  %v15022_v60 = vsub.f32 %v14674_v7, %v14909_v31 }
 0xa84   : > { %v15029_v21 = vsub.f32 %v14677_v41, %v14909_v31  ;;  %v15036_v7 = vsub.f32 %v14685_v58, %v14909_v31  ;;  %v15043_v41 = vsub.f32 %v14691_v2, %v14909_v31  ;;  %v15050_v58 = vsub.f32 %v14697_v51, %v14909_v31 }
 0xa85   : > { %v6646_v20 = vadd.f32 %v6645_v10, %v6644_v33  ;;  %v6585_v33 = vmul.f32 %v14994_v59, %v14994_v59  ;;  %v6657_v49 = vsel %vm2102_vm0, %v6584_v6, 0.0  ;;  %v15064_v51 = vsub.f32 %v14707_v14, %v14909_v31 }
 0xa86   : > { %17860 = vst [vmem:[#allocation115_spill] sm:$0xff] %v15029_v21  ;;  %17861 = vst [vmem:[#allocation127_spill] sm:$0xff] %v15036_v7  ;;  %v15078_v14 = vsub.f32 %v14717_v32, %v14909_v31 }
 0xa87   : > { %v6648_v11 = vadd.f32 %v6647_v17, %v6646_v20  ;;  %v6586_v20 = vmul.f32 %v15001_v30, %v15001_v30  ;;  %v6659_v1 = vsel %vm2102_vm0, %v6585_v33, 0.0  ;;  %17862 = vst [vmem:[#allocation129_spill] sm:$0xff] %v15043_v41  ;;  %17863 = vst [vmem:[#allocation120_spill] sm:$0xff] %v15050_v58 }
 0xa88   : > { %17865 = vst [vmem:[#allocation133_spill] sm:$0xff] %v15064_v51  ;;  %17867 = vst [vmem:[#allocation118_spill] sm:$0xff] %v15078_v14 }
 0xa89   : > { %v6650_v43 = vadd.f32 %v6649_v35, %v6648_v11  ;;  %v6587_v11 = vmul.f32 %v15008_v4, %v15008_v4  ;;  %v6661_v15 = vsel %vm2102_vm0, %v6586_v20, 0.0  ;;  %v6591_v20 = vmul.f32 %v15036_v7, %v15036_v7 }
 0xa8b   : > { %v6652_v13 = vadd.f32 %v6651_v22, %v6650_v43  ;;  %v6588_v43 = vmul.f32 %v15015_v48, %v15015_v48  ;;  %v6663_v6 = vsel %vm2102_vm0, %v6587_v11, 0.0 }
 0xa8d   : > { %v6654_v54 = vadd.f32 %v6653_v39, %v6652_v13  ;;  %v6589_v13 = vmul.f32 %v15022_v60, %v15022_v60  ;;  %v6665_v33 = vsel %vm2102_vm0, %v6588_v43, 0.0  ;;  %v6671_v43 = vsel %vm2102_vm0, %v6591_v20, 0.0 }
 0xa8f   : > { %v6656_v10 = vadd.f32 %v6655_v53, %v6654_v54  ;;  %v6590_v54 = vmul.f32 %v15029_v21, %v15029_v21  ;;  %v6667_v2 = vsel %vm2102_vm0, %v6589_v13, 0.0 }
 0xa91   : > { %v6658_v17 = vadd.f32 %v6657_v49, %v6656_v10  ;;  %v15054_v10 = vsub.f32 %v14700_v50, %v14909_v31  ;;  %v6669_v11 = vsel %vm2102_vm0, %v6590_v54, 0.0  ;;  %v6593_v50 = vmul.f32 %v15050_v58, %v15050_v58 }
 0xa93   : > { %v6660_v35 = vadd.f32 %v6659_v1, %v6658_v17  ;;  %17864 = vst [vmem:[#allocation131_spill] sm:$0xff] %v15054_v10  ;;  %v6592_v17 = vmul.f32 %v15043_v41, %v15043_v41  ;;  %v6675_v54 = vsel %vm2102_vm0, %v6593_v50, 0.0 }
 0xa95   : > { %v6662_v22 = vadd.f32 %v6661_v15, %v6660_v35  ;;  %v6594_v35 = vmul.f32 %v15054_v10, %v15054_v10  ;;  %v6673_v13 = vsel %vm2102_vm0, %v6592_v17, 0.0 }
 0xa97   : > { %v6664_v39 = vadd.f32 %v6663_v6, %v6662_v22  ;;  %v15073_v22 = vsub.f32 %v14712_v42, %v14909_v31 }
 0xa99   : > { %v6666_v53 = vadd.f32 %v6665_v33, %v6664_v39  ;;  %17866 = vst [vmem:[#allocation124_spill] sm:$0xff] %v15073_v22  ;;  %v6595_v39 = vmul.f32 %v15064_v51, %v15064_v51  ;;  %v6677_v33 = vsel %vm2102_vm0, %v6594_v35, 0.0  ;;  %v6596_v32 = vmul.f32 %v15073_v22, %v15073_v22 }
 0xa9b   : > { %v6668_v49 = vadd.f32 %v6667_v2, %v6666_v53  ;;  %v15092_v53 = vsub.f32 %v14720_v0, %v14909_v31  ;;  %v15098_v2 = vsub.f32 %v14727_v9, %v14909_v31  ;;  %v6679_v17 = vsel %vm2102_vm0, %v6595_v39, 0.0 }
 0xa9c   : > { %v6681_v50 = vsel %vm2102_vm0, %v6596_v32, 0.0  ;;  %v15112_v9 = vsub.f32 %v14737_v25, %v14909_v31  ;;  %v15126_v25 = vsub.f32 %v14750_v44, %v14909_v31  ;;  %v15140_v44 = vsub.f32 %v14757_v62, %v14909_v31 }
 0xa9d   : > { %v6670_v1 = vadd.f32 %v6669_v11, %v6668_v49  ;;  %17868 = vst [vmem:[#allocation122_spill] sm:$0xff] %v15092_v53  ;;  %17869 = vst [vmem:[#allocation135_spill] sm:$0xff] %v15098_v2  ;;  %v6597_v49 = vmul.f32 %v15078_v14, %v15078_v14  ;;  %v6598_v0 = vmul.f32 %v15092_v53, %v15092_v53 }
 0xa9e   : > { %17871 = vst [vmem:[#allocation128_spill] sm:$0xff] %v15112_v9  ;;  %17873 = vst [vmem:[#allocation141_spill] sm:$0xff] %v15126_v25  ;;  %v15154_v62 = vsub.f32 %v14767_v3, %v14909_v31  ;;  %v15168_v3 = vsub.f32 %v14777_v45, %v14909_v31 }
 0xa9f   : > { %v6672_v15 = vadd.f32 %v6671_v43, %v6670_v1  ;;  %v15105_v1 = vsub.f32 %v14732_v18, %v14909_v31  ;;  %v6599_v43 = vmul.f32 %v15098_v2, %v15098_v2  ;;  %v15119_v18 = vsub.f32 %v14742_v46, %v14909_v31  ;;  %17875 = vst [vmem:[#allocation126_spill] sm:$0xff] %v15140_v44 }
 0xaa0   : > { %v6685_v39 = vsel %vm2102_vm0, %v6598_v0, 0.0  ;;  %v15133_v46 = vsub.f32 %v14745_v47, %v14909_v31  ;;  %v15147_v47 = vsub.f32 %v14760_v34, %v14909_v31  ;;  %17877 = vst [vmem:[#allocation143_spill] sm:$0xff] %v15154_v62  ;;  %v15161_v34 = vsub.f32 %v14772_v12, %v14909_v31 }
 0xaa1   : > { %v6674_v6 = vadd.f32 %v6673_v13, %v6672_v15  ;;  %17870 = vst [vmem:[#allocation137_spill] sm:$0xff] %v15105_v1  ;;  %v6683_v15 = vsel %vm2102_vm0, %v6597_v49, 0.0  ;;  %17872 = vst [vmem:[#allocation139_spill] sm:$0xff] %v15119_v18 }
 0xaa2   : > { %17874 = vst [vmem:[#allocation132_spill] sm:$0xff] %v15133_v46  ;;  %17876 = vst [vmem:[#allocation130_spill] sm:$0xff] %v15147_v47 }
 0xaa3   : > { %v6676_v42 = vadd.f32 %v6675_v54, %v6674_v6  ;;  %v6600_v6 = vmul.f32 %v15105_v1, %v15105_v1 }
 0xaa5   : > { %v6678_v20 = vadd.f32 %v6677_v33, %v6676_v42  ;;  %v6601_v33 = vmul.f32 %v15112_v9, %v15112_v9  ;;  %v6687_v42 = vsel %vm2102_vm0, %v6599_v43, 0.0  ;;  %v6689_v49 = vsel %vm2102_vm0, %v6600_v6, 0.0 }
 0xaa7   : > { %v6680_v11 = vadd.f32 %v6679_v17, %v6678_v20  ;;  %v6602_v20 = vmul.f32 %v15119_v18, %v15119_v18  ;;  %v6691_v0 = vsel %vm2102_vm0, %v6601_v33, 0.0 }
 0xaa9   : > { %v6682_v35 = vadd.f32 %v6681_v50, %v6680_v11  ;;  %v6603_v11 = vmul.f32 %v15126_v25, %v15126_v25  ;;  %v6693_v43 = vsel %vm2102_vm0, %v6602_v20, 0.0 }
 0xaab   : > { %v6684_v13 = vadd.f32 %v6683_v15, %v6682_v35  ;;  %v6604_v35 = vmul.f32 %v15133_v46, %v15133_v46  ;;  %v6695_v6 = vsel %vm2102_vm0, %v6603_v11, 0.0  ;;  %v6608_v11 = vmul.f32 %v15161_v34, %v15161_v34 }
 0xaad   : > { %v6686_v54 = vadd.f32 %v6685_v39, %v6684_v13  ;;  %v6605_v13 = vmul.f32 %v15140_v44, %v15140_v44  ;;  %v6697_v33 = vsel %vm2102_vm0, %v6604_v35, 0.0  ;;  %v17879_v35 = vld [vmem:[#allocation100_spill] sm:$0xff] }
 0xaae   : > { %v15182_v45 = vsub.f32 %v17879_v35, %v14909_v31 }
 0xaaf   : > { %v6688_v32 = vadd.f32 %v6687_v42, %v6686_v54  ;;  %v6606_v54 = vmul.f32 %v15147_v47, %v15147_v47  ;;  %v6699_v20 = vsel %vm2102_vm0, %v6605_v13, 0.0  ;;  %v17885_v47 = vld [vmem:[#allocation110_spill] sm:$0xff] }
 0xab0   : > { %v15226_v44 = vsub.f32 %v17885_v47, %v14909_v31  ;;  %v11422_v47 = vld [vmem:[%s15088_s2 + $0x10] sm:$0xff]  }
 0xab1   : > { %v6690_v17 = vadd.f32 %v6689_v49, %v6688_v32  ;;  %v6607_v32 = vmul.f32 %v15154_v62, %v15154_v62 }
 0xab3   : > { %v6692_v50 = vadd.f32 %v6691_v0, %v6690_v17  ;;  %v17878_v17 = vld [vmem:[#allocation104_spill] sm:$0xff]  ;;  %v6701_v0 = vsel %vm2102_vm0, %v6606_v54, 0.0  ;;  %v6705_v54 = vsel %vm2102_vm0, %v6608_v11, 0.0 }
 0xab4   : > { %v15175_v12 = vsub.f32 %v17878_v17, %v14909_v31  ;;  %v6611_v17 = vmul.f32 %v15182_v45, %v15182_v45 }
 0xab5   : > { %v6694_v15 = vadd.f32 %v6693_v43, %v6692_v50  ;;  %v6609_v43 = vmul.f32 %v15168_v3, %v15168_v3 }
 0xab7   : > { %v6696_v39 = vadd.f32 %v6695_v6, %v6694_v15  ;;  %v6703_v15 = vsel %vm2102_vm0, %v6607_v32, 0.0  ;;  %v17880_v6 = vld [vmem:[#allocation103_spill] sm:$0xff]  ;;  %v6707_v32 = vsel %vm2102_vm0, %v6609_v43, 0.0 }
 0xab9   : > { %v6698_v42 = vadd.f32 %v6697_v33, %v6696_v39  ;;  %v15189_v39 = vsub.f32 %v17880_v6, %v14909_v31  ;;  %v6610_v33 = vmul.f32 %v15175_v12, %v15175_v12 }
 0xabb   : > { %v6700_v49 = vadd.f32 %v6699_v20, %v6698_v42  ;;  %v17881_v20 = vld [vmem:[#allocation106_spill] sm:$0xff]  ;;  %v6709_v11 = vsel %vm2102_vm0, %v6610_v33, 0.0 }
 0xabd   : > { %v6702_v50 = vadd.f32 %v6701_v0, %v6700_v49  ;;  %v15196_v49 = vsub.f32 %v17881_v20, %v14909_v31 }
 0xabf   : > { %v6704_v13 = vadd.f32 %v6703_v15, %v6702_v50  ;;  %v17882_v50 = vld [vmem:[#allocation108_spill] sm:$0xff]  ;;  %v6612_v15 = vmul.f32 %v15189_v39, %v15189_v39  ;;  %v6613_v43 = vmul.f32 %v15196_v49, %v15196_v49 }
 0xac0   : > { %v15203_v35 = vsub.f32 %v17882_v50, %v14909_v31  ;;  %v17884_v50 = vld [vmem:[#allocation107_spill] sm:$0xff] }
 0xac1   : > { %v6706_v42 = vadd.f32 %v6705_v54, %v6704_v13  ;;  %v11420_v13 = vld [vmem:[%s15088_s2] sm:$0xff]   ;;  %v17883_v54 = vld [vmem:[#allocation105_spill] sm:$0xff]  ;;  %v15218_v62 = vsub.f32 %v17884_v50, %v14909_v31 }
 0xac2   : > { %v15211_v20 = vsub.f32 %v17883_v54, %v14909_v31  ;;  %10679 = vmatprep.subr.bf16.mxu1 %v11420_v13  ;;  %v6614_v33 = vmul.f32 %v15203_v35, %v15203_v35 }
 0xac3   : > { %v6708_v0 = vadd.f32 %v6707_v32, %v6706_v42  ;;  %v6711_v42 = vsel %vm2102_vm0, %v6611_v17, 0.0  ;;  %10680 = vmatpush3.bf16.msra.mxu1 %v11420_v13  ;;  %v6715_v13 = vsel %vm2102_vm0, %v6613_v43, 0.0  ;;  %v6617_v43 = vmul.f32 %v15226_v44, %v15226_v44 }
 0xac4   : > { %v6615_v17 = vmul.f32 %v15211_v20, %v15211_v20 }
 0xac5   : > { %v6710_v6 = vadd.f32 %v6709_v11, %v6708_v0  ;;  %v6713_v0 = vsel %vm2102_vm0, %v6612_v15, 0.0  ;;  %v11421_v11 = vld [vmem:[%s15088_s2 + $0x8] sm:$0xff]   ;;  %v6616_v15 = vmul.f32 %v15218_v62, %v15218_v62 }
 0xac6   : > { %10681 = vmatprep.subr.bf16.mxu1 %v11421_v11 }
 0xac7   : > { %v6712_v32 = vadd.f32 %v6711_v42, %v6710_v6  ;;  %10682 = vmatpush3.bf16.msra.mxu1 %v11421_v11  ;;  %v15233_v42 = vsub.f32 %v14820_v29, %v14909_v31  ;;  %v6719_v11 = vsel %vm2102_vm0, %v6615_v17, 0.0  ;;  %v15248_v29 = vsub.f32 %v14832_v24, %v14909_v31 }
 0xac8   : > { %10683 = vmatprep.subr.bf16.mxu1 %v11422_v47  ;;  %v15263_v24 = vsub.f32 %v14840_v40, %v14909_v31 }
 0xac9   : > { %v6714_v54 = vadd.f32 %v6713_v0, %v6712_v32  ;;  %v6717_v32 = vsel %vm2102_vm0, %v6614_v33, 0.0  ;;  %v15241_v0 = vsub.f32 %v14827_v26, %v14909_v31  ;;  %v6618_v33 = vmul.f32 %v15233_v42, %v15233_v42 }
 0xaca   : > { %v6622_v46 = vmul.f32 %v15263_v24, %v15263_v24 }
 0xacb   : > { %v6716_v6 = vadd.f32 %v6715_v13, %v6714_v54  ;;  %10684 = vmatpush3.bf16.msra.mxu1 %v11422_v47  ;;  %v6721_v13 = vsel %vm2102_vm0, %v6616_v15, 0.0  ;;  %v6619_v17 = vmul.f32 %v15241_v0, %v15241_v0  ;;  %v6723_v47 = vsel %vm2102_vm0, %v6617_v43, 0.0 }
 0xacc   : > { %v6620_v15 = vmul.f32 %v15248_v29, %v15248_v29 }
 0xacd   : > { %v6718_v50 = vadd.f32 %v6717_v32, %v6716_v6  ;;  %v11423_v6 = vld [vmem:[%s15088_s2 + $0x18] sm:$0xff]   ;;  %v15256_v32 = vsub.f32 %v14837_v23, %v14909_v31 }
 0xace   : > { %10685 = vmatprep.subr.bf16.mxu1 %v11423_v6  ;;  %v17886_v23 = vld [vmem:[#allocation117_spill] sm:$0xff] }
 0xacf   : > { %v6720_v54 = vadd.f32 %v6719_v11, %v6718_v50  ;;  %10686 = vmatpush3.bf16.msra.mxu1 %v11423_v6  ;;  %v6725_v11 = vsel %vm2102_vm0, %v6618_v33, 0.0  ;;  %v6621_v43 = vmul.f32 %v15256_v32, %v15256_v32  ;;  %v6729_v33 = vsel %vm2102_vm0, %v6620_v15, 0.0 }
 0xad0   : > { %v6733_v15 = vsel %vm2102_vm0, %v6622_v46, 0.0 }
 0xad1   : > { %v6722_v26 = vadd.f32 %v6721_v13, %v6720_v54  ;;  %v15270_v13 = vsub.f32 %v17886_v23, %v14909_v31 }
 0xad3   : > { %v6724_v50 = vadd.f32 %v6723_v47, %v6722_v26  ;;  %v6727_v26 = vsel %vm2102_vm0, %v6619_v17, 0.0  ;;  %v17887_v47 = vld [vmem:[#allocation112_spill] sm:$0xff]  ;;  %v6623_v25 = vmul.f32 %v15270_v13, %v15270_v13  ;;  %v6731_v17 = vsel %vm2102_vm0, %v6621_v43, 0.0 }
 0xad4   : > { %v15277_v40 = vsub.f32 %v17887_v47, %v14909_v31 }
 0xad5   : > { %v6726_v54 = vadd.f32 %v6725_v11, %v6724_v50  ;;  %v17888_v11 = vld [vmem:[#allocation109_spill] sm:$0xff]  ;;  %v6735_v43 = vsel %vm2102_vm0, %v6623_v25, 0.0 }
 0xad6   : > { %v15284_v23 = vsub.f32 %v17888_v11, %v14909_v31  ;;  %v6624_v18 = vmul.f32 %v15277_v40, %v15277_v40 }
 0xad7   : > { %v6728_v6 = vadd.f32 %v6727_v26, %v6726_v54  ;;  %v17889_v26 = vld [vmem:[#allocation111_spill] sm:$0xff] }
 0xad8   : > { %v15291_v47 = vsub.f32 %v17889_v26, %v14909_v31  ;;  %v6625_v9 = vmul.f32 %v15284_v23, %v15284_v23  ;;  %v6737_v46 = vsel %vm2102_vm0, %v6624_v18, 0.0 }
 0xad9   : > { %v6730_v50 = vadd.f32 %v6729_v33, %v6728_v6  ;;  %v17890_v33 = vld [vmem:[#allocation119_spill] sm:$0xff] }
 0xada   : > { %v15298_v11 = vsub.f32 %v17890_v33, %v14909_v31  ;;  %v6626_v1 = vmul.f32 %v15291_v47, %v15291_v47  ;;  %v6739_v25 = vsel %vm2102_vm0, %v6625_v9, 0.0 }
 0xadb   : > { %v6732_v54 = vadd.f32 %v6731_v17, %v6730_v50  ;;  %v17891_v17 = vld [vmem:[#allocation121_spill] sm:$0xff] }
 0xadc   : > { %v15305_v26 = vsub.f32 %v17891_v17, %v14909_v31  ;;  %v6627_v2 = vmul.f32 %v15298_v11, %v15298_v11  ;;  %v6741_v18 = vsel %vm2102_vm0, %v6626_v1, 0.0 }
 0xadd   : > { %v6734_v6 = vadd.f32 %v6733_v15, %v6732_v54  ;;  %v17892_v15 = vld [vmem:[#allocation114_spill] sm:$0xff] }
 0xade   : > { %v15312_v33 = vsub.f32 %v17892_v15, %v14909_v31  ;;  %v6628_v53 = vmul.f32 %v15305_v26, %v15305_v26  ;;  %v6743_v9 = vsel %vm2102_vm0, %v6627_v2, 0.0 }
 0xadf   : > { %v6736_v50 = vadd.f32 %v6735_v43, %v6734_v6  ;;  %v17893_v43 = vld [vmem:[#allocation123_spill] sm:$0xff] }
 0xae0   : > { %v15319_v17 = vsub.f32 %v17893_v43, %v14909_v31  ;;  %v6629_v14 = vmul.f32 %v15312_v33, %v15312_v33  ;;  %v6745_v1 = vsel %vm2102_vm0, %v6628_v53, 0.0 }
 0xae1   : > { %v6738_v54 = vadd.f32 %v6737_v46, %v6736_v50  ;;  %v17894_v46 = vld [vmem:[#allocation125_spill] sm:$0xff] }
 0xae2   : > { %v15326_v15 = vsub.f32 %v17894_v46, %v14909_v31  ;;  %v6630_v22 = vmul.f32 %v15319_v17, %v15319_v17  ;;  %v6747_v2 = vsel %vm2102_vm0, %v6629_v14, 0.0  ;;  %v6635_v14 = vmul.f32 %v14915_v56, %v14915_v56 }
 0xae3   : > { %v6740_v6 = vadd.f32 %v6739_v25, %v6738_v54  ;;  %v17895_v25 = vld [vmem:[#allocation116_spill] sm:$0xff] }
 0xae4   : > { %v15333_v43 = vsub.f32 %v17895_v25, %v14909_v31  ;;  %v6631_v51 = vmul.f32 %v15326_v15, %v15326_v15  ;;  %v6749_v25 = vsel %vm2102_vm0, %v6630_v22, 0.0  ;;  %v6636_v22 = vmul.f32 %v14918_v5, %v14918_v5 }
 0xae5   : > { %v6742_v50 = vadd.f32 %v6741_v18, %v6740_v6  ;;  %v17896_v18 = vld [vmem:[#allocation113_spill] sm:$0xff] }
 0xae6   : > { %v15340_v46 = vsub.f32 %v17896_v18, %v14909_v31  ;;  %v6634_v31 = vmul.f32 %v14912_v37, %v14912_v37 }
 0xae7   : > { %v6744_v54 = vadd.f32 %v6743_v9, %v6742_v50  ;;  %v6632_v9 = vmul.f32 %v15333_v43, %v15333_v43 }
 0xae8   : > { %v6633_v53 = vmul.f32 %v15340_v46, %v15340_v46 }
 0xae9   : > { %v6746_v6 = vadd.f32 %v6745_v1, %v6744_v54  ;;  %v6751_v54 = vsel %vm2102_vm0, %v6631_v51, 0.0  ;;  %v6753_v18 = vsel %vm2102_vm0, %v6632_v9, 0.0  ;;  %v6759_v51 = vsel %vm2102_vm0, %v6635_v14, 0.0 }
 0xaeb   : > { %v6748_v50 = vadd.f32 %v6747_v2, %v6746_v6  ;;  %v6755_v6 = vsel %vm2102_vm0, %v6633_v53, 0.0 }
 0xaed   : > { %v6750_v10 = vadd.f32 %v6749_v25, %v6748_v50  ;;  %v6757_v50 = vsel %vm2102_vm0, %v6634_v31, 0.0 }
 0xaef   : > { %v6752_v1 = vadd.f32 %v6751_v54, %v6750_v10  ;;  %v6637_v10 = vmul.f32 %v14921_v8, %v14921_v8  ;;  %v6761_v54 = vsel %vm2102_vm0, %v6636_v22, 0.0  ;;  %v15375_v22 = vld [vmem:[%s800_s3] ss:$0 sm:$0xff] }
 0xaf1   : > { %v6754_v58 = vadd.f32 %v6753_v18, %v6752_v1  ;;  %v6763_v53 = vsel %vm2102_vm0, %v6637_v10, 0.0 }
 0xaf3   : > { %v6756_v2 = vadd.f32 %v6755_v6, %v6754_v58 }
 0xaf5   : > { %v6758_v25 = vadd.f32 %v6757_v50, %v6756_v2 }
 0xaf7   : > { %v6760_v9 = vadd.f32 %v6759_v51, %v6758_v25  ;;  %v15379_v25 = vld [vmem:[%s803_s28] ss:$0 sm:$0xff] }
 0xaf9   : > { %v6762_v1 = vadd.f32 %v6761_v54, %v6760_v9 }
 0xafb   : > { %v6764_v58 = vadd.f32 %v6763_v53, %v6762_v1 }
 0xafd   : > { %v6765_v18 = vrot.slane %v6764_v58, 4 }
 0xaff   : > { %v6766_v6 = vadd.f32 %v6765_v18, %v6764_v58 }
 0xb01   : > { %v6767_v41 = vrot.slane %v6766_v6, 2 }
 0xb03   : > { %v6768_v7 = vadd.f32 %v6767_v41, %v6766_v6 }
 0xb05   : > { %v6769_v31 = vrot.slane %v6768_v7, 1 }
 0xb07   : > { %v6770_v2 = vadd.f32 %v6769_v31, %v6768_v7 }
 0xb09   : > { %v6771_v50 = vmul.f32 0.001953125, %v6770_v2 }
 0xb0b   : > { %v6772_v21 = vadd.f32 1e-05, %v6771_v50 }
 0xb0d   : > { %11808 = vrsqrt.f32 %v6772_v21 }
 0xb17   : > { %v15373_v14 = vpop.eup %11808 }
 0xb18   : > { %v6835_v41 = vmul.f32 %v15373_v14, %v14915_v56  ;;  %v6808_v10 = vmul.f32 %v15373_v14, %v15161_v34  ;;  %v6809_v51 = vmul.f32 %v15373_v14, %v15168_v3  ;;  %v6810_v9 = vmul.f32 %v15373_v14, %v15175_v12 }
 0xb19   : > { %v6811_v54 = vmul.f32 %v15373_v14, %v15182_v45  ;;  %v6812_v56 = vmul.f32 %v15373_v14, %v15189_v39  ;;  %v6813_v1 = vmul.f32 %v15373_v14, %v15196_v49  ;;  %v6814_v53 = vmul.f32 %v15373_v14, %v15203_v35 }
 0xb1a   : > { %v6906_v7 = vmul.f32 %v15375_v22, %v6835_v41  ;;  %v6815_v34 = vmul.f32 %v15373_v14, %v15211_v20  ;;  %v6816_v3 = vmul.f32 %v15373_v14, %v15218_v62  ;;  %v6817_v12 = vmul.f32 %v15373_v14, %v15226_v44 }
 0xb1b   : > { %v6818_v45 = vmul.f32 %v15373_v14, %v15233_v42  ;;  %v6819_v39 = vmul.f32 %v15373_v14, %v15241_v0  ;;  %v6820_v49 = vmul.f32 %v15373_v14, %v15248_v29  ;;  %v6821_v35 = vmul.f32 %v15373_v14, %v15256_v32 }
 0xb1c   : > { %v15383_v21 = vadd.f32 %v15379_v25, %v6906_v7  ;;  %v6822_v20 = vmul.f32 %v15373_v14, %v15263_v24  ;;  %v6823_v62 = vmul.f32 %v15373_v14, %v15270_v13  ;;  %v6824_v44 = vmul.f32 %v15373_v14, %v15277_v40 }
 0xb1d   : > { %v6825_v42 = vmul.f32 %v15373_v14, %v15284_v23  ;;  %v6826_v0 = vmul.f32 %v15373_v14, %v15291_v47  ;;  %v6827_v29 = vmul.f32 %v15373_v14, %v15298_v11  ;;  %v6828_v32 = vmul.f32 %v15373_v14, %v15305_v26 }
 0xb1e   : > { %v6829_v24 = vmul.f32 %v15373_v14, %v15312_v33  ;;  %v6830_v13 = vmul.f32 %v15373_v14, %v15319_v17  ;;  %v6831_v40 = vmul.f32 %v15373_v14, %v15326_v15  ;;  %v6832_v23 = vmul.f32 %v15373_v14, %v15333_v43 }
 0xb1f   : > { %v6833_v47 = vmul.f32 %v15373_v14, %v15340_v46  ;;  %v6834_v11 = vmul.f32 %v15373_v14, %v14912_v37  ;;  %v6836_v26 = vmul.f32 %v15373_v14, %v14918_v5  ;;  %v6837_v33 = vmul.f32 %v15373_v14, %v14921_v8 }
 0xb20   : > { %v6879_v17 = vmul.f32 %v15375_v22, %v6808_v10  ;;  %v6880_v58 = vmul.f32 %v15375_v22, %v6809_v51  ;;  %v6881_v15 = vmul.f32 %v15375_v22, %v6810_v9  ;;  %v6882_v43 = vmul.f32 %v15375_v22, %v6811_v54 }
 0xb21   : > { %v6883_v18 = vmul.f32 %v15375_v22, %v6812_v56  ;;  %v6884_v46 = vmul.f32 %v15375_v22, %v6813_v1  ;;  %v6885_v37 = vmul.f32 %v15375_v22, %v6814_v53  ;;  %v6886_v6 = vmul.f32 %v15375_v22, %v6815_v34 }
 0xb22   : > { %v6887_v5 = vmul.f32 %v15375_v22, %v6816_v3  ;;  %v6888_v8 = vmul.f32 %v15375_v22, %v6817_v12  ;;  %v6889_v31 = vmul.f32 %v15375_v22, %v6818_v45  ;;  %v6890_v2 = vmul.f32 %v15375_v22, %v6819_v39 }
 0xb23   : > { %v6891_v50 = vmul.f32 %v15375_v22, %v6820_v49  ;;  %v6892_v41 = vmul.f32 %v15375_v22, %v6821_v35  ;;  %v6893_v7 = vmul.f32 %v15375_v22, %v6822_v20  ;;  %v6894_v10 = vmul.f32 %v15375_v22, %v6823_v62 }
 0xb24   : > { %v6895_v51 = vmul.f32 %v15375_v22, %v6824_v44  ;;  %v6896_v9 = vmul.f32 %v15375_v22, %v6825_v42  ;;  %v6897_v54 = vmul.f32 %v15375_v22, %v6826_v0  ;;  %v6898_v56 = vmul.f32 %v15375_v22, %v6827_v29 }
 0xb25   : > { %v6899_v1 = vmul.f32 %v15375_v22, %v6828_v32  ;;  %v6900_v53 = vmul.f32 %v15375_v22, %v6829_v24  ;;  %v6901_v34 = vmul.f32 %v15375_v22, %v6830_v13  ;;  %v6902_v3 = vmul.f32 %v15375_v22, %v6831_v40 }
 0xb26   : > { %v6903_v12 = vmul.f32 %v15375_v22, %v6832_v23  ;;  %v6904_v45 = vmul.f32 %v15375_v22, %v6833_v47  ;;  %v6905_v39 = vmul.f32 %v15375_v22, %v6834_v11  ;;  %v6907_v49 = vmul.f32 %v15375_v22, %v6836_v26 }
 0xb27   : > { %v6908_v35 = vmul.f32 %v15375_v22, %v6837_v33  ;;  %v6776_v20 = vmul.f32 %v15373_v14, %v14933_v57  ;;  %v6777_v62 = vmul.f32 %v15373_v14, %v14937_v36  ;;  %v6774_v44 = vmul.f32 %v15373_v14, %v14925_v19 }
 0xb28   : > { %v6775_v42 = vmul.f32 %v15373_v14, %v14929_v38  ;;  %v6778_v0 = vmul.f32 %v15373_v14, %v14945_v16  ;;  %v6779_v29 = vmul.f32 %v15373_v14, %v14951_v27  ;;  %v6780_v32 = vmul.f32 %v15373_v14, %v14959_v63 }
 0xb29   : > { %v6781_v57 = vmul.f32 %v15373_v14, %v14966_v55  ;;  %v6847_v36 = vmul.f32 %v15375_v22, %v6776_v20  ;;  %v6848_v24 = vmul.f32 %v15375_v22, %v6777_v62  ;;  %v6950_v19 = vadd.f32 %v15379_v25, %v6879_v17  ;;  %v17900_v62 = vld [vmem:[#allocation26_spill] sm:$0xff] }
 0xb2a   : > { %v6951_v38 = vadd.f32 %v15379_v25, %v6880_v58  ;;  %v15493_v13 = vadd.f32 %v15379_v25, %v6881_v15  ;;  %v15496_v16 = vadd.f32 %v15379_v25, %v6882_v43  ;;  %v6954_v27 = vadd.f32 %v15379_v25, %v6883_v18 }
 0xb2b   : > { %v6955_v63 = vadd.f32 %v15379_v25, %v6884_v46  ;;  %v15501_v55 = vadd.f32 %v15379_v25, %v6885_v37  ;;  %v15504_v40 = vadd.f32 %v15379_v25, %v6886_v6  ;;  %v6958_v23 = vadd.f32 %v15379_v25, %v6887_v5 }
 0xb2c   : > { %v6959_v47 = vadd.f32 %v15379_v25, %v6888_v8  ;;  %v15509_v11 = vadd.f32 %v15379_v25, %v6889_v31  ;;  %v15512_v26 = vadd.f32 %v15379_v25, %v6890_v2  ;;  %v6962_v33 = vadd.f32 %v15379_v25, %v6891_v50 }
 0xb2d   : > { %v6963_v17 = vadd.f32 %v15379_v25, %v6892_v41  ;;  %v15517_v58 = vadd.f32 %v15379_v25, %v6893_v7  ;;  %v15520_v15 = vadd.f32 %v15379_v25, %v6894_v10  ;;  %v6966_v43 = vadd.f32 %v15379_v25, %v6895_v51 }
 0xb2e   : > { %v6967_v18 = vadd.f32 %v15379_v25, %v6896_v9  ;;  %v15525_v46 = vadd.f32 %v15379_v25, %v6897_v54  ;;  %v15528_v37 = vadd.f32 %v15379_v25, %v6898_v56  ;;  %v6970_v6 = vadd.f32 %v15379_v25, %v6899_v1 }
 0xb2f   : > { %v6971_v5 = vadd.f32 %v15379_v25, %v6900_v53  ;;  %v15533_v8 = vadd.f32 %v15379_v25, %v6901_v34  ;;  %v15536_v31 = vadd.f32 %v15379_v25, %v6902_v3  ;;  %v6974_v2 = vadd.f32 %v15379_v25, %v6903_v12 }
 0xb30   : > { %v6975_v50 = vadd.f32 %v15379_v25, %v6904_v45  ;;  %v15541_v41 = vadd.f32 %v15379_v25, %v6905_v39  ;;  %v6978_v7 = vadd.f32 %v15379_v25, %v6907_v49  ;;  %v6979_v10 = vadd.f32 %v15379_v25, %v6908_v35  ;;  %v17899_v35 = vld [vmem:[#allocation25_spill] sm:$0xff] }
 0xb31   : > { %v6782_v51 = vmul.f32 %v15373_v14, %v14973_v52  ;;  %v6783_v9 = vmul.f32 %v15373_v14, %v14980_v28  ;;  %v6784_v54 = vmul.f32 %v15373_v14, %v14987_v61  ;;  %v6785_v56 = vmul.f32 %v15373_v14, %v14994_v59  ;;  %v17897_v59 = vld [vmem:[#allocation21_spill] sm:$0xff] }
 0xb32   : > { %v6786_v1 = vmul.f32 %v15373_v14, %v15001_v30  ;;  %v6845_v53 = vmul.f32 %v15375_v22, %v6774_v44  ;;  %v6846_v34 = vmul.f32 %v15375_v22, %v6775_v42  ;;  %v6849_v3 = vmul.f32 %v15375_v22, %v6778_v0  ;;  %v17898_v30 = vld [vmem:[#allocation22_spill] sm:$0xff]  ;;  %v17901_v42 = vld [vmem:[#allocation29_spill] sm:$0xff] }
 0xb33   : > { %v6850_v52 = vmul.f32 %v15375_v22, %v6779_v29  ;;  %v6851_v12 = vmul.f32 %v15375_v22, %v6780_v32  ;;  %v6852_v28 = vmul.f32 %v15375_v22, %v6781_v57  ;;  %v6918_v61 = vadd.f32 %v15379_v25, %v6847_v36  ;;  %v17902_v29 = vld [vmem:[#allocation30_spill] sm:$0xff]  ;;  %v17903_v57 = vld [vmem:[#allocation33_spill] sm:$0xff] }
 0xb34   : > { %v6919_v45 = vadd.f32 %v15379_v25, %v6848_v24  ;;  %v15564_v39 = vadd.f32 %v6950_v19, %v17897_v59  ;;  %v15567_v49 = vadd.f32 %v6951_v38, %v17898_v30  ;;  %v15570_v20 = vadd.f32 %v6954_v27, %v17899_v35  ;;  %v17904_v24 = vld [vmem:[#allocation34_spill] sm:$0xff]  ;;  %v17905_v38 = vld [vmem:[#allocation37_spill] sm:$0xff] }
 0xb35   : > { %v15573_v44 = vadd.f32 %v6955_v63, %v17900_v62  ;;  %v15576_v0 = vadd.f32 %v6958_v23, %v17901_v42  ;;  %v15579_v32 = vadd.f32 %v6959_v47, %v17902_v29  ;;  %v15582_v36 = vadd.f32 %v6962_v33, %v17903_v57  ;;  %v17906_v27 = vld [vmem:[#allocation38_spill] sm:$0xff]  ;;  %v17907_v63 = vld [vmem:[#allocation41_spill] sm:$0xff] }
 0xb36   : > { %v15585_v19 = vadd.f32 %v6963_v17, %v17904_v24  ;;  %v15588_v59 = vadd.f32 %v6966_v43, %v17905_v38  ;;  %v15591_v30 = vadd.f32 %v6967_v18, %v17906_v27  ;;  %v15594_v35 = vadd.f32 %v6970_v6, %v17907_v63  ;;  %v17908_v23 = vld [vmem:[#allocation42_spill] sm:$0xff]  ;;  %v17909_v47 = vld [vmem:[#allocation45_spill] sm:$0xff] }
 0xb37   : > { %v15597_v62 = vadd.f32 %v6971_v5, %v17908_v23  ;;  %v15600_v42 = vadd.f32 %v6974_v2, %v17909_v47  ;;  %v17910_v33 = vld [vmem:[#allocation46_spill] sm:$0xff]  ;;  %v17911_v17 = vld [vmem:[#allocation49_spill] sm:$0xff]  ;;  %v6916_v18 = vadd.f32 %v15379_v25, %v6845_v53  ;;  %v6917_v6 = vadd.f32 %v15379_v25, %v6846_v34 }
 0xb38   : > { %v15603_v29 = vadd.f32 %v6975_v50, %v17910_v33  ;;  %v15606_v57 = vadd.f32 %v6978_v7, %v17911_v17  ;;  %v17912_v43 = vld [vmem:[#allocation50_spill] sm:$0xff]  ;;  %v6920_v38 = vadd.f32 %v15379_v25, %v6849_v3  ;;  %v6921_v5 = vadd.f32 %v15379_v25, %v6850_v52  ;;  %v17913_v50 = vld [vmem:[#allocation51_spill] sm:$0xff]  ;;  %v17914_v23 = vld [vmem:[#allocation53_spill] sm:$0xff] }
 0xb39   : > { %v15609_v24 = vadd.f32 %v6979_v10, %v17912_v43  ;;  %v6853_v2 = vmul.f32 %v15375_v22, %v6782_v51  ;;  %v6854_v27 = vmul.f32 %v15375_v22, %v6783_v9  ;;  %v6982_v63 = vadd.f32 %v6918_v61, %v17913_v50  ;;  %v17916_v33 = vld [vmem:[#allocation54_spill] sm:$0xff]  ;;  %v17917_v43 = vld [vmem:[#allocation56_spill] sm:$0xff]  ;;  %v17945_v61 = vld [vmem:[#allocation131_spill] sm:$0xff] }
 0xb3a   : > { %v6983_v7 = vadd.f32 %v6919_v45, %v17914_v23  ;;  %v17915_v45 = vld [vmem:[#allocation52_spill] sm:$0xff]  ;;  %v6981_v17 = vadd.f32 %v6917_v6, %v17916_v33  ;;  %v6984_v50 = vadd.f32 %v6920_v38, %v17917_v43  ;;  %v17918_v23 = vld [vmem:[#allocation58_spill] sm:$0xff]  ;;  %v6787_v51 = vmul.f32 %v15373_v14, %v15008_v4 }
 0xb3b   : > { %v6980_v47 = vadd.f32 %v6916_v18, %v17915_v45  ;;  %v6985_v3 = vadd.f32 %v6921_v5, %v17918_v23  ;;  %v6855_v34 = vmul.f32 %v15375_v22, %v6784_v54  ;;  %v6922_v9 = vadd.f32 %v15379_v25, %v6851_v12  ;;  %v17919_v45 = vld [vmem:[#allocation115_spill] sm:$0xff]  ;;  %v17927_v43 = vld [vmem:[#allocation62_spill] sm:$0xff] }
 0xb3c   : > { %v7045_v53 = vpack.c.bf16 %v6983_v7, %v6982_v63  ;;  %v6923_v52 = vadd.f32 %v15379_v25, %v6852_v28  ;;  %v6788_v18 = vmul.f32 %v15373_v14, %v15015_v48  ;;  %v6789_v6 = vmul.f32 %v15373_v14, %v15022_v60  ;;  %v17920_v54 = vld [vmem:[#allocation127_spill] sm:$0xff] }
 0xb3d   : > { %v7044_v10 = vpack.c.bf16 %v6981_v17, %v6980_v47  ;;  %v6924_v38 = vadd.f32 %v15379_v25, %v6853_v2  ;;  %v6925_v5 = vadd.f32 %v15379_v25, %v6854_v27  ;;  %v6790_v4 = vmul.f32 %v15373_v14, %v17919_v45  ;;  %v17921_v2 = vld [vmem:[#allocation55_spill] sm:$0xff]  ;;  %v17922_v27 = vld [vmem:[#allocation57_spill] sm:$0xff]  ;;  %v17930_v45 = vld [vmem:[#allocation32_spill] sm:$0xff] }
 0xb3e   : > { %v6791_v12 = vmul.f32 %v15373_v14, %v17920_v54  ;;  %v6856_v63 = vmul.f32 %v15375_v22, %v6785_v56  ;;  %v7046_v28 = vpack.c.bf16 %v6985_v3, %v6984_v50  ;;  %v6857_v48 = vmul.f32 %v15375_v22, %v6786_v1  ;;  %v17923_v17 = vld [vmem:[#allocation23_spill] sm:$0xff]  ;;  %v17928_v50 = vld [vmem:[#allocation28_spill] sm:$0xff] }
 0xb3f   : > { %10687 = vmatprep.mubr.msk.bf16.mxu1 %vm2102_vm0, %v7044_v10  ;;  %v6858_v7 = vmul.f32 %v15375_v22, %v6787_v51  ;;  %v6926_v60 = vadd.f32 %v15379_v25, %v6855_v34  ;;  %v6986_v47 = vadd.f32 %v6922_v9, %v17921_v2  ;;  %v6987_v33 = vadd.f32 %v6923_v52, %v17922_v27  ;;  %v17924_v10 = vld [vmem:[#allocation24_spill] sm:$0xff]  ;;  %v17925_v1 = vld [vmem:[#allocation27_spill] sm:$0xff] }
 0xb40   : > { %10688 = vmatmul.mubr.msk.bf16.vlgmr.msra.gmra.mrb[108].mxu1 %vm2102_vm0, %v7045_v53  ;;  %v15665_v56 = vadd.f32 %v15493_v13, %v17923_v17  ;;  %v15669_v3 = vadd.f32 %v15496_v16, %v17924_v10  ;;  %v15673_v51 = vadd.f32 %v15501_v55, %v17925_v1  ;;  %v17926_v34 = vld [vmem:[#allocation60_spill] sm:$0xff]  ;;  %v6989_v53 = vadd.f32 %v6925_v5, %v17927_v43  ;;  %v17929_v23 = vld [vmem:[#allocation31_spill] sm:$0xff] }
 0xb41   : > { %10691 = vmatprep.mubr.msk.bf16.mxu1 %vm2102_vm0, %v7046_v28  ;;  %v6988_v9 = vadd.f32 %v6924_v38, %v17926_v34  ;;  %v15679_v52 = vadd.f32 %v15504_v40, %v17928_v50  ;;  %v15683_v13 = vadd.f32 %v15509_v11, %v17929_v23  ;;  %v15689_v54 = vadd.f32 %v15512_v26, %v17930_v45  ;;  %v17931_v55 = vld [vmem:[#allocation35_spill] sm:$0xff]  ;;  %v17932_v5 = vld [vmem:[#allocation36_spill] sm:$0xff] }
 0xb42   : > { %v7062_v16 = vpack.c.bf16 %v15669_v3, %v15665_v56  ;;  %v15693_v38 = vadd.f32 %v15517_v58, %v17931_v55  ;;  %v15697_v28 = vadd.f32 %v15520_v15, %v17932_v5  ;;  %v17933_v11 = vld [vmem:[#allocation39_spill] sm:$0xff]  ;;  %v17934_v27 = vld [vmem:[#allocation40_spill] sm:$0xff]  ;;  %v7047_v50 = vpack.c.bf16 %v6987_v33, %v6986_v47 }
 0xb43   : > { %v7064_v40 = vpack.c.bf16 %v15679_v52, %v15673_v51  ;;  %v15703_v2 = vadd.f32 %v15525_v46, %v17933_v11  ;;  %v15707_v17 = vadd.f32 %v15528_v37, %v17934_v27  ;;  %v17935_v26 = vld [vmem:[#allocation43_spill] sm:$0xff]  ;;  %v7066_v58 = vpack.c.bf16 %v15689_v54, %v15683_v13  ;;  %v17936_v1 = vld [vmem:[#allocation44_spill] sm:$0xff] }
 0xb44   : > { %v15711_v10 = vadd.f32 %v15533_v8, %v17935_v26  ;;  %v7068_v15 = vpack.c.bf16 %v15697_v28, %v15693_v38  ;;  %v15719_v34 = vadd.f32 %v15536_v31, %v17936_v1  ;;  %v17937_v46 = vld [vmem:[#allocation47_spill] sm:$0xff]  ;;  %v6927_v37 = vadd.f32 %v15379_v25, %v6856_v63  ;;  %v17938_v23 = vld [vmem:[#allocation48_spill] sm:$0xff]  ;;  %v17942_v1 = vld [vmem:[#allocation65_spill] sm:$0xff] }
 0xb45   : > { %v15723_v43 = vadd.f32 %v15541_v41, %v17937_v46  ;;  %v7070_v8 = vpack.c.bf16 %v15707_v17, %v15703_v2  ;;  %v15730_v45 = vadd.f32 %v15383_v21, %v17938_v23  ;;  %v6928_v55 = vadd.f32 %v15379_v25, %v6857_v48  ;;  %v17939_v47 = vld [vmem:[#allocation59_spill] sm:$0xff]  ;;  %v17940_v48 = vld [vmem:[#allocation61_spill] sm:$0xff] }
 0xb46   : > { %v6929_v5 = vadd.f32 %v15379_v25, %v6858_v7  ;;  %v7048_v31 = vpack.c.bf16 %v6989_v53, %v6988_v9  ;;  %v7072_v11 = vpack.c.bf16 %v15719_v34, %v15711_v10  ;;  %v6859_v63 = vmul.f32 %v15375_v22, %v6788_v18  ;;  %v17941_v53 = vld [vmem:[#allocation2_spill] sm:$0xff] }
 0xb47   : > { %v7074_v41 = vpack.c.bf16 %v15730_v45, %v15723_v43  ;;  %v6860_v21 = vmul.f32 %v15375_v22, %v6789_v6  ;;  %v6990_v33 = vadd.f32 %v6926_v60, %v17939_v47  ;;  %v6991_v27 = vadd.f32 %v6927_v37, %v17940_v48  ;;  %v17946_v47 = vld [vmem:[#allocation133_spill] sm:$0xff] }
 0xb48   : > { %10692 = vmatmul.mubr.msk.bf16.gmra.mrb[112].mxu1 %vm2102_vm0, %v7047_v50  ;;  %v6861_v7 = vmul.f32 %v15375_v22, %v6790_v4  ;;  %v6862_v9 = vmul.f32 %v15375_v22, %v6791_v12  ;;  %v6992_v26 = vadd.f32 %v6928_v55, %v17941_v53  ;;  %v6993_v46 = vadd.f32 %v6929_v5, %v17942_v1  ;;  %v17943_v50 = vld [vmem:[#allocation129_spill] sm:$0xff] }
 0xb49   : > { %10695 = vmatprep.mubr.msk.bf16.mxu1 %vm2102_vm0, %v7048_v31  ;;  %v6792_v23 = vmul.f32 %v15373_v14, %v17943_v50  ;;  %v17944_v31 = vld [vmem:[#allocation120_spill] sm:$0xff]  ;;  %v6794_v6 = vmul.f32 %v15373_v14, %v17945_v61  ;;  %v6930_v60 = vadd.f32 %v15379_v25, %v6859_v63  ;;  %v6931_v37 = vadd.f32 %v15379_v25, %v6860_v21  ;;  %v17947_v63 = vld [vmem:[#allocation63_spill] sm:$0xff] }
 0xb4a   : > { %v6793_v18 = vmul.f32 %v15373_v14, %v17944_v31  ;;  %v7049_v4 = vpack.c.bf16 %v6991_v27, %v6990_v33  ;;  %v6795_v12 = vmul.f32 %v15373_v14, %v17946_v47  ;;  %v6932_v55 = vadd.f32 %v15379_v25, %v6861_v7  ;;  %v17948_v21 = vld [vmem:[#allocation64_spill] sm:$0xff]  ;;  %v17949_v7 = vld [vmem:[#allocation3_spill] sm:$0xff]  ;;  %v17952_v47 = vld [vmem:[#allocation118_spill] sm:$0xff] }
 0xb4b   : > { %v6933_v5 = vadd.f32 %v15379_v25, %v6862_v9  ;;  %v7050_v48 = vpack.c.bf16 %v6993_v46, %v6992_v26  ;;  %v6863_v53 = vmul.f32 %v15375_v22, %v6792_v23  ;;  %v6994_v1 = vadd.f32 %v6930_v60, %v17947_v63  ;;  %v17950_v9 = vld [vmem:[#allocation4_spill] sm:$0xff]  ;;  %v17954_v63 = vld [vmem:[#allocation135_spill] sm:$0xff] }
 0xb4c   : > { %v6864_v61 = vmul.f32 %v15375_v22, %v6793_v18  ;;  %v6995_v33 = vadd.f32 %v6931_v37, %v17948_v21  ;;  %v6865_v27 = vmul.f32 %v15375_v22, %v6794_v6  ;;  %v6866_v50 = vmul.f32 %v15375_v22, %v6795_v12  ;;  %v17951_v46 = vld [vmem:[#allocation124_spill] sm:$0xff] }
 0xb4d   : > { %v6996_v31 = vadd.f32 %v6932_v55, %v17949_v7  ;;  %v6997_v26 = vadd.f32 %v6933_v5, %v17950_v9  ;;  %v6797_v23 = vmul.f32 %v15373_v14, %v17952_v47  ;;  %v6934_v60 = vadd.f32 %v15379_v25, %v6863_v53  ;;  %v17955_v53 = vld [vmem:[#allocation5_spill] sm:$0xff] }
 0xb4e   : > { %v6935_v37 = vadd.f32 %v15379_v25, %v6864_v61  ;;  %v7051_v6 = vpack.c.bf16 %v6995_v33, %v6994_v1  ;;  %v6799_v12 = vmul.f32 %v15373_v14, %v17954_v63  ;;  %v6936_v55 = vadd.f32 %v15379_v25, %v6865_v27  ;;  %v17956_v61 = vld [vmem:[#allocation6_spill] sm:$0xff]  ;;  %v17957_v27 = vld [vmem:[#allocation7_spill] sm:$0xff]  ;;  %v17960_v63 = vld [vmem:[#allocation128_spill] sm:$0xff] }
 0xb4f   : > { %v6937_v5 = vadd.f32 %v15379_v25, %v6866_v50  ;;  %v7052_v21 = vpack.c.bf16 %v6997_v26, %v6996_v31  ;;  %v6868_v9 = vmul.f32 %v15375_v22, %v6797_v23  ;;  %v17958_v50 = vld [vmem:[#allocation8_spill] sm:$0xff]  ;;  %v17959_v26 = vld [vmem:[#allocation137_spill] sm:$0xff] }
 0xb50   : > { %10696 = vmatmul.mubr.msk.bf16.gmra.mrb[116].mxu1 %vm2102_vm0, %v7049_v4  ;;  %v6796_v4 = vmul.f32 %v15373_v14, %v17951_v46  ;;  %v6998_v46 = vadd.f32 %v6934_v60, %v17955_v53  ;;  %v6999_v1 = vadd.f32 %v6935_v37, %v17956_v61  ;;  %v6870_v47 = vmul.f32 %v15375_v22, %v6799_v12  ;;  %v17962_v53 = vld [vmem:[#allocation141_spill] sm:$0xff] }
 0xb51   : > { %10699 = vmatprep.mubr.msk.bf16.mxu1 %vm2102_vm0, %v7050_v48  ;;  %v17953_v48 = vld [vmem:[#allocation122_spill] sm:$0xff]  ;;  %v7001_v31 = vadd.f32 %v6937_v5, %v17958_v50  ;;  %v6939_v37 = vadd.f32 %v15379_v25, %v6868_v9  ;;  %v6803_v12 = vmul.f32 %v15373_v14, %v17962_v53 }
 0xb52   : > { %v6798_v18 = vmul.f32 %v15373_v14, %v17953_v48  ;;  %v6867_v7 = vmul.f32 %v15375_v22, %v6796_v4  ;;  %v7000_v48 = vadd.f32 %v6936_v55, %v17957_v27  ;;  %v6801_v4 = vmul.f32 %v15373_v14, %v17960_v63  ;;  %v17964_v9 = vld [vmem:[#allocation10_spill] sm:$0xff] }
 0xb53   : > { %v6941_v5 = vadd.f32 %v15379_v25, %v6870_v47  ;;  %v6874_v63 = vmul.f32 %v15375_v22, %v6803_v12  ;;  %v17966_v47 = vld [vmem:[#allocation12_spill] sm:$0xff]  ;;  %v17968_v53 = vld [vmem:[#allocation126_spill] sm:$0xff] }
 0xb54   : > { %v6869_v33 = vmul.f32 %v15375_v22, %v6798_v18  ;;  %v6938_v60 = vadd.f32 %v15379_v25, %v6867_v7  ;;  %v7053_v18 = vpack.c.bf16 %v6999_v1, %v6998_v46  ;;  %v7054_v61 = vpack.c.bf16 %v7001_v31, %v7000_v48  ;;  %v17963_v7 = vld [vmem:[#allocation9_spill] sm:$0xff]  ;;  %v17967_v31 = vld [vmem:[#allocation132_spill] sm:$0xff] }
 0xb55   : > { %v6872_v50 = vmul.f32 %v15375_v22, %v6801_v4  ;;  %v7003_v46 = vadd.f32 %v6939_v37, %v17964_v9  ;;  %v7005_v48 = vadd.f32 %v6941_v5, %v17966_v47  ;;  %v6945_v5 = vadd.f32 %v15379_v25, %v6874_v63  ;;  %v17974_v63 = vld [vmem:[#allocation16_spill] sm:$0xff] }
 0xb56   : > { %v6940_v55 = vadd.f32 %v15379_v25, %v6869_v33  ;;  %v17965_v33 = vld [vmem:[#allocation11_spill] sm:$0xff] }
 0xb57   : > { %v6943_v37 = vadd.f32 %v15379_v25, %v6872_v50  ;;  %v17972_v50 = vld [vmem:[#allocation14_spill] sm:$0xff] }
 0xb58   : > { %10700 = vmatmul.mubr.msk.bf16.gmra.mrb[120].mxu1 %vm2102_vm0, %v7051_v6  ;;  %v6800_v6 = vmul.f32 %v15373_v14, %v17959_v26  ;;  %v7002_v26 = vadd.f32 %v6938_v60, %v17963_v7  ;;  %v17970_v7 = vld [vmem:[#allocation143_spill] sm:$0xff] }
 0xb59   : > { %10703 = vmatprep.mubr.msk.bf16.mxu1 %vm2102_vm0, %v7052_v21  ;;  %v17961_v21 = vld [vmem:[#allocation139_spill] sm:$0xff]  ;;  %v6807_v12 = vmul.f32 %v15373_v14, %v17970_v7 }
 0xb5a   : > { %v6802_v23 = vmul.f32 %v15373_v14, %v17961_v21  ;;  %v6871_v27 = vmul.f32 %v15375_v22, %v6800_v6  ;;  %v7004_v21 = vadd.f32 %v6940_v55, %v17965_v33  ;;  %v6805_v6 = vmul.f32 %v15373_v14, %v17968_v53 }
 0xb5c   : > { %v6873_v1 = vmul.f32 %v15375_v22, %v6802_v23  ;;  %v6942_v60 = vadd.f32 %v15379_v25, %v6871_v27  ;;  %v7055_v23 = vpack.c.bf16 %v7003_v46, %v7002_v26  ;;  %v7056_v9 = vpack.c.bf16 %v7005_v48, %v7004_v21  ;;  %v17971_v27 = vld [vmem:[#allocation13_spill] sm:$0xff] }
 0xb5d   : > { %v6876_v47 = vmul.f32 %v15375_v22, %v6805_v6  ;;  %v7007_v26 = vadd.f32 %v6943_v37, %v17972_v50  ;;  %v7009_v21 = vadd.f32 %v6945_v5, %v17974_v63  ;;  %v17976_v37 = vld [vmem:[#allocation18_spill] sm:$0xff]  ;;  %v17978_v5 = vld [vmem:[#allocation20_spill] sm:$0xff] }
 0xb5e   : > { %v6944_v55 = vadd.f32 %v15379_v25, %v6873_v1  ;;  %v17973_v1 = vld [vmem:[#allocation15_spill] sm:$0xff] }
 0xb60   : > { %10704 = vmatmul.mubr.msk.bf16.gmra.mrb[124].mxu1 %vm2102_vm0, %v7053_v18  ;;  %v6804_v18 = vmul.f32 %v15373_v14, %v17967_v31  ;;  %v7006_v31 = vadd.f32 %v6942_v60, %v17971_v27  ;;  %v7008_v53 = vadd.f32 %v6944_v55, %v17973_v1  ;;  %v17980_v27 = vpack.c.bf16 %v15573_v44, %v15570_v20 }
 0xb61   : > { %10707 = vmatprep.mubr.msk.bf16.mxu1 %vm2102_vm0, %v7054_v61  ;;  %v17969_v61 = vld [vmem:[#allocation130_spill] sm:$0xff]  ;;  %v17983_v20 = vpack.c.bf16 %v15591_v30, %v15588_v59  ;;  %v17984_v44 = vpack.c.bf16 %v15597_v62, %v15594_v35 }
 0xb62   : > { %v6806_v4 = vmul.f32 %v15373_v14, %v17969_v61  ;;  %v6875_v33 = vmul.f32 %v15375_v22, %v6804_v18  ;;  %v6878_v14 = vmul.f32 %v15375_v22, %v6807_v12  ;;  %v6947_v61 = vadd.f32 %v15379_v25, %v6876_v47  ;;  %v17977_v12 = vld [vmem:[#allocation19_spill] sm:$0xff] }
 0xb63   : > { %v7058_v60 = vpack.c.bf16 %v7009_v21, %v7008_v53 }
 0xb64   : > { %v6877_v46 = vmul.f32 %v15375_v22, %v6806_v4  ;;  %v6946_v48 = vadd.f32 %v15379_v25, %v6875_v33  ;;  %v6949_v6 = vadd.f32 %v15379_v25, %v6878_v14  ;;  %v17975_v4 = vld [vmem:[#allocation17_spill] sm:$0xff]  ;;  %v7011_v7 = vadd.f32 %v6947_v61, %v17976_v37 }
 0xb66   : > { %v6948_v18 = vadd.f32 %v15379_v25, %v6877_v46  ;;  %v7010_v22 = vadd.f32 %v6946_v48, %v17975_v4  ;;  %v17979_v25 = vpack.c.bf16 %v15567_v49, %v15564_v39  ;;  %v17981_v39 = vpack.c.bf16 %v15579_v32, %v15576_v0 }
 0xb67   : > { %v17982_v49 = vpack.c.bf16 %v15585_v19, %v15582_v36  ;;  %v17985_v0 = vpack.c.bf16 %v15603_v29, %v15600_v42  ;;  %v17986_v32 = vpack.c.bf16 %v15609_v24, %v15606_v57 }
 0xb68   : > { %10708 = vmatmul.mubr.msk.bf16.gmra.mrb[128].mxu1 %vm2102_vm0, %v7055_v23  ;;  %v7057_v23 = vpack.c.bf16 %v7007_v26, %v7006_v31  ;;  %v7012_v55 = vadd.f32 %v6948_v18, %v17977_v12  ;;  %v7059_v33 = vpack.c.bf16 %v7011_v7, %v7010_v22 }
 0xb69   : > { %10711 = vmatprep.mubr.msk.bf16.mxu1 %vm2102_vm0, %v7056_v9  ;;  %v7013_v9 = vadd.f32 %v6949_v6, %v17978_v5 }
 0xb6b   : > { %v7060_v47 = vpack.c.bf16 %v7013_v9, %v7012_v55 }
 0xb70   : > { %10712 = vmatmul.mubr.msk.bf16.gmra.mrb[132].mxu1 %vm2102_vm0, %v7057_v23 }
 0xb71   : > { %10715 = vmatprep.mubr.msk.bf16.mxu1 %vm2102_vm0, %v7058_v60 }
 0xb78   : > { %10716 = vmatmul.mubr.msk.bf16.gmra.mrb[136].mxu1 %vm2102_vm0, %v7059_v33 }
 0xb79   : > { %10719 = vmatprep.mubr.msk.bf16.mxu1 %vm2102_vm0, %v7060_v47 }
 0xb80   : > { %10720 = vmatmul.mubr.msk.bf16.gmra.mrb[140].mxu1 %vm2102_vm0, %v17979_v25 }
 0xb81   : > { %10723 = vmatprep.mubr.msk.bf16.mxu1 %vm2102_vm0, %v7062_v16 }
 0xb88   : > { %10724 = vmatmul.mubr.msk.bf16.gmra.mrb[144].mxu1 %vm2102_vm0, %v17980_v27 }
 0xb89   : > { %10727 = vmatprep.mubr.msk.bf16.mxu1 %vm2102_vm0, %v7064_v40 }
 0xb90   : > { %10728 = vmatmul.mubr.msk.bf16.gmra.mrb[148].mxu1 %vm2102_vm0, %v17981_v39 }
 0xb91   : > { %10731 = vmatprep.mubr.msk.bf16.mxu1 %vm2102_vm0, %v7066_v58 }
 0xb98   : > { %10732 = vmatmul.mubr.msk.bf16.gmra.mrb[152].mxu1 %vm2102_vm0, %v17982_v49 }
 0xb99   : > { %10735 = vmatprep.mubr.msk.bf16.mxu1 %vm2102_vm0, %v7068_v15 }
 0xba0   : > { %10736 = vmatmul.mubr.msk.bf16.gmra.mrb[156].mxu1 %vm2102_vm0, %v17983_v20 }
 0xba1   : > { %10739 = vmatprep.mubr.msk.bf16.mxu1 %vm2102_vm0, %v7070_v8 }
 0xba8   : > { %10740 = vmatmul.mubr.msk.bf16.gmra.mrb[160].mxu1 %vm2102_vm0, %v17984_v44 }
 0xba9   : > { %10743 = vmatprep.mubr.msk.bf16.mxu1 %vm2102_vm0, %v7072_v11 }
 0xbb0   : > { %10744 = vmatmul.mubr.msk.bf16.gmra.mrb[164].mxu1 %vm2102_vm0, %v17985_v0 }
 0xbb1   : > { %10747 = vmatprep.mubr.msk.bf16.mxu1 %vm2102_vm0, %v7074_v41 }
 0xbb8   : > { %10748 = vmatmul.mubr.msk.bf16.gmra.mrb[168].mxu1 %vm2102_vm0, %v17986_v32 }
 0xc13   : > { %v10689_v36 = vpop.f32.mrb[108].mxu1 }
 0xc14   : > { %7495 = vst.msk [vmem:[%s15912_s0 + $0x10] sm:$0xff] %vm2102_vm0, %v10689_v36  ;;  %v7238_v19 = vpop.f32.mrb[109].mxu1 }
 0xc15   : > { %7493 = vst.msk [vmem:[%s15912_s0] sm:$0xff] %vm2102_vm0, %v7238_v19  ;;  %v10690_v59 = vpop.f32.mrb[110].mxu1 }
 0xc16   : > { %7496 = vst.msk [vmem:[%s15912_s0 + $0x18] sm:$0xff] %vm2102_vm0, %v10690_v59  ;;  %v7241_v30 = vpop.f32.mrb[111].mxu1 }
 0xc17   : > { %7494 = vst.msk [vmem:[%s15912_s0 + $0x8] sm:$0xff] %vm2102_vm0, %v7241_v30 }
 0xc1b   : > { %v10693_v35 = vpop.f32.mrb[112].mxu1 }
 0xc1c   : > { %7499 = vst.msk [vmem:[%s15912_s0 + $0x30] sm:$0xff] %vm2102_vm0, %v10693_v35  ;;  %v7254_v62 = vpop.f32.mrb[113].mxu1 }
 0xc1d   : > { %7497 = vst.msk [vmem:[%s15912_s0 + $0x20] sm:$0xff] %vm2102_vm0, %v7254_v62  ;;  %v10694_v42 = vpop.f32.mrb[114].mxu1 }
 0xc1e   : > { %7500 = vst.msk [vmem:[%s15912_s0 + $0x38] sm:$0xff] %vm2102_vm0, %v10694_v42  ;;  %v7257_v29 = vpop.f32.mrb[115].mxu1 }
 0xc1f   : > { %7498 = vst.msk [vmem:[%s15912_s0 + $0x28] sm:$0xff] %vm2102_vm0, %v7257_v29 }
 0xc23   : > { %v10697_v57 = vpop.f32.mrb[116].mxu1 }
 0xc24   : > { %7503 = vst.msk [vmem:[%s15912_s0 + $0x50] sm:$0xff] %vm2102_vm0, %v10697_v57  ;;  %v7270_v24 = vpop.f32.mrb[117].mxu1 }
 0xc25   : > { %7501 = vst.msk [vmem:[%s15912_s0 + $0x40] sm:$0xff] %vm2102_vm0, %v7270_v24  ;;  %v10698_v56 = vpop.f32.mrb[118].mxu1 }
 0xc26   : > { %7504 = vst.msk [vmem:[%s15912_s0 + $0x58] sm:$0xff] %vm2102_vm0, %v10698_v56  ;;  %v7273_v3 = vpop.f32.mrb[119].mxu1 }
 0xc27   : > { %7502 = vst.msk [vmem:[%s15912_s0 + $0x48] sm:$0xff] %vm2102_vm0, %v7273_v3 }
 0xc2b   : > { %v10701_v51 = vpop.f32.mrb[120].mxu1 }
 0xc2c   : > { %7507 = vst.msk [vmem:[%s15912_s0 + $0x70] sm:$0xff] %vm2102_vm0, %v10701_v51  ;;  %v7286_v52 = vpop.f32.mrb[121].mxu1 }
 0xc2d   : > { %7505 = vst.msk [vmem:[%s15912_s0 + $0x60] sm:$0xff] %vm2102_vm0, %v7286_v52  ;;  %v10702_v13 = vpop.f32.mrb[122].mxu1 }
 0xc2e   : > { %7508 = vst.msk [vmem:[%s15912_s0 + $0x78] sm:$0xff] %vm2102_vm0, %v10702_v13  ;;  %v7289_v16 = vpop.f32.mrb[123].mxu1 }
 0xc2f   : > { %7506 = vst.msk [vmem:[%s15912_s0 + $0x68] sm:$0xff] %vm2102_vm0, %v7289_v16 }
 0xc33   : > { %v10705_v54 = vpop.f32.mrb[124].mxu1 }
 0xc34   : > { %7511 = vst.msk [vmem:[%s15912_s0 + $0x90] sm:$0xff] %vm2102_vm0, %v10705_v54  ;;  %v7302_v38 = vpop.f32.mrb[125].mxu1 }
 0xc35   : > { %7509 = vst.msk [vmem:[%s15912_s0 + $0x80] sm:$0xff] %vm2102_vm0, %v7302_v38  ;;  %v10706_v28 = vpop.f32.mrb[126].mxu1 }
 0xc36   : > { %7512 = vst.msk [vmem:[%s15912_s0 + $0x98] sm:$0xff] %vm2102_vm0, %v10706_v28  ;;  %v7305_v40 = vpop.f32.mrb[127].mxu1 }
 0xc37   : > { %7510 = vst.msk [vmem:[%s15912_s0 + $0x88] sm:$0xff] %vm2102_vm0, %v7305_v40 }
 0xc3b   : > { %v10709_v2 = vpop.f32.mrb[128].mxu1 }
 0xc3c   : > { %7515 = vst.msk [vmem:[%s15912_s0 + $0xb0] sm:$0xff] %vm2102_vm0, %v10709_v2  ;;  %v7318_v17 = vpop.f32.mrb[129].mxu1 }
 0xc3d   : > { %7513 = vst.msk [vmem:[%s15912_s0 + $0xa0] sm:$0xff] %vm2102_vm0, %v7318_v17  ;;  %v10710_v10 = vpop.f32.mrb[130].mxu1 }
 0xc3e   : > { %7516 = vst.msk [vmem:[%s15912_s0 + $0xb8] sm:$0xff] %vm2102_vm0, %v10710_v10  ;;  %v7321_v58 = vpop.f32.mrb[131].mxu1 }
 0xc3f   : > { %7514 = vst.msk [vmem:[%s15912_s0 + $0xa8] sm:$0xff] %vm2102_vm0, %v7321_v58 }
 0xc43   : > { %v10713_v15 = vpop.f32.mrb[132].mxu1 }
 0xc44   : > { %7519 = vst.msk [vmem:[%s15912_s0 + $0xd0] sm:$0xff] %vm2102_vm0, %v10713_v15  ;;  %v7334_v34 = vpop.f32.mrb[133].mxu1 }
 0xc45   : > { %7517 = vst.msk [vmem:[%s15912_s0 + $0xc0] sm:$0xff] %vm2102_vm0, %v7334_v34  ;;  %v10714_v43 = vpop.f32.mrb[134].mxu1 }
 0xc46   : > { %7520 = vst.msk [vmem:[%s15912_s0 + $0xd8] sm:$0xff] %vm2102_vm0, %v10714_v43  ;;  %v7337_v8 = vpop.f32.mrb[135].mxu1 }
 0xc47   : > { %7518 = vst.msk [vmem:[%s15912_s0 + $0xc8] sm:$0xff] %vm2102_vm0, %v7337_v8 }
 0xc4b   : > { %v10717_v45 = vpop.f32.mrb[136].mxu1 }
 0xc4c   : > { %7523 = vst.msk [vmem:[%s15912_s0 + $0xf0] sm:$0xff] %vm2102_vm0, %v10717_v45  ;;  %v7350_v11 = vpop.f32.mrb[137].mxu1 }
 0xc4d   : > { %7521 = vst.msk [vmem:[%s15912_s0 + $0xe0] sm:$0xff] %vm2102_vm0, %v7350_v11  ;;  %v10718_v41 = vpop.f32.mrb[138].mxu1 }
 0xc4e   : > { %7524 = vst.msk [vmem:[%s15912_s0 + $0xf8] sm:$0xff] %vm2102_vm0, %v10718_v41  ;;  %v7353_v31 = vpop.f32.mrb[139].mxu1 }
 0xc4f   : > { %7522 = vst.msk [vmem:[%s15912_s0 + $0xe8] sm:$0xff] %vm2102_vm0, %v7353_v31 }
 0xc53   : > { %v10721_v50 = vpop.f32.mrb[140].mxu1 }
 0xc54   : > { %7527 = vst.msk [vmem:[%s15912_s0 + $0x110] sm:$0xff] %vm2102_vm0, %v10721_v50  ;;  %v7366_v26 = vpop.f32.mrb[141].mxu1 }
 0xc55   : > { %7525 = vst.msk [vmem:[%s15912_s0 + $0x100] sm:$0xff] %vm2102_vm0, %v7366_v26  ;;  %v10722_v46 = vpop.f32.mrb[142].mxu1 }
 0xc56   : > { %7528 = vst.msk [vmem:[%s15912_s0 + $0x118] sm:$0xff] %vm2102_vm0, %v10722_v46  ;;  %v7369_v14 = vpop.f32.mrb[143].mxu1 }
 0xc57   : > { %7526 = vst.msk [vmem:[%s15912_s0 + $0x108] sm:$0xff] %vm2102_vm0, %v7369_v14 }
 0xc5b   : > { %v10725_v1 = vpop.f32.mrb[144].mxu1 }
 0xc5c   : > { %7531 = vst.msk [vmem:[%s15912_s0 + $0x130] sm:$0xff] %vm2102_vm0, %v10725_v1  ;;  %v7382_v53 = vpop.f32.mrb[145].mxu1 }
 0xc5d   : > { %7529 = vst.msk [vmem:[%s15912_s0 + $0x120] sm:$0xff] %vm2102_vm0, %v7382_v53  ;;  %v10726_v63 = vpop.f32.mrb[146].mxu1 }
 0xc5e   : > { %7532 = vst.msk [vmem:[%s15912_s0 + $0x138] sm:$0xff] %vm2102_vm0, %v10726_v63  ;;  %v7385_v21 = vpop.f32.mrb[147].mxu1 }
 0xc5f   : > { %7530 = vst.msk [vmem:[%s15912_s0 + $0x128] sm:$0xff] %vm2102_vm0, %v7385_v21 }
 0xc63   : > { %v10729_v48 = vpop.f32.mrb[148].mxu1 }
 0xc64   : > { %7535 = vst.msk [vmem:[%s15912_s0 + $0x150] sm:$0xff] %vm2102_vm0, %v10729_v48  ;;  %v7398_v61 = vpop.f32.mrb[149].mxu1 }
 0xc65   : > { %7533 = vst.msk [vmem:[%s15912_s0 + $0x140] sm:$0xff] %vm2102_vm0, %v7398_v61  ;;  %v10730_v23 = vpop.f32.mrb[150].mxu1 }
 0xc66   : > { %7536 = vst.msk [vmem:[%s15912_s0 + $0x158] sm:$0xff] %vm2102_vm0, %v10730_v23  ;;  %v7401_v18 = vpop.f32.mrb[151].mxu1 }
 0xc67   : > { %7534 = vst.msk [vmem:[%s15912_s0 + $0x148] sm:$0xff] %vm2102_vm0, %v7401_v18 }
 0xc6b   : > { %v10733_v6 = vpop.f32.mrb[152].mxu1 }
 0xc6c   : > { %7539 = vst.msk [vmem:[%s15912_s0 + $0x170] sm:$0xff] %vm2102_vm0, %v10733_v6  ;;  %v7414_v60 = vpop.f32.mrb[153].mxu1 }
 0xc6d   : > { %7537 = vst.msk [vmem:[%s15912_s0 + $0x160] sm:$0xff] %vm2102_vm0, %v7414_v60  ;;  %v10734_v4 = vpop.f32.mrb[154].mxu1 }
 0xc6e   : > { %7540 = vst.msk [vmem:[%s15912_s0 + $0x178] sm:$0xff] %vm2102_vm0, %v10734_v4  ;;  %v7417_v22 = vpop.f32.mrb[155].mxu1 }
 0xc6f   : > { %7538 = vst.msk [vmem:[%s15912_s0 + $0x168] sm:$0xff] %vm2102_vm0, %v7417_v22 }
 0xc73   : > { %v10737_v37 = vpop.f32.mrb[156].mxu1 }
 0xc74   : > { %7543 = vst.msk [vmem:[%s15912_s0 + $0x190] sm:$0xff] %vm2102_vm0, %v10737_v37  ;;  %v7430_v7 = vpop.f32.mrb[157].mxu1 }
 0xc75   : > { %7541 = vst.msk [vmem:[%s15912_s0 + $0x180] sm:$0xff] %vm2102_vm0, %v7430_v7  ;;  %v10738_v12 = vpop.f32.mrb[158].mxu1 }
 0xc76   : > { %7544 = vst.msk [vmem:[%s15912_s0 + $0x198] sm:$0xff] %vm2102_vm0, %v10738_v12  ;;  %v7433_v55 = vpop.f32.mrb[159].mxu1 }
 0xc77   : > { %7542 = vst.msk [vmem:[%s15912_s0 + $0x188] sm:$0xff] %vm2102_vm0, %v7433_v55 }
 0xc7b   : > { %v10741_v5 = vpop.f32.mrb[160].mxu1 }
 0xc7c   : > { %7547 = vst.msk [vmem:[%s15912_s0 + $0x1b0] sm:$0xff] %vm2102_vm0, %v10741_v5  ;;  %v7446_v9 = vpop.f32.mrb[161].mxu1 }
 0xc7d   : > { %7545 = vst.msk [vmem:[%s15912_s0 + $0x1a0] sm:$0xff] %vm2102_vm0, %v7446_v9  ;;  %v10742_v33 = vpop.f32.mrb[162].mxu1 }
 0xc7e   : > { %7548 = vst.msk [vmem:[%s15912_s0 + $0x1b8] sm:$0xff] %vm2102_vm0, %v10742_v33  ;;  %v7449_v47 = vpop.f32.mrb[163].mxu1 }
 0xc7f   : > { %7546 = vst.msk [vmem:[%s15912_s0 + $0x1a8] sm:$0xff] %vm2102_vm0, %v7449_v47 }
 0xc83   : > { %v10745_v25 = vpop.f32.mrb[164].mxu1 }
 0xc84   : > { %7551 = vst.msk [vmem:[%s15912_s0 + $0x1d0] sm:$0xff] %vm2102_vm0, %v10745_v25  ;;  %v7462_v27 = vpop.f32.mrb[165].mxu1 }
 0xc85   : > { %7549 = vst.msk [vmem:[%s15912_s0 + $0x1c0] sm:$0xff] %vm2102_vm0, %v7462_v27  ;;  %v10746_v39 = vpop.f32.mrb[166].mxu1 }
 0xc86   : > { %7552 = vst.msk [vmem:[%s15912_s0 + $0x1d8] sm:$0xff] %vm2102_vm0, %v10746_v39  ;;  %v7465_v49 = vpop.f32.mrb[167].mxu1 }
 0xc87   : > { %7550 = vst.msk [vmem:[%s15912_s0 + $0x1c8] sm:$0xff] %vm2102_vm0, %v7465_v49 }
 0xc89   : > { %7560 = sbr.rel (%p9722_p4) target bundleno = 3892 (0xf34), region = 104 }
 0xc8b   : > { %v10749_v20 = vpop.f32.mrb[168].mxu1 }
 0xc8c   : > { %7555 = vst.msk [vmem:[%s15912_s0 + $0x1f0] sm:$0xff] %vm2102_vm0, %v10749_v20  ;;  %v7478_v44 = vpop.f32.mrb[169].mxu1 }
 0xc8d   : > { %7553 = vst.msk [vmem:[%s15912_s0 + $0x1e0] sm:$0xff] %vm2102_vm0, %v7478_v44  ;;  %v10750_v0 = vpop.f32.mrb[170].mxu1 }
 0xc8e   : > { %7556 = vst.msk [vmem:[%s15912_s0 + $0x1f8] sm:$0xff] %vm2102_vm0, %v10750_v0  ;;  %v7481_v32 = vpop.f32.mrb[171].mxu1 }
 0xc8f   : > { %7554 = vst.msk [vmem:[%s15912_s0 + $0x1e8] sm:$0xff] %vm2102_vm0, %v7481_v32 }
 0xc90   : > { %s17987_s2 = sld [smem:[#allocation177_spill]]  ;;  %v17438_v19 = vmov 0.0   ;;  %vm11837_vm2 = vmmov 0   ;;  %s17988_s26 = sld [smem:[#allocation175_spill]]  ;;  %vm7798_vm3 = vcmask 1040384  }
 0xc91   : > { %10751 = vmatprep.subr.bf16.mxu1 %v17438_v19  ;;  %10835 = vmatprep.subr.bf16.mxu0 %v17438_v19  ;;  %s17989_s23 = sld [smem:[#allocation179_spill]]  ;;  %s18059_s3 = sld [smem:[#allocation178_spill]] }
 0xc92   : > { %10759 = vmatprep.mubr.msk.bf16.mxu1 %vm11837_vm2, %v17438_v19  ;;  %10843 = vmatprep.mubr.msk.bf16.mxu0 %vm11837_vm2, %v17438_v19 }
 0xc96   : > { %v11810_v36 = vld [vmem:[%s17987_s2] sm:$0xff]   ;;  %v11811_v59 = vld [vmem:[%s17987_s2 + $0x8] sm:$0xff]   ;;  %v16067_v62 = vld [vmem:[%s17988_s26 + $0x10] sm:$0xff] }
 0xc97   : > { %10752 = vmatpush3.bf16.msra.mxu1 %v11810_v36  ;;  %v16057_v30 = vld [vmem:[%s17988_s26] sm:$0xff]  ;;  %v16062_v35 = vld [vmem:[%s17988_s26 + $0x8] sm:$0xff]  ;;  %v11812_v42 = vld [vmem:[%s17987_s2 + $0x10] sm:$0xff]   ;;  %v7660_v56 = vsel %vm2102_vm0, %v16067_v62, 0.0 }
 0xc98   : > { %10753 = vmatprep.subr.bf16.mxu1 %v17438_v19  ;;  %v16075_v29 = vld [vmem:[%s17988_s26 + $0x18] sm:$0xff]  ;;  %v7657_v57 = vsel %vm2102_vm0, %v16057_v30, 0.0  ;;  %v7658_v24 = vsel %vm2102_vm0, %v16062_v35, 0.0  ;;  %v16089_v51 = vld [vmem:[%s17988_s26 + $0x20] sm:$0xff]  ;;  %v16098_v54 = vld [vmem:[%s17988_s26 + $0x28] sm:$0xff] }
 0xc99   : > { %v7659_v52 = vadd.f32 %v7658_v24, %v7657_v57  ;;  %v7662_v13 = vsel %vm2102_vm0, %v16075_v29, 0.0  ;;  %v11813_v28 = vld [vmem:[%s17987_s2 + $0x18] sm:$0xff]   ;;  %v7664_v40 = vsel %vm2102_vm0, %v16089_v51, 0.0  ;;  %v16111_v17 = vld [vmem:[%s17989_s23] sm:$0xff]   ;;  %v16116_v10 = vld [vmem:[%s17988_s26 + $0x30] sm:$0xff]  ;;  %v7666_v34 = vsel %vm2102_vm0, %v16098_v54, 0.0 }
 0xc9a   : > { %v16121_v58 = vld [vmem:[%s17988_s26 + $0x38] sm:$0xff]  ;;  %v16130_v8 = vld [vmem:[%s17988_s26 + $0x40] sm:$0xff]  ;;  %v16135_v45 = vld [vmem:[%s17988_s26 + $0x48] sm:$0xff]  ;;  %v7668_v41 = vsel %vm2102_vm0, %v16116_v10, 0.0 }
 0xc9b   : > { %10754 = vmatpush3.bf16.msra.mxu1 %v11811_v59  ;;  %v7661_v38 = vadd.f32 %v7660_v56, %v7659_v52  ;;  %v16145_v50 = vld [vmem:[%s17988_s26 + $0x50] sm:$0xff]  ;;  %v16150_v26 = vld [vmem:[%s17988_s26 + $0x58] sm:$0xff]  ;;  %v16155_v46 = vld [vmem:[%s17988_s26 + $0x100] sm:$0xff]  ;;  %v7670_v21 = vsel %vm2102_vm0, %v16121_v58, 0.0  ;;  %v7672_v4 = vsel %vm2102_vm0, %v16130_v8, 0.0  ;;  %v7674_v55 = vsel %vm2102_vm0, %v16135_v45, 0.0 }
 0xc9c   : > { %10755 = vmatprep.subr.bf16.mxu1 %v17438_v19  ;;  %17990 = vst [vmem:[#allocation154_spill] sm:$0xff] %v16155_v46  ;;  %v16160_v1 = vld [vmem:[%s17988_s26 + $0x108] sm:$0xff]  ;;  %v16165_v53 = vld [vmem:[%s17988_s26 + $0x110] sm:$0xff]  ;;  %v16170_v63 = vld [vmem:[%s17988_s26 + $0x118] sm:$0xff]  ;;  %v7728_v48 = vsel %vm2102_vm0, %v16155_v46, 0.0  ;;  %v7676_v44 = vsel %vm2102_vm0, %v16145_v50, 0.0 }
 0xc9d   : > { %v7663_v15 = vadd.f32 %v7662_v13, %v7661_v38  ;;  %17991 = vst [vmem:[#allocation155_spill] sm:$0xff] %v16165_v53  ;;  %17992 = vst [vmem:[#allocation156_spill] sm:$0xff] %v16170_v63  ;;  %v7729_v18 = vsel %vm2102_vm0, %v16160_v1, 0.0  ;;  %v7731_v6 = vsel %vm2102_vm0, %v16165_v53, 0.0  ;;  %v16185_v60 = vld [vmem:[%s17988_s26 + $0x120] sm:$0xff]  ;;  %v7733_v7 = vsel %vm2102_vm0, %v16170_v63, 0.0 }
 0xc9e   : > { %17993 = vst [vmem:[#allocation157_spill] sm:$0xff] %v16185_v60  ;;  %v7730_v22 = vadd.f32 %v7729_v18, %v7728_v48  ;;  %v16194_v12 = vld [vmem:[%s17988_s26 + $0x128] sm:$0xff]  ;;  %v16201_v9 = vld [vmem:[%s17988_s26 + $0x60] sm:$0xff]  ;;  %v16211_v47 = vld [vmem:[%s17988_s26 + $0x70] sm:$0xff]  ;;  %v7735_v27 = vsel %vm2102_vm0, %v16185_v60, 0.0  ;;  %v7678_v57 = vsel %vm2102_vm0, %v16150_v26, 0.0 }
 0xc9f   : > { %10756 = vmatpush3.bf16.msra.mxu1 %v11812_v42  ;;  %v7665_v11 = vadd.f32 %v7664_v40, %v7663_v15  ;;  %17994 = vst [vmem:[#allocation158_spill] sm:$0xff] %v16194_v12  ;;  %v16206_v33 = vld [vmem:[%s17988_s26 + $0x68] sm:$0xff]  ;;  %v16218_v39 = vld [vmem:[%s17988_s26 + $0x78] sm:$0xff]  ;;  %v16223_v49 = vld [vmem:[%s17988_s26 + $0x80] sm:$0xff]  ;;  %v7737_v24 = vsel %vm2102_vm0, %v16194_v12, 0.0  ;;  %v7680_v52 = vsel %vm2102_vm0, %v16201_v9, 0.0 }
 0xca0   : > { %10757 = vmatprep.subr.bf16.mxu1 %v17438_v19  ;;  %v7732_v5 = vadd.f32 %v7731_v6, %v7730_v22  ;;  %v16228_v20 = vld [vmem:[%s17988_s26 + $0x130] sm:$0xff]  ;;  %v16235_v32 = vld [vmem:[%s17988_s26 + $0x138] sm:$0xff]  ;;  %v16240_v36 = vld [vmem:[%s17988_s26 + $0x140] sm:$0xff]  ;;  %v7682_v13 = vsel %vm2102_vm0, %v16206_v33, 0.0  ;;  %v7684_v38 = vsel %vm2102_vm0, %v16211_v47, 0.0  ;;  %v7688_v48 = vsel %vm2102_vm0, %v16223_v49, 0.0 }
 0xca1   : > { %v7667_v14 = vadd.f32 %v7666_v34, %v7665_v11  ;;  %17995 = vst [vmem:[#allocation159_spill] sm:$0xff] %v16228_v20  ;;  %17996 = vst [vmem:[#allocation160_spill] sm:$0xff] %v16235_v32  ;;  %v16245_v59 = vld [vmem:[%s17988_s26 + $0x148] sm:$0xff]  ;;  %v16254_v56 = vld [vmem:[%s17988_s26 + $0x150] sm:$0xff] }
 0xca2   : > { %v7734_v0 = vadd.f32 %v7733_v7, %v7732_v5  ;;  %17997 = vst [vmem:[#allocation161_spill] sm:$0xff] %v16240_v36  ;;  %17998 = vst [vmem:[#allocation162_spill] sm:$0xff] %v16254_v56  ;;  %v16265_v40 = vld [vmem:[%s17988_s26 + $0x88] sm:$0xff]  ;;  %v16270_v15 = vld [vmem:[%s17988_s26 + $0x90] sm:$0xff]  ;;  %v7741_v7 = vsel %vm2102_vm0, %v16235_v32, 0.0  ;;  %v7745_v5 = vsel %vm2102_vm0, %v16245_v59, 0.0 }
 0xca3   : > { %10758 = vmatpush3.bf16.msra.mxu1 %v11813_v28  ;;  %v7669_v23 = vadd.f32 %v7668_v41, %v7667_v14  ;;  %v16275_v34 = vld [vmem:[%s17988_s26 + $0x98] sm:$0xff]  ;;  %v16280_v11 = vld [vmem:[%s17988_s26 + $0xa0] sm:$0xff]  ;;  %v16285_v41 = vld [vmem:[%s17988_s26 + $0xa8] sm:$0xff] }
 0xca4   : > { %10763 = vmatprep.subr.bf16.mxu1 %v16111_v17  ;;  %v7736_v28 = vadd.f32 %v7735_v27, %v7734_v0  ;;  %v16296_v18 = vld [vmem:[%s17988_s26 + $0xb0] sm:$0xff]  ;;  %v16301_v6 = vld [vmem:[%s17988_s26 + $0xb8] sm:$0xff]  ;;  %v16311_v22 = vld [vmem:[%s17988_s26 + $0xc8] sm:$0xff] }
 0xca5   : > { %v7671_v37 = vadd.f32 %v7670_v21, %v7669_v23  ;;  %v7686_v21 = vsel %vm2102_vm0, %v16218_v39, 0.0  ;;  %v7739_v23 = vsel %vm2102_vm0, %v16228_v20, 0.0  ;;  %v16365_v43 = vld [vmem:[%s17988_s26 + $0xf0] sm:$0xff] }
 0xca7   : > { %v7673_v25 = vadd.f32 %v7672_v4, %v7671_v37  ;;  %v16306_v4 = vld [vmem:[%s17988_s26 + $0xc0] sm:$0xff]  ;;  %v7738_v37 = vadd.f32 %v7737_v24, %v7736_v28  ;;  %v16333_v24 = vld [vmem:[%s17988_s26 + $0xd8] sm:$0xff] }
 0xca9   : > { %v7675_v42 = vadd.f32 %v7674_v55, %v7673_v25  ;;  %v7743_v55 = vsel %vm2102_vm0, %v16240_v36, 0.0  ;;  %v16322_v25 = vld [vmem:[%s17988_s26 + $0xd0] sm:$0xff]  ;;  %v7740_v28 = vadd.f32 %v7739_v23, %v7738_v37  ;;  %v16350_v23 = vld [vmem:[%s17988_s26 + $0xe0] sm:$0xff]  ;;  %v16355_v37 = vld [vmem:[%s17988_s26 + $0xe8] sm:$0xff] }
 0xcab   : > { %v7677_v14 = vadd.f32 %v7676_v44, %v7675_v42  ;;  %v7747_v44 = vsel %vm2102_vm0, %v16254_v56, 0.0  ;;  %v16370_v42 = vld [vmem:[%s17988_s26 + $0xf8] sm:$0xff] }
 0xcad   : > { %v7679_v27 = vadd.f32 %v7678_v57, %v7677_v14  ;;  %v16375_v14 = vld [vmem:[%s17988_s26 + $0x160] sm:$0xff] }
 0xcaf   : > { %v7681_v31 = vadd.f32 %v7680_v52, %v7679_v27  ;;  %v16360_v52 = vld [vmem:[%s17988_s26 + $0x158] sm:$0xff]  ;;  %v7742_v27 = vadd.f32 %v7741_v7, %v7740_v28 }
 0xcb0   : > { %v7749_v19 = vsel %vm2102_vm0, %v16360_v52, 0.0 }
 0xcb1   : > { %v7683_v0 = vadd.f32 %v7682_v13, %v7681_v31  ;;  %v7744_v57 = vadd.f32 %v7743_v55, %v7742_v27  ;;  %v16386_v31 = vld [vmem:[%s17988_s26 + $0x168] sm:$0xff]  ;;  %v7690_v13 = vsel %vm2102_vm0, %v16265_v40, 0.0 }
 0xcb2   : > { %v7753_v27 = vsel %vm2102_vm0, %v16386_v31, 0.0 }
 0xcb3   : > { %v7685_v61 = vadd.f32 %v7684_v38, %v7683_v0  ;;  %v7746_v28 = vadd.f32 %v7745_v5, %v7744_v57  ;;  %v7751_v5 = vsel %vm2102_vm0, %v16375_v14, 0.0 }
 0xcb5   : > { %v7687_v16 = vadd.f32 %v7686_v21, %v7685_v61  ;;  %v7748_v38 = vadd.f32 %v7747_v44, %v7746_v28  ;;  %v16395_v61 = vld [vmem:[%s17988_s26 + $0x170] sm:$0xff]  ;;  %v7692_v21 = vsel %vm2102_vm0, %v16270_v15, 0.0 }
 0xcb6   : > { %17999 = vst [vmem:[#allocation163_spill] sm:$0xff] %v16395_v61  ;;  %v7755_v2 = vsel %vm2102_vm0, %v16395_v61, 0.0 }
 0xcb7   : > { %v7689_v55 = vadd.f32 %v7688_v48, %v7687_v16  ;;  %v7750_v0 = vadd.f32 %v7749_v19, %v7748_v38  ;;  %v16404_v16 = vld [vmem:[%s17988_s26 + $0x178] sm:$0xff]  ;;  %v7694_v48 = vsel %vm2102_vm0, %v16275_v34, 0.0  ;;  %v7696_v38 = vsel %vm2102_vm0, %v16280_v11, 0.0 }
 0xcb9   : > { %v7691_v57 = vadd.f32 %v7690_v13, %v7689_v55  ;;  %v7752_v44 = vadd.f32 %v7751_v5, %v7750_v0  ;;  %v16415_v13 = vld [vmem:[%s17988_s26 + $0x180] sm:$0xff]  ;;  %v16426_v0 = vld [vmem:[%s17988_s26 + $0x188] sm:$0xff] }
 0xcba   : > { %18000 = vst [vmem:[#allocation164_spill] sm:$0xff] %v16415_v13  ;;  %18001 = vst [vmem:[#allocation165_spill] sm:$0xff] %v16426_v0  ;;  %v7761_v53 = vsel %vm2102_vm0, %v16426_v0, 0.0 }
 0xcbb   : > { %v7693_v28 = vadd.f32 %v7692_v21, %v7691_v57  ;;  %v7754_v55 = vadd.f32 %v7753_v27, %v7752_v44  ;;  %v7757_v21 = vsel %vm2102_vm0, %v16404_v16, 0.0  ;;  %v7698_v57 = vsel %vm2102_vm0, %v16285_v41, 0.0 }
 0xcbc   : > { %v7759_v27 = vsel %vm2102_vm0, %v16415_v13, 0.0  ;;  %v7700_v44 = vsel %vm2102_vm0, %v16296_v18, 0.0 }
 0xcbd   : > { %v7695_v5 = vadd.f32 %v7694_v48, %v7693_v28  ;;  %v7756_v19 = vadd.f32 %v7755_v2, %v7754_v55  ;;  %v16435_v48 = vld [vmem:[%s17988_s26 + $0x190] sm:$0xff]  ;;  %v16444_v2 = vld [vmem:[%s17988_s26 + $0x198] sm:$0xff] }
 0xcbe   : > { %18002 = vst [vmem:[#allocation166_spill] sm:$0xff] %v16435_v48  ;;  %v7763_v63 = vsel %vm2102_vm0, %v16435_v48, 0.0 }
 0xcbf   : > { %v7697_v3 = vadd.f32 %v7696_v38, %v7695_v5  ;;  %v7758_v28 = vadd.f32 %v7757_v21, %v7756_v19  ;;  %v7702_v38 = vsel %vm2102_vm0, %v16301_v6, 0.0  ;;  %v7704_v21 = vsel %vm2102_vm0, %v16306_v4, 0.0 }
 0xcc1   : > { %v7699_v7 = vadd.f32 %v7698_v57, %v7697_v3  ;;  %v7760_v55 = vadd.f32 %v7759_v27, %v7758_v28  ;;  %v16455_v3 = vld [vmem:[%s17988_s26 + $0x1a0] sm:$0xff]  ;;  %v7706_v28 = vsel %vm2102_vm0, %v16311_v22, 0.0 }
 0xcc3   : > { %v7701_v5 = vadd.f32 %v7700_v44, %v7699_v7  ;;  %v7762_v57 = vadd.f32 %v7761_v53, %v7760_v55  ;;  %v7765_v7 = vsel %vm2102_vm0, %v16444_v2, 0.0  ;;  %v16466_v44 = vld [vmem:[%s17988_s26 + $0x1a8] sm:$0xff]  ;;  %v7767_v53 = vsel %vm2102_vm0, %v16455_v3, 0.0 }
 0xcc4   : > { %v7708_v55 = vsel %vm2102_vm0, %v16322_v25, 0.0  ;;  %v7769_v20 = vsel %vm2102_vm0, %v16466_v44, 0.0 }
 0xcc5   : > { %v7703_v27 = vadd.f32 %v7702_v38, %v7701_v5  ;;  %v7764_v19 = vadd.f32 %v7763_v63, %v7762_v57  ;;  %v16475_v38 = vld [vmem:[%s17988_s26 + $0x1b0] sm:$0xff]  ;;  %v16484_v63 = vld [vmem:[%s17988_s26 + $0x1b8] sm:$0xff] }
 0xcc6   : > { %v7771_v32 = vsel %vm2102_vm0, %v16475_v38, 0.0 }
 0xcc7   : > { %v7705_v60 = vadd.f32 %v7704_v21, %v7703_v27  ;;  %v7766_v5 = vadd.f32 %v7765_v7, %v7764_v19  ;;  %v7710_v21 = vsel %vm2102_vm0, %v16333_v24, 0.0  ;;  %v7712_v7 = vsel %vm2102_vm0, %v16350_v23, 0.0 }
 0xcc9   : > { %v7707_v46 = vadd.f32 %v7706_v28, %v7705_v60  ;;  %v7768_v57 = vadd.f32 %v7767_v53, %v7766_v5  ;;  %v16495_v60 = vld [vmem:[%s17988_s26 + $0x1c0] sm:$0xff]  ;;  %v7714_v5 = vsel %vm2102_vm0, %v16355_v37, 0.0 }
 0xcca   : > { %18003 = vst [vmem:[#allocation167_spill] sm:$0xff] %v16495_v60 }
 0xccb   : > { %v7709_v27 = vadd.f32 %v7708_v55, %v7707_v46  ;;  %v7770_v28 = vadd.f32 %v7769_v20, %v7768_v57  ;;  %v7773_v46 = vsel %vm2102_vm0, %v16484_v63, 0.0  ;;  %v16506_v55 = vld [vmem:[%s17988_s26 + $0x1c8] sm:$0xff]  ;;  %v7775_v20 = vsel %vm2102_vm0, %v16495_v60, 0.0 }
 0xccc   : > { %18004 = vst [vmem:[#allocation168_spill] sm:$0xff] %v16506_v55  ;;  %v7716_v57 = vsel %vm2102_vm0, %v16365_v43, 0.0  ;;  %v7777_v56 = vsel %vm2102_vm0, %v16506_v55, 0.0 }
 0xccd   : > { %v7711_v53 = vadd.f32 %v7710_v21, %v7709_v27  ;;  %v7772_v19 = vadd.f32 %v7771_v32, %v7770_v28  ;;  %v16515_v21 = vld [vmem:[%s17988_s26 + $0x1d0] sm:$0xff]  ;;  %v16524_v32 = vld [vmem:[%s17988_s26 + $0x1d8] sm:$0xff] }
 0xcce   : > { %18005 = vst [vmem:[#allocation169_spill] sm:$0xff] %v16515_v21  ;;  %18006 = vst [vmem:[#allocation170_spill] sm:$0xff] %v16524_v32  ;;  %v7779_v60 = vsel %vm2102_vm0, %v16515_v21, 0.0 }
 0xccf   : > { %v7713_v36 = vadd.f32 %v7712_v7, %v7711_v53  ;;  %v7774_v27 = vadd.f32 %v7773_v46, %v7772_v19  ;;  %v7718_v7 = vsel %vm2102_vm0, %v16370_v42, 0.0 }
 0xcd1   : > { %v7715_v12 = vadd.f32 %v7714_v5, %v7713_v36  ;;  %v7776_v28 = vadd.f32 %v7775_v20, %v7774_v27  ;;  %v16535_v36 = vld [vmem:[%s17988_s26 + $0x1e0] sm:$0xff]  ;;  %v7781_v20 = vsel %vm2102_vm0, %v16524_v32, 0.0  ;;  %v16558_v5 = vld [vmem:[%s17988_s26 + $0x1f8] sm:$0xff] }
 0xcd2   : > { %18007 = vst [vmem:[#allocation171_spill] sm:$0xff] %v16535_v36  ;;  %v7783_v19 = vsel %vm2102_vm0, %v16535_v36, 0.0  ;;  %18010 = vst [vmem:[#allocation174_spill] sm:$0xff] %v16558_v5  ;;  %v7652_v36 = vpack.c.bf16 %v16484_v63, %v16475_v38  ;;  %v9723_v38 = vld [vmem:[%s18059_s3] ss:$0 sm:$0xff] }
 0xcd3   : > { %v7717_v53 = vadd.f32 %v7716_v57, %v7715_v12  ;;  %v7778_v46 = vadd.f32 %v7777_v56, %v7776_v28  ;;  %v16544_v12 = vld [vmem:[%s17988_s26 + $0x1e8] sm:$0xff]  ;;  %v16551_v56 = vld [vmem:[%s17988_s26 + $0x1f0] sm:$0xff] }
 0xcd4   : > { %18008 = vst [vmem:[#allocation172_spill] sm:$0xff] %v16544_v12  ;;  %18009 = vst [vmem:[#allocation173_spill] sm:$0xff] %v16551_v56 }
 0xcd5   : > { %v7719_v55 = vadd.f32 %v7718_v7, %v7717_v53  ;;  %v7780_v57 = vadd.f32 %v7779_v60, %v7778_v46  ;;  %v7785_v53 = vsel %vm2102_vm0, %v16544_v12, 0.0  ;;  %v7787_v46 = vsel %vm2102_vm0, %v16551_v56, 0.0 }
 0xcd7   : > { %v7720_v27 = vrot.slane %v7719_v55, 4  ;;  %v7782_v28 = vadd.f32 %v7781_v20, %v7780_v57  ;;  %v7789_v20 = vsel %vm2102_vm0, %v16558_v5, 0.0 }
 0xcd9   : > { %v7721_v7 = vadd.f32 %v7720_v27, %v7719_v55  ;;  %v7784_v60 = vadd.f32 %v7783_v19, %v7782_v28  ;;  %v7651_v19 = vpack.c.bf16 %v16466_v44, %v16455_v3  ;;  %v18058_v44 = vld [vmem:[#allocation174_spill] sm:$0xff] }
 0xcdb   : > { %v7722_v32 = vrot.slane %v7721_v7, 2  ;;  %v7786_v21 = vadd.f32 %v7785_v53, %v7784_v60  ;;  %v18057_v3 = vld [vmem:[#allocation173_spill] sm:$0xff] }
 0xcdd   : > { %v7788_v57 = vadd.f32 %v7787_v46, %v7786_v21  ;;  %v7723_v27 = vadd.f32 %v7722_v32, %v7721_v7  ;;  %v11815_v7 = vld [vmem:[%s17989_s23 + $0x8] sm:$0xff]   ;;  %v18016_v46 = vpack.c.bf16 %v16135_v45, %v16130_v8  ;;  %v18023_v8 = vpack.c.bf16 %v16301_v6, %v16296_v18  ;;  %v11822_v6 = vld [vmem:[%s17188_s17] sm:$0xff]  }
 0xcde   : > { %v18024_v45 = vpack.c.bf16 %v16311_v22, %v16306_v4  ;;  %v18037_v18 = vld [vmem:[#allocation159_spill] sm:$0xff]  ;;  %v18039_v4 = vld [vmem:[#allocation161_spill] sm:$0xff] }
 0xcdf   : > { %v7790_v12 = vadd.f32 %v7789_v20, %v7788_v57  ;;  %v7724_v28 = vrot.slane %v7723_v27, 1  ;;  %v18040_v22 = vpack.c.bf16 %v16245_v59, %v18039_v4  ;;  %v18047_v59 = vld [vmem:[#allocation164_spill] sm:$0xff]  ;;  %v18049_v57 = vld [vmem:[#allocation166_spill] sm:$0xff] }
 0xce1   : > { %v7791_v61 = vrot.slane %v7790_v12, 4  ;;  %v7725_v53 = vadd.f32 %v7724_v28, %v7723_v27  ;;  %v18053_v27 = vld [vmem:[#allocation169_spill] sm:$0xff]  ;;  %v18054_v28 = vld [vmem:[#allocation170_spill] sm:$0xff] }
 0xce3   : > { %v7792_v56 = vadd.f32 %v7791_v61, %v7790_v12  ;;  %v7727_v55 = vmul.f32 0.00390625, %v7725_v53  ;;  %v18011_v61 = vpack.c.bf16 %v16062_v35, %v16057_v30  ;;  %v11819_v30 = vld [vmem:[%s17187_s16 + $0x8] sm:$0xff]   ;;  %v18012_v35 = vmov 0.0  }
 0xce4   : > { %v18014_v12 = vpack.c.bf16 %v16098_v54, %v16089_v51  ;;  %v18019_v51 = vpack.c.bf16 %v16218_v39, %v16211_v47  ;;  %v18020_v54 = vpack.c.bf16 %v16265_v40, %v16223_v49  ;;  %v18030_v39 = vld [vmem:[#allocation156_spill] sm:$0xff]  ;;  %v18031_v49 = vld [vmem:[#allocation155_spill] sm:$0xff] }
 0xce5   : > { %v7793_v13 = vrot.slane %v7792_v56, 2  ;;  %v18032_v40 = vpack.c.bf16 %v18030_v39, %v18031_v49  ;;  %v18055_v53 = vld [vmem:[#allocation171_spill] sm:$0xff] }
 0xce7   : > { %v7794_v60 = vadd.f32 %v7793_v13, %v7792_v56  ;;  %v11816_v13 = vld [vmem:[%s17989_s23 + $0x10] sm:$0xff]   ;;  %v18015_v56 = vpack.c.bf16 %v16121_v58, %v16116_v10  ;;  %v18021_v10 = vpack.c.bf16 %v16275_v34, %v16270_v15  ;;  %v18022_v58 = vpack.c.bf16 %v16285_v41, %v16280_v11  ;;  %v18033_v15 = vld [vmem:[#allocation158_spill] sm:$0xff]  ;;  %v18034_v34 = vld [vmem:[#allocation157_spill] sm:$0xff] }
 0xce8   : > { %v18035_v11 = vpack.c.bf16 %v18033_v15, %v18034_v34  ;;  %v18036_v41 = vld [vmem:[#allocation160_spill] sm:$0xff] }
 0xce9   : > { %v7795_v0 = vrot.slane %v7794_v60, 1 }
 0xceb   : > { %v7796_v48 = vadd.f32 %v7795_v0, %v7794_v60  ;;  %v11817_v0 = vld [vmem:[%s17989_s23 + $0x18] sm:$0xff]   ;;  %v18056_v60 = vld [vmem:[#allocation172_spill] sm:$0xff] }
 0xced   : > { %v7797_v5 = vmul.f32 0.00390625, %v7796_v48  ;;  %v11820_v48 = vld [vmem:[%s17187_s16 + $0x10] sm:$0xff]  }
 0xcef   : > { %v7799_v21 = vsel %vm7798_vm3, %v7727_v55, %v7797_v5  ;;  %v18013_v5 = vpack.c.bf16 %v16075_v29, %v16067_v62  ;;  %v18017_v62 = vpack.c.bf16 %v16150_v26, %v16145_v50  ;;  %v18018_v29 = vpack.c.bf16 %v16206_v33, %v16201_v9  ;;  %v18028_v33 = vld [vmem:[#allocation154_spill] sm:$0xff]  ;;  %v18046_v55 = vld [vmem:[#allocation165_spill] sm:$0xff] }
 0xcf0   : > { %v7800_v32 = vpack.c.bf16 %v7799_v21, %v7799_v21  ;;  %v18025_v50 = vpack.c.bf16 %v16333_v24, %v16322_v25  ;;  %v18026_v26 = vpack.c.bf16 %v16355_v37, %v16350_v23  ;;  %v18027_v9 = vpack.c.bf16 %v16370_v42, %v16365_v43  ;;  %v11821_v43 = vld [vmem:[%s17187_s16 + $0x18] sm:$0xff]   ;;  %v18041_v25 = vld [vmem:[#allocation162_spill] sm:$0xff]  ;;  %v18044_v23 = vld [vmem:[#allocation163_spill] sm:$0xff] }
 0xcf1   : > { %v18029_v47 = vpack.c.bf16 %v16160_v1, %v18028_v33  ;;  %v18038_v1 = vpack.c.bf16 %v18036_v41, %v18037_v18  ;;  %v18042_v42 = vpack.c.bf16 %v16360_v52, %v18041_v25  ;;  %v18043_v24 = vpack.c.bf16 %v16386_v31, %v16375_v14  ;;  %v18051_v14 = vld [vmem:[#allocation167_spill] sm:$0xff]  ;;  %v18052_v31 = vld [vmem:[#allocation168_spill] sm:$0xff] }
 0xcf2   : > { %10760 = vmatmul.mubr.msk.bf16.vlgmr.msra.gmra.mrb[0].mxu1 %vm2102_vm0, %v7800_v32  ;;  %v18045_v37 = vpack.c.bf16 %v16404_v16, %v18044_v23  ;;  %v18048_v20 = vpack.c.bf16 %v18046_v55, %v18047_v59  ;;  %v18050_v52 = vpack.c.bf16 %v16444_v2, %v18049_v57  ;;  %v7653_v16 = vpack.c.bf16 %v18052_v31, %v18051_v14 }
 0xcf3   : > { %10764 = vmatpush3.bf16.msra.mxu1 %v16111_v17  ;;  %10771 = vmatprep.mubr.msk.bf16.mxu1 %vm2102_vm0, %v18011_v61  ;;  %v11818_v17 = vld [vmem:[%s17187_s16] sm:$0xff]   ;;  %v7654_v2 = vpack.c.bf16 %v18054_v28, %v18053_v27  ;;  %v7655_v21 = vpack.c.bf16 %v18056_v60, %v18055_v53 }
 0xcf4   : > { %10765 = vmatprep.subr.bf16.mxu1 %v11815_v7  ;;  %10836 = vmatpush3.bf16.msra.mxu0 %v11818_v17  ;;  %v11824_v17 = vld [vmem:[%s17188_s17 + $0x10] sm:$0xff]  }
 0xcf5   : > { %10837 = vmatprep.subr.bf16.mxu0 %v18012_v35 }
 0xcf7   : > { %10766 = vmatpush3.bf16.msra.mxu1 %v11815_v7 }
 0xcf8   : > { %10767 = vmatprep.subr.bf16.mxu1 %v11816_v13  ;;  %10838 = vmatpush3.bf16.msra.mxu0 %v11819_v30  ;;  %v11825_v30 = vld [vmem:[%s17188_s17 + $0x18] sm:$0xff]  }
 0xcf9   : > { %10839 = vmatprep.subr.bf16.mxu0 %v18012_v35 }
 0xcfb   : > { %10768 = vmatpush3.bf16.msra.mxu1 %v11816_v13 }
 0xcfc   : > { %10769 = vmatprep.subr.bf16.mxu1 %v11817_v0  ;;  %10840 = vmatpush3.bf16.msra.mxu0 %v11820_v48  ;;  %v16741_v48 = vld [vmem:[%s17176_s5] ss:$0 sm:$0xff] }
 0xcfd   : > { %10841 = vmatprep.subr.bf16.mxu0 %v18012_v35 }
 0xcff   : > { %10770 = vmatpush3.bf16.msra.mxu1 %v11817_v0  ;;  %v11823_v0 = vld [vmem:[%s17188_s17 + $0x8] sm:$0xff]  }
 0xd00   : > { %10842 = vmatpush3.bf16.msra.mxu0 %v11821_v43 }
 0xd01   : > { %10847 = vmatprep.subr.bf16.mxu0 %v11822_v6 }
 0xd02   : > { %10772 = vmatmul.mubr.msk.bf16.vlgmr.msra.gmra.mrb[4].mxu1 %vm2102_vm0, %v18013_v5 }
 0xd03   : > { %10775 = vmatprep.mubr.msk.bf16.mxu1 %vm2102_vm0, %v18014_v12 }
 0xd0a   : > { %10776 = vmatmul.mubr.msk.bf16.gmra.mrb[8].mxu1 %vm2102_vm0, %v18015_v56 }
 0xd0b   : > { %10779 = vmatprep.mubr.msk.bf16.mxu1 %vm2102_vm0, %v18016_v46 }
 0xd12   : > { %10780 = vmatmul.mubr.msk.bf16.gmra.mrb[12].mxu1 %vm2102_vm0, %v18017_v62 }
 0xd13   : > { %10783 = vmatprep.mubr.msk.bf16.mxu1 %vm2102_vm0, %v18018_v29 }
 0xd1a   : > { %10784 = vmatmul.mubr.msk.bf16.gmra.mrb[16].mxu1 %vm2102_vm0, %v18019_v51 }
 0xd1b   : > { %10787 = vmatprep.mubr.msk.bf16.mxu1 %vm2102_vm0, %v18020_v54 }
 0xd22   : > { %10788 = vmatmul.mubr.msk.bf16.gmra.mrb[20].mxu1 %vm2102_vm0, %v18021_v10 }
 0xd23   : > { %10791 = vmatprep.mubr.msk.bf16.mxu1 %vm2102_vm0, %v18022_v58 }
 0xd2a   : > { %10792 = vmatmul.mubr.msk.bf16.gmra.mrb[24].mxu1 %vm2102_vm0, %v18023_v8 }
 0xd2b   : > { %10795 = vmatprep.mubr.msk.bf16.mxu1 %vm2102_vm0, %v18024_v45 }
 0xd32   : > { %10796 = vmatmul.mubr.msk.bf16.gmra.mrb[28].mxu1 %vm2102_vm0, %v18025_v50 }
 0xd33   : > { %10799 = vmatprep.mubr.msk.bf16.mxu1 %vm2102_vm0, %v18026_v26 }
 0xd3a   : > { %10800 = vmatmul.mubr.msk.bf16.gmra.mrb[32].mxu1 %vm2102_vm0, %v18027_v9 }
 0xd3b   : > { %10803 = vmatprep.mubr.msk.bf16.mxu1 %vm2102_vm0, %v18029_v47 }
 0xd42   : > { %10804 = vmatmul.mubr.msk.bf16.gmra.mrb[36].mxu1 %vm2102_vm0, %v18032_v40 }
 0xd43   : > { %10807 = vmatprep.mubr.msk.bf16.mxu1 %vm2102_vm0, %v18035_v11 }
 0xd4a   : > { %10808 = vmatmul.mubr.msk.bf16.gmra.mrb[40].mxu1 %vm2102_vm0, %v18038_v1 }
 0xd4b   : > { %10811 = vmatprep.mubr.msk.bf16.mxu1 %vm2102_vm0, %v18040_v22 }
 0xd52   : > { %10812 = vmatmul.mubr.msk.bf16.gmra.mrb[44].mxu1 %vm2102_vm0, %v18042_v42 }
 0xd53   : > { %10815 = vmatprep.mubr.msk.bf16.mxu1 %vm2102_vm0, %v18043_v24 }
 0xd5a   : > { %10816 = vmatmul.mubr.msk.bf16.gmra.mrb[48].mxu1 %vm2102_vm0, %v18045_v37 }
 0xd5b   : > { %10819 = vmatprep.mubr.msk.bf16.mxu1 %vm2102_vm0, %v18048_v20 }
 0xd62   : > { %10820 = vmatmul.mubr.msk.bf16.gmra.mrb[52].mxu1 %vm2102_vm0, %v18050_v52 }
 0xd63   : > { %10823 = vmatprep.mubr.msk.bf16.mxu1 %vm2102_vm0, %v7651_v19  ;;  %v7656_v19 = vpack.c.bf16 %v18058_v44, %v18057_v3 }
 0xd6a   : > { %10824 = vmatmul.mubr.msk.bf16.gmra.mrb[56].mxu1 %vm2102_vm0, %v7652_v36 }
 0xd6b   : > { %10827 = vmatprep.mubr.msk.bf16.mxu1 %vm2102_vm0, %v7653_v16 }
 0xd72   : > { %10828 = vmatmul.mubr.msk.bf16.gmra.mrb[60].mxu1 %vm2102_vm0, %v7654_v2 }
 0xd73   : > { %10831 = vmatprep.mubr.msk.bf16.mxu1 %vm2102_vm0, %v7655_v21 }
 0xd7a   : > { %10832 = vmatmul.mubr.msk.bf16.gmra.mrb[64].mxu1 %vm2102_vm0, %v7656_v19 }
 0xdc5   : > { %v7877_v63 = vpop.f32.mrb[0].mxu1 }
 0xdc6   : > { %v7878_v36 = vadd.f32 %v9723_v38, %v7877_v63  ;;  %v10761_v32 = vpop.f32.mrb[1].mxu1 }
 0xdc7   : > { %v7880_v7 = vpop.f32.mrb[2].mxu1 }
 0xdc8   : > { %v8307_v61 = vpack.c.bf16 %v7878_v36, %v7878_v36  ;;  %v10762_v13 = vpop.f32.mrb[3].mxu1 }
 0xdca   : > { %10844 = vmatmul.mubr.msk.bf16.vlgmr.msra.gmra.mrb[0].mxu0 %vm2102_vm0, %v8307_v61 }
 0xdcb   : > { %10848 = vmatpush3.bf16.msra.mxu0 %v11822_v6 }
 0xdcc   : > { %10849 = vmatprep.subr.bf16.mxu0 %v11823_v0 }
 0xdcf   : > { %10850 = vmatpush3.bf16.msra.mxu0 %v11823_v0 }
 0xdd0   : > { %10851 = vmatprep.subr.bf16.mxu0 %v11824_v17 }
 0xdd3   : > { %10852 = vmatpush3.bf16.msra.mxu0 %v11824_v17 }
 0xdd4   : > { %10853 = vmatprep.subr.bf16.mxu0 %v11825_v30 }
 0xdd5   : > { %v10773_v35 = vpop.f32.mrb[4].mxu1 }
 0xdd6   : > { %v8052_v5 = vpop.f32.mrb[5].mxu1  ;;  %v8061_v56 = vadd.f32 %v10773_v35, %v16741_v48 }
 0xdd7   : > { %v10774_v12 = vpop.f32.mrb[6].mxu1  ;;  %10854 = vmatpush3.bf16.msra.mxu0 %v11825_v30  ;;  %v8053_v29 = vadd.f32 %v16741_v48, %v8052_v5 }
 0xdd8   : > { %v8064_v46 = vadd.f32 %v10774_v12, %v16741_v48  ;;  %v8055_v62 = vpop.f32.mrb[7].mxu1 }
 0xdd9   : > { %v8056_v51 = vadd.f32 %v16741_v48, %v8055_v62 }
 0xdda   : > { %v8384_v54 = vpack.c.bf16 %v8064_v46, %v8061_v56 }
 0xddb   : > { %v8383_v10 = vpack.c.bf16 %v8056_v51, %v8053_v29 }
 0xddd   : > { %v10777_v58 = vpop.f32.mrb[8].mxu1  ;;  %10855 = vmatprep.mubr.msk.bf16.mxu0 %vm2102_vm0, %v8383_v10 }
 0xdde   : > { %v8068_v8 = vpop.f32.mrb[9].mxu1  ;;  %10856 = vmatmul.mubr.msk.bf16.vlgmr.msra.gmra.mrb[4].mxu0 %vm2102_vm0, %v8384_v54  ;;  %v8077_v50 = vadd.f32 %v10777_v58, %v16741_v48 }
 0xddf   : > { %v10778_v45 = vpop.f32.mrb[10].mxu1  ;;  %v8069_v33 = vadd.f32 %v16741_v48, %v8068_v8 }
 0xde0   : > { %v8080_v26 = vadd.f32 %v10778_v45, %v16741_v48  ;;  %v8071_v9 = vpop.f32.mrb[11].mxu1 }
 0xde1   : > { %v8072_v47 = vadd.f32 %v16741_v48, %v8071_v9 }
 0xde2   : > { %v8386_v39 = vpack.c.bf16 %v8080_v26, %v8077_v50 }
 0xde3   : > { %v8385_v49 = vpack.c.bf16 %v8072_v47, %v8069_v33 }
 0xde5   : > { %v10781_v40 = vpop.f32.mrb[12].mxu1  ;;  %10859 = vmatprep.mubr.msk.bf16.mxu0 %vm2102_vm0, %v8385_v49 }
 0xde6   : > { %v8084_v15 = vpop.f32.mrb[13].mxu1  ;;  %10860 = vmatmul.mubr.msk.bf16.gmra.mrb[8].mxu0 %vm2102_vm0, %v8386_v39  ;;  %v8093_v11 = vadd.f32 %v10781_v40, %v16741_v48 }
 0xde7   : > { %v10782_v34 = vpop.f32.mrb[14].mxu1  ;;  %v8085_v18 = vadd.f32 %v16741_v48, %v8084_v15 }
 0xde8   : > { %v8096_v43 = vadd.f32 %v10782_v34, %v16741_v48  ;;  %v8087_v41 = vpop.f32.mrb[15].mxu1 }
 0xde9   : > { %v8088_v1 = vadd.f32 %v16741_v48, %v8087_v41 }
 0xdea   : > { %v8388_v6 = vpack.c.bf16 %v8096_v43, %v8093_v11 }
 0xdeb   : > { %v8387_v4 = vpack.c.bf16 %v8088_v1, %v8085_v18 }
 0xded   : > { %v10785_v22 = vpop.f32.mrb[16].mxu1  ;;  %10863 = vmatprep.mubr.msk.bf16.mxu0 %vm2102_vm0, %v8387_v4 }
 0xdee   : > { %v8100_v25 = vpop.f32.mrb[17].mxu1  ;;  %10864 = vmatmul.mubr.msk.bf16.gmra.mrb[12].mxu0 %vm2102_vm0, %v8388_v6  ;;  %v8109_v24 = vadd.f32 %v10785_v22, %v16741_v48 }
 0xdef   : > { %v10786_v42 = vpop.f32.mrb[18].mxu1  ;;  %v8101_v55 = vadd.f32 %v16741_v48, %v8100_v25 }
 0xdf0   : > { %v8112_v23 = vadd.f32 %v10786_v42, %v16741_v48  ;;  %v8103_v37 = vpop.f32.mrb[19].mxu1 }
 0xdf1   : > { %v8104_v59 = vadd.f32 %v16741_v48, %v8103_v37 }
 0xdf2   : > { %v8390_v20 = vpack.c.bf16 %v8112_v23, %v8109_v24 }
 0xdf3   : > { %v8389_v57 = vpack.c.bf16 %v8104_v59, %v8101_v55 }
 0xdf5   : > { %v10789_v52 = vpop.f32.mrb[20].mxu1  ;;  %10867 = vmatprep.mubr.msk.bf16.mxu0 %vm2102_vm0, %v8389_v57 }
 0xdf6   : > { %v8116_v14 = vpop.f32.mrb[21].mxu1  ;;  %10868 = vmatmul.mubr.msk.bf16.gmra.mrb[16].mxu0 %vm2102_vm0, %v8390_v20  ;;  %v8125_v16 = vadd.f32 %v10789_v52, %v16741_v48 }
 0xdf7   : > { %v10790_v31 = vpop.f32.mrb[22].mxu1  ;;  %v8117_v2 = vadd.f32 %v16741_v48, %v8116_v14 }
 0xdf8   : > { %v8128_v27 = vadd.f32 %v10790_v31, %v16741_v48  ;;  %v8119_v28 = vpop.f32.mrb[23].mxu1 }
 0xdf9   : > { %v8120_v53 = vadd.f32 %v16741_v48, %v8119_v28 }
 0xdfa   : > { %v8392_v60 = vpack.c.bf16 %v8128_v27, %v8125_v16 }
 0xdfb   : > { %v8391_v21 = vpack.c.bf16 %v8120_v53, %v8117_v2 }
 0xdfd   : > { %v10793_v3 = vpop.f32.mrb[24].mxu1  ;;  %10871 = vmatprep.mubr.msk.bf16.mxu0 %vm2102_vm0, %v8391_v21 }
 0xdfe   : > { %v8132_v44 = vpop.f32.mrb[25].mxu1  ;;  %10872 = vmatmul.mubr.msk.bf16.gmra.mrb[20].mxu0 %vm2102_vm0, %v8392_v60  ;;  %v8141_v38 = vadd.f32 %v10793_v3, %v16741_v48 }
 0xdff   : > { %v10794_v19 = vpop.f32.mrb[26].mxu1  ;;  %v8133_v32 = vadd.f32 %v16741_v48, %v8132_v44 }
 0xe00   : > { %v8144_v63 = vadd.f32 %v10794_v19, %v16741_v48  ;;  %v8135_v36 = vpop.f32.mrb[27].mxu1 }
 0xe01   : > { %v8136_v7 = vadd.f32 %v16741_v48, %v8135_v36 }
 0xe02   : > { %v8394_v61 = vpack.c.bf16 %v8144_v63, %v8141_v38 }
 0xe03   : > { %v8393_v13 = vpack.c.bf16 %v8136_v7, %v8133_v32 }
 0xe05   : > { %v10797_v0 = vpop.f32.mrb[28].mxu1  ;;  %10875 = vmatprep.mubr.msk.bf16.mxu0 %vm2102_vm0, %v8393_v13 }
 0xe06   : > { %v8148_v17 = vpop.f32.mrb[29].mxu1  ;;  %10876 = vmatmul.mubr.msk.bf16.gmra.mrb[24].mxu0 %vm2102_vm0, %v8394_v61  ;;  %v8157_v35 = vadd.f32 %v10797_v0, %v16741_v48 }
 0xe07   : > { %v10798_v30 = vpop.f32.mrb[30].mxu1  ;;  %v8149_v56 = vadd.f32 %v16741_v48, %v8148_v17 }
 0xe08   : > { %v8160_v5 = vadd.f32 %v10798_v30, %v16741_v48  ;;  %v8151_v12 = vpop.f32.mrb[31].mxu1 }
 0xe09   : > { %v8152_v46 = vadd.f32 %v16741_v48, %v8151_v12 }
 0xe0a   : > { %v8396_v62 = vpack.c.bf16 %v8160_v5, %v8157_v35 }
 0xe0b   : > { %v8395_v29 = vpack.c.bf16 %v8152_v46, %v8149_v56 }
 0xe0d   : > { %v10801_v51 = vpop.f32.mrb[32].mxu1  ;;  %10879 = vmatprep.mubr.msk.bf16.mxu0 %vm2102_vm0, %v8395_v29 }
 0xe0e   : > { %v8164_v54 = vpop.f32.mrb[33].mxu1  ;;  %10880 = vmatmul.mubr.msk.bf16.gmra.mrb[28].mxu0 %vm2102_vm0, %v8396_v62  ;;  %v8173_v58 = vadd.f32 %v10801_v51, %v16741_v48 }
 0xe0f   : > { %v10802_v10 = vpop.f32.mrb[34].mxu1  ;;  %v8165_v50 = vadd.f32 %v16741_v48, %v8164_v54 }
 0xe10   : > { %v8176_v8 = vadd.f32 %v10802_v10, %v16741_v48  ;;  %v8167_v45 = vpop.f32.mrb[35].mxu1 }
 0xe11   : > { %v8168_v26 = vadd.f32 %v16741_v48, %v8167_v45 }
 0xe12   : > { %v8398_v9 = vpack.c.bf16 %v8176_v8, %v8173_v58 }
 0xe13   : > { %v8397_v33 = vpack.c.bf16 %v8168_v26, %v8165_v50 }
 0xe15   : > { %v10805_v47 = vpop.f32.mrb[36].mxu1  ;;  %10883 = vmatprep.mubr.msk.bf16.mxu0 %vm2102_vm0, %v8397_v33 }
 0xe16   : > { %v8180_v39 = vpop.f32.mrb[37].mxu1  ;;  %10884 = vmatmul.mubr.msk.bf16.gmra.mrb[32].mxu0 %vm2102_vm0, %v8398_v9  ;;  %v8189_v40 = vadd.f32 %v10805_v47, %v16741_v48 }
 0xe17   : > { %v10806_v49 = vpop.f32.mrb[38].mxu1  ;;  %v8181_v11 = vadd.f32 %v16741_v48, %v8180_v39 }
 0xe18   : > { %v8192_v15 = vadd.f32 %v10806_v49, %v16741_v48  ;;  %v8183_v34 = vpop.f32.mrb[39].mxu1 }
 0xe19   : > { %v8184_v43 = vadd.f32 %v16741_v48, %v8183_v34 }
 0xe1a   : > { %v8400_v41 = vpack.c.bf16 %v8192_v15, %v8189_v40 }
 0xe1b   : > { %v8399_v18 = vpack.c.bf16 %v8184_v43, %v8181_v11 }
 0xe1d   : > { %v10809_v1 = vpop.f32.mrb[40].mxu1  ;;  %10887 = vmatprep.mubr.msk.bf16.mxu0 %vm2102_vm0, %v8399_v18 }
 0xe1e   : > { %v8196_v6 = vpop.f32.mrb[41].mxu1  ;;  %10888 = vmatmul.mubr.msk.bf16.gmra.mrb[36].mxu0 %vm2102_vm0, %v8400_v41  ;;  %v8205_v22 = vadd.f32 %v10809_v1, %v16741_v48 }
 0xe1f   : > { %v10810_v4 = vpop.f32.mrb[42].mxu1  ;;  %v8197_v24 = vadd.f32 %v16741_v48, %v8196_v6 }
 0xe20   : > { %v8208_v25 = vadd.f32 %v10810_v4, %v16741_v48  ;;  %v8199_v42 = vpop.f32.mrb[43].mxu1 }
 0xe21   : > { %v8200_v23 = vadd.f32 %v16741_v48, %v8199_v42 }
 0xe22   : > { %v8402_v37 = vpack.c.bf16 %v8208_v25, %v8205_v22 }
 0xe23   : > { %v8401_v55 = vpack.c.bf16 %v8200_v23, %v8197_v24  ;;  %v11838_v23 = vmov 1966171168  }
 0xe25   : > { %v10813_v59 = vpop.f32.mrb[44].mxu1  ;;  %10891 = vmatprep.mubr.msk.bf16.mxu0 %vm2102_vm0, %v8401_v55  ;;  %v8971_v55 = vlaneseq }
 0xe26   : > { %v8212_v20 = vpop.f32.mrb[45].mxu1  ;;  %10892 = vmatmul.mubr.msk.bf16.gmra.mrb[40].mxu0 %vm2102_vm0, %v8402_v37  ;;  %v8221_v52 = vadd.f32 %v10813_v59, %v16741_v48  ;;  %v8969_v37 = vunpack.c.l.s4 %v11838_v23 }
 0xe27   : > { %v10814_v57 = vpop.f32.mrb[46].mxu1  ;;  %v8213_v16 = vadd.f32 %v16741_v48, %v8212_v20  ;;  %v8972_v20 = vshrl.u32 %v8971_v55, 7 }
 0xe28   : > { %v8224_v14 = vadd.f32 %v10814_v57, %v16741_v48  ;;  %v8215_v31 = vpop.f32.mrb[47].mxu1  ;;  %v8970_v59 = vunpack.c.0.s8 %v8969_v37  ;;  %v8850_v37 = vld [vmem:[%s15912_s0 + $0x58] sm:$0xff] }
 0xe29   : > { %v8216_v27 = vadd.f32 %v16741_v48, %v8215_v31 }
 0xe2a   : > { %v8404_v28 = vpack.c.bf16 %v8224_v14, %v8221_v52  ;;  %v8973_v57 = vsub.s32 %v8970_v59, %v8972_v20 }
 0xe2b   : > { %v8403_v2 = vpack.c.bf16 %v8216_v27, %v8213_v16 }
 0xe2d   : > { %v10817_v53 = vpop.f32.mrb[48].mxu1  ;;  %10895 = vmatprep.mubr.msk.bf16.mxu0 %vm2102_vm0, %v8403_v2  ;;  %v8992_v2 = vsub.s32 0, %v8972_v20 }
 0xe2e   : > { %v8228_v60 = vpop.f32.mrb[49].mxu1  ;;  %10896 = vmatmul.mubr.msk.bf16.gmra.mrb[44].mxu0 %vm2102_vm0, %v8404_v28  ;;  %v8237_v3 = vadd.f32 %v10817_v53, %v16741_v48 }
 0xe2f   : > { %v10818_v21 = vpop.f32.mrb[50].mxu1  ;;  %v8229_v38 = vadd.f32 %v16741_v48, %v8228_v60  ;;  %v16844_v60 = vld [vmem:[%s17190_s19] ss:$0 sm:$0xff] }
 0xe30   : > { %v8240_v44 = vadd.f32 %v10818_v21, %v16741_v48  ;;  %v8231_v19 = vpop.f32.mrb[51].mxu1 }
 0xe31   : > { %v8232_v63 = vadd.f32 %v16741_v48, %v8231_v19 }
 0xe32   : > { %v8406_v36 = vpack.c.bf16 %v8240_v44, %v8237_v3  ;;  %v8841_v44 = vld [vmem:[%s15912_s0 + $0x10] sm:$0xff] }
 0xe33   : > { %v8405_v32 = vpack.c.bf16 %v8232_v63, %v8229_v38  ;;  %v8839_v63 = vld [vmem:[%s15912_s0] sm:$0xff] }
 0xe35   : > { %v10821_v7 = vpop.f32.mrb[52].mxu1  ;;  %10899 = vmatprep.mubr.msk.bf16.mxu0 %vm2102_vm0, %v8405_v32 }
 0xe36   : > { %v8244_v61 = vpop.f32.mrb[53].mxu1  ;;  %10900 = vmatmul.mubr.msk.bf16.gmra.mrb[48].mxu0 %vm2102_vm0, %v8406_v36  ;;  %v8253_v0 = vadd.f32 %v10821_v7, %v16741_v48  ;;  %v8842_v7 = vld [vmem:[%s15912_s0 + $0x18] sm:$0xff] }
 0xe37   : > { %v10822_v13 = vpop.f32.mrb[54].mxu1  ;;  %v8245_v35 = vadd.f32 %v16741_v48, %v8244_v61 }
 0xe38   : > { %v8256_v17 = vadd.f32 %v10822_v13, %v16741_v48  ;;  %v8247_v30 = vpop.f32.mrb[55].mxu1 }
 0xe39   : > { %v8248_v5 = vadd.f32 %v16741_v48, %v8247_v30  ;;  %v8840_v30 = vld [vmem:[%s15912_s0 + $0x8] sm:$0xff] }
 0xe3a   : > { %v8408_v12 = vpack.c.bf16 %v8256_v17, %v8253_v0 }
 0xe3b   : > { %v8407_v56 = vpack.c.bf16 %v8248_v5, %v8245_v35 }
 0xe3d   : > { %v10825_v46 = vpop.f32.mrb[56].mxu1  ;;  %10903 = vmatprep.mubr.msk.bf16.mxu0 %vm2102_vm0, %v8407_v56 }
 0xe3e   : > { %v8260_v62 = vpop.f32.mrb[57].mxu1  ;;  %10904 = vmatmul.mubr.msk.bf16.gmra.mrb[52].mxu0 %vm2102_vm0, %v8408_v12  ;;  %v8269_v51 = vadd.f32 %v10825_v46, %v16741_v48 }
 0xe3f   : > { %v10826_v29 = vpop.f32.mrb[58].mxu1  ;;  %v8261_v58 = vadd.f32 %v16741_v48, %v8260_v62 }
 0xe40   : > { %v8272_v54 = vadd.f32 %v10826_v29, %v16741_v48  ;;  %v8263_v10 = vpop.f32.mrb[59].mxu1 }
 0xe41   : > { %v8264_v8 = vadd.f32 %v16741_v48, %v8263_v10  ;;  %v8845_v10 = vld [vmem:[%s15912_s0 + $0x30] sm:$0xff] }
 0xe42   : > { %v8410_v45 = vpack.c.bf16 %v8272_v54, %v8269_v51 }
 0xe43   : > { %v8409_v50 = vpack.c.bf16 %v8264_v8, %v8261_v58 }
 0xe45   : > { %v10829_v26 = vpop.f32.mrb[60].mxu1  ;;  %10907 = vmatprep.mubr.msk.bf16.mxu0 %vm2102_vm0, %v8409_v50 }
 0xe46   : > { %v8276_v9 = vpop.f32.mrb[61].mxu1  ;;  %10908 = vmatmul.mubr.msk.bf16.gmra.mrb[56].mxu0 %vm2102_vm0, %v8410_v45  ;;  %v8285_v47 = vadd.f32 %v10829_v26, %v16741_v48  ;;  %v8843_v45 = vld [vmem:[%s15912_s0 + $0x20] sm:$0xff] }
 0xe47   : > { %v10830_v33 = vpop.f32.mrb[62].mxu1  ;;  %v8277_v40 = vadd.f32 %v16741_v48, %v8276_v9  ;;  %v8846_v9 = vld [vmem:[%s15912_s0 + $0x38] sm:$0xff] }
 0xe48   : > { %v8288_v39 = vadd.f32 %v10830_v33, %v16741_v48  ;;  %v8279_v49 = vpop.f32.mrb[63].mxu1 }
 0xe49   : > { %v8280_v15 = vadd.f32 %v16741_v48, %v8279_v49  ;;  %v8844_v49 = vld [vmem:[%s15912_s0 + $0x28] sm:$0xff] }
 0xe4a   : > { %v8412_v34 = vpack.c.bf16 %v8288_v39, %v8285_v47 }
 0xe4b   : > { %v8411_v11 = vpack.c.bf16 %v8280_v15, %v8277_v40 }
 0xe4d   : > { %v10833_v43 = vpop.f32.mrb[64].mxu1  ;;  %10911 = vmatprep.mubr.msk.bf16.mxu0 %vm2102_vm0, %v8411_v11 }
 0xe4e   : > { %v8292_v41 = vpop.f32.mrb[65].mxu1  ;;  %10912 = vmatmul.mubr.msk.bf16.gmra.mrb[60].mxu0 %vm2102_vm0, %v8412_v34  ;;  %v8301_v1 = vadd.f32 %v10833_v43, %v16741_v48 }
 0xe4f   : > { %v10834_v18 = vpop.f32.mrb[66].mxu1  ;;  %v8293_v22 = vadd.f32 %v16741_v48, %v8292_v41 }
 0xe50   : > { %v8304_v6 = vadd.f32 %v10834_v18, %v16741_v48  ;;  %v8295_v4 = vpop.f32.mrb[67].mxu1 }
 0xe51   : > { %v8296_v25 = vadd.f32 %v16741_v48, %v8295_v4  ;;  %v8849_v4 = vld [vmem:[%s15912_s0 + $0x50] sm:$0xff] }
 0xe52   : > { %v8414_v42 = vpack.c.bf16 %v8304_v6, %v8301_v1 }
 0xe53   : > { %v8413_v24 = vpack.c.bf16 %v8296_v25, %v8293_v22 }
 0xe55   : > { %10915 = vmatprep.mubr.msk.bf16.mxu0 %vm2102_vm0, %v8413_v24 }
 0xe56   : > { %10916 = vmatmul.mubr.msk.bf16.gmra.mrb[64].mxu0 %vm2102_vm0, %v8414_v42  ;;  %v8847_v42 = vld [vmem:[%s15912_s0 + $0x40] sm:$0xff] }
 0xe9d   : > { %v8377_v52 = vpop.f32.mrb[0].mxu0 }
 0xe9e   : > { %v8974_v14 = vrot.slane %v8377_v52, %v8973_v57  ;;  %v10845_v31 = vpop.f32.mrb[1].mxu0 }
 0xe9f   : > { %v8380_v16 = vpop.f32.mrb[2].mxu0 }
 0xea0   : > { %v8975_v48 = vcombine.high %v8974_v14, %v8974_v14  ;;  %v10846_v27 = vpop.f32.mrb[3].mxu0  ;;  %v8982_v21 = vrot.slane %v8974_v14, %v8973_v57 }
 0xea2   : > { %v8989_v28 = vrot.slane %v8975_v48, %v8973_v57  ;;  %v16851_v61 = vrot.slane %v8982_v21, %v8992_v2  ;;  %v8848_v57 = vld [vmem:[%s15912_s0 + $0x48] sm:$0xff] }
 0xea4   : > { %v16839_v53 = vrot.slane %v8989_v28, %v8992_v2 }
 0xeb1   : > { %v10857_v3 = vpop.f32.mrb[4].mxu0 }
 0xeb2   : > { %v8593_v19 = vadd.f32 %v10857_v3, %v16844_v60  ;;  %v8584_v38 = vpop.f32.mrb[5].mxu0  ;;  %v8853_v3 = vld [vmem:[%s15912_s0 + $0x70] sm:$0xff] }
 0xeb3   : > { %v8585_v36 = vadd.f32 %v16844_v60, %v8584_v38  ;;  %v10858_v32 = vpop.f32.mrb[6].mxu0  ;;  %v8851_v38 = vld [vmem:[%s15912_s0 + $0x60] sm:$0xff] }
 0xeb4   : > { %v8905_v13 = vadd.f32 %v8841_v44, %v8593_v19  ;;  %v8596_v0 = vadd.f32 %v10858_v32, %v16844_v60  ;;  %v8587_v17 = vpop.f32.mrb[7].mxu0  ;;  %v8854_v32 = vld [vmem:[%s15912_s0 + $0x78] sm:$0xff] }
 0xeb5   : > { %v8903_v35 = vadd.f32 %v8839_v63, %v8585_v36  ;;  %v8588_v5 = vadd.f32 %v16844_v60, %v8587_v17  ;;  %v8852_v17 = vld [vmem:[%s15912_s0 + $0x68] sm:$0xff] }
 0xeb6   : > { %v9002_v12 = vadd.f32 %v16851_v61, %v8905_v13  ;;  %v8906_v56 = vadd.f32 %v8842_v7, %v8596_v0 }
 0xeb7   : > { %v9000_v46 = vadd.f32 %v16851_v61, %v8903_v35  ;;  %v8904_v62 = vadd.f32 %v8840_v30, %v8588_v5 }
 0xeb8   : > { %9066 = vst.msk [vmem:[%s15912_s0 + $0x10] sm:$0xff] %vm2102_vm0, %v9002_v12  ;;  %v9003_v29 = vadd.f32 %v16851_v61, %v8906_v56 }
 0xeb9   : > { %9064 = vst.msk [vmem:[%s15912_s0] sm:$0xff] %vm2102_vm0, %v9000_v46  ;;  %v9001_v51 = vadd.f32 %v16851_v61, %v8904_v62  ;;  %v10861_v54 = vpop.f32.mrb[8].mxu0 }
 0xeba   : > { %9067 = vst.msk [vmem:[%s15912_s0 + $0x18] sm:$0xff] %vm2102_vm0, %v9003_v29  ;;  %v8609_v58 = vadd.f32 %v10861_v54, %v16844_v60  ;;  %v8600_v8 = vpop.f32.mrb[9].mxu0  ;;  %v8857_v54 = vld [vmem:[%s15912_s0 + $0x90] sm:$0xff] }
 0xebb   : > { %9065 = vst.msk [vmem:[%s15912_s0 + $0x8] sm:$0xff] %vm2102_vm0, %v9001_v51  ;;  %v8601_v50 = vadd.f32 %v16844_v60, %v8600_v8  ;;  %v10862_v26 = vpop.f32.mrb[10].mxu0  ;;  %v8855_v8 = vld [vmem:[%s15912_s0 + $0x80] sm:$0xff] }
 0xebc   : > { %v8909_v33 = vadd.f32 %v8845_v10, %v8609_v58  ;;  %v8612_v47 = vadd.f32 %v10862_v26, %v16844_v60  ;;  %v8603_v39 = vpop.f32.mrb[11].mxu0  ;;  %v8858_v26 = vld [vmem:[%s15912_s0 + $0x98] sm:$0xff] }
 0xebd   : > { %v8907_v40 = vadd.f32 %v8843_v45, %v8601_v50  ;;  %v8604_v15 = vadd.f32 %v16844_v60, %v8603_v39  ;;  %v8856_v39 = vld [vmem:[%s15912_s0 + $0x88] sm:$0xff] }
 0xebe   : > { %v9006_v34 = vadd.f32 %v16851_v61, %v8909_v33  ;;  %v8910_v11 = vadd.f32 %v8846_v9, %v8612_v47 }
 0xebf   : > { %v9004_v43 = vadd.f32 %v16851_v61, %v8907_v40  ;;  %v8908_v41 = vadd.f32 %v8844_v49, %v8604_v15 }
 0xec0   : > { %9070 = vst.msk [vmem:[%s15912_s0 + $0x30] sm:$0xff] %vm2102_vm0, %v9006_v34  ;;  %v9007_v18 = vadd.f32 %v16851_v61, %v8910_v11 }
 0xec1   : > { %9068 = vst.msk [vmem:[%s15912_s0 + $0x20] sm:$0xff] %vm2102_vm0, %v9004_v43  ;;  %v9005_v1 = vadd.f32 %v16851_v61, %v8908_v41  ;;  %v10865_v6 = vpop.f32.mrb[12].mxu0 }
 0xec2   : > { %9071 = vst.msk [vmem:[%s15912_s0 + $0x38] sm:$0xff] %vm2102_vm0, %v9007_v18  ;;  %v8625_v22 = vadd.f32 %v10865_v6, %v16844_v60  ;;  %v8616_v25 = vpop.f32.mrb[13].mxu0  ;;  %v8861_v6 = vld [vmem:[%s15912_s0 + $0xb0] sm:$0xff] }
 0xec3   : > { %9069 = vst.msk [vmem:[%s15912_s0 + $0x28] sm:$0xff] %vm2102_vm0, %v9005_v1  ;;  %v8617_v24 = vadd.f32 %v16844_v60, %v8616_v25  ;;  %v10866_v23 = vpop.f32.mrb[14].mxu0  ;;  %v8859_v25 = vld [vmem:[%s15912_s0 + $0xa0] sm:$0xff] }
 0xec4   : > { %v8913_v55 = vadd.f32 %v8849_v4, %v8625_v22  ;;  %v8628_v59 = vadd.f32 %v10866_v23, %v16844_v60  ;;  %v8619_v20 = vpop.f32.mrb[15].mxu0  ;;  %v8862_v23 = vld [vmem:[%s15912_s0 + $0xb8] sm:$0xff] }
 0xec5   : > { %v8911_v52 = vadd.f32 %v8847_v42, %v8617_v24  ;;  %v8620_v14 = vadd.f32 %v16844_v60, %v8619_v20  ;;  %v8860_v20 = vld [vmem:[%s15912_s0 + $0xa8] sm:$0xff] }
 0xec6   : > { %v9010_v31 = vadd.f32 %v16851_v61, %v8913_v55  ;;  %v8914_v16 = vadd.f32 %v8850_v37, %v8628_v59 }
 0xec7   : > { %v9008_v48 = vadd.f32 %v16851_v61, %v8911_v52  ;;  %v8912_v27 = vadd.f32 %v8848_v57, %v8620_v14 }
 0xec8   : > { %9074 = vst.msk [vmem:[%s15912_s0 + $0x50] sm:$0xff] %vm2102_vm0, %v9010_v31  ;;  %v9011_v28 = vadd.f32 %v16851_v61, %v8914_v16 }
 0xec9   : > { %9072 = vst.msk [vmem:[%s15912_s0 + $0x40] sm:$0xff] %vm2102_vm0, %v9008_v48  ;;  %v9009_v2 = vadd.f32 %v16851_v61, %v8912_v27  ;;  %v10869_v21 = vpop.f32.mrb[16].mxu0 }
 0xeca   : > { %9075 = vst.msk [vmem:[%s15912_s0 + $0x58] sm:$0xff] %vm2102_vm0, %v9011_v28  ;;  %v8641_v44 = vadd.f32 %v10869_v21, %v16844_v60  ;;  %v8632_v19 = vpop.f32.mrb[17].mxu0  ;;  %v8865_v21 = vld [vmem:[%s15912_s0 + $0xd0] sm:$0xff] }
 0xecb   : > { %9073 = vst.msk [vmem:[%s15912_s0 + $0x48] sm:$0xff] %vm2102_vm0, %v9009_v2  ;;  %v8633_v63 = vadd.f32 %v16844_v60, %v8632_v19  ;;  %v10870_v36 = vpop.f32.mrb[18].mxu0  ;;  %v8863_v19 = vld [vmem:[%s15912_s0 + $0xc0] sm:$0xff] }
 0xecc   : > { %v8917_v7 = vadd.f32 %v8853_v3, %v8641_v44  ;;  %v8644_v13 = vadd.f32 %v10870_v36, %v16844_v60  ;;  %v8635_v0 = vpop.f32.mrb[19].mxu0  ;;  %v8866_v36 = vld [vmem:[%s15912_s0 + $0xd8] sm:$0xff] }
 0xecd   : > { %v8915_v30 = vadd.f32 %v8851_v38, %v8633_v63  ;;  %v8636_v35 = vadd.f32 %v16844_v60, %v8635_v0  ;;  %v8864_v0 = vld [vmem:[%s15912_s0 + $0xc8] sm:$0xff] }
 0xece   : > { %v9014_v5 = vadd.f32 %v16851_v61, %v8917_v7  ;;  %v8918_v12 = vadd.f32 %v8854_v32, %v8644_v13 }
 0xecf   : > { %v9012_v56 = vadd.f32 %v16851_v61, %v8915_v30  ;;  %v8916_v46 = vadd.f32 %v8852_v17, %v8636_v35 }
 0xed0   : > { %9078 = vst.msk [vmem:[%s15912_s0 + $0x70] sm:$0xff] %vm2102_vm0, %v9014_v5  ;;  %v9015_v62 = vadd.f32 %v16851_v61, %v8918_v12 }
 0xed1   : > { %9076 = vst.msk [vmem:[%s15912_s0 + $0x60] sm:$0xff] %vm2102_vm0, %v9012_v56  ;;  %v9013_v29 = vadd.f32 %v16851_v61, %v8916_v46  ;;  %v10873_v51 = vpop.f32.mrb[20].mxu0 }
 0xed2   : > { %9079 = vst.msk [vmem:[%s15912_s0 + $0x78] sm:$0xff] %vm2102_vm0, %v9015_v62  ;;  %v8657_v10 = vadd.f32 %v10873_v51, %v16844_v60  ;;  %v8648_v58 = vpop.f32.mrb[21].mxu0  ;;  %v8869_v51 = vld [vmem:[%s15912_s0 + $0xf0] sm:$0xff] }
 0xed3   : > { %9077 = vst.msk [vmem:[%s15912_s0 + $0x68] sm:$0xff] %vm2102_vm0, %v9013_v29  ;;  %v8649_v45 = vadd.f32 %v16844_v60, %v8648_v58  ;;  %v10874_v50 = vpop.f32.mrb[22].mxu0  ;;  %v8867_v58 = vld [vmem:[%s15912_s0 + $0xe0] sm:$0xff] }
 0xed4   : > { %v8921_v9 = vadd.f32 %v8857_v54, %v8657_v10  ;;  %v8660_v33 = vadd.f32 %v10874_v50, %v16844_v60  ;;  %v8651_v47 = vpop.f32.mrb[23].mxu0  ;;  %v8870_v50 = vld [vmem:[%s15912_s0 + $0xf8] sm:$0xff] }
 0xed5   : > { %v8919_v49 = vadd.f32 %v8855_v8, %v8649_v45  ;;  %v8652_v40 = vadd.f32 %v16844_v60, %v8651_v47  ;;  %v8868_v47 = vld [vmem:[%s15912_s0 + $0xe8] sm:$0xff] }
 0xed6   : > { %v9018_v15 = vadd.f32 %v16851_v61, %v8921_v9  ;;  %v8922_v34 = vadd.f32 %v8858_v26, %v8660_v33 }
 0xed7   : > { %v9016_v11 = vadd.f32 %v16851_v61, %v8919_v49  ;;  %v8920_v43 = vadd.f32 %v8856_v39, %v8652_v40 }
 0xed8   : > { %9082 = vst.msk [vmem:[%s15912_s0 + $0x90] sm:$0xff] %vm2102_vm0, %v9018_v15  ;;  %v9019_v41 = vadd.f32 %v16851_v61, %v8922_v34 }
 0xed9   : > { %9080 = vst.msk [vmem:[%s15912_s0 + $0x80] sm:$0xff] %vm2102_vm0, %v9016_v11  ;;  %v9017_v18 = vadd.f32 %v16851_v61, %v8920_v43  ;;  %v10877_v1 = vpop.f32.mrb[24].mxu0 }
 0xeda   : > { %9083 = vst.msk [vmem:[%s15912_s0 + $0x98] sm:$0xff] %vm2102_vm0, %v9019_v41  ;;  %v8673_v4 = vadd.f32 %v10877_v1, %v16844_v60  ;;  %v8664_v22 = vpop.f32.mrb[25].mxu0  ;;  %v8873_v1 = vld [vmem:[%s15912_s0 + $0x110] sm:$0xff] }
 0xedb   : > { %9081 = vst.msk [vmem:[%s15912_s0 + $0x88] sm:$0xff] %vm2102_vm0, %v9017_v18  ;;  %v8665_v42 = vadd.f32 %v16844_v60, %v8664_v22  ;;  %v10878_v24 = vpop.f32.mrb[26].mxu0  ;;  %v8871_v22 = vld [vmem:[%s15912_s0 + $0x100] sm:$0xff] }
 0xedc   : > { %v8925_v37 = vadd.f32 %v8861_v6, %v8673_v4  ;;  %v8676_v55 = vadd.f32 %v10878_v24, %v16844_v60  ;;  %v8667_v59 = vpop.f32.mrb[27].mxu0  ;;  %v8874_v24 = vld [vmem:[%s15912_s0 + $0x118] sm:$0xff] }
 0xedd   : > { %v8923_v57 = vadd.f32 %v8859_v25, %v8665_v42  ;;  %v8668_v52 = vadd.f32 %v16844_v60, %v8667_v59 }
 0xede   : > { %v9022_v14 = vadd.f32 %v16851_v61, %v8925_v37  ;;  %v8926_v31 = vadd.f32 %v8862_v23, %v8676_v55  ;;  %v8872_v55 = vld [vmem:[%s15912_s0 + $0x108] sm:$0xff] }
 0xedf   : > { %v9020_v16 = vadd.f32 %v16851_v61, %v8923_v57  ;;  %v8924_v48 = vadd.f32 %v8860_v20, %v8668_v52 }
 0xee0   : > { %9086 = vst.msk [vmem:[%s15912_s0 + $0xb0] sm:$0xff] %vm2102_vm0, %v9022_v14  ;;  %v9023_v27 = vadd.f32 %v16851_v61, %v8926_v31 }
 0xee1   : > { %9084 = vst.msk [vmem:[%s15912_s0 + $0xa0] sm:$0xff] %vm2102_vm0, %v9020_v16  ;;  %v9021_v28 = vadd.f32 %v16851_v61, %v8924_v48  ;;  %v10881_v2 = vpop.f32.mrb[28].mxu0 }
 0xee2   : > { %9087 = vst.msk [vmem:[%s15912_s0 + $0xb8] sm:$0xff] %vm2102_vm0, %v9023_v27  ;;  %v8689_v3 = vadd.f32 %v10881_v2, %v16844_v60  ;;  %v8680_v44 = vpop.f32.mrb[29].mxu0 }
 0xee3   : > { %9085 = vst.msk [vmem:[%s15912_s0 + $0xa8] sm:$0xff] %vm2102_vm0, %v9021_v28  ;;  %v8681_v38 = vadd.f32 %v16844_v60, %v8680_v44  ;;  %v10882_v63 = vpop.f32.mrb[30].mxu0  ;;  %v8877_v28 = vld [vmem:[%s15912_s0 + $0x130] sm:$0xff] }
 0xee4   : > { %v8929_v32 = vadd.f32 %v8865_v21, %v8689_v3  ;;  %v8692_v7 = vadd.f32 %v10882_v63, %v16844_v60  ;;  %v8683_v13 = vpop.f32.mrb[31].mxu0  ;;  %v8875_v3 = vld [vmem:[%s15912_s0 + $0x120] sm:$0xff] }
 0xee5   : > { %v8927_v17 = vadd.f32 %v8863_v19, %v8681_v38  ;;  %v8684_v30 = vadd.f32 %v16844_v60, %v8683_v13  ;;  %v8878_v38 = vld [vmem:[%s15912_s0 + $0x138] sm:$0xff] }
 0xee6   : > { %v9026_v35 = vadd.f32 %v16851_v61, %v8929_v32  ;;  %v8930_v5 = vadd.f32 %v8866_v36, %v8692_v7  ;;  %v8876_v7 = vld [vmem:[%s15912_s0 + $0x128] sm:$0xff] }
 0xee7   : > { %v9024_v12 = vadd.f32 %v16851_v61, %v8927_v17  ;;  %v8928_v56 = vadd.f32 %v8864_v0, %v8684_v30 }
 0xee8   : > { %9090 = vst.msk [vmem:[%s15912_s0 + $0xd0] sm:$0xff] %vm2102_vm0, %v9026_v35  ;;  %v9027_v46 = vadd.f32 %v16851_v61, %v8930_v5 }
 0xee9   : > { %9088 = vst.msk [vmem:[%s15912_s0 + $0xc0] sm:$0xff] %vm2102_vm0, %v9024_v12  ;;  %v9025_v62 = vadd.f32 %v16851_v61, %v8928_v56  ;;  %v10885_v29 = vpop.f32.mrb[32].mxu0 }
 0xeea   : > { %9091 = vst.msk [vmem:[%s15912_s0 + $0xd8] sm:$0xff] %vm2102_vm0, %v9027_v46  ;;  %v8705_v54 = vadd.f32 %v10885_v29, %v16844_v60  ;;  %v8696_v10 = vpop.f32.mrb[33].mxu0 }
 0xeeb   : > { %9089 = vst.msk [vmem:[%s15912_s0 + $0xc8] sm:$0xff] %vm2102_vm0, %v9025_v62  ;;  %v8697_v8 = vadd.f32 %v16844_v60, %v8696_v10  ;;  %v10886_v45 = vpop.f32.mrb[34].mxu0  ;;  %v8881_v62 = vld [vmem:[%s15912_s0 + $0x150] sm:$0xff] }
 0xeec   : > { %v8933_v26 = vadd.f32 %v8869_v51, %v8705_v54  ;;  %v8708_v9 = vadd.f32 %v10886_v45, %v16844_v60  ;;  %v8699_v33 = vpop.f32.mrb[35].mxu0  ;;  %v8879_v54 = vld [vmem:[%s15912_s0 + $0x140] sm:$0xff] }
 0xeed   : > { %v8931_v39 = vadd.f32 %v8867_v58, %v8697_v8  ;;  %v8700_v49 = vadd.f32 %v16844_v60, %v8699_v33  ;;  %v8882_v8 = vld [vmem:[%s15912_s0 + $0x158] sm:$0xff] }
 0xeee   : > { %v9030_v40 = vadd.f32 %v16851_v61, %v8933_v26  ;;  %v8934_v15 = vadd.f32 %v8870_v50, %v8708_v9  ;;  %v8880_v9 = vld [vmem:[%s15912_s0 + $0x148] sm:$0xff] }
 0xeef   : > { %v9028_v34 = vadd.f32 %v16851_v61, %v8931_v39  ;;  %v8932_v11 = vadd.f32 %v8868_v47, %v8700_v49 }
 0xef0   : > { %9094 = vst.msk [vmem:[%s15912_s0 + $0xf0] sm:$0xff] %vm2102_vm0, %v9030_v40  ;;  %v9031_v43 = vadd.f32 %v16851_v61, %v8934_v15 }
 0xef1   : > { %9092 = vst.msk [vmem:[%s15912_s0 + $0xe0] sm:$0xff] %vm2102_vm0, %v9028_v34  ;;  %v9029_v41 = vadd.f32 %v16851_v61, %v8932_v11  ;;  %v10889_v18 = vpop.f32.mrb[36].mxu0 }
 0xef2   : > { %9095 = vst.msk [vmem:[%s15912_s0 + $0xf8] sm:$0xff] %vm2102_vm0, %v9031_v43  ;;  %v8721_v6 = vadd.f32 %v10889_v18, %v16844_v60  ;;  %v8712_v4 = vpop.f32.mrb[37].mxu0 }
 0xef3   : > { %9093 = vst.msk [vmem:[%s15912_s0 + $0xe8] sm:$0xff] %vm2102_vm0, %v9029_v41  ;;  %v8713_v25 = vadd.f32 %v16844_v60, %v8712_v4  ;;  %v10890_v42 = vpop.f32.mrb[38].mxu0  ;;  %v8885_v41 = vld [vmem:[%s15912_s0 + $0x170] sm:$0xff] }
 0xef4   : > { %v8937_v23 = vadd.f32 %v8873_v1, %v8721_v6  ;;  %v8724_v61 = vadd.f32 %v10890_v42, %v16844_v60  ;;  %v8715_v37 = vpop.f32.mrb[39].mxu0  ;;  %v8883_v6 = vld [vmem:[%s15912_s0 + $0x160] sm:$0xff] }
 0xef5   : > { %v8935_v59 = vadd.f32 %v8871_v22, %v8713_v25  ;;  %v8716_v20 = vadd.f32 %v16844_v60, %v8715_v37  ;;  %v8886_v25 = vld [vmem:[%s15912_s0 + $0x178] sm:$0xff] }
 0xef6   : > { %v9034_v57 = vadd.f32 %v16839_v53, %v8937_v23  ;;  %v8938_v52 = vadd.f32 %v8874_v24, %v8724_v61  ;;  %v8884_v61 = vld [vmem:[%s15912_s0 + $0x168] sm:$0xff] }
 0xef7   : > { %v9032_v14 = vadd.f32 %v16839_v53, %v8935_v59  ;;  %v8936_v31 = vadd.f32 %v8872_v55, %v8716_v20 }
 0xef8   : > { %9098 = vst.msk [vmem:[%s15912_s0 + $0x110] sm:$0xff] %vm2102_vm0, %v9034_v57  ;;  %v9035_v16 = vadd.f32 %v16839_v53, %v8938_v52 }
 0xef9   : > { %9096 = vst.msk [vmem:[%s15912_s0 + $0x100] sm:$0xff] %vm2102_vm0, %v9032_v14  ;;  %v9033_v48 = vadd.f32 %v16839_v53, %v8936_v31  ;;  %v10893_v27 = vpop.f32.mrb[40].mxu0 }
 0xefa   : > { %9099 = vst.msk [vmem:[%s15912_s0 + $0x118] sm:$0xff] %vm2102_vm0, %v9035_v16  ;;  %v8737_v2 = vadd.f32 %v10893_v27, %v16844_v60  ;;  %v8728_v21 = vpop.f32.mrb[41].mxu0 }
 0xefb   : > { %9097 = vst.msk [vmem:[%s15912_s0 + $0x108] sm:$0xff] %vm2102_vm0, %v9033_v48  ;;  %v8729_v44 = vadd.f32 %v16844_v60, %v8728_v21  ;;  %v10894_v19 = vpop.f32.mrb[42].mxu0  ;;  %v8889_v48 = vld [vmem:[%s15912_s0 + $0x190] sm:$0xff] }
 0xefc   : > { %v8941_v63 = vadd.f32 %v8877_v28, %v8737_v2  ;;  %v8740_v36 = vadd.f32 %v10894_v19, %v16844_v60  ;;  %v8731_v32 = vpop.f32.mrb[43].mxu0  ;;  %v8887_v2 = vld [vmem:[%s15912_s0 + $0x180] sm:$0xff] }
 0xefd   : > { %v8939_v13 = vadd.f32 %v8875_v3, %v8729_v44  ;;  %v8732_v0 = vadd.f32 %v16844_v60, %v8731_v32  ;;  %v8890_v44 = vld [vmem:[%s15912_s0 + $0x198] sm:$0xff] }
 0xefe   : > { %v9038_v17 = vadd.f32 %v16839_v53, %v8941_v63  ;;  %v8942_v30 = vadd.f32 %v8878_v38, %v8740_v36  ;;  %v8888_v36 = vld [vmem:[%s15912_s0 + $0x188] sm:$0xff] }
 0xeff   : > { %v9036_v35 = vadd.f32 %v16839_v53, %v8939_v13  ;;  %v8940_v5 = vadd.f32 %v8876_v7, %v8732_v0 }
 0xf00   : > { %9102 = vst.msk [vmem:[%s15912_s0 + $0x130] sm:$0xff] %vm2102_vm0, %v9038_v17  ;;  %v9039_v12 = vadd.f32 %v16839_v53, %v8942_v30 }
 0xf01   : > { %9100 = vst.msk [vmem:[%s15912_s0 + $0x120] sm:$0xff] %vm2102_vm0, %v9036_v35  ;;  %v9037_v56 = vadd.f32 %v16839_v53, %v8940_v5  ;;  %v10897_v46 = vpop.f32.mrb[44].mxu0 }
 0xf02   : > { %9103 = vst.msk [vmem:[%s15912_s0 + $0x138] sm:$0xff] %vm2102_vm0, %v9039_v12  ;;  %v8753_v29 = vadd.f32 %v10897_v46, %v16844_v60  ;;  %v8744_v51 = vpop.f32.mrb[45].mxu0 }
 0xf03   : > { %9101 = vst.msk [vmem:[%s15912_s0 + $0x128] sm:$0xff] %vm2102_vm0, %v9037_v56  ;;  %v8745_v10 = vadd.f32 %v16844_v60, %v8744_v51  ;;  %v10898_v58 = vpop.f32.mrb[46].mxu0  ;;  %v8893_v56 = vld [vmem:[%s15912_s0 + $0x1b0] sm:$0xff] }
 0xf04   : > { %v8945_v45 = vadd.f32 %v8881_v62, %v8753_v29  ;;  %v8756_v50 = vadd.f32 %v10898_v58, %v16844_v60  ;;  %v8747_v26 = vpop.f32.mrb[47].mxu0  ;;  %v8891_v29 = vld [vmem:[%s15912_s0 + $0x1a0] sm:$0xff] }
 0xf05   : > { %v8943_v33 = vadd.f32 %v8879_v54, %v8745_v10  ;;  %v8748_v47 = vadd.f32 %v16844_v60, %v8747_v26  ;;  %v8894_v10 = vld [vmem:[%s15912_s0 + $0x1b8] sm:$0xff] }
 0xf06   : > { %v9042_v39 = vadd.f32 %v16839_v53, %v8945_v45  ;;  %v8946_v49 = vadd.f32 %v8882_v8, %v8756_v50  ;;  %v8892_v50 = vld [vmem:[%s15912_s0 + $0x1a8] sm:$0xff] }
 0xf07   : > { %v9040_v40 = vadd.f32 %v16839_v53, %v8943_v33  ;;  %v8944_v15 = vadd.f32 %v8880_v9, %v8748_v47 }
 0xf08   : > { %9106 = vst.msk [vmem:[%s15912_s0 + $0x150] sm:$0xff] %vm2102_vm0, %v9042_v39  ;;  %v9043_v34 = vadd.f32 %v16839_v53, %v8946_v49 }
 0xf09   : > { %9104 = vst.msk [vmem:[%s15912_s0 + $0x140] sm:$0xff] %vm2102_vm0, %v9040_v40  ;;  %v9041_v11 = vadd.f32 %v16839_v53, %v8944_v15  ;;  %v10901_v43 = vpop.f32.mrb[48].mxu0 }
 0xf0a   : > { %9107 = vst.msk [vmem:[%s15912_s0 + $0x158] sm:$0xff] %vm2102_vm0, %v9043_v34  ;;  %v8769_v18 = vadd.f32 %v10901_v43, %v16844_v60  ;;  %v8760_v1 = vpop.f32.mrb[49].mxu0 }
 0xf0b   : > { %9105 = vst.msk [vmem:[%s15912_s0 + $0x148] sm:$0xff] %vm2102_vm0, %v9041_v11  ;;  %v8761_v4 = vadd.f32 %v16844_v60, %v8760_v1  ;;  %v10902_v22 = vpop.f32.mrb[50].mxu0  ;;  %v8897_v11 = vld [vmem:[%s15912_s0 + $0x1d0] sm:$0xff] }
 0xf0c   : > { %v8949_v42 = vadd.f32 %v8885_v41, %v8769_v18  ;;  %v8772_v24 = vadd.f32 %v10902_v22, %v16844_v60  ;;  %v8763_v23 = vpop.f32.mrb[51].mxu0  ;;  %v8895_v18 = vld [vmem:[%s15912_s0 + $0x1c0] sm:$0xff] }
 0xf0d   : > { %v8947_v37 = vadd.f32 %v8883_v6, %v8761_v4  ;;  %v8764_v55 = vadd.f32 %v16844_v60, %v8763_v23  ;;  %v8898_v4 = vld [vmem:[%s15912_s0 + $0x1d8] sm:$0xff] }
 0xf0e   : > { %v9046_v59 = vadd.f32 %v16839_v53, %v8949_v42  ;;  %v8950_v20 = vadd.f32 %v8886_v25, %v8772_v24  ;;  %v8896_v24 = vld [vmem:[%s15912_s0 + $0x1c8] sm:$0xff] }
 0xf0f   : > { %v9044_v57 = vadd.f32 %v16839_v53, %v8947_v37  ;;  %v8948_v52 = vadd.f32 %v8884_v61, %v8764_v55 }
 0xf10   : > { %9110 = vst.msk [vmem:[%s15912_s0 + $0x170] sm:$0xff] %vm2102_vm0, %v9046_v59  ;;  %v9047_v14 = vadd.f32 %v16839_v53, %v8950_v20 }
 0xf11   : > { %9108 = vst.msk [vmem:[%s15912_s0 + $0x160] sm:$0xff] %vm2102_vm0, %v9044_v57  ;;  %v9045_v31 = vadd.f32 %v16839_v53, %v8948_v52  ;;  %v10905_v16 = vpop.f32.mrb[52].mxu0 }
 0xf12   : > { %9111 = vst.msk [vmem:[%s15912_s0 + $0x178] sm:$0xff] %vm2102_vm0, %v9047_v14  ;;  %v8785_v27 = vadd.f32 %v10905_v16, %v16844_v60  ;;  %v8776_v28 = vpop.f32.mrb[53].mxu0 }
 0xf13   : > { %9109 = vst.msk [vmem:[%s15912_s0 + $0x168] sm:$0xff] %vm2102_vm0, %v9045_v31  ;;  %v8777_v21 = vadd.f32 %v16844_v60, %v8776_v28  ;;  %v10906_v3 = vpop.f32.mrb[54].mxu0  ;;  %v8901_v31 = vld [vmem:[%s15912_s0 + $0x1f0] sm:$0xff] }
 0xf14   : > { %v8953_v19 = vadd.f32 %v8889_v48, %v8785_v27  ;;  %v8788_v38 = vadd.f32 %v10906_v3, %v16844_v60  ;;  %v8779_v63 = vpop.f32.mrb[55].mxu0  ;;  %v8899_v27 = vld [vmem:[%s15912_s0 + $0x1e0] sm:$0xff] }
 0xf15   : > { %v8951_v32 = vadd.f32 %v8887_v2, %v8777_v21  ;;  %v8780_v7 = vadd.f32 %v16844_v60, %v8779_v63  ;;  %v8902_v21 = vld [vmem:[%s15912_s0 + $0x1f8] sm:$0xff] }
 0xf16   : > { %v9050_v13 = vadd.f32 %v16839_v53, %v8953_v19  ;;  %v8954_v0 = vadd.f32 %v8890_v44, %v8788_v38  ;;  %v8900_v38 = vld [vmem:[%s15912_s0 + $0x1e8] sm:$0xff] }
 0xf17   : > { %v9048_v17 = vadd.f32 %v16839_v53, %v8951_v32  ;;  %v8952_v30 = vadd.f32 %v8888_v36, %v8780_v7 }
 0xf18   : > { %9114 = vst.msk [vmem:[%s15912_s0 + $0x190] sm:$0xff] %vm2102_vm0, %v9050_v13  ;;  %v9051_v35 = vadd.f32 %v16839_v53, %v8954_v0 }
 0xf19   : > { %9112 = vst.msk [vmem:[%s15912_s0 + $0x180] sm:$0xff] %vm2102_vm0, %v9048_v17  ;;  %v9049_v5 = vadd.f32 %v16839_v53, %v8952_v30  ;;  %v10909_v12 = vpop.f32.mrb[56].mxu0 }
 0xf1a   : > { %9115 = vst.msk [vmem:[%s15912_s0 + $0x198] sm:$0xff] %vm2102_vm0, %v9051_v35  ;;  %v8801_v46 = vadd.f32 %v10909_v12, %v16844_v60  ;;  %v8792_v62 = vpop.f32.mrb[57].mxu0 }
 0xf1b   : > { %9113 = vst.msk [vmem:[%s15912_s0 + $0x188] sm:$0xff] %vm2102_vm0, %v9049_v5  ;;  %v8793_v51 = vadd.f32 %v16844_v60, %v8792_v62  ;;  %v10910_v54 = vpop.f32.mrb[58].mxu0 }
 0xf1c   : > { %v8957_v58 = vadd.f32 %v8893_v56, %v8801_v46  ;;  %v8804_v8 = vadd.f32 %v10910_v54, %v16844_v60  ;;  %v8795_v45 = vpop.f32.mrb[59].mxu0 }
 0xf1d   : > { %v8955_v26 = vadd.f32 %v8891_v29, %v8793_v51  ;;  %v8796_v9 = vadd.f32 %v16844_v60, %v8795_v45 }
 0xf1e   : > { %v9054_v33 = vadd.f32 %v16839_v53, %v8957_v58  ;;  %v8958_v47 = vadd.f32 %v8894_v10, %v8804_v8 }
 0xf1f   : > { %v9052_v39 = vadd.f32 %v16839_v53, %v8955_v26  ;;  %v8956_v49 = vadd.f32 %v8892_v50, %v8796_v9 }
 0xf20   : > { %9118 = vst.msk [vmem:[%s15912_s0 + $0x1b0] sm:$0xff] %vm2102_vm0, %v9054_v33  ;;  %v9055_v40 = vadd.f32 %v16839_v53, %v8958_v47 }
 0xf21   : > { %9116 = vst.msk [vmem:[%s15912_s0 + $0x1a0] sm:$0xff] %vm2102_vm0, %v9052_v39  ;;  %v9053_v15 = vadd.f32 %v16839_v53, %v8956_v49  ;;  %v10913_v34 = vpop.f32.mrb[60].mxu0 }
 0xf22   : > { %9119 = vst.msk [vmem:[%s15912_s0 + $0x1b8] sm:$0xff] %vm2102_vm0, %v9055_v40  ;;  %v8817_v43 = vadd.f32 %v10913_v34, %v16844_v60  ;;  %v8808_v41 = vpop.f32.mrb[61].mxu0 }
 0xf23   : > { %9117 = vst.msk [vmem:[%s15912_s0 + $0x1a8] sm:$0xff] %vm2102_vm0, %v9053_v15  ;;  %v8809_v1 = vadd.f32 %v16844_v60, %v8808_v41  ;;  %v10914_v6 = vpop.f32.mrb[62].mxu0 }
 0xf24   : > { %v8961_v22 = vadd.f32 %v8897_v11, %v8817_v43  ;;  %v8820_v25 = vadd.f32 %v10914_v6, %v16844_v60  ;;  %v8811_v42 = vpop.f32.mrb[63].mxu0 }
 0xf25   : > { %v8959_v23 = vadd.f32 %v8895_v18, %v8809_v1  ;;  %v8812_v61 = vadd.f32 %v16844_v60, %v8811_v42 }
 0xf26   : > { %v9058_v37 = vadd.f32 %v16839_v53, %v8961_v22  ;;  %v8962_v55 = vadd.f32 %v8898_v4, %v8820_v25 }
 0xf27   : > { %v9056_v59 = vadd.f32 %v16839_v53, %v8959_v23  ;;  %v8960_v20 = vadd.f32 %v8896_v24, %v8812_v61 }
 0xf28   : > { %9122 = vst.msk [vmem:[%s15912_s0 + $0x1d0] sm:$0xff] %vm2102_vm0, %v9058_v37  ;;  %v9059_v57 = vadd.f32 %v16839_v53, %v8962_v55 }
 0xf29   : > { %9120 = vst.msk [vmem:[%s15912_s0 + $0x1c0] sm:$0xff] %vm2102_vm0, %v9056_v59  ;;  %v9057_v52 = vadd.f32 %v16839_v53, %v8960_v20  ;;  %v10917_v14 = vpop.f32.mrb[64].mxu0 }
 0xf2a   : > { %9123 = vst.msk [vmem:[%s15912_s0 + $0x1d8] sm:$0xff] %vm2102_vm0, %v9059_v57  ;;  %v8833_v16 = vadd.f32 %v10917_v14, %v16844_v60  ;;  %v8824_v48 = vpop.f32.mrb[65].mxu0 }
 0xf2b   : > { %9121 = vst.msk [vmem:[%s15912_s0 + $0x1c8] sm:$0xff] %vm2102_vm0, %v9057_v52  ;;  %v8825_v28 = vadd.f32 %v16844_v60, %v8824_v48  ;;  %v10918_v2 = vpop.f32.mrb[66].mxu0 }
 0xf2c   : > { %v8965_v3 = vadd.f32 %v8901_v31, %v8833_v16  ;;  %v8836_v44 = vadd.f32 %v10918_v2, %v16844_v60  ;;  %v8827_v19 = vpop.f32.mrb[67].mxu0 }
 0xf2d   : > { %v8963_v63 = vadd.f32 %v8899_v27, %v8825_v28  ;;  %v8828_v36 = vadd.f32 %v16844_v60, %v8827_v19 }
 0xf2e   : > { %v9062_v32 = vadd.f32 %v16839_v53, %v8965_v3  ;;  %v8966_v7 = vadd.f32 %v8902_v21, %v8836_v44 }
 0xf2f   : > { %v9060_v13 = vadd.f32 %v16839_v53, %v8963_v63  ;;  %v8964_v0 = vadd.f32 %v8900_v38, %v8828_v36 }
 0xf30   : > { %9126 = vst.msk [vmem:[%s15912_s0 + $0x1f0] sm:$0xff] %vm2102_vm0, %v9062_v32  ;;  %v9063_v17 = vadd.f32 %v16839_v53, %v8966_v7 }
 0xf31   : > { %9124 = vst.msk [vmem:[%s15912_s0 + $0x1e0] sm:$0xff] %vm2102_vm0, %v9060_v13  ;;  %v9061_v30 = vadd.f32 %v16839_v53, %v8964_v0 }
 0xf32   : > { %9127 = vst.msk [vmem:[%s15912_s0 + $0x1f8] sm:$0xff] %vm2102_vm0, %v9063_v17 }
 0xf33   : > { %9125 = vst.msk [vmem:[%s15912_s0 + $0x1e8] sm:$0xff] %vm2102_vm0, %v9061_v30 }
 0xf34 PF: > { %s30_s1 = sadd.s32 1, %s11832_s1  }
 0xf35   : > { %p27_p5 = scmp.ge.s32.totalorder %s30_s1, 5  }
 0xf37   :  { %29 = sbr.rel (!%p27_p5) target bundleno = 6 (0x6), region = 167 }

</bundles_post_ra>
